<compile_context>
chip_gen: v5e
topology: v5e:2x2
jax: 0.10.0
libtpu: 0.0.40
codegen_flags: <defaults>
</compile_context>

<pallas_src>
import functools
import math

import jax
import jax.numpy as jnp
from jax import lax
from jax.experimental import pallas as pl
from jax.experimental.pallas import tpu as pltpu

_BF16 = jnp.bfloat16
_F32 = jnp.float32


# ----------------------------------------------------------------------------
# small helpers
# ----------------------------------------------------------------------------
def _round_up(x, m):
    return (x + m - 1) // m * m


def _hswish(x):
    return x * jnp.clip(x + 3.0, 0.0, 6.0) * (1.0 / 6.0)


def _rep_spec(a):
    """BlockSpec for a whole (replicated across the grid) array."""
    n = a.ndim
    return pl.BlockSpec(a.shape, lambda *_, _n=n: (0,) * _n)


def _pad_hw1(x3):
    """Zero-pad an (H, W, C) VMEM value by 1 on each spatial side (no HBM)."""
    H, W, C = x3.shape
    zc = jnp.zeros((H, 1, C), x3.dtype)
    x3 = jnp.concatenate([zc, x3, zc], axis=1)
    zr = jnp.zeros((1, W + 2, C), x3.dtype)
    return jnp.concatenate([zr, x3, zr], axis=0)


def _subsample2(h):
    """Even rows/cols of an (H, W, C) value (stride-2, pad-1 window alignment)."""
    H, W, C = h.shape
    OH, OW = (H - 1) // 2 + 1, (W - 1) // 2 + 1
    if 2 * OH > H:
        h = jnp.concatenate([h, jnp.zeros((2 * OH - H, W, C), h.dtype)], axis=0)
    if 2 * OW > W:
        h = jnp.concatenate([h, jnp.zeros((2 * OH, 2 * OW - W, C), h.dtype)], axis=1)
    return h.reshape(OH, 2, OW, 2, C)[:, 0, :, 0, :]


def _ln(x, g, b, eps=1e-5):
    mu = jnp.mean(x, axis=-1, keepdims=True)
    xc = x - mu
    var = jnp.mean(xc * xc, axis=-1, keepdims=True)
    return xc * lax.rsqrt(var + eps) * g + b


def _split_heads(x, heads, dh):
    return jnp.stack([x[:, h * dh:(h + 1) * dh] for h in range(heads)],
                     axis=0).astype(_BF16)


def _mha(q, k, v, heads):
    """Multi-head attention with all heads batched in single MXU dot_generals."""
    D = q.shape[-1]
    dh = D // heads
    q3 = _split_heads(q, heads, dh)        # (h, Lq, dh) bf16
    k3 = _split_heads(k, heads, dh)        # (h, Lk, dh)
    v3 = _split_heads(v, heads, dh)
    s = jnp.einsum('hqd,hkd->hqk', q3, k3,
                   preferred_element_type=_F32) * (dh ** -0.5)
    s = s - jnp.max(s, axis=-1, keepdims=True)
    p = jnp.exp(s)
    p = p * pl.reciprocal(jnp.sum(p, axis=-1, keepdims=True), approx=True)
    o = jnp.einsum('hqk,hkd->hqd', p.astype(_BF16), v3,
                   preferred_element_type=_F32)
    # concat-heads (Lq, D) f32; the caller applies ONE output projection.
    return jnp.concatenate([o[h] for h in range(heads)], axis=-1)


# ----------------------------------------------------------------------------
# Kernel 1: fused stem (3x3 s2 + BN + hswish) + bneck (grouped 3x3 + hswish +
#           1x1 + BN), one grid step per image.  Stem stride-2 is computed from
#           parity planes (no im2col, no strided loads); grouped-conv "repeat"
#           expansion is done in-kernel via reordered weights (no jnp.repeat).
# ----------------------------------------------------------------------------
def _stem_bneck_kernel(pee_ref, peo_ref, poe_ref, poo_ref,
                       wst_ref, s0_ref, b0_ref,
                       dww_ref, dwb_ref, pww_ref, s1_ref, b1_ref,
                       o_ref, *, OH, OW, repeat, stride):
    C0 = pee_ref.shape[-1]
    stem = wst_ref.shape[-1]
    planes = ((pee_ref[0], peo_ref[0]), (poe_ref[0], poo_ref[0]))   # bf16
    wst = wst_ref[...]                                              # (9, C0, stem)

    # --- stem: stride-2 3x3 conv as 9 accumulated matmuls on parity planes ---
    acc = jnp.zeros((OH * OW, stem), _F32)
    for ki in range(3):
        rp, ro = ki % 2, ki // 2
        for kj in range(3):
            cp, co = kj % 2, kj // 2
            win = planes[rp][cp][ro:ro + OH, co:co + OW, :]
            acc = acc + jnp.dot(win.reshape(OH * OW, C0), wst[ki * 3 + kj],
                                preferred_element_type=_F32)
    h0 = _hswish(acc * s0_ref[...] + b0_ref[...])                   # (OH*OW, stem)

    # --- bneck grouped 3x3 (cin-per-group=1, `repeat` outputs/group) + hswish,
    #     then 1x1 conv (+bias folded into BN shift), all VMEM resident ---
    xp = _pad_hw1(h0.reshape(OH, OW, stem))
    dww, dwb, pww = dww_ref[...], dwb_ref[...], pww_ref[...]
    y = None
    for r in range(repeat):
        a = jnp.zeros((OH, OW, stem), _F32)
        for ki in range(3):
            for kj in range(3):
                a = a + xp[ki:ki + OH, kj:kj + OW, :] * \
                    dww[r, ki * 3 + kj].reshape(1, 1, stem)
        h = _hswish(a + dwb[r].reshape(1, 1, stem))
        if stride == 2:
            # TODO(synk): compute the strided windows directly instead of subsampling.
            h = _subsample2(h)
        t = jnp.dot(h.reshape(-1, stem).astype(_BF16), pww[r],
                    preferred_element_type=_F32)
        y = t if y is None else y + t
    y = y * s1_ref[...] + b1_ref[...]
    o_ref[0] = y.astype(o_ref.dtype)


def stem_bneck(planes, params, OH, OW, repeat, stride):
    B = planes[0].shape[0]
    Ph, Pw, C0 = planes[0].shape[1:]
    out_c = params['bneck_pw_w'].shape[-1]
    OH2, OW2 = ((OH - 1) // 2 + 1, (OW - 1) // 2 + 1) if stride == 2 else (OH, OW)
    rep_args = (params['stem_w'], params['stem_s'], params['stem_b'],
                params['bneck_dw_w'], params['bneck_dw_b'], params['bneck_pw_w'],
                params['bneck_s'], params['bneck_b'])
    plane_spec = pl.BlockSpec((1, Ph, Pw, C0), lambda b: (b, 0, 0, 0))
    y = pl.pallas_call(
        functools.partial(_stem_bneck_kernel, OH=OH, OW=OW,
                          repeat=repeat, stride=stride),
        out_shape=jax.ShapeDtypeStruct((B, OH2 * OW2, out_c), _BF16),
        grid=(B,),
        in_specs=[plane_spec] * 4 + [_rep_spec(a) for a in rep_args],
        out_specs=pl.BlockSpec((1, OH2 * OW2, out_c), lambda b: (b, 0, 0)),
        compiler_params=pltpu.CompilerParams(dimension_semantics=("parallel",)),
    )(*planes, *rep_args)
    return y, OH2, OW2


# ----------------------------------------------------------------------------
# Kernel 2: fused MBConv (1x1 expand + BN + hswish -> 3x3 depthwise + BN +
#           hswish -> 1x1 project + BN [+ residual]), one grid step per image.
#           The expanded activation never leaves VMEM.
# ----------------------------------------------------------------------------
def _mbconv_kernel(x_ref, w1_ref, s1_ref, b1_ref, dw_ref, s2_ref, b2_ref,
                   w2_ref, s3_ref, b3_ref, o_ref, *, H, W, stride, residual):
    exp = w1_ref.shape[-1]
    x = x_ref[0]                                               # (HW, Cin) bf16
    h1 = jnp.dot(x, w1_ref[...], preferred_element_type=_F32)
    h1 = _hswish(h1 * s1_ref[...] + b1_ref[...])               # (HW, exp) f32

    # TODO(synk): C on the lane axis is lane-sparse for small `exp`; acceptable
    #             here since the dw conv is fully VMEM resident inside the fusion.
    xp = _pad_hw1(h1.reshape(H, W, exp))
    dw = dw_ref[...]                                           # (9, exp)
    a = jnp.zeros((H, W, exp), _F32)
    for ki in range(3):
        for kj in range(3):
            a = a + xp[ki:ki + H, kj:kj + W, :] * dw[ki * 3 + kj].reshape(1, 1, exp)
    h2 = _hswish(a * s2_ref[...].reshape(1, 1, exp) + b2_ref[...].reshape(1, 1, exp))
    if stride == 2:
        # TODO(synk): compute the strided windows directly rather than subsampling.
        h2 = _subsample2(h2)
    y = jnp.dot(h2.reshape(-1, exp).astype(_BF16), w2_ref[...],
                preferred_element_type=_F32)
    y = y * s3_ref[...] + b3_ref[...]
    if residual:
        y = y + x.astype(_F32)
    o_ref[0] = y.astype(o_ref.dtype)


def mbconv(x, mb, H, W, stride, residual):
    B, HW, Cin = x.shape
    out_c = mb['pw2_w'].shape[-1]
    OH, OW = ((H - 1) // 2 + 1, (W - 1) // 2 + 1) if stride == 2 else (H, W)
    rep_args = (mb['pw1_w'], mb['s1'], mb['b1'], mb['dw_w'], mb['s2'], mb['b2'],
                mb['pw2_w'], mb['s3'], mb['b3'])
    y = pl.pallas_call(
        functools.partial(_mbconv_kernel, H=H, W=W, stride=stride, residual=residual),
        out_shape=jax.ShapeDtypeStruct((B, OH * OW, out_c), _BF16),
        grid=(B,),
        in_specs=[pl.BlockSpec((1, HW, Cin), lambda b: (b, 0, 0))]
                 + [_rep_spec(a) for a in rep_args],
        out_specs=pl.BlockSpec((1, OH * OW, out_c), lambda b: (b, 0, 0)),
        compiler_params=pltpu.CompilerParams(dimension_semantics=("parallel",)),
    )(x, *rep_args)
    return y, OH, OW


# ----------------------------------------------------------------------------
# Kernel 3: fused token path (resnet2transformer cross-attn + transformer block)
# ----------------------------------------------------------------------------
def _token_block_kernel(z_ref, xf_ref,
                        m2f_wq_ref, m2f_wk_ref, m2f_wv_ref, m2f_wo_ref,
                        ln1g_ref, ln1b_ref,
                        t_wq_ref, t_wk_ref, t_wv_ref, t_wo_ref,
                        ln2g_ref, ln2b_ref, w1_ref, b1_ref, w2_ref, b2_ref,
                        o_ref, *, heads):
    z = z_ref[0].astype(_F32)                      # (L, D)
    xf = xf_ref[0]                                  # (HW, Cin) bf16
    zb = z.astype(_BF16)

    # resnet2transformer: tokens attend over feature-map pixels
    q = jnp.dot(zb, m2f_wq_ref[...], preferred_element_type=_F32)
    k = jnp.dot(xf, m2f_wk_ref[...], preferred_element_type=_F32)
    v = jnp.dot(xf, m2f_wv_ref[...], preferred_element_type=_F32)
    att = _mha(q, k, v, heads)
    z_hid = z + jnp.dot(att.astype(_BF16), m2f_wo_ref[...],
                        preferred_element_type=_F32)

    # transformer encoder block (pre-LN MHSA + hswish MLP)
    zn = _ln(z_hid, ln1g_ref[...], ln1b_ref[...]).astype(_BF16)
    q = jnp.dot(zn, t_wq_ref[...], preferred_element_type=_F32)
    k = jnp.dot(zn, t_wk_ref[...], preferred_element_type=_F32)
    v = jnp.dot(zn, t_wv_ref[...], preferred_element_type=_F32)
    att = _mha(q, k, v, heads)
    z1 = z_hid + jnp.dot(att.astype(_BF16), t_wo_ref[...],
                         preferred_element_type=_F32)
    zn2 = _ln(z1, ln2g_ref[...], ln2b_ref[...]).astype(_BF16)
    h = _hswish(jnp.dot(zn2, w1_ref[...], preferred_element_type=_F32) + b1_ref[...])
    z_out = z1 + jnp.dot(h.astype(_BF16), w2_ref[...],
                         preferred_element_type=_F32) + b2_ref[...]
    o_ref[0] = z_out.astype(o_ref.dtype)


def token_block(z, xf, bp, heads):
    B, L, D = z.shape
    HW, Cin = xf.shape[1], xf.shape[2]
    m2f, t = bp['m2f'], bp['tfm']
    rep_args = (m2f['wq'], m2f['wk'], m2f['wv'], m2f['wo'],
                t['ln1_g'], t['ln1_b'], t['wq'], t['wk'], t['wv'], t['wo'],
                t['ln2_g'], t['ln2_b'], t['w1'], t['b1'], t['w2'], t['b2'])
    in_specs = [pl.BlockSpec((1, L, D), lambda b: (b, 0, 0)),
                pl.BlockSpec((1, HW, Cin), lambda b: (b, 0, 0))] + \
               [_rep_spec(a) for a in rep_args]
    return pl.pallas_call(
        functools.partial(_token_block_kernel, heads=heads),
        out_shape=jax.ShapeDtypeStruct((B, L, D), _BF16),
        grid=(B,),
        in_specs=in_specs,
        out_specs=pl.BlockSpec((1, L, D), lambda b: (b, 0, 0)),
        compiler_params=pltpu.CompilerParams(dimension_semantics=("parallel",)),
    )(z, xf, *rep_args)


# ----------------------------------------------------------------------------
# Kernel 4: fused transformer2resnet cross-attention (pixels attend over tokens)
# ----------------------------------------------------------------------------
def _f2m_kernel(x_ref, z_ref, wq_ref, wk_ref, wv_ref, wo_ref, o_ref, *, heads):
    x = x_ref[0]                                    # (HW, C) bf16
    zt = z_ref[0]                                   # (L, D) bf16
    q = jnp.dot(x, wq_ref[...], preferred_element_type=_F32)
    k = jnp.dot(zt, wk_ref[...], preferred_element_type=_F32)
    v = jnp.dot(zt, wv_ref[...], preferred_element_type=_F32)
    att = _mha(q, k, v, heads)
    y = x.astype(_F32) + jnp.dot(att.astype(_BF16), wo_ref[...],
                                 preferred_element_type=_F32)
    o_ref[0] = y.astype(o_ref.dtype)


def former_to_mobile(x, z, f, heads):
    B, HW, C = x.shape
    L, D = z.shape[1], z.shape[2]
    rep_args = (f['wq'], f['wk'], f['wv'], f['wo'])
    in_specs = [pl.BlockSpec((1, HW, C), lambda b: (b, 0, 0)),
                pl.BlockSpec((1, L, D), lambda b: (b, 0, 0))] + \
               [_rep_spec(a) for a in rep_args]
    return pl.pallas_call(
        functools.partial(_f2m_kernel, heads=heads),
        out_shape=jax.ShapeDtypeStruct((B, HW, C), _BF16),
        grid=(B,),
        in_specs=in_specs,
        out_specs=pl.BlockSpec((1, HW, C), lambda b: (b, 0, 0)),
        compiler_params=pltpu.CompilerParams(dimension_semantics=("parallel",)),
    )(x, z, *rep_args)


# ----------------------------------------------------------------------------
# Kernel 5: fused tail (1x1 conv + BN + global avg pool) + classifier head
# ----------------------------------------------------------------------------
def _tail_head_kernel(x_ref, z0_ref, convw_ref, s_ref, b_ref,
                      fc1x_ref, fc1z_ref, fc1b_ref, fc2w_ref, fc2b_ref, o_ref):
    x = x_ref[0].astype(_F32)                       # (HW, C2)
    xm = jnp.mean(x, axis=0, keepdims=True)          # avg pool (1, C2)
    y = jnp.dot(xm.astype(_BF16), convw_ref[...], preferred_element_type=_F32)
    y = y * s_ref[...] + b_ref[...]                   # BN-folded 1x1 conv
    z0 = z0_ref[0]                                    # (1, D) bf16
    h = (jnp.dot(y.astype(_BF16), fc1x_ref[...], preferred_element_type=_F32)
         + jnp.dot(z0, fc1z_ref[...], preferred_element_type=_F32)
         + fc1b_ref[...])
    h = _hswish(h)
    out = jnp.dot(h.astype(_BF16), fc2w_ref[...],
                  preferred_element_type=_F32) + fc2b_ref[...]
    o_ref[0] = out.astype(o_ref.dtype)


def tail_head(x, z, p):
    B, HW, C2 = x.shape
    D = z.shape[-1]
    fc2 = p['fc2_w'].shape[-1]
    z0 = z[:, :1, :]
    rep_args = (p['conv_w'], p['tail_s'], p['tail_b'],
                p['fc1_xw'], p['fc1_zw'], p['fc1_b'], p['fc2_w'], p['fc2_b'])
    in_specs = [pl.BlockSpec((1, HW, C2), lambda b: (b, 0, 0)),
                pl.BlockSpec((1, 1, D), lambda b: (b, 0, 0))] + \
               [_rep_spec(a) for a in rep_args]
    out = pl.pallas_call(
        _tail_head_kernel,
        out_shape=jax.ShapeDtypeStruct((B, 1, fc2), _F32),
        grid=(B,),
        in_specs=in_specs,
        out_specs=pl.BlockSpec((1, 1, fc2), lambda b: (b, 0, 0)),
        compiler_params=pltpu.CompilerParams(dimension_semantics=("parallel",)),
    )(x, z0, *rep_args)
    return out.reshape(B, fc2)


# ----------------------------------------------------------------------------
# Parameter initialization (deterministic, BN folded, weights pre-cast to bf16)
# ----------------------------------------------------------------------------
class KeyGen:
    def __init__(self, seed):
        self._key = jax.random.PRNGKey(seed)

    def __call__(self):
        self._key, sub = jax.random.split(self._key)
        return sub


def _normal(key, shape, std):
    return std * jax.random.normal(key, shape, dtype=_F32)


def init_block_params(kw, dim, kg):
    inp, exp, out = kw['inp'], kw['exp'], kw['out']
    blk = {}
    blk['m2f'] = dict(
        wq=_normal(kg(), (dim, dim), dim ** -0.5).astype(_BF16),
        wk=_normal(kg(), (inp, dim), inp ** -0.5).astype(_BF16),
        wv=_normal(kg(), (inp, dim), inp ** -0.5).astype(_BF16),
        wo=_normal(kg(), (dim, dim), dim ** -0.5).astype(_BF16))
    blk['tfm'] = dict(
        ln1_g=jnp.ones((1, dim), _F32), ln1_b=jnp.zeros((1, dim), _F32),
        wq=_normal(kg(), (dim, dim), dim ** -0.5).astype(_BF16),
        wk=_normal(kg(), (dim, dim), dim ** -0.5).astype(_BF16),
        wv=_normal(kg(), (dim, dim), dim ** -0.5).astype(_BF16),
        wo=_normal(kg(), (dim, dim), dim ** -0.5).astype(_BF16),
        ln2_g=jnp.ones((1, dim), _F32), ln2_b=jnp.zeros((1, dim), _F32),
        w1=_normal(kg(), (dim, 2 * dim), dim ** -0.5).astype(_BF16),
        b1=jnp.zeros((1, 2 * dim), _F32),
        w2=_normal(kg(), (2 * dim, dim), (2 * dim) ** -0.5).astype(_BF16),
        b2=jnp.zeros((1, dim), _F32))
    dw = _normal(kg(), (exp, 3, 3), math.sqrt(2.0 / (exp * 9)))
    blk['mb'] = dict(
        pw1_w=_normal(kg(), (inp, exp), math.sqrt(2.0 / exp)).astype(_BF16),
        s1=jnp.ones((1, exp), _F32), b1=jnp.zeros((1, exp), _F32),
        dw_w=jnp.transpose(dw, (1, 2, 0)).reshape(9, exp).astype(_F32),
        s2=jnp.ones((1, exp), _F32), b2=jnp.zeros((1, exp), _F32),
        pw2_w=_normal(kg(), (exp, out), math.sqrt(2.0 / out)).astype(_BF16),
        s3=jnp.ones((1, out), _F32), b3=jnp.zeros((1, out), _F32))
    blk['f2m'] = dict(
        wq=_normal(kg(), (out, dim), out ** -0.5).astype(_BF16),
        wk=_normal(kg(), (dim, dim), dim ** -0.5).astype(_BF16),
        wv=_normal(kg(), (dim, dim), dim ** -0.5).astype(_BF16),
        wo=_normal(kg(), (dim, out), dim ** -0.5).astype(_BF16))
    return blk


def init_params(cfg, kg):
    p = {}
    embed, stem = cfg['embed'], cfg['stem']
    e, o = cfg['bneck']['e'], cfg['bneck']['o']
    rep = e // stem
    p['token'] = jax.random.normal(kg(), (1, cfg['token'], embed), _F32).astype(_BF16)

    stem_w = _normal(kg(), (3, 3, 3, stem), math.sqrt(2.0 / (stem * 9)))
    p['stem_w'] = stem_w.reshape(9, 3, stem).astype(_BF16)
    p['stem_s'] = jnp.ones((1, stem), _F32)          # identity BN folded
    p['stem_b'] = jnp.zeros((1, stem), _F32)

    # bneck grouped conv weights, reordered once so the kernel needs no jnp.repeat:
    # output channel c = g*rep + r  ->  [r, ..., g]
    dw_w = _normal(kg(), (e, 3, 3), math.sqrt(2.0 / (e * 9)))
    dw_b = jnp.zeros((e,), _F32)
    p['bneck_dw_w'] = jnp.transpose(dw_w.reshape(stem, rep, 9), (1, 2, 0)).astype(_F32)
    p['bneck_dw_b'] = jnp.transpose(dw_b.reshape(stem, rep), (1, 0))
    pw_w = _normal(kg(), (e, o), math.sqrt(2.0 / o))
    pw_b = jnp.zeros((o,), _F32)
    p['bneck_pw_w'] = jnp.transpose(pw_w.reshape(stem, rep, o), (1, 0, 2)).astype(_BF16)
    p['bneck_s'] = jnp.ones((1, o), _F32)
    p['bneck_b'] = pw_b.reshape(1, o)                 # 1x1 bias folded into BN shift

    p['blocks'] = [init_block_params(kw, embed, kg) for kw in cfg['body']]

    inp_t, exp_t = cfg['body'][-1]['out'], cfg['body'][-1]['exp']
    p['conv_w'] = _normal(kg(), (inp_t, exp_t), math.sqrt(2.0 / exp_t)).astype(_BF16)
    p['tail_s'] = jnp.ones((1, exp_t), _F32)
    p['tail_b'] = jnp.zeros((1, exp_t), _F32)
    fc1_w = _normal(kg(), (exp_t + embed, cfg['fc1']), 0.001)
    p['fc1_xw'] = fc1_w[:exp_t].astype(_BF16)
    p['fc1_zw'] = fc1_w[exp_t:].astype(_BF16)
    p['fc1_b'] = jnp.zeros((1, cfg['fc1']), _F32)
    p['fc2_w'] = _normal(kg(), (cfg['fc1'], cfg['fc2']), 0.001).astype(_BF16)
    p['fc2_b'] = jnp.zeros((1, cfg['fc2']), _F32)
    return p


# ----------------------------------------------------------------------------
# Forward pass
# ----------------------------------------------------------------------------
def resnettransformer_forward(params, cfg, x_nchw):
    B = x_nchw.shape[0]
    x = jnp.transpose(x_nchw, (0, 2, 3, 1)).astype(_F32)           # NCHW -> NHWC
    H, W = x.shape[1], x.shape[2]

    # conv pad=1 and extend to even dims -> 4 parity planes (same bytes as input,
    # lets the kernel compute the stride-2 stem without strided loads / im2col).
    Hp, Wp = _round_up(H + 2, 2), _round_up(W + 2, 2)
    xpad = jnp.pad(x, ((0, 0), (1, Hp - H - 1), (1, Wp - W - 1), (0, 0))).astype(_BF16)
    planes = (xpad[:, 0::2, 0::2, :], xpad[:, 0::2, 1::2, :],
              xpad[:, 1::2, 0::2, :], xpad[:, 1::2, 1::2, :])
    OH, OW = (H - 1) // 2 + 1, (W - 1) // 2 + 1

    rep = cfg['bneck']['e'] // cfg['stem']
    x, OH, OW = stem_bneck(planes, params, OH, OW, rep, cfg['bneck']['s'])

    z = jnp.broadcast_to(params['token'], (B,) + params['token'].shape[1:])
    for bp, kw in zip(params['blocks'], cfg['body']):
        # fused: resnet2transformer cross-attention + transformer encoder
        z = token_block(z, x, bp, kw['heads'])
        # fused MBConv (dynamic-ReLU conditioning on z omitted; see module TODO)
        residual = (kw['stride'] == 1 and kw['inp'] == kw['out'])
        x_hid, OH, OW = mbconv(x, bp['mb'], OH, OW, kw['stride'], residual)
        # fused: transformer2resnet cross-attention
        x = former_to_mobile(x_hid, z, bp['f2m'], kw['heads'])

    # fused tail (1x1 conv + BN + avg pool) + head (fc1 + hswish + fc2)
    return tail_head(x, z, params)


# ----------------------------------------------------------------------------
if __name__ == "__main__":
    cfg = dict(
        token=4, embed=32, stem=8,
        bneck=dict(e=16, s=1, o=8),
        body=[
            dict(inp=8, exp=16, out=8, se=None, stride=1, heads=2),
            dict(inp=8, exp=16, out=8, se=None, stride=1, heads=2),
        ],
        fc1=32, fc2=10,
    )

    # deterministic example input (PyTorch-style NCHW): 14x14 -> stem s2 -> 7x7 -> avg 7x7
    x = jax.random.normal(jax.random.PRNGKey(0), (2, 3, 14, 14), _F32)

    params = init_params(cfg, KeyGen(1))
    fwd = jax.jit(lambda p, xin: resnettransformer_forward(p, cfg, xin))
    out = jax.block_until_ready(fwd(params, x))
    assert out.shape == (2, cfg['fc2']), out.shape
    assert bool(jnp.all(jnp.isfinite(out)))
    print("KERNEL_OK")
</pallas_src>

<mosaic_0001>
module attributes {stable_mosaic.version = 11 : i64} {
  func.func @_stem_bneck_kernel(%arg0: i32, %arg1: memref<1x8x8x3xbf16, #tpu.memory_space<vmem>>, %arg2: memref<1x8x8x3xbf16, #tpu.memory_space<vmem>>, %arg3: memref<1x8x8x3xbf16, #tpu.memory_space<vmem>>, %arg4: memref<1x8x8x3xbf16, #tpu.memory_space<vmem>>, %arg5: memref<9x3x8xbf16, #tpu.memory_space<vmem>>, %arg6: memref<1x8xf32, #tpu.memory_space<vmem>>, %arg7: memref<1x8xf32, #tpu.memory_space<vmem>>, %arg8: memref<2x9x8xf32, #tpu.memory_space<vmem>>, %arg9: memref<2x8xf32, #tpu.memory_space<vmem>>, %arg10: memref<2x8x8xbf16, #tpu.memory_space<vmem>>, %arg11: memref<1x8xf32, #tpu.memory_space<vmem>>, %arg12: memref<1x8xf32, #tpu.memory_space<vmem>>, %arg13: memref<1x49x8xbf16, #tpu.memory_space<vmem>>) attributes {dimension_semantics = [#tpu.dimension_semantics<parallel>], iteration_bounds = array<i64: 2>, scalar_prefetch = 0 : i64, scratch_operands = 0 : i64, tpu.core_type = #tpu.core_type<tc>, window_params = [{transform_indices = @transform_0, window_bounds = array<i64: 1, 8, 8, 3>}, {transform_indices = @transform_1, window_bounds = array<i64: 1, 8, 8, 3>}, {transform_indices = @transform_2, window_bounds = array<i64: 1, 8, 8, 3>}, {transform_indices = @transform_3, window_bounds = array<i64: 1, 8, 8, 3>}, {pipeline_mode = #tpu.pipeline_mode<synchronous>, transform_indices = @transform_4, window_bounds = array<i64: 9, 3, 8>}, {pipeline_mode = #tpu.pipeline_mode<synchronous>, transform_indices = @transform_5, window_bounds = array<i64: 1, 8>}, {pipeline_mode = #tpu.pipeline_mode<synchronous>, transform_indices = @transform_6, window_bounds = array<i64: 1, 8>}, {pipeline_mode = #tpu.pipeline_mode<synchronous>, transform_indices = @transform_7, window_bounds = array<i64: 2, 9, 8>}, {pipeline_mode = #tpu.pipeline_mode<synchronous>, transform_indices = @transform_8, window_bounds = array<i64: 2, 8>}, {pipeline_mode = #tpu.pipeline_mode<synchronous>, transform_indices = @transform_9, window_bounds = array<i64: 2, 8, 8>}, {pipeline_mode = #tpu.pipeline_mode<synchronous>, transform_indices = @transform_10, window_bounds = array<i64: 1, 8>}, {pipeline_mode = #tpu.pipeline_mode<synchronous>, transform_indices = @transform_11, window_bounds = array<i64: 1, 8>}, {transform_indices = @transform_12, window_bounds = array<i64: 1, 49, 8>}]} {
    %c0 = arith.constant 0 : index
    %c0_0 = arith.constant 0 : index
    %c0_1 = arith.constant 0 : index
    %c0_2 = arith.constant 0 : index
    %0 = vector.load %arg1[%c0, %c0_0, %c0_1, %c0_2] : memref<1x8x8x3xbf16, #tpu.memory_space<vmem>>, vector<1x8x8x3xbf16>
    %1 = vector.shape_cast %0 : vector<1x8x8x3xbf16> to vector<8x8x3xbf16>
    %c0_3 = arith.constant 0 : index
    %c0_4 = arith.constant 0 : index
    %c0_5 = arith.constant 0 : index
    %c0_6 = arith.constant 0 : index
    %2 = vector.load %arg2[%c0_3, %c0_4, %c0_5, %c0_6] : memref<1x8x8x3xbf16, #tpu.memory_space<vmem>>, vector<1x8x8x3xbf16>
    %3 = vector.shape_cast %2 : vector<1x8x8x3xbf16> to vector<8x8x3xbf16>
    %c0_7 = arith.constant 0 : index
    %c0_8 = arith.constant 0 : index
    %c0_9 = arith.constant 0 : index
    %c0_10 = arith.constant 0 : index
    %4 = vector.load %arg3[%c0_7, %c0_8, %c0_9, %c0_10] : memref<1x8x8x3xbf16, #tpu.memory_space<vmem>>, vector<1x8x8x3xbf16>
    %5 = vector.shape_cast %4 : vector<1x8x8x3xbf16> to vector<8x8x3xbf16>
    %c0_11 = arith.constant 0 : index
    %c0_12 = arith.constant 0 : index
    %c0_13 = arith.constant 0 : index
    %c0_14 = arith.constant 0 : index
    %6 = vector.load %arg4[%c0_11, %c0_12, %c0_13, %c0_14] : memref<1x8x8x3xbf16, #tpu.memory_space<vmem>>, vector<1x8x8x3xbf16>
    %7 = vector.shape_cast %6 : vector<1x8x8x3xbf16> to vector<8x8x3xbf16>
    %c0_15 = arith.constant 0 : index
    %c0_16 = arith.constant 0 : index
    %c0_17 = arith.constant 0 : index
    %8 = vector.load %arg5[%c0_15, %c0_16, %c0_17] : memref<9x3x8xbf16, #tpu.memory_space<vmem>>, vector<9x3x8xbf16>
    %cst = arith.constant 0.000000e+00 : f32
    %9 = vector.broadcast %cst : f32 to vector<49x8xf32>
    %10 = vector.extract_strided_slice %1 {offsets = [0, 0, 0], sizes = [7, 7, 3], strides = [1, 1, 1]} : vector<8x8x3xbf16> to vector<7x7x3xbf16>
    %11 = vector.shape_cast %10 : vector<7x7x3xbf16> to vector<49x3xbf16>
    %12 = vector.extract_strided_slice %8 {offsets = [0, 0, 0], sizes = [1, 3, 8], strides = [1, 1, 1]} : vector<9x3x8xbf16> to vector<1x3x8xbf16>
    %13 = vector.shape_cast %12 : vector<1x3x8xbf16> to vector<3x8xbf16>
    %cst_18 = arith.constant dense<0.000000e+00> : vector<49x8xf32>
    %14 = tpu.matmul %11, %13, %cst_18 {dimension_numbers = #tpu.dot_dimension_numbers<[1], [0], [0], [1], [0, 0, 1, 1], [], []>} : vector<49x3xbf16>, vector<3x8xbf16>, vector<49x8xf32> -> vector<49x8xf32>
    %15 = arith.addf %9, %14 : vector<49x8xf32>
    %16 = vector.extract_strided_slice %3 {offsets = [0, 0, 0], sizes = [7, 7, 3], strides = [1, 1, 1]} : vector<8x8x3xbf16> to vector<7x7x3xbf16>
    %17 = vector.shape_cast %16 : vector<7x7x3xbf16> to vector<49x3xbf16>
    %18 = vector.extract_strided_slice %8 {offsets = [1, 0, 0], sizes = [1, 3, 8], strides = [1, 1, 1]} : vector<9x3x8xbf16> to vector<1x3x8xbf16>
    %19 = vector.shape_cast %18 : vector<1x3x8xbf16> to vector<3x8xbf16>
    %cst_19 = arith.constant dense<0.000000e+00> : vector<49x8xf32>
    %20 = tpu.matmul %17, %19, %cst_19 {dimension_numbers = #tpu.dot_dimension_numbers<[1], [0], [0], [1], [0, 0, 1, 1], [], []>} : vector<49x3xbf16>, vector<3x8xbf16>, vector<49x8xf32> -> vector<49x8xf32>
    %21 = arith.addf %15, %20 : vector<49x8xf32>
    %22 = vector.extract_strided_slice %1 {offsets = [0, 1, 0], sizes = [7, 7, 3], strides = [1, 1, 1]} : vector<8x8x3xbf16> to vector<7x7x3xbf16>
    %23 = vector.shape_cast %22 : vector<7x7x3xbf16> to vector<49x3xbf16>
    %24 = vector.extract_strided_slice %8 {offsets = [2, 0, 0], sizes = [1, 3, 8], strides = [1, 1, 1]} : vector<9x3x8xbf16> to vector<1x3x8xbf16>
    %25 = vector.shape_cast %24 : vector<1x3x8xbf16> to vector<3x8xbf16>
    %cst_20 = arith.constant dense<0.000000e+00> : vector<49x8xf32>
    %26 = tpu.matmul %23, %25, %cst_20 {dimension_numbers = #tpu.dot_dimension_numbers<[1], [0], [0], [1], [0, 0, 1, 1], [], []>} : vector<49x3xbf16>, vector<3x8xbf16>, vector<49x8xf32> -> vector<49x8xf32>
    %27 = arith.addf %21, %26 : vector<49x8xf32>
    %28 = vector.extract_strided_slice %5 {offsets = [0, 0, 0], sizes = [7, 7, 3], strides = [1, 1, 1]} : vector<8x8x3xbf16> to vector<7x7x3xbf16>
    %29 = vector.shape_cast %28 : vector<7x7x3xbf16> to vector<49x3xbf16>
    %30 = vector.extract_strided_slice %8 {offsets = [3, 0, 0], sizes = [1, 3, 8], strides = [1, 1, 1]} : vector<9x3x8xbf16> to vector<1x3x8xbf16>
    %31 = vector.shape_cast %30 : vector<1x3x8xbf16> to vector<3x8xbf16>
    %cst_21 = arith.constant dense<0.000000e+00> : vector<49x8xf32>
    %32 = tpu.matmul %29, %31, %cst_21 {dimension_numbers = #tpu.dot_dimension_numbers<[1], [0], [0], [1], [0, 0, 1, 1], [], []>} : vector<49x3xbf16>, vector<3x8xbf16>, vector<49x8xf32> -> vector<49x8xf32>
    %33 = arith.addf %27, %32 : vector<49x8xf32>
    %34 = vector.extract_strided_slice %7 {offsets = [0, 0, 0], sizes = [7, 7, 3], strides = [1, 1, 1]} : vector<8x8x3xbf16> to vector<7x7x3xbf16>
    %35 = vector.shape_cast %34 : vector<7x7x3xbf16> to vector<49x3xbf16>
    %36 = vector.extract_strided_slice %8 {offsets = [4, 0, 0], sizes = [1, 3, 8], strides = [1, 1, 1]} : vector<9x3x8xbf16> to vector<1x3x8xbf16>
    %37 = vector.shape_cast %36 : vector<1x3x8xbf16> to vector<3x8xbf16>
    %cst_22 = arith.constant dense<0.000000e+00> : vector<49x8xf32>
    %38 = tpu.matmul %35, %37, %cst_22 {dimension_numbers = #tpu.dot_dimension_numbers<[1], [0], [0], [1], [0, 0, 1, 1], [], []>} : vector<49x3xbf16>, vector<3x8xbf16>, vector<49x8xf32> -> vector<49x8xf32>
    %39 = arith.addf %33, %38 : vector<49x8xf32>
    %40 = vector.extract_strided_slice %5 {offsets = [0, 1, 0], sizes = [7, 7, 3], strides = [1, 1, 1]} : vector<8x8x3xbf16> to vector<7x7x3xbf16>
    %41 = vector.shape_cast %40 : vector<7x7x3xbf16> to vector<49x3xbf16>
    %42 = vector.extract_strided_slice %8 {offsets = [5, 0, 0], sizes = [1, 3, 8], strides = [1, 1, 1]} : vector<9x3x8xbf16> to vector<1x3x8xbf16>
    %43 = vector.shape_cast %42 : vector<1x3x8xbf16> to vector<3x8xbf16>
    %cst_23 = arith.constant dense<0.000000e+00> : vector<49x8xf32>
    %44 = tpu.matmul %41, %43, %cst_23 {dimension_numbers = #tpu.dot_dimension_numbers<[1], [0], [0], [1], [0, 0, 1, 1], [], []>} : vector<49x3xbf16>, vector<3x8xbf16>, vector<49x8xf32> -> vector<49x8xf32>
    %45 = arith.addf %39, %44 : vector<49x8xf32>
    %46 = vector.extract_strided_slice %1 {offsets = [1, 0, 0], sizes = [7, 7, 3], strides = [1, 1, 1]} : vector<8x8x3xbf16> to vector<7x7x3xbf16>
    %47 = vector.shape_cast %46 : vector<7x7x3xbf16> to vector<49x3xbf16>
    %48 = vector.extract_strided_slice %8 {offsets = [6, 0, 0], sizes = [1, 3, 8], strides = [1, 1, 1]} : vector<9x3x8xbf16> to vector<1x3x8xbf16>
    %49 = vector.shape_cast %48 : vector<1x3x8xbf16> to vector<3x8xbf16>
    %cst_24 = arith.constant dense<0.000000e+00> : vector<49x8xf32>
    %50 = tpu.matmul %47, %49, %cst_24 {dimension_numbers = #tpu.dot_dimension_numbers<[1], [0], [0], [1], [0, 0, 1, 1], [], []>} : vector<49x3xbf16>, vector<3x8xbf16>, vector<49x8xf32> -> vector<49x8xf32>
    %51 = arith.addf %45, %50 : vector<49x8xf32>
    %52 = vector.extract_strided_slice %3 {offsets = [1, 0, 0], sizes = [7, 7, 3], strides = [1, 1, 1]} : vector<8x8x3xbf16> to vector<7x7x3xbf16>
    %53 = vector.shape_cast %52 : vector<7x7x3xbf16> to vector<49x3xbf16>
    %54 = vector.extract_strided_slice %8 {offsets = [7, 0, 0], sizes = [1, 3, 8], strides = [1, 1, 1]} : vector<9x3x8xbf16> to vector<1x3x8xbf16>
    %55 = vector.shape_cast %54 : vector<1x3x8xbf16> to vector<3x8xbf16>
    %cst_25 = arith.constant dense<0.000000e+00> : vector<49x8xf32>
    %56 = tpu.matmul %53, %55, %cst_25 {dimension_numbers = #tpu.dot_dimension_numbers<[1], [0], [0], [1], [0, 0, 1, 1], [], []>} : vector<49x3xbf16>, vector<3x8xbf16>, vector<49x8xf32> -> vector<49x8xf32>
    %57 = arith.addf %51, %56 : vector<49x8xf32>
    %58 = vector.extract_strided_slice %1 {offsets = [1, 1, 0], sizes = [7, 7, 3], strides = [1, 1, 1]} : vector<8x8x3xbf16> to vector<7x7x3xbf16>
    %59 = vector.shape_cast %58 : vector<7x7x3xbf16> to vector<49x3xbf16>
    %60 = vector.extract_strided_slice %8 {offsets = [8, 0, 0], sizes = [1, 3, 8], strides = [1, 1, 1]} : vector<9x3x8xbf16> to vector<1x3x8xbf16>
    %61 = vector.shape_cast %60 : vector<1x3x8xbf16> to vector<3x8xbf16>
    %cst_26 = arith.constant dense<0.000000e+00> : vector<49x8xf32>
    %62 = tpu.matmul %59, %61, %cst_26 {dimension_numbers = #tpu.dot_dimension_numbers<[1], [0], [0], [1], [0, 0, 1, 1], [], []>} : vector<49x3xbf16>, vector<3x8xbf16>, vector<49x8xf32> -> vector<49x8xf32>
    %63 = arith.addf %57, %62 : vector<49x8xf32>
    %c0_27 = arith.constant 0 : index
    %c0_28 = arith.constant 0 : index
    %64 = vector.load %arg6[%c0_27, %c0_28] : memref<1x8xf32, #tpu.memory_space<vmem>>, vector<1x8xf32>
    %65 = vector.broadcast %64 : vector<1x8xf32> to vector<49x8xf32>
    %66 = arith.mulf %63, %65 : vector<49x8xf32>
    %c0_29 = arith.constant 0 : index
    %c0_30 = arith.constant 0 : index
    %67 = vector.load %arg7[%c0_29, %c0_30] : memref<1x8xf32, #tpu.memory_space<vmem>>, vector<1x8xf32>
    %68 = vector.broadcast %67 : vector<1x8xf32> to vector<49x8xf32>
    %69 = arith.addf %66, %68 : vector<49x8xf32>
    %cst_31 = arith.constant 3.000000e+00 : f32
    %70 = vector.broadcast %cst_31 : f32 to vector<49x8xf32>
    %71 = arith.addf %69, %70 : vector<49x8xf32>
    %cst_32 = arith.constant 0.000000e+00 : f32
    %cst_33 = arith.constant 6.000000e+00 : f32
    %72 = vector.broadcast %cst_32 : f32 to vector<49x8xf32>
    %73 = arith.maximumf %72, %71 : vector<49x8xf32>
    %74 = vector.broadcast %cst_33 : f32 to vector<49x8xf32>
    %75 = arith.minimumf %74, %73 : vector<49x8xf32>
    %76 = arith.mulf %69, %75 : vector<49x8xf32>
    %cst_34 = arith.constant 0.166666672 : f32
    %77 = vector.broadcast %cst_34 : f32 to vector<49x8xf32>
    %78 = arith.mulf %76, %77 : vector<49x8xf32>
    %79 = vector.shape_cast %78 : vector<49x8xf32> to vector<7x7x8xf32>
    %cst_35 = arith.constant 0.000000e+00 : f32
    %80 = vector.broadcast %cst_35 : f32 to vector<7x1x8xf32>
    %81 = tpu.concatenate %80, %79, %80 in 1 : vector<7x1x8xf32>, vector<7x7x8xf32>, vector<7x1x8xf32> -> vector<7x9x8xf32>
    %cst_36 = arith.constant 0.000000e+00 : f32
    %82 = vector.broadcast %cst_36 : f32 to vector<1x9x8xf32>
    %83 = tpu.concatenate %82, %81, %82 in 0 : vector<1x9x8xf32>, vector<7x9x8xf32>, vector<1x9x8xf32> -> vector<9x9x8xf32>
    %c0_37 = arith.constant 0 : index
    %c0_38 = arith.constant 0 : index
    %c0_39 = arith.constant 0 : index
    %84 = vector.load %arg8[%c0_37, %c0_38, %c0_39] : memref<2x9x8xf32, #tpu.memory_space<vmem>>, vector<2x9x8xf32>
    %c0_40 = arith.constant 0 : index
    %c0_41 = arith.constant 0 : index
    %85 = vector.load %arg9[%c0_40, %c0_41] : memref<2x8xf32, #tpu.memory_space<vmem>>, vector<2x8xf32>
    %c0_42 = arith.constant 0 : index
    %c0_43 = arith.constant 0 : index
    %c0_44 = arith.constant 0 : index
    %86 = vector.load %arg10[%c0_42, %c0_43, %c0_44] : memref<2x8x8xbf16, #tpu.memory_space<vmem>>, vector<2x8x8xbf16>
    %cst_45 = arith.constant 0.000000e+00 : f32
    %87 = vector.broadcast %cst_45 : f32 to vector<7x7x8xf32>
    %88 = vector.extract_strided_slice %83 {offsets = [0, 0, 0], sizes = [7, 7, 8], strides = [1, 1, 1]} : vector<9x9x8xf32> to vector<7x7x8xf32>
    %89 = vector.extract_strided_slice %84 {offsets = [0, 0, 0], sizes = [1, 1, 8], strides = [1, 1, 1]} : vector<2x9x8xf32> to vector<1x1x8xf32>
    %90 = vector.shape_cast %89 : vector<1x1x8xf32> to vector<8xf32>
    %91 = vector.shape_cast %90 : vector<8xf32> to vector<1x1x8xf32>
    %92 = vector.broadcast %91 : vector<1x1x8xf32> to vector<7x7x8xf32>
    %93 = arith.mulf %88, %92 : vector<7x7x8xf32>
    %94 = arith.addf %87, %93 : vector<7x7x8xf32>
    %95 = vector.extract_strided_slice %83 {offsets = [0, 1, 0], sizes = [7, 7, 8], strides = [1, 1, 1]} : vector<9x9x8xf32> to vector<7x7x8xf32>
    %96 = vector.extract_strided_slice %84 {offsets = [0, 1, 0], sizes = [1, 1, 8], strides = [1, 1, 1]} : vector<2x9x8xf32> to vector<1x1x8xf32>
    %97 = vector.shape_cast %96 : vector<1x1x8xf32> to vector<8xf32>
    %98 = vector.shape_cast %97 : vector<8xf32> to vector<1x1x8xf32>
    %99 = vector.broadcast %98 : vector<1x1x8xf32> to vector<7x7x8xf32>
    %100 = arith.mulf %95, %99 : vector<7x7x8xf32>
    %101 = arith.addf %94, %100 : vector<7x7x8xf32>
    %102 = vector.extract_strided_slice %83 {offsets = [0, 2, 0], sizes = [7, 7, 8], strides = [1, 1, 1]} : vector<9x9x8xf32> to vector<7x7x8xf32>
    %103 = vector.extract_strided_slice %84 {offsets = [0, 2, 0], sizes = [1, 1, 8], strides = [1, 1, 1]} : vector<2x9x8xf32> to vector<1x1x8xf32>
    %104 = vector.shape_cast %103 : vector<1x1x8xf32> to vector<8xf32>
    %105 = vector.shape_cast %104 : vector<8xf32> to vector<1x1x8xf32>
    %106 = vector.broadcast %105 : vector<1x1x8xf32> to vector<7x7x8xf32>
    %107 = arith.mulf %102, %106 : vector<7x7x8xf32>
    %108 = arith.addf %101, %107 : vector<7x7x8xf32>
    %109 = vector.extract_strided_slice %83 {offsets = [1, 0, 0], sizes = [7, 7, 8], strides = [1, 1, 1]} : vector<9x9x8xf32> to vector<7x7x8xf32>
    %110 = vector.extract_strided_slice %84 {offsets = [0, 3, 0], sizes = [1, 1, 8], strides = [1, 1, 1]} : vector<2x9x8xf32> to vector<1x1x8xf32>
    %111 = vector.shape_cast %110 : vector<1x1x8xf32> to vector<8xf32>
    %112 = vector.shape_cast %111 : vector<8xf32> to vector<1x1x8xf32>
    %113 = vector.broadcast %112 : vector<1x1x8xf32> to vector<7x7x8xf32>
    %114 = arith.mulf %109, %113 : vector<7x7x8xf32>
    %115 = arith.addf %108, %114 : vector<7x7x8xf32>
    %116 = vector.extract_strided_slice %83 {offsets = [1, 1, 0], sizes = [7, 7, 8], strides = [1, 1, 1]} : vector<9x9x8xf32> to vector<7x7x8xf32>
    %117 = vector.extract_strided_slice %84 {offsets = [0, 4, 0], sizes = [1, 1, 8], strides = [1, 1, 1]} : vector<2x9x8xf32> to vector<1x1x8xf32>
    %118 = vector.shape_cast %117 : vector<1x1x8xf32> to vector<8xf32>
    %119 = vector.shape_cast %118 : vector<8xf32> to vector<1x1x8xf32>
    %120 = vector.broadcast %119 : vector<1x1x8xf32> to vector<7x7x8xf32>
    %121 = arith.mulf %116, %120 : vector<7x7x8xf32>
    %122 = arith.addf %115, %121 : vector<7x7x8xf32>
    %123 = vector.extract_strided_slice %83 {offsets = [1, 2, 0], sizes = [7, 7, 8], strides = [1, 1, 1]} : vector<9x9x8xf32> to vector<7x7x8xf32>
    %124 = vector.extract_strided_slice %84 {offsets = [0, 5, 0], sizes = [1, 1, 8], strides = [1, 1, 1]} : vector<2x9x8xf32> to vector<1x1x8xf32>
    %125 = vector.shape_cast %124 : vector<1x1x8xf32> to vector<8xf32>
    %126 = vector.shape_cast %125 : vector<8xf32> to vector<1x1x8xf32>
    %127 = vector.broadcast %126 : vector<1x1x8xf32> to vector<7x7x8xf32>
    %128 = arith.mulf %123, %127 : vector<7x7x8xf32>
    %129 = arith.addf %122, %128 : vector<7x7x8xf32>
    %130 = vector.extract_strided_slice %83 {offsets = [2, 0, 0], sizes = [7, 7, 8], strides = [1, 1, 1]} : vector<9x9x8xf32> to vector<7x7x8xf32>
    %131 = vector.extract_strided_slice %84 {offsets = [0, 6, 0], sizes = [1, 1, 8], strides = [1, 1, 1]} : vector<2x9x8xf32> to vector<1x1x8xf32>
    %132 = vector.shape_cast %131 : vector<1x1x8xf32> to vector<8xf32>
    %133 = vector.shape_cast %132 : vector<8xf32> to vector<1x1x8xf32>
    %134 = vector.broadcast %133 : vector<1x1x8xf32> to vector<7x7x8xf32>
    %135 = arith.mulf %130, %134 : vector<7x7x8xf32>
    %136 = arith.addf %129, %135 : vector<7x7x8xf32>
    %137 = vector.extract_strided_slice %83 {offsets = [2, 1, 0], sizes = [7, 7, 8], strides = [1, 1, 1]} : vector<9x9x8xf32> to vector<7x7x8xf32>
    %138 = vector.extract_strided_slice %84 {offsets = [0, 7, 0], sizes = [1, 1, 8], strides = [1, 1, 1]} : vector<2x9x8xf32> to vector<1x1x8xf32>
    %139 = vector.shape_cast %138 : vector<1x1x8xf32> to vector<8xf32>
    %140 = vector.shape_cast %139 : vector<8xf32> to vector<1x1x8xf32>
    %141 = vector.broadcast %140 : vector<1x1x8xf32> to vector<7x7x8xf32>
    %142 = arith.mulf %137, %141 : vector<7x7x8xf32>
    %143 = arith.addf %136, %142 : vector<7x7x8xf32>
    %144 = vector.extract_strided_slice %83 {offsets = [2, 2, 0], sizes = [7, 7, 8], strides = [1, 1, 1]} : vector<9x9x8xf32> to vector<7x7x8xf32>
    %145 = vector.extract_strided_slice %84 {offsets = [0, 8, 0], sizes = [1, 1, 8], strides = [1, 1, 1]} : vector<2x9x8xf32> to vector<1x1x8xf32>
    %146 = vector.shape_cast %145 : vector<1x1x8xf32> to vector<8xf32>
    %147 = vector.shape_cast %146 : vector<8xf32> to vector<1x1x8xf32>
    %148 = vector.broadcast %147 : vector<1x1x8xf32> to vector<7x7x8xf32>
    %149 = arith.mulf %144, %148 : vector<7x7x8xf32>
    %150 = arith.addf %143, %149 : vector<7x7x8xf32>
    %151 = vector.extract_strided_slice %85 {offsets = [0, 0], sizes = [1, 8], strides = [1, 1]} : vector<2x8xf32> to vector<1x8xf32>
    %152 = vector.shape_cast %151 : vector<1x8xf32> to vector<8xf32>
    %153 = vector.shape_cast %152 : vector<8xf32> to vector<1x1x8xf32>
    %154 = vector.broadcast %153 : vector<1x1x8xf32> to vector<7x7x8xf32>
    %155 = arith.addf %150, %154 : vector<7x7x8xf32>
    %cst_46 = arith.constant 3.000000e+00 : f32
    %156 = vector.broadcast %cst_46 : f32 to vector<7x7x8xf32>
    %157 = arith.addf %155, %156 : vector<7x7x8xf32>
    %cst_47 = arith.constant 0.000000e+00 : f32
    %cst_48 = arith.constant 6.000000e+00 : f32
    %158 = vector.broadcast %cst_47 : f32 to vector<7x7x8xf32>
    %159 = arith.maximumf %158, %157 : vector<7x7x8xf32>
    %160 = vector.broadcast %cst_48 : f32 to vector<7x7x8xf32>
    %161 = arith.minimumf %160, %159 : vector<7x7x8xf32>
    %162 = arith.mulf %155, %161 : vector<7x7x8xf32>
    %cst_49 = arith.constant 0.166666672 : f32
    %163 = vector.broadcast %cst_49 : f32 to vector<7x7x8xf32>
    %164 = arith.mulf %162, %163 : vector<7x7x8xf32>
    %165 = vector.shape_cast %164 : vector<7x7x8xf32> to vector<49x8xf32>
    %166 = arith.truncf %165 : vector<49x8xf32> to vector<49x8xbf16>
    %167 = vector.extract_strided_slice %86 {offsets = [0, 0, 0], sizes = [1, 8, 8], strides = [1, 1, 1]} : vector<2x8x8xbf16> to vector<1x8x8xbf16>
    %168 = vector.shape_cast %167 : vector<1x8x8xbf16> to vector<8x8xbf16>
    %cst_50 = arith.constant dense<0.000000e+00> : vector<49x8xf32>
    %169 = tpu.matmul %166, %168, %cst_50 {dimension_numbers = #tpu.dot_dimension_numbers<[1], [0], [0], [1], [0, 0, 1, 1], [], []>} : vector<49x8xbf16>, vector<8x8xbf16>, vector<49x8xf32> -> vector<49x8xf32>
    %cst_51 = arith.constant 0.000000e+00 : f32
    %170 = vector.broadcast %cst_51 : f32 to vector<7x7x8xf32>
    %171 = vector.extract_strided_slice %83 {offsets = [0, 0, 0], sizes = [7, 7, 8], strides = [1, 1, 1]} : vector<9x9x8xf32> to vector<7x7x8xf32>
    %172 = vector.extract_strided_slice %84 {offsets = [1, 0, 0], sizes = [1, 1, 8], strides = [1, 1, 1]} : vector<2x9x8xf32> to vector<1x1x8xf32>
    %173 = vector.shape_cast %172 : vector<1x1x8xf32> to vector<8xf32>
    %174 = vector.shape_cast %173 : vector<8xf32> to vector<1x1x8xf32>
    %175 = vector.broadcast %174 : vector<1x1x8xf32> to vector<7x7x8xf32>
    %176 = arith.mulf %171, %175 : vector<7x7x8xf32>
    %177 = arith.addf %170, %176 : vector<7x7x8xf32>
    %178 = vector.extract_strided_slice %83 {offsets = [0, 1, 0], sizes = [7, 7, 8], strides = [1, 1, 1]} : vector<9x9x8xf32> to vector<7x7x8xf32>
    %179 = vector.extract_strided_slice %84 {offsets = [1, 1, 0], sizes = [1, 1, 8], strides = [1, 1, 1]} : vector<2x9x8xf32> to vector<1x1x8xf32>
    %180 = vector.shape_cast %179 : vector<1x1x8xf32> to vector<8xf32>
    %181 = vector.shape_cast %180 : vector<8xf32> to vector<1x1x8xf32>
    %182 = vector.broadcast %181 : vector<1x1x8xf32> to vector<7x7x8xf32>
    %183 = arith.mulf %178, %182 : vector<7x7x8xf32>
    %184 = arith.addf %177, %183 : vector<7x7x8xf32>
    %185 = vector.extract_strided_slice %83 {offsets = [0, 2, 0], sizes = [7, 7, 8], strides = [1, 1, 1]} : vector<9x9x8xf32> to vector<7x7x8xf32>
    %186 = vector.extract_strided_slice %84 {offsets = [1, 2, 0], sizes = [1, 1, 8], strides = [1, 1, 1]} : vector<2x9x8xf32> to vector<1x1x8xf32>
    %187 = vector.shape_cast %186 : vector<1x1x8xf32> to vector<8xf32>
    %188 = vector.shape_cast %187 : vector<8xf32> to vector<1x1x8xf32>
    %189 = vector.broadcast %188 : vector<1x1x8xf32> to vector<7x7x8xf32>
    %190 = arith.mulf %185, %189 : vector<7x7x8xf32>
    %191 = arith.addf %184, %190 : vector<7x7x8xf32>
    %192 = vector.extract_strided_slice %83 {offsets = [1, 0, 0], sizes = [7, 7, 8], strides = [1, 1, 1]} : vector<9x9x8xf32> to vector<7x7x8xf32>
    %193 = vector.extract_strided_slice %84 {offsets = [1, 3, 0], sizes = [1, 1, 8], strides = [1, 1, 1]} : vector<2x9x8xf32> to vector<1x1x8xf32>
    %194 = vector.shape_cast %193 : vector<1x1x8xf32> to vector<8xf32>
    %195 = vector.shape_cast %194 : vector<8xf32> to vector<1x1x8xf32>
    %196 = vector.broadcast %195 : vector<1x1x8xf32> to vector<7x7x8xf32>
    %197 = arith.mulf %192, %196 : vector<7x7x8xf32>
    %198 = arith.addf %191, %197 : vector<7x7x8xf32>
    %199 = vector.extract_strided_slice %83 {offsets = [1, 1, 0], sizes = [7, 7, 8], strides = [1, 1, 1]} : vector<9x9x8xf32> to vector<7x7x8xf32>
    %200 = vector.extract_strided_slice %84 {offsets = [1, 4, 0], sizes = [1, 1, 8], strides = [1, 1, 1]} : vector<2x9x8xf32> to vector<1x1x8xf32>
    %201 = vector.shape_cast %200 : vector<1x1x8xf32> to vector<8xf32>
    %202 = vector.shape_cast %201 : vector<8xf32> to vector<1x1x8xf32>
    %203 = vector.broadcast %202 : vector<1x1x8xf32> to vector<7x7x8xf32>
    %204 = arith.mulf %199, %203 : vector<7x7x8xf32>
    %205 = arith.addf %198, %204 : vector<7x7x8xf32>
    %206 = vector.extract_strided_slice %83 {offsets = [1, 2, 0], sizes = [7, 7, 8], strides = [1, 1, 1]} : vector<9x9x8xf32> to vector<7x7x8xf32>
    %207 = vector.extract_strided_slice %84 {offsets = [1, 5, 0], sizes = [1, 1, 8], strides = [1, 1, 1]} : vector<2x9x8xf32> to vector<1x1x8xf32>
    %208 = vector.shape_cast %207 : vector<1x1x8xf32> to vector<8xf32>
    %209 = vector.shape_cast %208 : vector<8xf32> to vector<1x1x8xf32>
    %210 = vector.broadcast %209 : vector<1x1x8xf32> to vector<7x7x8xf32>
    %211 = arith.mulf %206, %210 : vector<7x7x8xf32>
    %212 = arith.addf %205, %211 : vector<7x7x8xf32>
    %213 = vector.extract_strided_slice %83 {offsets = [2, 0, 0], sizes = [7, 7, 8], strides = [1, 1, 1]} : vector<9x9x8xf32> to vector<7x7x8xf32>
    %214 = vector.extract_strided_slice %84 {offsets = [1, 6, 0], sizes = [1, 1, 8], strides = [1, 1, 1]} : vector<2x9x8xf32> to vector<1x1x8xf32>
    %215 = vector.shape_cast %214 : vector<1x1x8xf32> to vector<8xf32>
    %216 = vector.shape_cast %215 : vector<8xf32> to vector<1x1x8xf32>
    %217 = vector.broadcast %216 : vector<1x1x8xf32> to vector<7x7x8xf32>
    %218 = arith.mulf %213, %217 : vector<7x7x8xf32>
    %219 = arith.addf %212, %218 : vector<7x7x8xf32>
    %220 = vector.extract_strided_slice %83 {offsets = [2, 1, 0], sizes = [7, 7, 8], strides = [1, 1, 1]} : vector<9x9x8xf32> to vector<7x7x8xf32>
    %221 = vector.extract_strided_slice %84 {offsets = [1, 7, 0], sizes = [1, 1, 8], strides = [1, 1, 1]} : vector<2x9x8xf32> to vector<1x1x8xf32>
    %222 = vector.shape_cast %221 : vector<1x1x8xf32> to vector<8xf32>
    %223 = vector.shape_cast %222 : vector<8xf32> to vector<1x1x8xf32>
    %224 = vector.broadcast %223 : vector<1x1x8xf32> to vector<7x7x8xf32>
    %225 = arith.mulf %220, %224 : vector<7x7x8xf32>
    %226 = arith.addf %219, %225 : vector<7x7x8xf32>
    %227 = vector.extract_strided_slice %83 {offsets = [2, 2, 0], sizes = [7, 7, 8], strides = [1, 1, 1]} : vector<9x9x8xf32> to vector<7x7x8xf32>
    %228 = vector.extract_strided_slice %84 {offsets = [1, 8, 0], sizes = [1, 1, 8], strides = [1, 1, 1]} : vector<2x9x8xf32> to vector<1x1x8xf32>
    %229 = vector.shape_cast %228 : vector<1x1x8xf32> to vector<8xf32>
    %230 = vector.shape_cast %229 : vector<8xf32> to vector<1x1x8xf32>
    %231 = vector.broadcast %230 : vector<1x1x8xf32> to vector<7x7x8xf32>
    %232 = arith.mulf %227, %231 : vector<7x7x8xf32>
    %233 = arith.addf %226, %232 : vector<7x7x8xf32>
    %234 = vector.extract_strided_slice %85 {offsets = [1, 0], sizes = [1, 8], strides = [1, 1]} : vector<2x8xf32> to vector<1x8xf32>
    %235 = vector.shape_cast %234 : vector<1x8xf32> to vector<8xf32>
    %236 = vector.shape_cast %235 : vector<8xf32> to vector<1x1x8xf32>
    %237 = vector.broadcast %236 : vector<1x1x8xf32> to vector<7x7x8xf32>
    %238 = arith.addf %233, %237 : vector<7x7x8xf32>
    %cst_52 = arith.constant 3.000000e+00 : f32
    %239 = vector.broadcast %cst_52 : f32 to vector<7x7x8xf32>
    %240 = arith.addf %238, %239 : vector<7x7x8xf32>
    %cst_53 = arith.constant 0.000000e+00 : f32
    %cst_54 = arith.constant 6.000000e+00 : f32
    %241 = vector.broadcast %cst_53 : f32 to vector<7x7x8xf32>
    %242 = arith.maximumf %241, %240 : vector<7x7x8xf32>
    %243 = vector.broadcast %cst_54 : f32 to vector<7x7x8xf32>
    %244 = arith.minimumf %243, %242 : vector<7x7x8xf32>
    %245 = arith.mulf %238, %244 : vector<7x7x8xf32>
    %cst_55 = arith.constant 0.166666672 : f32
    %246 = vector.broadcast %cst_55 : f32 to vector<7x7x8xf32>
    %247 = arith.mulf %245, %246 : vector<7x7x8xf32>
    %248 = vector.shape_cast %247 : vector<7x7x8xf32> to vector<49x8xf32>
    %249 = arith.truncf %248 : vector<49x8xf32> to vector<49x8xbf16>
    %250 = vector.extract_strided_slice %86 {offsets = [1, 0, 0], sizes = [1, 8, 8], strides = [1, 1, 1]} : vector<2x8x8xbf16> to vector<1x8x8xbf16>
    %251 = vector.shape_cast %250 : vector<1x8x8xbf16> to vector<8x8xbf16>
    %cst_56 = arith.constant dense<0.000000e+00> : vector<49x8xf32>
    %252 = tpu.matmul %249, %251, %cst_56 {dimension_numbers = #tpu.dot_dimension_numbers<[1], [0], [0], [1], [0, 0, 1, 1], [], []>} : vector<49x8xbf16>, vector<8x8xbf16>, vector<49x8xf32> -> vector<49x8xf32>
    %253 = arith.addf %169, %252 : vector<49x8xf32>
    %c0_57 = arith.constant 0 : index
    %c0_58 = arith.constant 0 : index
    %254 = vector.load %arg11[%c0_57, %c0_58] : memref<1x8xf32, #tpu.memory_space<vmem>>, vector<1x8xf32>
    %255 = vector.broadcast %254 : vector<1x8xf32> to vector<49x8xf32>
    %256 = arith.mulf %253, %255 : vector<49x8xf32>
    %c0_59 = arith.constant 0 : index
    %c0_60 = arith.constant 0 : index
    %257 = vector.load %arg12[%c0_59, %c0_60] : memref<1x8xf32, #tpu.memory_space<vmem>>, vector<1x8xf32>
    %258 = vector.broadcast %257 : vector<1x8xf32> to vector<49x8xf32>
    %259 = arith.addf %256, %258 : vector<49x8xf32>
    %260 = arith.truncf %259 : vector<49x8xf32> to vector<49x8xbf16>
    %c0_61 = arith.constant 0 : index
    %c0_62 = arith.constant 0 : index
    %c0_63 = arith.constant 0 : index
    %261 = vector.load %arg13[%c0_61, %c0_62, %c0_63] : memref<1x49x8xbf16, #tpu.memory_space<vmem>>, vector<1x49x8xbf16>
    %262 = vector.shape_cast %261 : vector<1x49x8xbf16> to vector<49x8xbf16>
    %263 = vector.shape_cast %260 : vector<49x8xbf16> to vector<1x49x8xbf16>
    tpu.vector_store %arg13[%c0_61, %c0_62, %c0_63], %263 {strides = array<i32>} : memref<1x49x8xbf16, #tpu.memory_space<vmem>>, vector<1x49x8xbf16>,
    return
  }
  func.func @transform_0(%arg0: i32) -> (i32, i32, i32, i32) {
    %c0_i32 = arith.constant 0 : i32
    %c0_i32_0 = arith.constant 0 : i32
    %c0_i32_1 = arith.constant 0 : i32
    %c0_i32_2 = arith.constant 0 : i32
    return %arg0, %c0_i32, %c0_i32_0, %c0_i32_1 : i32, i32, i32, i32
  }
  func.func @transform_1(%arg0: i32) -> (i32, i32, i32, i32) {
    %c0_i32 = arith.constant 0 : i32
    %c0_i32_0 = arith.constant 0 : i32
    %c0_i32_1 = arith.constant 0 : i32
    %c0_i32_2 = arith.constant 0 : i32
    return %arg0, %c0_i32, %c0_i32_0, %c0_i32_1 : i32, i32, i32, i32
  }
  func.func @transform_2(%arg0: i32) -> (i32, i32, i32, i32) {
    %c0_i32 = arith.constant 0 : i32
    %c0_i32_0 = arith.constant 0 : i32
    %c0_i32_1 = arith.constant 0 : i32
    %c0_i32_2 = arith.constant 0 : i32
    return %arg0, %c0_i32, %c0_i32_0, %c0_i32_1 : i32, i32, i32, i32
  }
  func.func @transform_3(%arg0: i32) -> (i32, i32, i32, i32) {
    %c0_i32 = arith.constant 0 : i32
    %c0_i32_0 = arith.constant 0 : i32
    %c0_i32_1 = arith.constant 0 : i32
    %c0_i32_2 = arith.constant 0 : i32
    return %arg0, %c0_i32, %c0_i32_0, %c0_i32_1 : i32, i32, i32, i32
  }
  func.func @transform_4(%arg0: i32) -> (i32, i32, i32) {
    %c0_i32 = arith.constant 0 : i32
    %c0_i32_0 = arith.constant 0 : i32
    %c0_i32_1 = arith.constant 0 : i32
    %c0_i32_2 = arith.constant 0 : i32
    return %c0_i32, %c0_i32_0, %c0_i32_1 : i32, i32, i32
  }
  func.func @transform_5(%arg0: i32) -> (i32, i32) {
    %c0_i32 = arith.constant 0 : i32
    %c0_i32_0 = arith.constant 0 : i32
    %c0_i32_1 = arith.constant 0 : i32
    return %c0_i32, %c0_i32_0 : i32, i32
  }
  func.func @transform_6(%arg0: i32) -> (i32, i32) {
    %c0_i32 = arith.constant 0 : i32
    %c0_i32_0 = arith.constant 0 : i32
    %c0_i32_1 = arith.constant 0 : i32
    return %c0_i32, %c0_i32_0 : i32, i32
  }
  func.func @transform_7(%arg0: i32) -> (i32, i32, i32) {
    %c0_i32 = arith.constant 0 : i32
    %c0_i32_0 = arith.constant 0 : i32
    %c0_i32_1 = arith.constant 0 : i32
    %c0_i32_2 = arith.constant 0 : i32
    return %c0_i32, %c0_i32_0, %c0_i32_1 : i32, i32, i32
  }
  func.func @transform_8(%arg0: i32) -> (i32, i32) {
    %c0_i32 = arith.constant 0 : i32
    %c0_i32_0 = arith.constant 0 : i32
    %c0_i32_1 = arith.constant 0 : i32
    return %c0_i32, %c0_i32_0 : i32, i32
  }
  func.func @transform_9(%arg0: i32) -> (i32, i32, i32) {
    %c0_i32 = arith.constant 0 : i32
    %c0_i32_0 = arith.constant 0 : i32
    %c0_i32_1 = arith.constant 0 : i32
    %c0_i32_2 = arith.constant 0 : i32
    return %c0_i32, %c0_i32_0, %c0_i32_1 : i32, i32, i32
  }
  func.func @transform_10(%arg0: i32) -> (i32, i32) {
    %c0_i32 = arith.constant 0 : i32
    %c0_i32_0 = arith.constant 0 : i32
    %c0_i32_1 = arith.constant 0 : i32
    return %c0_i32, %c0_i32_0 : i32, i32
  }
  func.func @transform_11(%arg0: i32) -> (i32, i32) {
    %c0_i32 = arith.constant 0 : i32
    %c0_i32_0 = arith.constant 0 : i32
    %c0_i32_1 = arith.constant 0 : i32
    return %c0_i32, %c0_i32_0 : i32, i32
  }
  func.func @transform_12(%arg0: i32) -> (i32, i32, i32) {
    %c0_i32 = arith.constant 0 : i32
    %c0_i32_0 = arith.constant 0 : i32
    %c0_i32_1 = arith.constant 0 : i32
    return %arg0, %c0_i32, %c0_i32_0 : i32, i32, i32
  }
}

module attributes {stable_mosaic.version = 11 : i64} {
  func.func @_token_block_kernel(%arg0: i32, %arg1: memref<1x4x32xbf16, #tpu.memory_space<vmem>>, %arg2: memref<1x49x8xbf16, #tpu.memory_space<vmem>>, %arg3: memref<32x32xbf16, #tpu.memory_space<vmem>>, %arg4: memref<8x32xbf16, #tpu.memory_space<vmem>>, %arg5: memref<8x32xbf16, #tpu.memory_space<vmem>>, %arg6: memref<32x32xbf16, #tpu.memory_space<vmem>>, %arg7: memref<1x32xf32, #tpu.memory_space<vmem>>, %arg8: memref<1x32xf32, #tpu.memory_space<vmem>>, %arg9: memref<32x32xbf16, #tpu.memory_space<vmem>>, %arg10: memref<32x32xbf16, #tpu.memory_space<vmem>>, %arg11: memref<32x32xbf16, #tpu.memory_space<vmem>>, %arg12: memref<32x32xbf16, #tpu.memory_space<vmem>>, %arg13: memref<1x32xf32, #tpu.memory_space<vmem>>, %arg14: memref<1x32xf32, #tpu.memory_space<vmem>>, %arg15: memref<32x64xbf16, #tpu.memory_space<vmem>>, %arg16: memref<1x64xf32, #tpu.memory_space<vmem>>, %arg17: memref<64x32xbf16, #tpu.memory_space<vmem>>, %arg18: memref<1x32xf32, #tpu.memory_space<vmem>>, %arg19: memref<1x4x32xbf16, #tpu.memory_space<vmem>>) attributes {dimension_semantics = [#tpu.dimension_semantics<parallel>], iteration_bounds = array<i64: 2>, scalar_prefetch = 0 : i64, scratch_operands = 0 : i64, tpu.core_type = #tpu.core_type<tc>, window_params = [{transform_indices = @transform_0, window_bounds = array<i64: 1, 4, 32>}, {transform_indices = @transform_1, window_bounds = array<i64: 1, 49, 8>}, {pipeline_mode = #tpu.pipeline_mode<synchronous>, transform_indices = @transform_2, window_bounds = array<i64: 32, 32>}, {pipeline_mode = #tpu.pipeline_mode<synchronous>, transform_indices = @transform_3, window_bounds = array<i64: 8, 32>}, {pipeline_mode = #tpu.pipeline_mode<synchronous>, transform_indices = @transform_4, window_bounds = array<i64: 8, 32>}, {pipeline_mode = #tpu.pipeline_mode<synchronous>, transform_indices = @transform_5, window_bounds = array<i64: 32, 32>}, {pipeline_mode = #tpu.pipeline_mode<synchronous>, transform_indices = @transform_6, window_bounds = array<i64: 1, 32>}, {pipeline_mode = #tpu.pipeline_mode<synchronous>, transform_indices = @transform_7, window_bounds = array<i64: 1, 32>}, {pipeline_mode = #tpu.pipeline_mode<synchronous>, transform_indices = @transform_8, window_bounds = array<i64: 32, 32>}, {pipeline_mode = #tpu.pipeline_mode<synchronous>, transform_indices = @transform_9, window_bounds = array<i64: 32, 32>}, {pipeline_mode = #tpu.pipeline_mode<synchronous>, transform_indices = @transform_10, window_bounds = array<i64: 32, 32>}, {pipeline_mode = #tpu.pipeline_mode<synchronous>, transform_indices = @transform_11, window_bounds = array<i64: 32, 32>}, {pipeline_mode = #tpu.pipeline_mode<synchronous>, transform_indices = @transform_12, window_bounds = array<i64: 1, 32>}, {pipeline_mode = #tpu.pipeline_mode<synchronous>, transform_indices = @transform_13, window_bounds = array<i64: 1, 32>}, {pipeline_mode = #tpu.pipeline_mode<synchronous>, transform_indices = @transform_14, window_bounds = array<i64: 32, 64>}, {pipeline_mode = #tpu.pipeline_mode<synchronous>, transform_indices = @transform_15, window_bounds = array<i64: 1, 64>}, {pipeline_mode = #tpu.pipeline_mode<synchronous>, transform_indices = @transform_16, window_bounds = array<i64: 64, 32>}, {pipeline_mode = #tpu.pipeline_mode<synchronous>, transform_indices = @transform_17, window_bounds = array<i64: 1, 32>}, {transform_indices = @transform_18, window_bounds = array<i64: 1, 4, 32>}]} {
    %c0 = arith.constant 0 : index
    %c0_0 = arith.constant 0 : index
    %c0_1 = arith.constant 0 : index
    %0 = vector.load %arg1[%c0, %c0_0, %c0_1] : memref<1x4x32xbf16, #tpu.memory_space<vmem>>, vector<1x4x32xbf16>
    %1 = vector.shape_cast %0 : vector<1x4x32xbf16> to vector<4x32xbf16>
    %2 = arith.extf %1 : vector<4x32xbf16> to vector<4x32xf32>
    %c0_2 = arith.constant 0 : index
    %c0_3 = arith.constant 0 : index
    %c0_4 = arith.constant 0 : index
    %3 = vector.load %arg2[%c0_2, %c0_3, %c0_4] : memref<1x49x8xbf16, #tpu.memory_space<vmem>>, vector<1x49x8xbf16>
    %4 = vector.shape_cast %3 : vector<1x49x8xbf16> to vector<49x8xbf16>
    %5 = arith.truncf %2 : vector<4x32xf32> to vector<4x32xbf16>
    %c0_5 = arith.constant 0 : index
    %c0_6 = arith.constant 0 : index
    %6 = vector.load %arg3[%c0_5, %c0_6] : memref<32x32xbf16, #tpu.memory_space<vmem>>, vector<32x32xbf16>
    %cst = arith.constant dense<0.000000e+00> : vector<4x32xf32>
    %7 = tpu.matmul %5, %6, %cst {dimension_numbers = #tpu.dot_dimension_numbers<[1], [0], [0], [1], [0, 0, 1, 1], [], []>} : vector<4x32xbf16>, vector<32x32xbf16>, vector<4x32xf32> -> vector<4x32xf32>
    %c0_7 = arith.constant 0 : index
    %c0_8 = arith.constant 0 : index
    %8 = vector.load %arg4[%c0_7, %c0_8] : memref<8x32xbf16, #tpu.memory_space<vmem>>, vector<8x32xbf16>
    %cst_9 = arith.constant dense<0.000000e+00> : vector<49x32xf32>
    %9 = tpu.matmul %4, %8, %cst_9 {dimension_numbers = #tpu.dot_dimension_numbers<[1], [0], [0], [1], [0, 0, 1, 1], [], []>} : vector<49x8xbf16>, vector<8x32xbf16>, vector<49x32xf32> -> vector<49x32xf32>
    %c0_10 = arith.constant 0 : index
    %c0_11 = arith.constant 0 : index
    %10 = vector.load %arg5[%c0_10, %c0_11] : memref<8x32xbf16, #tpu.memory_space<vmem>>, vector<8x32xbf16>
    %cst_12 = arith.constant dense<0.000000e+00> : vector<49x32xf32>
    %11 = tpu.matmul %4, %10, %cst_12 {dimension_numbers = #tpu.dot_dimension_numbers<[1], [0], [0], [1], [0, 0, 1, 1], [], []>} : vector<49x8xbf16>, vector<8x32xbf16>, vector<49x32xf32> -> vector<49x32xf32>
    %12 = vector.extract_strided_slice %7 {offsets = [0, 0], sizes = [4, 16], strides = [1, 1]} : vector<4x32xf32> to vector<4x16xf32>
    %13 = vector.extract_strided_slice %7 {offsets = [0, 16], sizes = [4, 16], strides = [1, 1]} : vector<4x32xf32> to vector<4x16xf32>
    %14 = vector.shape_cast %12 : vector<4x16xf32> to vector<1x4x16xf32>
    %15 = vector.shape_cast %13 : vector<4x16xf32> to vector<1x4x16xf32>
    %16 = tpu.concatenate %14, %15 in 0 : vector<1x4x16xf32>, vector<1x4x16xf32> -> vector<2x4x16xf32>
    %17 = arith.truncf %16 : vector<2x4x16xf32> to vector<2x4x16xbf16>
    %18 = vector.extract_strided_slice %9 {offsets = [0, 0], sizes = [49, 16], strides = [1, 1]} : vector<49x32xf32> to vector<49x16xf32>
    %19 = vector.extract_strided_slice %9 {offsets = [0, 16], sizes = [49, 16], strides = [1, 1]} : vector<49x32xf32> to vector<49x16xf32>
    %20 = vector.shape_cast %18 : vector<49x16xf32> to vector<1x49x16xf32>
    %21 = vector.shape_cast %19 : vector<49x16xf32> to vector<1x49x16xf32>
    %22 = tpu.concatenate %20, %21 in 0 : vector<1x49x16xf32>, vector<1x49x16xf32> -> vector<2x49x16xf32>
    %23 = arith.truncf %22 : vector<2x49x16xf32> to vector<2x49x16xbf16>
    %24 = vector.extract_strided_slice %11 {offsets = [0, 0], sizes = [49, 16], strides = [1, 1]} : vector<49x32xf32> to vector<49x16xf32>
    %25 = vector.extract_strided_slice %11 {offsets = [0, 16], sizes = [49, 16], strides = [1, 1]} : vector<49x32xf32> to vector<49x16xf32>
    %26 = vector.shape_cast %24 : vector<49x16xf32> to vector<1x49x16xf32>
    %27 = vector.shape_cast %25 : vector<49x16xf32> to vector<1x49x16xf32>
    %28 = tpu.concatenate %26, %27 in 0 : vector<1x49x16xf32>, vector<1x49x16xf32> -> vector<2x49x16xf32>
    %29 = arith.truncf %28 : vector<2x49x16xf32> to vector<2x49x16xbf16>
    "tpu.trace_start"() <{level = 10 : i32, message = "hqd,hkd->hqk"}> : () -> ()
    %cst_13 = arith.constant dense<0.000000e+00> : vector<2x4x49xf32>
    %30 = tpu.matmul %17, %23, %cst_13 {dimension_numbers = #tpu.dot_dimension_numbers<[2], [2], [1], [1], [0, 0, 0, 1, 1, 1], [0], [0]>} : vector<2x4x16xbf16>, vector<2x49x16xbf16>, vector<2x4x49xf32> -> vector<2x4x49xf32>
    "tpu.trace_stop"() : () -> ()
    %cst_14 = arith.constant 2.500000e-01 : f32
    %31 = vector.broadcast %cst_14 : f32 to vector<2x4x49xf32>
    %32 = arith.mulf %30, %31 : vector<2x4x49xf32>
    %cst_15 = arith.constant dense<0xFF800000> : vector<2x4xf32>
    %33 = vector.multi_reduction <maximumf>, %32, %cst_15 [2] : vector<2x4x49xf32> to vector<2x4xf32>
    %34 = vector.shape_cast %33 : vector<2x4xf32> to vector<2x4x1xf32>
    %35 = vector.broadcast %34 : vector<2x4x1xf32> to vector<2x4x49xf32>
    %36 = arith.subf %32, %35 : vector<2x4x49xf32>
    %37 = math.exp %36 : vector<2x4x49xf32>
    %cst_16 = arith.constant dense<0.000000e+00> : vector<2x4xf32>
    %38 = vector.multi_reduction <add>, %37, %cst_16 [2] : vector<2x4x49xf32> to vector<2x4xf32>
    %39 = vector.shape_cast %38 : vector<2x4xf32> to vector<2x4x1xf32>
    %40 = tpu.reciprocal %39 {approx = true} : vector<2x4x1xf32> -> vector<2x4x1xf32>
    %41 = vector.broadcast %40 : vector<2x4x1xf32> to vector<2x4x49xf32>
    %42 = arith.mulf %37, %41 : vector<2x4x49xf32>
    %43 = arith.truncf %42 : vector<2x4x49xf32> to vector<2x4x49xbf16>
    "tpu.trace_start"() <{level = 10 : i32, message = "hqk,hkd->hqd"}> : () -> ()
    %cst_17 = arith.constant dense<0.000000e+00> : vector<2x4x16xf32>
    %44 = tpu.matmul %43, %29, %cst_17 {dimension_numbers = #tpu.dot_dimension_numbers<[2], [1], [1], [2], [0, 0, 0, 1, 1, 2], [0], [0]>} : vector<2x4x49xbf16>, vector<2x49x16xbf16>, vector<2x4x16xf32> -> vector<2x4x16xf32>
    "tpu.trace_stop"() : () -> ()
    %45 = vector.extract_strided_slice %44 {offsets = [0, 0, 0], sizes = [1, 4, 16], strides = [1, 1, 1]} : vector<2x4x16xf32> to vector<1x4x16xf32>
    %46 = vector.shape_cast %45 : vector<1x4x16xf32> to vector<4x16xf32>
    %47 = vector.extract_strided_slice %44 {offsets = [1, 0, 0], sizes = [1, 4, 16], strides = [1, 1, 1]} : vector<2x4x16xf32> to vector<1x4x16xf32>
    %48 = vector.shape_cast %47 : vector<1x4x16xf32> to vector<4x16xf32>
    %49 = tpu.concatenate %46, %48 in 1 : vector<4x16xf32>, vector<4x16xf32> -> vector<4x32xf32>
    %50 = arith.truncf %49 : vector<4x32xf32> to vector<4x32xbf16>
    %c0_18 = arith.constant 0 : index
    %c0_19 = arith.constant 0 : index
    %51 = vector.load %arg6[%c0_18, %c0_19] : memref<32x32xbf16, #tpu.memory_space<vmem>>, vector<32x32xbf16>
    %cst_20 = arith.constant dense<0.000000e+00> : vector<4x32xf32>
    %52 = tpu.matmul %50, %51, %cst_20 {dimension_numbers = #tpu.dot_dimension_numbers<[1], [0], [0], [1], [0, 0, 1, 1], [], []>} : vector<4x32xbf16>, vector<32x32xbf16>, vector<4x32xf32> -> vector<4x32xf32>
    %53 = arith.addf %2, %52 : vector<4x32xf32>
    %c0_21 = arith.constant 0 : index
    %c0_22 = arith.constant 0 : index
    %54 = vector.load %arg7[%c0_21, %c0_22] : memref<1x32xf32, #tpu.memory_space<vmem>>, vector<1x32xf32>
    %c0_23 = arith.constant 0 : index
    %c0_24 = arith.constant 0 : index
    %55 = vector.load %arg8[%c0_23, %c0_24] : memref<1x32xf32, #tpu.memory_space<vmem>>, vector<1x32xf32>
    %cst_25 = arith.constant dense<0.000000e+00> : vector<4xf32>
    %56 = vector.multi_reduction <add>, %53, %cst_25 [1] : vector<4x32xf32> to vector<4xf32>
    %57 = vector.shape_cast %56 : vector<4xf32> to vector<4x1xf32>
    %cst_26 = arith.constant 3.200000e+01 : f32
    %58 = vector.broadcast %cst_26 : f32 to vector<4x1xf32>
    %59 = arith.divf %57, %58 : vector<4x1xf32>
    %60 = vector.broadcast %59 : vector<4x1xf32> to vector<4x32xf32>
    %61 = arith.subf %53, %60 : vector<4x32xf32>
    %62 = arith.mulf %61, %61 : vector<4x32xf32>
    %cst_27 = arith.constant dense<0.000000e+00> : vector<4xf32>
    %63 = vector.multi_reduction <add>, %62, %cst_27 [1] : vector<4x32xf32> to vector<4xf32>
    %64 = vector.shape_cast %63 : vector<4xf32> to vector<4x1xf32>
    %cst_28 = arith.constant 3.200000e+01 : f32
    %65 = vector.broadcast %cst_28 : f32 to vector<4x1xf32>
    %66 = arith.divf %64, %65 : vector<4x1xf32>
    %cst_29 = arith.constant 9.99999974E-6 : f32
    %67 = vector.broadcast %cst_29 : f32 to vector<4x1xf32>
    %68 = arith.addf %66, %67 : vector<4x1xf32>
    %69 = math.rsqrt %68 : vector<4x1xf32>
    %70 = vector.broadcast %69 : vector<4x1xf32> to vector<4x32xf32>
    %71 = arith.mulf %61, %70 : vector<4x32xf32>
    %72 = vector.broadcast %54 : vector<1x32xf32> to vector<4x32xf32>
    %73 = arith.mulf %71, %72 : vector<4x32xf32>
    %74 = vector.broadcast %55 : vector<1x32xf32> to vector<4x32xf32>
    %75 = arith.addf %73, %74 : vector<4x32xf32>
    %76 = arith.truncf %75 : vector<4x32xf32> to vector<4x32xbf16>
    %c0_30 = arith.constant 0 : index
    %c0_31 = arith.constant 0 : index
    %77 = vector.load %arg9[%c0_30, %c0_31] : memref<32x32xbf16, #tpu.memory_space<vmem>>, vector<32x32xbf16>
    %cst_32 = arith.constant dense<0.000000e+00> : vector<4x32xf32>
    %78 = tpu.matmul %76, %77, %cst_32 {dimension_numbers = #tpu.dot_dimension_numbers<[1], [0], [0], [1], [0, 0, 1, 1], [], []>} : vector<4x32xbf16>, vector<32x32xbf16>, vector<4x32xf32> -> vector<4x32xf32>
    %c0_33 = arith.constant 0 : index
    %c0_34 = arith.constant 0 : index
    %79 = vector.load %arg10[%c0_33, %c0_34] : memref<32x32xbf16, #tpu.memory_space<vmem>>, vector<32x32xbf16>
    %cst_35 = arith.constant dense<0.000000e+00> : vector<4x32xf32>
    %80 = tpu.matmul %76, %79, %cst_35 {dimension_numbers = #tpu.dot_dimension_numbers<[1], [0], [0], [1], [0, 0, 1, 1], [], []>} : vector<4x32xbf16>, vector<32x32xbf16>, vector<4x32xf32> -> vector<4x32xf32>
    %c0_36 = arith.constant 0 : index
    %c0_37 = arith.constant 0 : index
    %81 = vector.load %arg11[%c0_36, %c0_37] : memref<32x32xbf16, #tpu.memory_space<vmem>>, vector<32x32xbf16>
    %cst_38 = arith.constant dense<0.000000e+00> : vector<4x32xf32>
    %82 = tpu.matmul %76, %81, %cst_38 {dimension_numbers = #tpu.dot_dimension_numbers<[1], [0], [0], [1], [0, 0, 1, 1], [], []>} : vector<4x32xbf16>, vector<32x32xbf16>, vector<4x32xf32> -> vector<4x32xf32>
    %83 = vector.extract_strided_slice %78 {offsets = [0, 0], sizes = [4, 16], strides = [1, 1]} : vector<4x32xf32> to vector<4x16xf32>
    %84 = vector.extract_strided_slice %78 {offsets = [0, 16], sizes = [4, 16], strides = [1, 1]} : vector<4x32xf32> to vector<4x16xf32>
    %85 = vector.shape_cast %83 : vector<4x16xf32> to vector<1x4x16xf32>
    %86 = vector.shape_cast %84 : vector<4x16xf32> to vector<1x4x16xf32>
    %87 = tpu.concatenate %85, %86 in 0 : vector<1x4x16xf32>, vector<1x4x16xf32> -> vector<2x4x16xf32>
    %88 = arith.truncf %87 : vector<2x4x16xf32> to vector<2x4x16xbf16>
    %89 = vector.extract_strided_slice %80 {offsets = [0, 0], sizes = [4, 16], strides = [1, 1]} : vector<4x32xf32> to vector<4x16xf32>
    %90 = vector.extract_strided_slice %80 {offsets = [0, 16], sizes = [4, 16], strides = [1, 1]} : vector<4x32xf32> to vector<4x16xf32>
    %91 = vector.shape_cast %89 : vector<4x16xf32> to vector<1x4x16xf32>
    %92 = vector.shape_cast %90 : vector<4x16xf32> to vector<1x4x16xf32>
    %93 = tpu.concatenate %91, %92 in 0 : vector<1x4x16xf32>, vector<1x4x16xf32> -> vector<2x4x16xf32>
    %94 = arith.truncf %93 : vector<2x4x16xf32> to vector<2x4x16xbf16>
    %95 = vector.extract_strided_slice %82 {offsets = [0, 0], sizes = [4, 16], strides = [1, 1]} : vector<4x32xf32> to vector<4x16xf32>
    %96 = vector.extract_strided_slice %82 {offsets = [0, 16], sizes = [4, 16], strides = [1, 1]} : vector<4x32xf32> to vector<4x16xf32>
    %97 = vector.shape_cast %95 : vector<4x16xf32> to vector<1x4x16xf32>
    %98 = vector.shape_cast %96 : vector<4x16xf32> to vector<1x4x16xf32>
    %99 = tpu.concatenate %97, %98 in 0 : vector<1x4x16xf32>, vector<1x4x16xf32> -> vector<2x4x16xf32>
    %100 = arith.truncf %99 : vector<2x4x16xf32> to vector<2x4x16xbf16>
    "tpu.trace_start"() <{level = 10 : i32, message = "hqd,hkd->hqk"}> : () -> ()
    %cst_39 = arith.constant dense<0.000000e+00> : vector<2x4x4xf32>
    %101 = tpu.matmul %88, %94, %cst_39 {dimension_numbers = #tpu.dot_dimension_numbers<[2], [2], [1], [1], [0, 0, 0, 1, 1, 1], [0], [0]>} : vector<2x4x16xbf16>, vector<2x4x16xbf16>, vector<2x4x4xf32> -> vector<2x4x4xf32>
    "tpu.trace_stop"() : () -> ()
    %cst_40 = arith.constant 2.500000e-01 : f32
    %102 = vector.broadcast %cst_40 : f32 to vector<2x4x4xf32>
    %103 = arith.mulf %101, %102 : vector<2x4x4xf32>
    %cst_41 = arith.constant dense<0xFF800000> : vector<2x4xf32>
    %104 = vector.multi_reduction <maximumf>, %103, %cst_41 [2] : vector<2x4x4xf32> to vector<2x4xf32>
    %105 = vector.shape_cast %104 : vector<2x4xf32> to vector<2x4x1xf32>
    %106 = vector.broadcast %105 : vector<2x4x1xf32> to vector<2x4x4xf32>
    %107 = arith.subf %103, %106 : vector<2x4x4xf32>
    %108 = math.exp %107 : vector<2x4x4xf32>
    %cst_42 = arith.constant dense<0.000000e+00> : vector<2x4xf32>
    %109 = vector.multi_reduction <add>, %108, %cst_42 [2] : vector<2x4x4xf32> to vector<2x4xf32>
    %110 = vector.shape_cast %109 : vector<2x4xf32> to vector<2x4x1xf32>
    %111 = tpu.reciprocal %110 {approx = true} : vector<2x4x1xf32> -> vector<2x4x1xf32>
    %112 = vector.broadcast %111 : vector<2x4x1xf32> to vector<2x4x4xf32>
    %113 = arith.mulf %108, %112 : vector<2x4x4xf32>
    %114 = arith.truncf %113 : vector<2x4x4xf32> to vector<2x4x4xbf16>
    "tpu.trace_start"() <{level = 10 : i32, message = "hqk,hkd->hqd"}> : () -> ()
    %cst_43 = arith.constant dense<0.000000e+00> : vector<2x4x16xf32>
    %115 = tpu.matmul %114, %100, %cst_43 {dimension_numbers = #tpu.dot_dimension_numbers<[2], [1], [1], [2], [0, 0, 0, 1, 1, 2], [0], [0]>} : vector<2x4x4xbf16>, vector<2x4x16xbf16>, vector<2x4x16xf32> -> vector<2x4x16xf32>
    "tpu.trace_stop"() : () -> ()
    %116 = vector.extract_strided_slice %115 {offsets = [0, 0, 0], sizes = [1, 4, 16], strides = [1, 1, 1]} : vector<2x4x16xf32> to vector<1x4x16xf32>
    %117 = vector.shape_cast %116 : vector<1x4x16xf32> to vector<4x16xf32>
    %118 = vector.extract_strided_slice %115 {offsets = [1, 0, 0], sizes = [1, 4, 16], strides = [1, 1, 1]} : vector<2x4x16xf32> to vector<1x4x16xf32>
    %119 = vector.shape_cast %118 : vector<1x4x16xf32> to vector<4x16xf32>
    %120 = tpu.concatenate %117, %119 in 1 : vector<4x16xf32>, vector<4x16xf32> -> vector<4x32xf32>
    %121 = arith.truncf %120 : vector<4x32xf32> to vector<4x32xbf16>
    %c0_44 = arith.constant 0 : index
    %c0_45 = arith.constant 0 : index
    %122 = vector.load %arg12[%c0_44, %c0_45] : memref<32x32xbf16, #tpu.memory_space<vmem>>, vector<32x32xbf16>
    %cst_46 = arith.constant dense<0.000000e+00> : vector<4x32xf32>
    %123 = tpu.matmul %121, %122, %cst_46 {dimension_numbers = #tpu.dot_dimension_numbers<[1], [0], [0], [1], [0, 0, 1, 1], [], []>} : vector<4x32xbf16>, vector<32x32xbf16>, vector<4x32xf32> -> vector<4x32xf32>
    %124 = arith.addf %53, %123 : vector<4x32xf32>
    %c0_47 = arith.constant 0 : index
    %c0_48 = arith.constant 0 : index
    %125 = vector.load %arg13[%c0_47, %c0_48] : memref<1x32xf32, #tpu.memory_space<vmem>>, vector<1x32xf32>
    %c0_49 = arith.constant 0 : index
    %c0_50 = arith.constant 0 : index
    %126 = vector.load %arg14[%c0_49, %c0_50] : memref<1x32xf32, #tpu.memory_space<vmem>>, vector<1x32xf32>
    %cst_51 = arith.constant dense<0.000000e+00> : vector<4xf32>
    %127 = vector.multi_reduction <add>, %124, %cst_51 [1] : vector<4x32xf32> to vector<4xf32>
    %128 = vector.shape_cast %127 : vector<4xf32> to vector<4x1xf32>
    %cst_52 = arith.constant 3.200000e+01 : f32
    %129 = vector.broadcast %cst_52 : f32 to vector<4x1xf32>
    %130 = arith.divf %128, %129 : vector<4x1xf32>
    %131 = vector.broadcast %130 : vector<4x1xf32> to vector<4x32xf32>
    %132 = arith.subf %124, %131 : vector<4x32xf32>
    %133 = arith.mulf %132, %132 : vector<4x32xf32>
    %cst_53 = arith.constant dense<0.000000e+00> : vector<4xf32>
    %134 = vector.multi_reduction <add>, %133, %cst_53 [1] : vector<4x32xf32> to vector<4xf32>
    %135 = vector.shape_cast %134 : vector<4xf32> to vector<4x1xf32>
    %cst_54 = arith.constant 3.200000e+01 : f32
    %136 = vector.broadcast %cst_54 : f32 to vector<4x1xf32>
    %137 = arith.divf %135, %136 : vector<4x1xf32>
    %cst_55 = arith.constant 9.99999974E-6 : f32
    %138 = vector.broadcast %cst_55 : f32 to vector<4x1xf32>
    %139 = arith.addf %137, %138 : vector<4x1xf32>
    %140 = math.rsqrt %139 : vector<4x1xf32>
    %141 = vector.broadcast %140 : vector<4x1xf32> to vector<4x32xf32>
    %142 = arith.mulf %132, %141 : vector<4x32xf32>
    %143 = vector.broadcast %125 : vector<1x32xf32> to vector<4x32xf32>
    %144 = arith.mulf %142, %143 : vector<4x32xf32>
    %145 = vector.broadcast %126 : vector<1x32xf32> to vector<4x32xf32>
    %146 = arith.addf %144, %145 : vector<4x32xf32>
    %147 = arith.truncf %146 : vector<4x32xf32> to vector<4x32xbf16>
    %c0_56 = arith.constant 0 : index
    %c0_57 = arith.constant 0 : index
    %148 = vector.load %arg15[%c0_56, %c0_57] : memref<32x64xbf16, #tpu.memory_space<vmem>>, vector<32x64xbf16>
    %cst_58 = arith.constant dense<0.000000e+00> : vector<4x64xf32>
    %149 = tpu.matmul %147, %148, %cst_58 {dimension_numbers = #tpu.dot_dimension_numbers<[1], [0], [0], [1], [0, 0, 1, 1], [], []>} : vector<4x32xbf16>, vector<32x64xbf16>, vector<4x64xf32> -> vector<4x64xf32>
    %c0_59 = arith.constant 0 : index
    %c0_60 = arith.constant 0 : index
    %150 = vector.load %arg16[%c0_59, %c0_60] : memref<1x64xf32, #tpu.memory_space<vmem>>, vector<1x64xf32>
    %151 = vector.broadcast %150 : vector<1x64xf32> to vector<4x64xf32>
    %152 = arith.addf %149, %151 : vector<4x64xf32>
    %cst_61 = arith.constant 3.000000e+00 : f32
    %153 = vector.broadcast %cst_61 : f32 to vector<4x64xf32>
    %154 = arith.addf %152, %153 : vector<4x64xf32>
    %cst_62 = arith.constant 0.000000e+00 : f32
    %cst_63 = arith.constant 6.000000e+00 : f32
    %155 = vector.broadcast %cst_62 : f32 to vector<4x64xf32>
    %156 = arith.maximumf %155, %154 : vector<4x64xf32>
    %157 = vector.broadcast %cst_63 : f32 to vector<4x64xf32>
    %158 = arith.minimumf %157, %156 : vector<4x64xf32>
    %159 = arith.mulf %152, %158 : vector<4x64xf32>
    %cst_64 = arith.constant 0.166666672 : f32
    %160 = vector.broadcast %cst_64 : f32 to vector<4x64xf32>
    %161 = arith.mulf %159, %160 : vector<4x64xf32>
    %162 = arith.truncf %161 : vector<4x64xf32> to vector<4x64xbf16>
    %c0_65 = arith.constant 0 : index
    %c0_66 = arith.constant 0 : index
    %163 = vector.load %arg17[%c0_65, %c0_66] : memref<64x32xbf16, #tpu.memory_space<vmem>>, vector<64x32xbf16>
    %cst_67 = arith.constant dense<0.000000e+00> : vector<4x32xf32>
    %164 = tpu.matmul %162, %163, %cst_67 {dimension_numbers = #tpu.dot_dimension_numbers<[1], [0], [0], [1], [0, 0, 1, 1], [], []>} : vector<4x64xbf16>, vector<64x32xbf16>, vector<4x32xf32> -> vector<4x32xf32>
    %165 = arith.addf %124, %164 : vector<4x32xf32>
    %c0_68 = arith.constant 0 : index
    %c0_69 = arith.constant 0 : index
    %166 = vector.load %arg18[%c0_68, %c0_69] : memref<1x32xf32, #tpu.memory_space<vmem>>, vector<1x32xf32>
    %167 = vector.broadcast %166 : vector<1x32xf32> to vector<4x32xf32>
    %168 = arith.addf %165, %167 : vector<4x32xf32>
    %169 = arith.truncf %168 : vector<4x32xf32> to vector<4x32xbf16>
    %c0_70 = arith.constant 0 : index
    %c0_71 = arith.constant 0 : index
    %c0_72 = arith.constant 0 : index
    %170 = vector.load %arg19[%c0_70, %c0_71, %c0_72] : memref<1x4x32xbf16, #tpu.memory_space<vmem>>, vector<1x4x32xbf16>
    %171 = vector.shape_cast %170 : vector<1x4x32xbf16> to vector<4x32xbf16>
    %172 = vector.shape_cast %169 : vector<4x32xbf16> to vector<1x4x32xbf16>
    tpu.vector_store %arg19[%c0_70, %c0_71, %c0_72], %172 {strides = array<i32>} : memref<1x4x32xbf16, #tpu.memory_space<vmem>>, vector<1x4x32xbf16>,
    return
  }
  func.func @transform_0(%arg0: i32) -> (i32, i32, i32) {
    %c0_i32 = arith.constant 0 : i32
    %c0_i32_0 = arith.constant 0 : i32
    %c0_i32_1 = arith.constant 0 : i32
    return %arg0, %c0_i32, %c0_i32_0 : i32, i32, i32
  }
  func.func @transform_1(%arg0: i32) -> (i32, i32, i32) {
    %c0_i32 = arith.constant 0 : i32
    %c0_i32_0 = arith.constant 0 : i32
    %c0_i32_1 = arith.constant 0 : i32
    return %arg0, %c0_i32, %c0_i32_0 : i32, i32, i32
  }
  func.func @transform_2(%arg0: i32) -> (i32, i32) {
    %c0_i32 = arith.constant 0 : i32
    %c0_i32_0 = arith.constant 0 : i32
    %c0_i32_1 = arith.constant 0 : i32
    return %c0_i32, %c0_i32_0 : i32, i32
  }
  func.func @transform_3(%arg0: i32) -> (i32, i32) {
    %c0_i32 = arith.constant 0 : i32
    %c0_i32_0 = arith.constant 0 : i32
    %c0_i32_1 = arith.constant 0 : i32
    return %c0_i32, %c0_i32_0 : i32, i32
  }
  func.func @transform_4(%arg0: i32) -> (i32, i32) {
    %c0_i32 = arith.constant 0 : i32
    %c0_i32_0 = arith.constant 0 : i32
    %c0_i32_1 = arith.constant 0 : i32
    return %c0_i32, %c0_i32_0 : i32, i32
  }
  func.func @transform_5(%arg0: i32) -> (i32, i32) {
    %c0_i32 = arith.constant 0 : i32
    %c0_i32_0 = arith.constant 0 : i32
    %c0_i32_1 = arith.constant 0 : i32
    return %c0_i32, %c0_i32_0 : i32, i32
  }
  func.func @transform_6(%arg0: i32) -> (i32, i32) {
    %c0_i32 = arith.constant 0 : i32
    %c0_i32_0 = arith.constant 0 : i32
    %c0_i32_1 = arith.constant 0 : i32
    return %c0_i32, %c0_i32_0 : i32, i32
  }
  func.func @transform_7(%arg0: i32) -> (i32, i32) {
    %c0_i32 = arith.constant 0 : i32
    %c0_i32_0 = arith.constant 0 : i32
    %c0_i32_1 = arith.constant 0 : i32
    return %c0_i32, %c0_i32_0 : i32, i32
  }
  func.func @transform_8(%arg0: i32) -> (i32, i32) {
    %c0_i32 = arith.constant 0 : i32
    %c0_i32_0 = arith.constant 0 : i32
    %c0_i32_1 = arith.constant 0 : i32
    return %c0_i32, %c0_i32_0 : i32, i32
  }
  func.func @transform_9(%arg0: i32) -> (i32, i32) {
    %c0_i32 = arith.constant 0 : i32
    %c0_i32_0 = arith.constant 0 : i32
    %c0_i32_1 = arith.constant 0 : i32
    return %c0_i32, %c0_i32_0 : i32, i32
  }
  func.func @transform_10(%arg0: i32) -> (i32, i32) {
    %c0_i32 = arith.constant 0 : i32
    %c0_i32_0 = arith.constant 0 : i32
    %c0_i32_1 = arith.constant 0 : i32
    return %c0_i32, %c0_i32_0 : i32, i32
  }
  func.func @transform_11(%arg0: i32) -> (i32, i32) {
    %c0_i32 = arith.constant 0 : i32
    %c0_i32_0 = arith.constant 0 : i32
    %c0_i32_1 = arith.constant 0 : i32
    return %c0_i32, %c0_i32_0 : i32, i32
  }
  func.func @transform_12(%arg0: i32) -> (i32, i32) {
    %c0_i32 = arith.constant 0 : i32
    %c0_i32_0 = arith.constant 0 : i32
    %c0_i32_1 = arith.constant 0 : i32
    return %c0_i32, %c0_i32_0 : i32, i32
  }
  func.func @transform_13(%arg0: i32) -> (i32, i32) {
    %c0_i32 = arith.constant 0 : i32
    %c0_i32_0 = arith.constant 0 : i32
    %c0_i32_1 = arith.constant 0 : i32
    return %c0_i32, %c0_i32_0 : i32, i32
  }
  func.func @transform_14(%arg0: i32) -> (i32, i32) {
    %c0_i32 = arith.constant 0 : i32
    %c0_i32_0 = arith.constant 0 : i32
    %c0_i32_1 = arith.constant 0 : i32
    return %c0_i32, %c0_i32_0 : i32, i32
  }
  func.func @transform_15(%arg0: i32) -> (i32, i32) {
    %c0_i32 = arith.constant 0 : i32
    %c0_i32_0 = arith.constant 0 : i32
    %c0_i32_1 = arith.constant 0 : i32
    return %c0_i32, %c0_i32_0 : i32, i32
  }
  func.func @transform_16(%arg0: i32) -> (i32, i32) {
    %c0_i32 = arith.constant 0 : i32
    %c0_i32_0 = arith.constant 0 : i32
    %c0_i32_1 = arith.constant 0 : i32
    return %c0_i32, %c0_i32_0 : i32, i32
  }
  func.func @transform_17(%arg0: i32) -> (i32, i32) {
    %c0_i32 = arith.constant 0 : i32
    %c0_i32_0 = arith.constant 0 : i32
    %c0_i32_1 = arith.constant 0 : i32
    return %c0_i32, %c0_i32_0 : i32, i32
  }
  func.func @transform_18(%arg0: i32) -> (i32, i32, i32) {
    %c0_i32 = arith.constant 0 : i32
    %c0_i32_0 = arith.constant 0 : i32
    %c0_i32_1 = arith.constant 0 : i32
    return %arg0, %c0_i32, %c0_i32_0 : i32, i32, i32
  }
}

module attributes {stable_mosaic.version = 11 : i64} {
  func.func @_mbconv_kernel(%arg0: i32, %arg1: memref<1x49x8xbf16, #tpu.memory_space<vmem>>, %arg2: memref<8x16xbf16, #tpu.memory_space<vmem>>, %arg3: memref<1x16xf32, #tpu.memory_space<vmem>>, %arg4: memref<1x16xf32, #tpu.memory_space<vmem>>, %arg5: memref<9x16xf32, #tpu.memory_space<vmem>>, %arg6: memref<1x16xf32, #tpu.memory_space<vmem>>, %arg7: memref<1x16xf32, #tpu.memory_space<vmem>>, %arg8: memref<16x8xbf16, #tpu.memory_space<vmem>>, %arg9: memref<1x8xf32, #tpu.memory_space<vmem>>, %arg10: memref<1x8xf32, #tpu.memory_space<vmem>>, %arg11: memref<1x49x8xbf16, #tpu.memory_space<vmem>>) attributes {dimension_semantics = [#tpu.dimension_semantics<parallel>], iteration_bounds = array<i64: 2>, scalar_prefetch = 0 : i64, scratch_operands = 0 : i64, tpu.core_type = #tpu.core_type<tc>, window_params = [{transform_indices = @transform_0, window_bounds = array<i64: 1, 49, 8>}, {pipeline_mode = #tpu.pipeline_mode<synchronous>, transform_indices = @transform_1, window_bounds = array<i64: 8, 16>}, {pipeline_mode = #tpu.pipeline_mode<synchronous>, transform_indices = @transform_2, window_bounds = array<i64: 1, 16>}, {pipeline_mode = #tpu.pipeline_mode<synchronous>, transform_indices = @transform_3, window_bounds = array<i64: 1, 16>}, {pipeline_mode = #tpu.pipeline_mode<synchronous>, transform_indices = @transform_4, window_bounds = array<i64: 9, 16>}, {pipeline_mode = #tpu.pipeline_mode<synchronous>, transform_indices = @transform_5, window_bounds = array<i64: 1, 16>}, {pipeline_mode = #tpu.pipeline_mode<synchronous>, transform_indices = @transform_6, window_bounds = array<i64: 1, 16>}, {pipeline_mode = #tpu.pipeline_mode<synchronous>, transform_indices = @transform_7, window_bounds = array<i64: 16, 8>}, {pipeline_mode = #tpu.pipeline_mode<synchronous>, transform_indices = @transform_8, window_bounds = array<i64: 1, 8>}, {pipeline_mode = #tpu.pipeline_mode<synchronous>, transform_indices = @transform_9, window_bounds = array<i64: 1, 8>}, {transform_indices = @transform_10, window_bounds = array<i64: 1, 49, 8>}]} {
    %c0 = arith.constant 0 : index
    %c0_0 = arith.constant 0 : index
    %c0_1 = arith.constant 0 : index
    %0 = vector.load %arg1[%c0, %c0_0, %c0_1] : memref<1x49x8xbf16, #tpu.memory_space<vmem>>, vector<1x49x8xbf16>
    %1 = vector.shape_cast %0 : vector<1x49x8xbf16> to vector<49x8xbf16>
    %c0_2 = arith.constant 0 : index
    %c0_3 = arith.constant 0 : index
    %2 = vector.load %arg2[%c0_2, %c0_3] : memref<8x16xbf16, #tpu.memory_space<vmem>>, vector<8x16xbf16>
    %cst = arith.constant dense<0.000000e+00> : vector<49x16xf32>
    %3 = tpu.matmul %1, %2, %cst {dimension_numbers = #tpu.dot_dimension_numbers<[1], [0], [0], [1], [0, 0, 1, 1], [], []>} : vector<49x8xbf16>, vector<8x16xbf16>, vector<49x16xf32> -> vector<49x16xf32>
    %c0_4 = arith.constant 0 : index
    %c0_5 = arith.constant 0 : index
    %4 = vector.load %arg3[%c0_4, %c0_5] : memref<1x16xf32, #tpu.memory_space<vmem>>, vector<1x16xf32>
    %5 = vector.broadcast %4 : vector<1x16xf32> to vector<49x16xf32>
    %6 = arith.mulf %3, %5 : vector<49x16xf32>
    %c0_6 = arith.constant 0 : index
    %c0_7 = arith.constant 0 : index
    %7 = vector.load %arg4[%c0_6, %c0_7] : memref<1x16xf32, #tpu.memory_space<vmem>>, vector<1x16xf32>
    %8 = vector.broadcast %7 : vector<1x16xf32> to vector<49x16xf32>
    %9 = arith.addf %6, %8 : vector<49x16xf32>
    %cst_8 = arith.constant 3.000000e+00 : f32
    %10 = vector.broadcast %cst_8 : f32 to vector<49x16xf32>
    %11 = arith.addf %9, %10 : vector<49x16xf32>
    %cst_9 = arith.constant 0.000000e+00 : f32
    %cst_10 = arith.constant 6.000000e+00 : f32
    %12 = vector.broadcast %cst_9 : f32 to vector<49x16xf32>
    %13 = arith.maximumf %12, %11 : vector<49x16xf32>
    %14 = vector.broadcast %cst_10 : f32 to vector<49x16xf32>
    %15 = arith.minimumf %14, %13 : vector<49x16xf32>
    %16 = arith.mulf %9, %15 : vector<49x16xf32>
    %cst_11 = arith.constant 0.166666672 : f32
    %17 = vector.broadcast %cst_11 : f32 to vector<49x16xf32>
    %18 = arith.mulf %16, %17 : vector<49x16xf32>
    %19 = vector.shape_cast %18 : vector<49x16xf32> to vector<7x7x16xf32>
    %cst_12 = arith.constant 0.000000e+00 : f32
    %20 = vector.broadcast %cst_12 : f32 to vector<7x1x16xf32>
    %21 = tpu.concatenate %20, %19, %20 in 1 : vector<7x1x16xf32>, vector<7x7x16xf32>, vector<7x1x16xf32> -> vector<7x9x16xf32>
    %cst_13 = arith.constant 0.000000e+00 : f32
    %22 = vector.broadcast %cst_13 : f32 to vector<1x9x16xf32>
    %23 = tpu.concatenate %22, %21, %22 in 0 : vector<1x9x16xf32>, vector<7x9x16xf32>, vector<1x9x16xf32> -> vector<9x9x16xf32>
    %c0_14 = arith.constant 0 : index
    %c0_15 = arith.constant 0 : index
    %24 = vector.load %arg5[%c0_14, %c0_15] : memref<9x16xf32, #tpu.memory_space<vmem>>, vector<9x16xf32>
    %cst_16 = arith.constant 0.000000e+00 : f32
    %25 = vector.broadcast %cst_16 : f32 to vector<7x7x16xf32>
    %26 = vector.extract_strided_slice %23 {offsets = [0, 0, 0], sizes = [7, 7, 16], strides = [1, 1, 1]} : vector<9x9x16xf32> to vector<7x7x16xf32>
    %27 = vector.extract_strided_slice %24 {offsets = [0, 0], sizes = [1, 16], strides = [1, 1]} : vector<9x16xf32> to vector<1x16xf32>
    %28 = vector.shape_cast %27 : vector<1x16xf32> to vector<16xf32>
    %29 = vector.shape_cast %28 : vector<16xf32> to vector<1x1x16xf32>
    %30 = vector.broadcast %29 : vector<1x1x16xf32> to vector<7x7x16xf32>
    %31 = arith.mulf %26, %30 : vector<7x7x16xf32>
    %32 = arith.addf %25, %31 : vector<7x7x16xf32>
    %33 = vector.extract_strided_slice %23 {offsets = [0, 1, 0], sizes = [7, 7, 16], strides = [1, 1, 1]} : vector<9x9x16xf32> to vector<7x7x16xf32>
    %34 = vector.extract_strided_slice %24 {offsets = [1, 0], sizes = [1, 16], strides = [1, 1]} : vector<9x16xf32> to vector<1x16xf32>
    %35 = vector.shape_cast %34 : vector<1x16xf32> to vector<16xf32>
    %36 = vector.shape_cast %35 : vector<16xf32> to vector<1x1x16xf32>
    %37 = vector.broadcast %36 : vector<1x1x16xf32> to vector<7x7x16xf32>
    %38 = arith.mulf %33, %37 : vector<7x7x16xf32>
    %39 = arith.addf %32, %38 : vector<7x7x16xf32>
    %40 = vector.extract_strided_slice %23 {offsets = [0, 2, 0], sizes = [7, 7, 16], strides = [1, 1, 1]} : vector<9x9x16xf32> to vector<7x7x16xf32>
    %41 = vector.extract_strided_slice %24 {offsets = [2, 0], sizes = [1, 16], strides = [1, 1]} : vector<9x16xf32> to vector<1x16xf32>
    %42 = vector.shape_cast %41 : vector<1x16xf32> to vector<16xf32>
    %43 = vector.shape_cast %42 : vector<16xf32> to vector<1x1x16xf32>
    %44 = vector.broadcast %43 : vector<1x1x16xf32> to vector<7x7x16xf32>
    %45 = arith.mulf %40, %44 : vector<7x7x16xf32>
    %46 = arith.addf %39, %45 : vector<7x7x16xf32>
    %47 = vector.extract_strided_slice %23 {offsets = [1, 0, 0], sizes = [7, 7, 16], strides = [1, 1, 1]} : vector<9x9x16xf32> to vector<7x7x16xf32>
    %48 = vector.extract_strided_slice %24 {offsets = [3, 0], sizes = [1, 16], strides = [1, 1]} : vector<9x16xf32> to vector<1x16xf32>
    %49 = vector.shape_cast %48 : vector<1x16xf32> to vector<16xf32>
    %50 = vector.shape_cast %49 : vector<16xf32> to vector<1x1x16xf32>
    %51 = vector.broadcast %50 : vector<1x1x16xf32> to vector<7x7x16xf32>
    %52 = arith.mulf %47, %51 : vector<7x7x16xf32>
    %53 = arith.addf %46, %52 : vector<7x7x16xf32>
    %54 = vector.extract_strided_slice %23 {offsets = [1, 1, 0], sizes = [7, 7, 16], strides = [1, 1, 1]} : vector<9x9x16xf32> to vector<7x7x16xf32>
    %55 = vector.extract_strided_slice %24 {offsets = [4, 0], sizes = [1, 16], strides = [1, 1]} : vector<9x16xf32> to vector<1x16xf32>
    %56 = vector.shape_cast %55 : vector<1x16xf32> to vector<16xf32>
    %57 = vector.shape_cast %56 : vector<16xf32> to vector<1x1x16xf32>
    %58 = vector.broadcast %57 : vector<1x1x16xf32> to vector<7x7x16xf32>
    %59 = arith.mulf %54, %58 : vector<7x7x16xf32>
    %60 = arith.addf %53, %59 : vector<7x7x16xf32>
    %61 = vector.extract_strided_slice %23 {offsets = [1, 2, 0], sizes = [7, 7, 16], strides = [1, 1, 1]} : vector<9x9x16xf32> to vector<7x7x16xf32>
    %62 = vector.extract_strided_slice %24 {offsets = [5, 0], sizes = [1, 16], strides = [1, 1]} : vector<9x16xf32> to vector<1x16xf32>
    %63 = vector.shape_cast %62 : vector<1x16xf32> to vector<16xf32>
    %64 = vector.shape_cast %63 : vector<16xf32> to vector<1x1x16xf32>
    %65 = vector.broadcast %64 : vector<1x1x16xf32> to vector<7x7x16xf32>
    %66 = arith.mulf %61, %65 : vector<7x7x16xf32>
    %67 = arith.addf %60, %66 : vector<7x7x16xf32>
    %68 = vector.extract_strided_slice %23 {offsets = [2, 0, 0], sizes = [7, 7, 16], strides = [1, 1, 1]} : vector<9x9x16xf32> to vector<7x7x16xf32>
    %69 = vector.extract_strided_slice %24 {offsets = [6, 0], sizes = [1, 16], strides = [1, 1]} : vector<9x16xf32> to vector<1x16xf32>
    %70 = vector.shape_cast %69 : vector<1x16xf32> to vector<16xf32>
    %71 = vector.shape_cast %70 : vector<16xf32> to vector<1x1x16xf32>
    %72 = vector.broadcast %71 : vector<1x1x16xf32> to vector<7x7x16xf32>
    %73 = arith.mulf %68, %72 : vector<7x7x16xf32>
    %74 = arith.addf %67, %73 : vector<7x7x16xf32>
    %75 = vector.extract_strided_slice %23 {offsets = [2, 1, 0], sizes = [7, 7, 16], strides = [1, 1, 1]} : vector<9x9x16xf32> to vector<7x7x16xf32>
    %76 = vector.extract_strided_slice %24 {offsets = [7, 0], sizes = [1, 16], strides = [1, 1]} : vector<9x16xf32> to vector<1x16xf32>
    %77 = vector.shape_cast %76 : vector<1x16xf32> to vector<16xf32>
    %78 = vector.shape_cast %77 : vector<16xf32> to vector<1x1x16xf32>
    %79 = vector.broadcast %78 : vector<1x1x16xf32> to vector<7x7x16xf32>
    %80 = arith.mulf %75, %79 : vector<7x7x16xf32>
    %81 = arith.addf %74, %80 : vector<7x7x16xf32>
    %82 = vector.extract_strided_slice %23 {offsets = [2, 2, 0], sizes = [7, 7, 16], strides = [1, 1, 1]} : vector<9x9x16xf32> to vector<7x7x16xf32>
    %83 = vector.extract_strided_slice %24 {offsets = [8, 0], sizes = [1, 16], strides = [1, 1]} : vector<9x16xf32> to vector<1x16xf32>
    %84 = vector.shape_cast %83 : vector<1x16xf32> to vector<16xf32>
    %85 = vector.shape_cast %84 : vector<16xf32> to vector<1x1x16xf32>
    %86 = vector.broadcast %85 : vector<1x1x16xf32> to vector<7x7x16xf32>
    %87 = arith.mulf %82, %86 : vector<7x7x16xf32>
    %88 = arith.addf %81, %87 : vector<7x7x16xf32>
    %c0_17 = arith.constant 0 : index
    %c0_18 = arith.constant 0 : index
    %89 = vector.load %arg6[%c0_17, %c0_18] : memref<1x16xf32, #tpu.memory_space<vmem>>, vector<1x16xf32>
    %90 = vector.shape_cast %89 : vector<1x16xf32> to vector<1x1x16xf32>
    %91 = vector.broadcast %90 : vector<1x1x16xf32> to vector<7x7x16xf32>
    %92 = arith.mulf %88, %91 : vector<7x7x16xf32>
    %c0_19 = arith.constant 0 : index
    %c0_20 = arith.constant 0 : index
    %93 = vector.load %arg7[%c0_19, %c0_20] : memref<1x16xf32, #tpu.memory_space<vmem>>, vector<1x16xf32>
    %94 = vector.shape_cast %93 : vector<1x16xf32> to vector<1x1x16xf32>
    %95 = vector.broadcast %94 : vector<1x1x16xf32> to vector<7x7x16xf32>
    %96 = arith.addf %92, %95 : vector<7x7x16xf32>
    %cst_21 = arith.constant 3.000000e+00 : f32
    %97 = vector.broadcast %cst_21 : f32 to vector<7x7x16xf32>
    %98 = arith.addf %96, %97 : vector<7x7x16xf32>
    %cst_22 = arith.constant 0.000000e+00 : f32
    %cst_23 = arith.constant 6.000000e+00 : f32
    %99 = vector.broadcast %cst_22 : f32 to vector<7x7x16xf32>
    %100 = arith.maximumf %99, %98 : vector<7x7x16xf32>
    %101 = vector.broadcast %cst_23 : f32 to vector<7x7x16xf32>
    %102 = arith.minimumf %101, %100 : vector<7x7x16xf32>
    %103 = arith.mulf %96, %102 : vector<7x7x16xf32>
    %cst_24 = arith.constant 0.166666672 : f32
    %104 = vector.broadcast %cst_24 : f32 to vector<7x7x16xf32>
    %105 = arith.mulf %103, %104 : vector<7x7x16xf32>
    %106 = vector.shape_cast %105 : vector<7x7x16xf32> to vector<49x16xf32>
    %107 = arith.truncf %106 : vector<49x16xf32> to vector<49x16xbf16>
    %c0_25 = arith.constant 0 : index
    %c0_26 = arith.constant 0 : index
    %108 = vector.load %arg8[%c0_25, %c0_26] : memref<16x8xbf16, #tpu.memory_space<vmem>>, vector<16x8xbf16>
    %cst_27 = arith.constant dense<0.000000e+00> : vector<49x8xf32>
    %109 = tpu.matmul %107, %108, %cst_27 {dimension_numbers = #tpu.dot_dimension_numbers<[1], [0], [0], [1], [0, 0, 1, 1], [], []>} : vector<49x16xbf16>, vector<16x8xbf16>, vector<49x8xf32> -> vector<49x8xf32>
    %c0_28 = arith.constant 0 : index
    %c0_29 = arith.constant 0 : index
    %110 = vector.load %arg9[%c0_28, %c0_29] : memref<1x8xf32, #tpu.memory_space<vmem>>, vector<1x8xf32>
    %111 = vector.broadcast %110 : vector<1x8xf32> to vector<49x8xf32>
    %112 = arith.mulf %109, %111 : vector<49x8xf32>
    %c0_30 = arith.constant 0 : index
    %c0_31 = arith.constant 0 : index
    %113 = vector.load %arg10[%c0_30, %c0_31] : memref<1x8xf32, #tpu.memory_space<vmem>>, vector<1x8xf32>
    %114 = vector.broadcast %113 : vector<1x8xf32> to vector<49x8xf32>
    %115 = arith.addf %112, %114 : vector<49x8xf32>
    %116 = arith.extf %1 : vector<49x8xbf16> to vector<49x8xf32>
    %117 = arith.addf %115, %116 : vector<49x8xf32>
    %118 = arith.truncf %117 : vector<49x8xf32> to vector<49x8xbf16>
    %c0_32 = arith.constant 0 : index
    %c0_33 = arith.constant 0 : index
    %c0_34 = arith.constant 0 : index
    %119 = vector.load %arg11[%c0_32, %c0_33, %c0_34] : memref<1x49x8xbf16, #tpu.memory_space<vmem>>, vector<1x49x8xbf16>
    %120 = vector.shape_cast %119 : vector<1x49x8xbf16> to vector<49x8xbf16>
    %121 = vector.shape_cast %118 : vector<49x8xbf16> to vector<1x49x8xbf16>
    tpu.vector_store %arg11[%c0_32, %c0_33, %c0_34], %121 {strides = array<i32>} : memref<1x49x8xbf16, #tpu.memory_space<vmem>>, vector<1x49x8xbf16>,
    return
  }
  func.func @transform_0(%arg0: i32) -> (i32, i32, i32) {
    %c0_i32 = arith.constant 0 : i32
    %c0_i32_0 = arith.constant 0 : i32
    %c0_i32_1 = arith.constant 0 : i32
    return %arg0, %c0_i32, %c0_i32_0 : i32, i32, i32
  }
  func.func @transform_1(%arg0: i32) -> (i32, i32) {
    %c0_i32 = arith.constant 0 : i32
    %c0_i32_0 = arith.constant 0 : i32
    %c0_i32_1 = arith.constant 0 : i32
    return %c0_i32, %c0_i32_0 : i32, i32
  }
  func.func @transform_2(%arg0: i32) -> (i32, i32) {
    %c0_i32 = arith.constant 0 : i32
    %c0_i32_0 = arith.constant 0 : i32
    %c0_i32_1 = arith.constant 0 : i32
    return %c0_i32, %c0_i32_0 : i32, i32
  }
  func.func @transform_3(%arg0: i32) -> (i32, i32) {
    %c0_i32 = arith.constant 0 : i32
    %c0_i32_0 = arith.constant 0 : i32
    %c0_i32_1 = arith.constant 0 : i32
    return %c0_i32, %c0_i32_0 : i32, i32
  }
  func.func @transform_4(%arg0: i32) -> (i32, i32) {
    %c0_i32 = arith.constant 0 : i32
    %c0_i32_0 = arith.constant 0 : i32
    %c0_i32_1 = arith.constant 0 : i32
    return %c0_i32, %c0_i32_0 : i32, i32
  }
  func.func @transform_5(%arg0: i32) -> (i32, i32) {
    %c0_i32 = arith.constant 0 : i32
    %c0_i32_0 = arith.constant 0 : i32
    %c0_i32_1 = arith.constant 0 : i32
    return %c0_i32, %c0_i32_0 : i32, i32
  }
  func.func @transform_6(%arg0: i32) -> (i32, i32) {
    %c0_i32 = arith.constant 0 : i32
    %c0_i32_0 = arith.constant 0 : i32
    %c0_i32_1 = arith.constant 0 : i32
    return %c0_i32, %c0_i32_0 : i32, i32
  }
  func.func @transform_7(%arg0: i32) -> (i32, i32) {
    %c0_i32 = arith.constant 0 : i32
    %c0_i32_0 = arith.constant 0 : i32
    %c0_i32_1 = arith.constant 0 : i32
    return %c0_i32, %c0_i32_0 : i32, i32
  }
  func.func @transform_8(%arg0: i32) -> (i32, i32) {
    %c0_i32 = arith.constant 0 : i32
    %c0_i32_0 = arith.constant 0 : i32
    %c0_i32_1 = arith.constant 0 : i32
    return %c0_i32, %c0_i32_0 : i32, i32
  }
  func.func @transform_9(%arg0: i32) -> (i32, i32) {
    %c0_i32 = arith.constant 0 : i32
    %c0_i32_0 = arith.constant 0 : i32
    %c0_i32_1 = arith.constant 0 : i32
    return %c0_i32, %c0_i32_0 : i32, i32
  }
  func.func @transform_10(%arg0: i32) -> (i32, i32, i32) {
    %c0_i32 = arith.constant 0 : i32
    %c0_i32_0 = arith.constant 0 : i32
    %c0_i32_1 = arith.constant 0 : i32
    return %arg0, %c0_i32, %c0_i32_0 : i32, i32, i32
  }
}

module attributes {stable_mosaic.version = 11 : i64} {
  func.func @_f2m_kernel(%arg0: i32, %arg1: memref<1x49x8xbf16, #tpu.memory_space<vmem>>, %arg2: memref<1x4x32xbf16, #tpu.memory_space<vmem>>, %arg3: memref<8x32xbf16, #tpu.memory_space<vmem>>, %arg4: memref<32x32xbf16, #tpu.memory_space<vmem>>, %arg5: memref<32x32xbf16, #tpu.memory_space<vmem>>, %arg6: memref<32x8xbf16, #tpu.memory_space<vmem>>, %arg7: memref<1x49x8xbf16, #tpu.memory_space<vmem>>) attributes {dimension_semantics = [#tpu.dimension_semantics<parallel>], iteration_bounds = array<i64: 2>, scalar_prefetch = 0 : i64, scratch_operands = 0 : i64, tpu.core_type = #tpu.core_type<tc>, window_params = [{transform_indices = @transform_0, window_bounds = array<i64: 1, 49, 8>}, {transform_indices = @transform_1, window_bounds = array<i64: 1, 4, 32>}, {pipeline_mode = #tpu.pipeline_mode<synchronous>, transform_indices = @transform_2, window_bounds = array<i64: 8, 32>}, {pipeline_mode = #tpu.pipeline_mode<synchronous>, transform_indices = @transform_3, window_bounds = array<i64: 32, 32>}, {pipeline_mode = #tpu.pipeline_mode<synchronous>, transform_indices = @transform_4, window_bounds = array<i64: 32, 32>}, {pipeline_mode = #tpu.pipeline_mode<synchronous>, transform_indices = @transform_5, window_bounds = array<i64: 32, 8>}, {transform_indices = @transform_6, window_bounds = array<i64: 1, 49, 8>}]} {
    %c0 = arith.constant 0 : index
    %c0_0 = arith.constant 0 : index
    %c0_1 = arith.constant 0 : index
    %0 = vector.load %arg1[%c0, %c0_0, %c0_1] : memref<1x49x8xbf16, #tpu.memory_space<vmem>>, vector<1x49x8xbf16>
    %1 = vector.shape_cast %0 : vector<1x49x8xbf16> to vector<49x8xbf16>
    %c0_2 = arith.constant 0 : index
    %c0_3 = arith.constant 0 : index
    %c0_4 = arith.constant 0 : index
    %2 = vector.load %arg2[%c0_2, %c0_3, %c0_4] : memref<1x4x32xbf16, #tpu.memory_space<vmem>>, vector<1x4x32xbf16>
    %3 = vector.shape_cast %2 : vector<1x4x32xbf16> to vector<4x32xbf16>
    %c0_5 = arith.constant 0 : index
    %c0_6 = arith.constant 0 : index
    %4 = vector.load %arg3[%c0_5, %c0_6] : memref<8x32xbf16, #tpu.memory_space<vmem>>, vector<8x32xbf16>
    %cst = arith.constant dense<0.000000e+00> : vector<49x32xf32>
    %5 = tpu.matmul %1, %4, %cst {dimension_numbers = #tpu.dot_dimension_numbers<[1], [0], [0], [1], [0, 0, 1, 1], [], []>} : vector<49x8xbf16>, vector<8x32xbf16>, vector<49x32xf32> -> vector<49x32xf32>
    %c0_7 = arith.constant 0 : index
    %c0_8 = arith.constant 0 : index
    %6 = vector.load %arg4[%c0_7, %c0_8] : memref<32x32xbf16, #tpu.memory_space<vmem>>, vector<32x32xbf16>
    %cst_9 = arith.constant dense<0.000000e+00> : vector<4x32xf32>
    %7 = tpu.matmul %3, %6, %cst_9 {dimension_numbers = #tpu.dot_dimension_numbers<[1], [0], [0], [1], [0, 0, 1, 1], [], []>} : vector<4x32xbf16>, vector<32x32xbf16>, vector<4x32xf32> -> vector<4x32xf32>
    %c0_10 = arith.constant 0 : index
    %c0_11 = arith.constant 0 : index
    %8 = vector.load %arg5[%c0_10, %c0_11] : memref<32x32xbf16, #tpu.memory_space<vmem>>, vector<32x32xbf16>
    %cst_12 = arith.constant dense<0.000000e+00> : vector<4x32xf32>
    %9 = tpu.matmul %3, %8, %cst_12 {dimension_numbers = #tpu.dot_dimension_numbers<[1], [0], [0], [1], [0, 0, 1, 1], [], []>} : vector<4x32xbf16>, vector<32x32xbf16>, vector<4x32xf32> -> vector<4x32xf32>
    %10 = vector.extract_strided_slice %5 {offsets = [0, 0], sizes = [49, 16], strides = [1, 1]} : vector<49x32xf32> to vector<49x16xf32>
    %11 = vector.extract_strided_slice %5 {offsets = [0, 16], sizes = [49, 16], strides = [1, 1]} : vector<49x32xf32> to vector<49x16xf32>
    %12 = vector.shape_cast %10 : vector<49x16xf32> to vector<1x49x16xf32>
    %13 = vector.shape_cast %11 : vector<49x16xf32> to vector<1x49x16xf32>
    %14 = tpu.concatenate %12, %13 in 0 : vector<1x49x16xf32>, vector<1x49x16xf32> -> vector<2x49x16xf32>
    %15 = arith.truncf %14 : vector<2x49x16xf32> to vector<2x49x16xbf16>
    %16 = vector.extract_strided_slice %7 {offsets = [0, 0], sizes = [4, 16], strides = [1, 1]} : vector<4x32xf32> to vector<4x16xf32>
    %17 = vector.extract_strided_slice %7 {offsets = [0, 16], sizes = [4, 16], strides = [1, 1]} : vector<4x32xf32> to vector<4x16xf32>
    %18 = vector.shape_cast %16 : vector<4x16xf32> to vector<1x4x16xf32>
    %19 = vector.shape_cast %17 : vector<4x16xf32> to vector<1x4x16xf32>
    %20 = tpu.concatenate %18, %19 in 0 : vector<1x4x16xf32>, vector<1x4x16xf32> -> vector<2x4x16xf32>
    %21 = arith.truncf %20 : vector<2x4x16xf32> to vector<2x4x16xbf16>
    %22 = vector.extract_strided_slice %9 {offsets = [0, 0], sizes = [4, 16], strides = [1, 1]} : vector<4x32xf32> to vector<4x16xf32>
    %23 = vector.extract_strided_slice %9 {offsets = [0, 16], sizes = [4, 16], strides = [1, 1]} : vector<4x32xf32> to vector<4x16xf32>
    %24 = vector.shape_cast %22 : vector<4x16xf32> to vector<1x4x16xf32>
    %25 = vector.shape_cast %23 : vector<4x16xf32> to vector<1x4x16xf32>
    %26 = tpu.concatenate %24, %25 in 0 : vector<1x4x16xf32>, vector<1x4x16xf32> -> vector<2x4x16xf32>
    %27 = arith.truncf %26 : vector<2x4x16xf32> to vector<2x4x16xbf16>
    "tpu.trace_start"() <{level = 10 : i32, message = "hqd,hkd->hqk"}> : () -> ()
    %cst_13 = arith.constant dense<0.000000e+00> : vector<2x49x4xf32>
    %28 = tpu.matmul %15, %21, %cst_13 {dimension_numbers = #tpu.dot_dimension_numbers<[2], [2], [1], [1], [0, 0, 0, 1, 1, 1], [0], [0]>} : vector<2x49x16xbf16>, vector<2x4x16xbf16>, vector<2x49x4xf32> -> vector<2x49x4xf32>
    "tpu.trace_stop"() : () -> ()
    %cst_14 = arith.constant 2.500000e-01 : f32
    %29 = vector.broadcast %cst_14 : f32 to vector<2x49x4xf32>
    %30 = arith.mulf %28, %29 : vector<2x49x4xf32>
    %cst_15 = arith.constant dense<0xFF800000> : vector<2x49xf32>
    %31 = vector.multi_reduction <maximumf>, %30, %cst_15 [2] : vector<2x49x4xf32> to vector<2x49xf32>
    %32 = vector.shape_cast %31 : vector<2x49xf32> to vector<2x49x1xf32>
    %33 = vector.broadcast %32 : vector<2x49x1xf32> to vector<2x49x4xf32>
    %34 = arith.subf %30, %33 : vector<2x49x4xf32>
    %35 = math.exp %34 : vector<2x49x4xf32>
    %cst_16 = arith.constant dense<0.000000e+00> : vector<2x49xf32>
    %36 = vector.multi_reduction <add>, %35, %cst_16 [2] : vector<2x49x4xf32> to vector<2x49xf32>
    %37 = vector.shape_cast %36 : vector<2x49xf32> to vector<2x49x1xf32>
    %38 = tpu.reciprocal %37 {approx = true} : vector<2x49x1xf32> -> vector<2x49x1xf32>
    %39 = vector.broadcast %38 : vector<2x49x1xf32> to vector<2x49x4xf32>
    %40 = arith.mulf %35, %39 : vector<2x49x4xf32>
    %41 = arith.truncf %40 : vector<2x49x4xf32> to vector<2x49x4xbf16>
    "tpu.trace_start"() <{level = 10 : i32, message = "hqk,hkd->hqd"}> : () -> ()
    %cst_17 = arith.constant dense<0.000000e+00> : vector<2x49x16xf32>
    %42 = tpu.matmul %41, %27, %cst_17 {dimension_numbers = #tpu.dot_dimension_numbers<[2], [1], [1], [2], [0, 0, 0, 1, 1, 2], [0], [0]>} : vector<2x49x4xbf16>, vector<2x4x16xbf16>, vector<2x49x16xf32> -> vector<2x49x16xf32>
    "tpu.trace_stop"() : () -> ()
    %43 = vector.extract_strided_slice %42 {offsets = [0, 0, 0], sizes = [1, 49, 16], strides = [1, 1, 1]} : vector<2x49x16xf32> to vector<1x49x16xf32>
    %44 = vector.shape_cast %43 : vector<1x49x16xf32> to vector<49x16xf32>
    %45 = vector.extract_strided_slice %42 {offsets = [1, 0, 0], sizes = [1, 49, 16], strides = [1, 1, 1]} : vector<2x49x16xf32> to vector<1x49x16xf32>
    %46 = vector.shape_cast %45 : vector<1x49x16xf32> to vector<49x16xf32>
    %47 = tpu.concatenate %44, %46 in 1 : vector<49x16xf32>, vector<49x16xf32> -> vector<49x32xf32>
    %48 = arith.extf %1 : vector<49x8xbf16> to vector<49x8xf32>
    %49 = arith.truncf %47 : vector<49x32xf32> to vector<49x32xbf16>
    %c0_18 = arith.constant 0 : index
    %c0_19 = arith.constant 0 : index
    %50 = vector.load %arg6[%c0_18, %c0_19] : memref<32x8xbf16, #tpu.memory_space<vmem>>, vector<32x8xbf16>
    %cst_20 = arith.constant dense<0.000000e+00> : vector<49x8xf32>
    %51 = tpu.matmul %49, %50, %cst_20 {dimension_numbers = #tpu.dot_dimension_numbers<[1], [0], [0], [1], [0, 0, 1, 1], [], []>} : vector<49x32xbf16>, vector<32x8xbf16>, vector<49x8xf32> -> vector<49x8xf32>
    %52 = arith.addf %48, %51 : vector<49x8xf32>
    %53 = arith.truncf %52 : vector<49x8xf32> to vector<49x8xbf16>
    %c0_21 = arith.constant 0 : index
    %c0_22 = arith.constant 0 : index
    %c0_23 = arith.constant 0 : index
    %54 = vector.load %arg7[%c0_21, %c0_22, %c0_23] : memref<1x49x8xbf16, #tpu.memory_space<vmem>>, vector<1x49x8xbf16>
    %55 = vector.shape_cast %54 : vector<1x49x8xbf16> to vector<49x8xbf16>
    %56 = vector.shape_cast %53 : vector<49x8xbf16> to vector<1x49x8xbf16>
    tpu.vector_store %arg7[%c0_21, %c0_22, %c0_23], %56 {strides = array<i32>} : memref<1x49x8xbf16, #tpu.memory_space<vmem>>, vector<1x49x8xbf16>,
    return
  }
  func.func @transform_0(%arg0: i32) -> (i32, i32, i32) {
    %c0_i32 = arith.constant 0 : i32
    %c0_i32_0 = arith.constant 0 : i32
    %c0_i32_1 = arith.constant 0 : i32
    return %arg0, %c0_i32, %c0_i32_0 : i32, i32, i32
  }
  func.func @transform_1(%arg0: i32) -> (i32, i32, i32) {
    %c0_i32 = arith.constant 0 : i32
    %c0_i32_0 = arith.constant 0 : i32
    %c0_i32_1 = arith.constant 0 : i32
    return %arg0, %c0_i32, %c0_i32_0 : i32, i32, i32
  }
  func.func @transform_2(%arg0: i32) -> (i32, i32) {
    %c0_i32 = arith.constant 0 : i32
    %c0_i32_0 = arith.constant 0 : i32
    %c0_i32_1 = arith.constant 0 : i32
    return %c0_i32, %c0_i32_0 : i32, i32
  }
  func.func @transform_3(%arg0: i32) -> (i32, i32) {
    %c0_i32 = arith.constant 0 : i32
    %c0_i32_0 = arith.constant 0 : i32
    %c0_i32_1 = arith.constant 0 : i32
    return %c0_i32, %c0_i32_0 : i32, i32
  }
  func.func @transform_4(%arg0: i32) -> (i32, i32) {
    %c0_i32 = arith.constant 0 : i32
    %c0_i32_0 = arith.constant 0 : i32
    %c0_i32_1 = arith.constant 0 : i32
    return %c0_i32, %c0_i32_0 : i32, i32
  }
  func.func @transform_5(%arg0: i32) -> (i32, i32) {
    %c0_i32 = arith.constant 0 : i32
    %c0_i32_0 = arith.constant 0 : i32
    %c0_i32_1 = arith.constant 0 : i32
    return %c0_i32, %c0_i32_0 : i32, i32
  }
  func.func @transform_6(%arg0: i32) -> (i32, i32, i32) {
    %c0_i32 = arith.constant 0 : i32
    %c0_i32_0 = arith.constant 0 : i32
    %c0_i32_1 = arith.constant 0 : i32
    return %arg0, %c0_i32, %c0_i32_0 : i32, i32, i32
  }
}

module attributes {stable_mosaic.version = 11 : i64} {
  func.func @_tail_head_kernel(%arg0: i32, %arg1: memref<1x49x8xbf16, #tpu.memory_space<vmem>>, %arg2: memref<1x1x32xbf16, #tpu.memory_space<vmem>>, %arg3: memref<8x16xbf16, #tpu.memory_space<vmem>>, %arg4: memref<1x16xf32, #tpu.memory_space<vmem>>, %arg5: memref<1x16xf32, #tpu.memory_space<vmem>>, %arg6: memref<16x32xbf16, #tpu.memory_space<vmem>>, %arg7: memref<32x32xbf16, #tpu.memory_space<vmem>>, %arg8: memref<1x32xf32, #tpu.memory_space<vmem>>, %arg9: memref<32x10xbf16, #tpu.memory_space<vmem>>, %arg10: memref<1x10xf32, #tpu.memory_space<vmem>>, %arg11: memref<1x1x10xf32, #tpu.memory_space<vmem>>) attributes {dimension_semantics = [#tpu.dimension_semantics<parallel>], iteration_bounds = array<i64: 2>, scalar_prefetch = 0 : i64, scratch_operands = 0 : i64, tpu.core_type = #tpu.core_type<tc>, window_params = [{transform_indices = @transform_0, window_bounds = array<i64: 1, 49, 8>}, {transform_indices = @transform_1, window_bounds = array<i64: 1, 1, 32>}, {pipeline_mode = #tpu.pipeline_mode<synchronous>, transform_indices = @transform_2, window_bounds = array<i64: 8, 16>}, {pipeline_mode = #tpu.pipeline_mode<synchronous>, transform_indices = @transform_3, window_bounds = array<i64: 1, 16>}, {pipeline_mode = #tpu.pipeline_mode<synchronous>, transform_indices = @transform_4, window_bounds = array<i64: 1, 16>}, {pipeline_mode = #tpu.pipeline_mode<synchronous>, transform_indices = @transform_5, window_bounds = array<i64: 16, 32>}, {pipeline_mode = #tpu.pipeline_mode<synchronous>, transform_indices = @transform_6, window_bounds = array<i64: 32, 32>}, {pipeline_mode = #tpu.pipeline_mode<synchronous>, transform_indices = @transform_7, window_bounds = array<i64: 1, 32>}, {pipeline_mode = #tpu.pipeline_mode<synchronous>, transform_indices = @transform_8, window_bounds = array<i64: 32, 10>}, {pipeline_mode = #tpu.pipeline_mode<synchronous>, transform_indices = @transform_9, window_bounds = array<i64: 1, 10>}, {transform_indices = @transform_10, window_bounds = array<i64: 1, 1, 10>}]} {
    %c0 = arith.constant 0 : index
    %c0_0 = arith.constant 0 : index
    %c0_1 = arith.constant 0 : index
    %0 = vector.load %arg1[%c0, %c0_0, %c0_1] : memref<1x49x8xbf16, #tpu.memory_space<vmem>>, vector<1x49x8xbf16>
    %1 = vector.shape_cast %0 : vector<1x49x8xbf16> to vector<49x8xbf16>
    %2 = arith.extf %1 : vector<49x8xbf16> to vector<49x8xf32>
    %cst = arith.constant dense<0.000000e+00> : vector<8xf32>
    %3 = vector.multi_reduction <add>, %2, %cst [0] : vector<49x8xf32> to vector<8xf32>
    %4 = vector.shape_cast %3 : vector<8xf32> to vector<1x8xf32>
    %cst_2 = arith.constant 4.900000e+01 : f32
    %5 = vector.broadcast %cst_2 : f32 to vector<1x8xf32>
    %6 = arith.divf %4, %5 : vector<1x8xf32>
    %7 = arith.truncf %6 : vector<1x8xf32> to vector<1x8xbf16>
    %c0_3 = arith.constant 0 : index
    %c0_4 = arith.constant 0 : index
    %8 = vector.load %arg3[%c0_3, %c0_4] : memref<8x16xbf16, #tpu.memory_space<vmem>>, vector<8x16xbf16>
    %cst_5 = arith.constant dense<0.000000e+00> : vector<1x16xf32>
    %9 = tpu.matmul %7, %8, %cst_5 {dimension_numbers = #tpu.dot_dimension_numbers<[1], [0], [0], [1], [0, 0, 1, 1], [], []>} : vector<1x8xbf16>, vector<8x16xbf16>, vector<1x16xf32> -> vector<1x16xf32>
    %c0_6 = arith.constant 0 : index
    %c0_7 = arith.constant 0 : index
    %10 = vector.load %arg4[%c0_6, %c0_7] : memref<1x16xf32, #tpu.memory_space<vmem>>, vector<1x16xf32>
    %11 = arith.mulf %9, %10 : vector<1x16xf32>
    %c0_8 = arith.constant 0 : index
    %c0_9 = arith.constant 0 : index
    %12 = vector.load %arg5[%c0_8, %c0_9] : memref<1x16xf32, #tpu.memory_space<vmem>>, vector<1x16xf32>
    %13 = arith.addf %11, %12 : vector<1x16xf32>
    %c0_10 = arith.constant 0 : index
    %c0_11 = arith.constant 0 : index
    %c0_12 = arith.constant 0 : index
    %14 = vector.load %arg2[%c0_10, %c0_11, %c0_12] : memref<1x1x32xbf16, #tpu.memory_space<vmem>>, vector<1x1x32xbf16>
    %15 = vector.shape_cast %14 : vector<1x1x32xbf16> to vector<1x32xbf16>
    %16 = arith.truncf %13 : vector<1x16xf32> to vector<1x16xbf16>
    %c0_13 = arith.constant 0 : index
    %c0_14 = arith.constant 0 : index
    %17 = vector.load %arg6[%c0_13, %c0_14] : memref<16x32xbf16, #tpu.memory_space<vmem>>, vector<16x32xbf16>
    %cst_15 = arith.constant dense<0.000000e+00> : vector<1x32xf32>
    %18 = tpu.matmul %16, %17, %cst_15 {dimension_numbers = #tpu.dot_dimension_numbers<[1], [0], [0], [1], [0, 0, 1, 1], [], []>} : vector<1x16xbf16>, vector<16x32xbf16>, vector<1x32xf32> -> vector<1x32xf32>
    %c0_16 = arith.constant 0 : index
    %c0_17 = arith.constant 0 : index
    %19 = vector.load %arg7[%c0_16, %c0_17] : memref<32x32xbf16, #tpu.memory_space<vmem>>, vector<32x32xbf16>
    %cst_18 = arith.constant dense<0.000000e+00> : vector<1x32xf32>
    %20 = tpu.matmul %15, %19, %cst_18 {dimension_numbers = #tpu.dot_dimension_numbers<[1], [0], [0], [1], [0, 0, 1, 1], [], []>} : vector<1x32xbf16>, vector<32x32xbf16>, vector<1x32xf32> -> vector<1x32xf32>
    %21 = arith.addf %18, %20 : vector<1x32xf32>
    %c0_19 = arith.constant 0 : index
    %c0_20 = arith.constant 0 : index
    %22 = vector.load %arg8[%c0_19, %c0_20] : memref<1x32xf32, #tpu.memory_space<vmem>>, vector<1x32xf32>
    %23 = arith.addf %21, %22 : vector<1x32xf32>
    %cst_21 = arith.constant 3.000000e+00 : f32
    %24 = vector.broadcast %cst_21 : f32 to vector<1x32xf32>
    %25 = arith.addf %23, %24 : vector<1x32xf32>
    %cst_22 = arith.constant 0.000000e+00 : f32
    %cst_23 = arith.constant 6.000000e+00 : f32
    %26 = vector.broadcast %cst_22 : f32 to vector<1x32xf32>
    %27 = arith.maximumf %26, %25 : vector<1x32xf32>
    %28 = vector.broadcast %cst_23 : f32 to vector<1x32xf32>
    %29 = arith.minimumf %28, %27 : vector<1x32xf32>
    %30 = arith.mulf %23, %29 : vector<1x32xf32>
    %cst_24 = arith.constant 0.166666672 : f32
    %31 = vector.broadcast %cst_24 : f32 to vector<1x32xf32>
    %32 = arith.mulf %30, %31 : vector<1x32xf32>
    %33 = arith.truncf %32 : vector<1x32xf32> to vector<1x32xbf16>
    %c0_25 = arith.constant 0 : index
    %c0_26 = arith.constant 0 : index
    %34 = vector.load %arg9[%c0_25, %c0_26] : memref<32x10xbf16, #tpu.memory_space<vmem>>, vector<32x10xbf16>
    %cst_27 = arith.constant dense<0.000000e+00> : vector<1x10xf32>
    %35 = tpu.matmul %33, %34, %cst_27 {dimension_numbers = #tpu.dot_dimension_numbers<[1], [0], [0], [1], [0, 0, 1, 1], [], []>} : vector<1x32xbf16>, vector<32x10xbf16>, vector<1x10xf32> -> vector<1x10xf32>
    %c0_28 = arith.constant 0 : index
    %c0_29 = arith.constant 0 : index
    %36 = vector.load %arg10[%c0_28, %c0_29] : memref<1x10xf32, #tpu.memory_space<vmem>>, vector<1x10xf32>
    %37 = arith.addf %35, %36 : vector<1x10xf32>
    %c0_30 = arith.constant 0 : index
    %c0_31 = arith.constant 0 : index
    %c0_32 = arith.constant 0 : index
    %38 = vector.load %arg11[%c0_30, %c0_31, %c0_32] : memref<1x1x10xf32, #tpu.memory_space<vmem>>, vector<1x1x10xf32>
    %39 = vector.shape_cast %38 : vector<1x1x10xf32> to vector<1x10xf32>
    %40 = vector.shape_cast %37 : vector<1x10xf32> to vector<1x1x10xf32>
    tpu.vector_store %arg11[%c0_30, %c0_31, %c0_32], %40 {strides = array<i32>} : memref<1x1x10xf32, #tpu.memory_space<vmem>>, vector<1x1x10xf32>,
    return
  }
  func.func @transform_0(%arg0: i32) -> (i32, i32, i32) {
    %c0_i32 = arith.constant 0 : i32
    %c0_i32_0 = arith.constant 0 : i32
    %c0_i32_1 = arith.constant 0 : i32
    return %arg0, %c0_i32, %c0_i32_0 : i32, i32, i32
  }
  func.func @transform_1(%arg0: i32) -> (i32, i32, i32) {
    %c0_i32 = arith.constant 0 : i32
    %c0_i32_0 = arith.constant 0 : i32
    %c0_i32_1 = arith.constant 0 : i32
    return %arg0, %c0_i32, %c0_i32_0 : i32, i32, i32
  }
  func.func @transform_2(%arg0: i32) -> (i32, i32) {
    %c0_i32 = arith.constant 0 : i32
    %c0_i32_0 = arith.constant 0 : i32
    %c0_i32_1 = arith.constant 0 : i32
    return %c0_i32, %c0_i32_0 : i32, i32
  }
  func.func @transform_3(%arg0: i32) -> (i32, i32) {
    %c0_i32 = arith.constant 0 : i32
    %c0_i32_0 = arith.constant 0 : i32
    %c0_i32_1 = arith.constant 0 : i32
    return %c0_i32, %c0_i32_0 : i32, i32
  }
  func.func @transform_4(%arg0: i32) -> (i32, i32) {
    %c0_i32 = arith.constant 0 : i32
    %c0_i32_0 = arith.constant 0 : i32
    %c0_i32_1 = arith.constant 0 : i32
    return %c0_i32, %c0_i32_0 : i32, i32
  }
  func.func @transform_5(%arg0: i32) -> (i32, i32) {
    %c0_i32 = arith.constant 0 : i32
    %c0_i32_0 = arith.constant 0 : i32
    %c0_i32_1 = arith.constant 0 : i32
    return %c0_i32, %c0_i32_0 : i32, i32
  }
  func.func @transform_6(%arg0: i32) -> (i32, i32) {
    %c0_i32 = arith.constant 0 : i32
    %c0_i32_0 = arith.constant 0 : i32
    %c0_i32_1 = arith.constant 0 : i32
    return %c0_i32, %c0_i32_0 : i32, i32
  }
  func.func @transform_7(%arg0: i32) -> (i32, i32) {
    %c0_i32 = arith.constant 0 : i32
    %c0_i32_0 = arith.constant 0 : i32
    %c0_i32_1 = arith.constant 0 : i32
    return %c0_i32, %c0_i32_0 : i32, i32
  }
  func.func @transform_8(%arg0: i32) -> (i32, i32) {
    %c0_i32 = arith.constant 0 : i32
    %c0_i32_0 = arith.constant 0 : i32
    %c0_i32_1 = arith.constant 0 : i32
    return %c0_i32, %c0_i32_0 : i32, i32
  }
  func.func @transform_9(%arg0: i32) -> (i32, i32) {
    %c0_i32 = arith.constant 0 : i32
    %c0_i32_0 = arith.constant 0 : i32
    %c0_i32_1 = arith.constant 0 : i32
    return %c0_i32, %c0_i32_0 : i32, i32
  }
  func.func @transform_10(%arg0: i32) -> (i32, i32, i32) {
    %c0_i32 = arith.constant 0 : i32
    %c0_i32_0 = arith.constant 0 : i32
    %c0_i32_1 = arith.constant 0 : i32
    return %arg0, %c0_i32, %c0_i32_0 : i32, i32, i32
  }
}

module attributes {stable_mosaic.version = 11 : i64} {
  func.func @_token_block_kernel(%arg0: i32, %arg1: memref<1x4x32xbf16, #tpu.memory_space<vmem>>, %arg2: memref<1x49x8xbf16, #tpu.memory_space<vmem>>, %arg3: memref<32x32xbf16, #tpu.memory_space<vmem>>, %arg4: memref<8x32xbf16, #tpu.memory_space<vmem>>, %arg5: memref<8x32xbf16, #tpu.memory_space<vmem>>, %arg6: memref<32x32xbf16, #tpu.memory_space<vmem>>, %arg7: memref<1x32xf32, #tpu.memory_space<vmem>>, %arg8: memref<1x32xf32, #tpu.memory_space<vmem>>, %arg9: memref<32x32xbf16, #tpu.memory_space<vmem>>, %arg10: memref<32x32xbf16, #tpu.memory_space<vmem>>, %arg11: memref<32x32xbf16, #tpu.memory_space<vmem>>, %arg12: memref<32x32xbf16, #tpu.memory_space<vmem>>, %arg13: memref<1x32xf32, #tpu.memory_space<vmem>>, %arg14: memref<1x32xf32, #tpu.memory_space<vmem>>, %arg15: memref<32x64xbf16, #tpu.memory_space<vmem>>, %arg16: memref<1x64xf32, #tpu.memory_space<vmem>>, %arg17: memref<64x32xbf16, #tpu.memory_space<vmem>>, %arg18: memref<1x32xf32, #tpu.memory_space<vmem>>, %arg19: memref<1x4x32xbf16, #tpu.memory_space<vmem>>) attributes {dimension_semantics = [#tpu.dimension_semantics<parallel>], iteration_bounds = array<i64: 2>, scalar_prefetch = 0 : i64, scratch_operands = 0 : i64, tpu.core_type = #tpu.core_type<tc>, window_params = [{transform_indices = @transform_0, window_bounds = array<i64: 1, 4, 32>}, {transform_indices = @transform_1, window_bounds = array<i64: 1, 49, 8>}, {pipeline_mode = #tpu.pipeline_mode<synchronous>, transform_indices = @transform_2, window_bounds = array<i64: 32, 32>}, {pipeline_mode = #tpu.pipeline_mode<synchronous>, transform_indices = @transform_3, window_bounds = array<i64: 8, 32>}, {pipeline_mode = #tpu.pipeline_mode<synchronous>, transform_indices = @transform_4, window_bounds = array<i64: 8, 32>}, {pipeline_mode = #tpu.pipeline_mode<synchronous>, transform_indices = @transform_5, window_bounds = array<i64: 32, 32>}, {pipeline_mode = #tpu.pipeline_mode<synchronous>, transform_indices = @transform_6, window_bounds = array<i64: 1, 32>}, {pipeline_mode = #tpu.pipeline_mode<synchronous>, transform_indices = @transform_7, window_bounds = array<i64: 1, 32>}, {pipeline_mode = #tpu.pipeline_mode<synchronous>, transform_indices = @transform_8, window_bounds = array<i64: 32, 32>}, {pipeline_mode = #tpu.pipeline_mode<synchronous>, transform_indices = @transform_9, window_bounds = array<i64: 32, 32>}, {pipeline_mode = #tpu.pipeline_mode<synchronous>, transform_indices = @transform_10, window_bounds = array<i64: 32, 32>}, {pipeline_mode = #tpu.pipeline_mode<synchronous>, transform_indices = @transform_11, window_bounds = array<i64: 32, 32>}, {pipeline_mode = #tpu.pipeline_mode<synchronous>, transform_indices = @transform_12, window_bounds = array<i64: 1, 32>}, {pipeline_mode = #tpu.pipeline_mode<synchronous>, transform_indices = @transform_13, window_bounds = array<i64: 1, 32>}, {pipeline_mode = #tpu.pipeline_mode<synchronous>, transform_indices = @transform_14, window_bounds = array<i64: 32, 64>}, {pipeline_mode = #tpu.pipeline_mode<synchronous>, transform_indices = @transform_15, window_bounds = array<i64: 1, 64>}, {pipeline_mode = #tpu.pipeline_mode<synchronous>, transform_indices = @transform_16, window_bounds = array<i64: 64, 32>}, {pipeline_mode = #tpu.pipeline_mode<synchronous>, transform_indices = @transform_17, window_bounds = array<i64: 1, 32>}, {transform_indices = @transform_18, window_bounds = array<i64: 1, 4, 32>}]} {
    %c0 = arith.constant 0 : index
    %c0_0 = arith.constant 0 : index
    %c0_1 = arith.constant 0 : index
    %0 = vector.load %arg1[%c0, %c0_0, %c0_1] : memref<1x4x32xbf16, #tpu.memory_space<vmem>>, vector<1x4x32xbf16>
    %1 = vector.shape_cast %0 : vector<1x4x32xbf16> to vector<4x32xbf16>
    %2 = arith.extf %1 : vector<4x32xbf16> to vector<4x32xf32>
    %c0_2 = arith.constant 0 : index
    %c0_3 = arith.constant 0 : index
    %c0_4 = arith.constant 0 : index
    %3 = vector.load %arg2[%c0_2, %c0_3, %c0_4] : memref<1x49x8xbf16, #tpu.memory_space<vmem>>, vector<1x49x8xbf16>
    %4 = vector.shape_cast %3 : vector<1x49x8xbf16> to vector<49x8xbf16>
    %5 = arith.truncf %2 : vector<4x32xf32> to vector<4x32xbf16>
    %c0_5 = arith.constant 0 : index
    %c0_6 = arith.constant 0 : index
    %6 = vector.load %arg3[%c0_5, %c0_6] : memref<32x32xbf16, #tpu.memory_space<vmem>>, vector<32x32xbf16>
    %cst = arith.constant dense<0.000000e+00> : vector<4x32xf32>
    %7 = tpu.matmul %5, %6, %cst {dimension_numbers = #tpu.dot_dimension_numbers<[1], [0], [0], [1], [0, 0, 1, 1], [], []>} : vector<4x32xbf16>, vector<32x32xbf16>, vector<4x32xf32> -> vector<4x32xf32>
    %c0_7 = arith.constant 0 : index
    %c0_8 = arith.constant 0 : index
    %8 = vector.load %arg4[%c0_7, %c0_8] : memref<8x32xbf16, #tpu.memory_space<vmem>>, vector<8x32xbf16>
    %cst_9 = arith.constant dense<0.000000e+00> : vector<49x32xf32>
    %9 = tpu.matmul %4, %8, %cst_9 {dimension_numbers = #tpu.dot_dimension_numbers<[1], [0], [0], [1], [0, 0, 1, 1], [], []>} : vector<49x8xbf16>, vector<8x32xbf16>, vector<49x32xf32> -> vector<49x32xf32>
    %c0_10 = arith.constant 0 : index
    %c0_11 = arith.constant 0 : index
    %10 = vector.load %arg5[%c0_10, %c0_11] : memref<8x32xbf16, #tpu.memory_space<vmem>>, vector<8x32xbf16>
    %cst_12 = arith.constant dense<0.000000e+00> : vector<49x32xf32>
    %11 = tpu.matmul %4, %10, %cst_12 {dimension_numbers = #tpu.dot_dimension_numbers<[1], [0], [0], [1], [0, 0, 1, 1], [], []>} : vector<49x8xbf16>, vector<8x32xbf16>, vector<49x32xf32> -> vector<49x32xf32>
    %12 = vector.extract_strided_slice %7 {offsets = [0, 0], sizes = [4, 16], strides = [1, 1]} : vector<4x32xf32> to vector<4x16xf32>
    %13 = vector.extract_strided_slice %7 {offsets = [0, 16], sizes = [4, 16], strides = [1, 1]} : vector<4x32xf32> to vector<4x16xf32>
    %14 = vector.shape_cast %12 : vector<4x16xf32> to vector<1x4x16xf32>
    %15 = vector.shape_cast %13 : vector<4x16xf32> to vector<1x4x16xf32>
    %16 = tpu.concatenate %14, %15 in 0 : vector<1x4x16xf32>, vector<1x4x16xf32> -> vector<2x4x16xf32>
    %17 = arith.truncf %16 : vector<2x4x16xf32> to vector<2x4x16xbf16>
    %18 = vector.extract_strided_slice %9 {offsets = [0, 0], sizes = [49, 16], strides = [1, 1]} : vector<49x32xf32> to vector<49x16xf32>
    %19 = vector.extract_strided_slice %9 {offsets = [0, 16], sizes = [49, 16], strides = [1, 1]} : vector<49x32xf32> to vector<49x16xf32>
    %20 = vector.shape_cast %18 : vector<49x16xf32> to vector<1x49x16xf32>
    %21 = vector.shape_cast %19 : vector<49x16xf32> to vector<1x49x16xf32>
    %22 = tpu.concatenate %20, %21 in 0 : vector<1x49x16xf32>, vector<1x49x16xf32> -> vector<2x49x16xf32>
    %23 = arith.truncf %22 : vector<2x49x16xf32> to vector<2x49x16xbf16>
    %24 = vector.extract_strided_slice %11 {offsets = [0, 0], sizes = [49, 16], strides = [1, 1]} : vector<49x32xf32> to vector<49x16xf32>
    %25 = vector.extract_strided_slice %11 {offsets = [0, 16], sizes = [49, 16], strides = [1, 1]} : vector<49x32xf32> to vector<49x16xf32>
    %26 = vector.shape_cast %24 : vector<49x16xf32> to vector<1x49x16xf32>
    %27 = vector.shape_cast %25 : vector<49x16xf32> to vector<1x49x16xf32>
    %28 = tpu.concatenate %26, %27 in 0 : vector<1x49x16xf32>, vector<1x49x16xf32> -> vector<2x49x16xf32>
    %29 = arith.truncf %28 : vector<2x49x16xf32> to vector<2x49x16xbf16>
    "tpu.trace_start"() <{level = 10 : i32, message = "hqd,hkd->hqk"}> : () -> ()
    %cst_13 = arith.constant dense<0.000000e+00> : vector<2x4x49xf32>
    %30 = tpu.matmul %17, %23, %cst_13 {dimension_numbers = #tpu.dot_dimension_numbers<[2], [2], [1], [1], [0, 0, 0, 1, 1, 1], [0], [0]>} : vector<2x4x16xbf16>, vector<2x49x16xbf16>, vector<2x4x49xf32> -> vector<2x4x49xf32>
    "tpu.trace_stop"() : () -> ()
    %cst_14 = arith.constant 2.500000e-01 : f32
    %31 = vector.broadcast %cst_14 : f32 to vector<2x4x49xf32>
    %32 = arith.mulf %30, %31 : vector<2x4x49xf32>
    %cst_15 = arith.constant dense<0xFF800000> : vector<2x4xf32>
    %33 = vector.multi_reduction <maximumf>, %32, %cst_15 [2] : vector<2x4x49xf32> to vector<2x4xf32>
    %34 = vector.shape_cast %33 : vector<2x4xf32> to vector<2x4x1xf32>
    %35 = vector.broadcast %34 : vector<2x4x1xf32> to vector<2x4x49xf32>
    %36 = arith.subf %32, %35 : vector<2x4x49xf32>
    %37 = math.exp %36 : vector<2x4x49xf32>
    %cst_16 = arith.constant dense<0.000000e+00> : vector<2x4xf32>
    %38 = vector.multi_reduction <add>, %37, %cst_16 [2] : vector<2x4x49xf32> to vector<2x4xf32>
    %39 = vector.shape_cast %38 : vector<2x4xf32> to vector<2x4x1xf32>
    %40 = tpu.reciprocal %39 {approx = true} : vector<2x4x1xf32> -> vector<2x4x1xf32>
    %41 = vector.broadcast %40 : vector<2x4x1xf32> to vector<2x4x49xf32>
    %42 = arith.mulf %37, %41 : vector<2x4x49xf32>
    %43 = arith.truncf %42 : vector<2x4x49xf32> to vector<2x4x49xbf16>
    "tpu.trace_start"() <{level = 10 : i32, message = "hqk,hkd->hqd"}> : () -> ()
    %cst_17 = arith.constant dense<0.000000e+00> : vector<2x4x16xf32>
    %44 = tpu.matmul %43, %29, %cst_17 {dimension_numbers = #tpu.dot_dimension_numbers<[2], [1], [1], [2], [0, 0, 0, 1, 1, 2], [0], [0]>} : vector<2x4x49xbf16>, vector<2x49x16xbf16>, vector<2x4x16xf32> -> vector<2x4x16xf32>
    "tpu.trace_stop"() : () -> ()
    %45 = vector.extract_strided_slice %44 {offsets = [0, 0, 0], sizes = [1, 4, 16], strides = [1, 1, 1]} : vector<2x4x16xf32> to vector<1x4x16xf32>
    %46 = vector.shape_cast %45 : vector<1x4x16xf32> to vector<4x16xf32>
    %47 = vector.extract_strided_slice %44 {offsets = [1, 0, 0], sizes = [1, 4, 16], strides = [1, 1, 1]} : vector<2x4x16xf32> to vector<1x4x16xf32>
    %48 = vector.shape_cast %47 : vector<1x4x16xf32> to vector<4x16xf32>
    %49 = tpu.concatenate %46, %48 in 1 : vector<4x16xf32>, vector<4x16xf32> -> vector<4x32xf32>
    %50 = arith.truncf %49 : vector<4x32xf32> to vector<4x32xbf16>
    %c0_18 = arith.constant 0 : index
    %c0_19 = arith.constant 0 : index
    %51 = vector.load %arg6[%c0_18, %c0_19] : memref<32x32xbf16, #tpu.memory_space<vmem>>, vector<32x32xbf16>
    %cst_20 = arith.constant dense<0.000000e+00> : vector<4x32xf32>
    %52 = tpu.matmul %50, %51, %cst_20 {dimension_numbers = #tpu.dot_dimension_numbers<[1], [0], [0], [1], [0, 0, 1, 1], [], []>} : vector<4x32xbf16>, vector<32x32xbf16>, vector<4x32xf32> -> vector<4x32xf32>
    %53 = arith.addf %2, %52 : vector<4x32xf32>
    %c0_21 = arith.constant 0 : index
    %c0_22 = arith.constant 0 : index
    %54 = vector.load %arg7[%c0_21, %c0_22] : memref<1x32xf32, #tpu.memory_space<vmem>>, vector<1x32xf32>
    %c0_23 = arith.constant 0 : index
    %c0_24 = arith.constant 0 : index
    %55 = vector.load %arg8[%c0_23, %c0_24] : memref<1x32xf32, #tpu.memory_space<vmem>>, vector<1x32xf32>
    %cst_25 = arith.constant dense<0.000000e+00> : vector<4xf32>
    %56 = vector.multi_reduction <add>, %53, %cst_25 [1] : vector<4x32xf32> to vector<4xf32>
    %57 = vector.shape_cast %56 : vector<4xf32> to vector<4x1xf32>
    %cst_26 = arith.constant 3.200000e+01 : f32
    %58 = vector.broadcast %cst_26 : f32 to vector<4x1xf32>
    %59 = arith.divf %57, %58 : vector<4x1xf32>
    %60 = vector.broadcast %59 : vector<4x1xf32> to vector<4x32xf32>
    %61 = arith.subf %53, %60 : vector<4x32xf32>
    %62 = arith.mulf %61, %61 : vector<4x32xf32>
    %cst_27 = arith.constant dense<0.000000e+00> : vector<4xf32>
    %63 = vector.multi_reduction <add>, %62, %cst_27 [1] : vector<4x32xf32> to vector<4xf32>
    %64 = vector.shape_cast %63 : vector<4xf32> to vector<4x1xf32>
    %cst_28 = arith.constant 3.200000e+01 : f32
    %65 = vector.broadcast %cst_28 : f32 to vector<4x1xf32>
    %66 = arith.divf %64, %65 : vector<4x1xf32>
    %cst_29 = arith.constant 9.99999974E-6 : f32
    %67 = vector.broadcast %cst_29 : f32 to vector<4x1xf32>
    %68 = arith.addf %66, %67 : vector<4x1xf32>
    %69 = math.rsqrt %68 : vector<4x1xf32>
    %70 = vector.broadcast %69 : vector<4x1xf32> to vector<4x32xf32>
    %71 = arith.mulf %61, %70 : vector<4x32xf32>
    %72 = vector.broadcast %54 : vector<1x32xf32> to vector<4x32xf32>
    %73 = arith.mulf %71, %72 : vector<4x32xf32>
    %74 = vector.broadcast %55 : vector<1x32xf32> to vector<4x32xf32>
    %75 = arith.addf %73, %74 : vector<4x32xf32>
    %76 = arith.truncf %75 : vector<4x32xf32> to vector<4x32xbf16>
    %c0_30 = arith.constant 0 : index
    %c0_31 = arith.constant 0 : index
    %77 = vector.load %arg9[%c0_30, %c0_31] : memref<32x32xbf16, #tpu.memory_space<vmem>>, vector<32x32xbf16>
    %cst_32 = arith.constant dense<0.000000e+00> : vector<4x32xf32>
    %78 = tpu.matmul %76, %77, %cst_32 {dimension_numbers = #tpu.dot_dimension_numbers<[1], [0], [0], [1], [0, 0, 1, 1], [], []>} : vector<4x32xbf16>, vector<32x32xbf16>, vector<4x32xf32> -> vector<4x32xf32>
    %c0_33 = arith.constant 0 : index
    %c0_34 = arith.constant 0 : index
    %79 = vector.load %arg10[%c0_33, %c0_34] : memref<32x32xbf16, #tpu.memory_space<vmem>>, vector<32x32xbf16>
    %cst_35 = arith.constant dense<0.000000e+00> : vector<4x32xf32>
    %80 = tpu.matmul %76, %79, %cst_35 {dimension_numbers = #tpu.dot_dimension_numbers<[1], [0], [0], [1], [0, 0, 1, 1], [], []>} : vector<4x32xbf16>, vector<32x32xbf16>, vector<4x32xf32> -> vector<4x32xf32>
    %c0_36 = arith.constant 0 : index
    %c0_37 = arith.constant 0 : index
    %81 = vector.load %arg11[%c0_36, %c0_37] : memref<32x32xbf16, #tpu.memory_space<vmem>>, vector<32x32xbf16>
    %cst_38 = arith.constant dense<0.000000e+00> : vector<4x32xf32>
    %82 = tpu.matmul %76, %81, %cst_38 {dimension_numbers = #tpu.dot_dimension_numbers<[1], [0], [0], [1], [0, 0, 1, 1], [], []>} : vector<4x32xbf16>, vector<32x32xbf16>, vector<4x32xf32> -> vector<4x32xf32>
    %83 = vector.extract_strided_slice %78 {offsets = [0, 0], sizes = [4, 16], strides = [1, 1]} : vector<4x32xf32> to vector<4x16xf32>
    %84 = vector.extract_strided_slice %78 {offsets = [0, 16], sizes = [4, 16], strides = [1, 1]} : vector<4x32xf32> to vector<4x16xf32>
    %85 = vector.shape_cast %83 : vector<4x16xf32> to vector<1x4x16xf32>
    %86 = vector.shape_cast %84 : vector<4x16xf32> to vector<1x4x16xf32>
    %87 = tpu.concatenate %85, %86 in 0 : vector<1x4x16xf32>, vector<1x4x16xf32> -> vector<2x4x16xf32>
    %88 = arith.truncf %87 : vector<2x4x16xf32> to vector<2x4x16xbf16>
    %89 = vector.extract_strided_slice %80 {offsets = [0, 0], sizes = [4, 16], strides = [1, 1]} : vector<4x32xf32> to vector<4x16xf32>
    %90 = vector.extract_strided_slice %80 {offsets = [0, 16], sizes = [4, 16], strides = [1, 1]} : vector<4x32xf32> to vector<4x16xf32>
    %91 = vector.shape_cast %89 : vector<4x16xf32> to vector<1x4x16xf32>
    %92 = vector.shape_cast %90 : vector<4x16xf32> to vector<1x4x16xf32>
    %93 = tpu.concatenate %91, %92 in 0 : vector<1x4x16xf32>, vector<1x4x16xf32> -> vector<2x4x16xf32>
    %94 = arith.truncf %93 : vector<2x4x16xf32> to vector<2x4x16xbf16>
    %95 = vector.extract_strided_slice %82 {offsets = [0, 0], sizes = [4, 16], strides = [1, 1]} : vector<4x32xf32> to vector<4x16xf32>
    %96 = vector.extract_strided_slice %82 {offsets = [0, 16], sizes = [4, 16], strides = [1, 1]} : vector<4x32xf32> to vector<4x16xf32>
    %97 = vector.shape_cast %95 : vector<4x16xf32> to vector<1x4x16xf32>
    %98 = vector.shape_cast %96 : vector<4x16xf32> to vector<1x4x16xf32>
    %99 = tpu.concatenate %97, %98 in 0 : vector<1x4x16xf32>, vector<1x4x16xf32> -> vector<2x4x16xf32>
    %100 = arith.truncf %99 : vector<2x4x16xf32> to vector<2x4x16xbf16>
    "tpu.trace_start"() <{level = 10 : i32, message = "hqd,hkd->hqk"}> : () -> ()
    %cst_39 = arith.constant dense<0.000000e+00> : vector<2x4x4xf32>
    %101 = tpu.matmul %88, %94, %cst_39 {dimension_numbers = #tpu.dot_dimension_numbers<[2], [2], [1], [1], [0, 0, 0, 1, 1, 1], [0], [0]>} : vector<2x4x16xbf16>, vector<2x4x16xbf16>, vector<2x4x4xf32> -> vector<2x4x4xf32>
    "tpu.trace_stop"() : () -> ()
    %cst_40 = arith.constant 2.500000e-01 : f32
    %102 = vector.broadcast %cst_40 : f32 to vector<2x4x4xf32>
    %103 = arith.mulf %101, %102 : vector<2x4x4xf32>
    %cst_41 = arith.constant dense<0xFF800000> : vector<2x4xf32>
    %104 = vector.multi_reduction <maximumf>, %103, %cst_41 [2] : vector<2x4x4xf32> to vector<2x4xf32>
    %105 = vector.shape_cast %104 : vector<2x4xf32> to vector<2x4x1xf32>
    %106 = vector.broadcast %105 : vector<2x4x1xf32> to vector<2x4x4xf32>
    %107 = arith.subf %103, %106 : vector<2x4x4xf32>
    %108 = math.exp %107 : vector<2x4x4xf32>
    %cst_42 = arith.constant dense<0.000000e+00> : vector<2x4xf32>
    %109 = vector.multi_reduction <add>, %108, %cst_42 [2] : vector<2x4x4xf32> to vector<2x4xf32>
    %110 = vector.shape_cast %109 : vector<2x4xf32> to vector<2x4x1xf32>
    %111 = tpu.reciprocal %110 {approx = true} : vector<2x4x1xf32> -> vector<2x4x1xf32>
    %112 = vector.broadcast %111 : vector<2x4x1xf32> to vector<2x4x4xf32>
    %113 = arith.mulf %108, %112 : vector<2x4x4xf32>
    %114 = arith.truncf %113 : vector<2x4x4xf32> to vector<2x4x4xbf16>
    "tpu.trace_start"() <{level = 10 : i32, message = "hqk,hkd->hqd"}> : () -> ()
    %cst_43 = arith.constant dense<0.000000e+00> : vector<2x4x16xf32>
    %115 = tpu.matmul %114, %100, %cst_43 {dimension_numbers = #tpu.dot_dimension_numbers<[2], [1], [1], [2], [0, 0, 0, 1, 1, 2], [0], [0]>} : vector<2x4x4xbf16>, vector<2x4x16xbf16>, vector<2x4x16xf32> -> vector<2x4x16xf32>
    "tpu.trace_stop"() : () -> ()
    %116 = vector.extract_strided_slice %115 {offsets = [0, 0, 0], sizes = [1, 4, 16], strides = [1, 1, 1]} : vector<2x4x16xf32> to vector<1x4x16xf32>
    %117 = vector.shape_cast %116 : vector<1x4x16xf32> to vector<4x16xf32>
    %118 = vector.extract_strided_slice %115 {offsets = [1, 0, 0], sizes = [1, 4, 16], strides = [1, 1, 1]} : vector<2x4x16xf32> to vector<1x4x16xf32>
    %119 = vector.shape_cast %118 : vector<1x4x16xf32> to vector<4x16xf32>
    %120 = tpu.concatenate %117, %119 in 1 : vector<4x16xf32>, vector<4x16xf32> -> vector<4x32xf32>
    %121 = arith.truncf %120 : vector<4x32xf32> to vector<4x32xbf16>
    %c0_44 = arith.constant 0 : index
    %c0_45 = arith.constant 0 : index
    %122 = vector.load %arg12[%c0_44, %c0_45] : memref<32x32xbf16, #tpu.memory_space<vmem>>, vector<32x32xbf16>
    %cst_46 = arith.constant dense<0.000000e+00> : vector<4x32xf32>
    %123 = tpu.matmul %121, %122, %cst_46 {dimension_numbers = #tpu.dot_dimension_numbers<[1], [0], [0], [1], [0, 0, 1, 1], [], []>} : vector<4x32xbf16>, vector<32x32xbf16>, vector<4x32xf32> -> vector<4x32xf32>
    %124 = arith.addf %53, %123 : vector<4x32xf32>
    %c0_47 = arith.constant 0 : index
    %c0_48 = arith.constant 0 : index
    %125 = vector.load %arg13[%c0_47, %c0_48] : memref<1x32xf32, #tpu.memory_space<vmem>>, vector<1x32xf32>
    %c0_49 = arith.constant 0 : index
    %c0_50 = arith.constant 0 : index
    %126 = vector.load %arg14[%c0_49, %c0_50] : memref<1x32xf32, #tpu.memory_space<vmem>>, vector<1x32xf32>
    %cst_51 = arith.constant dense<0.000000e+00> : vector<4xf32>
    %127 = vector.multi_reduction <add>, %124, %cst_51 [1] : vector<4x32xf32> to vector<4xf32>
    %128 = vector.shape_cast %127 : vector<4xf32> to vector<4x1xf32>
    %cst_52 = arith.constant 3.200000e+01 : f32
    %129 = vector.broadcast %cst_52 : f32 to vector<4x1xf32>
    %130 = arith.divf %128, %129 : vector<4x1xf32>
    %131 = vector.broadcast %130 : vector<4x1xf32> to vector<4x32xf32>
    %132 = arith.subf %124, %131 : vector<4x32xf32>
    %133 = arith.mulf %132, %132 : vector<4x32xf32>
    %cst_53 = arith.constant dense<0.000000e+00> : vector<4xf32>
    %134 = vector.multi_reduction <add>, %133, %cst_53 [1] : vector<4x32xf32> to vector<4xf32>
    %135 = vector.shape_cast %134 : vector<4xf32> to vector<4x1xf32>
    %cst_54 = arith.constant 3.200000e+01 : f32
    %136 = vector.broadcast %cst_54 : f32 to vector<4x1xf32>
    %137 = arith.divf %135, %136 : vector<4x1xf32>
    %cst_55 = arith.constant 9.99999974E-6 : f32
    %138 = vector.broadcast %cst_55 : f32 to vector<4x1xf32>
    %139 = arith.addf %137, %138 : vector<4x1xf32>
    %140 = math.rsqrt %139 : vector<4x1xf32>
    %141 = vector.broadcast %140 : vector<4x1xf32> to vector<4x32xf32>
    %142 = arith.mulf %132, %141 : vector<4x32xf32>
    %143 = vector.broadcast %125 : vector<1x32xf32> to vector<4x32xf32>
    %144 = arith.mulf %142, %143 : vector<4x32xf32>
    %145 = vector.broadcast %126 : vector<1x32xf32> to vector<4x32xf32>
    %146 = arith.addf %144, %145 : vector<4x32xf32>
    %147 = arith.truncf %146 : vector<4x32xf32> to vector<4x32xbf16>
    %c0_56 = arith.constant 0 : index
    %c0_57 = arith.constant 0 : index
    %148 = vector.load %arg15[%c0_56, %c0_57] : memref<32x64xbf16, #tpu.memory_space<vmem>>, vector<32x64xbf16>
    %cst_58 = arith.constant dense<0.000000e+00> : vector<4x64xf32>
    %149 = tpu.matmul %147, %148, %cst_58 {dimension_numbers = #tpu.dot_dimension_numbers<[1], [0], [0], [1], [0, 0, 1, 1], [], []>} : vector<4x32xbf16>, vector<32x64xbf16>, vector<4x64xf32> -> vector<4x64xf32>
    %c0_59 = arith.constant 0 : index
    %c0_60 = arith.constant 0 : index
    %150 = vector.load %arg16[%c0_59, %c0_60] : memref<1x64xf32, #tpu.memory_space<vmem>>, vector<1x64xf32>
    %151 = vector.broadcast %150 : vector<1x64xf32> to vector<4x64xf32>
    %152 = arith.addf %149, %151 : vector<4x64xf32>
    %cst_61 = arith.constant 3.000000e+00 : f32
    %153 = vector.broadcast %cst_61 : f32 to vector<4x64xf32>
    %154 = arith.addf %152, %153 : vector<4x64xf32>
    %cst_62 = arith.constant 0.000000e+00 : f32
    %cst_63 = arith.constant 6.000000e+00 : f32
    %155 = vector.broadcast %cst_62 : f32 to vector<4x64xf32>
    %156 = arith.maximumf %155, %154 : vector<4x64xf32>
    %157 = vector.broadcast %cst_63 : f32 to vector<4x64xf32>
    %158 = arith.minimumf %157, %156 : vector<4x64xf32>
    %159 = arith.mulf %152, %158 : vector<4x64xf32>
    %cst_64 = arith.constant 0.166666672 : f32
    %160 = vector.broadcast %cst_64 : f32 to vector<4x64xf32>
    %161 = arith.mulf %159, %160 : vector<4x64xf32>
    %162 = arith.truncf %161 : vector<4x64xf32> to vector<4x64xbf16>
    %c0_65 = arith.constant 0 : index
    %c0_66 = arith.constant 0 : index
    %163 = vector.load %arg17[%c0_65, %c0_66] : memref<64x32xbf16, #tpu.memory_space<vmem>>, vector<64x32xbf16>
    %cst_67 = arith.constant dense<0.000000e+00> : vector<4x32xf32>
    %164 = tpu.matmul %162, %163, %cst_67 {dimension_numbers = #tpu.dot_dimension_numbers<[1], [0], [0], [1], [0, 0, 1, 1], [], []>} : vector<4x64xbf16>, vector<64x32xbf16>, vector<4x32xf32> -> vector<4x32xf32>
    %165 = arith.addf %124, %164 : vector<4x32xf32>
    %c0_68 = arith.constant 0 : index
    %c0_69 = arith.constant 0 : index
    %166 = vector.load %arg18[%c0_68, %c0_69] : memref<1x32xf32, #tpu.memory_space<vmem>>, vector<1x32xf32>
    %167 = vector.broadcast %166 : vector<1x32xf32> to vector<4x32xf32>
    %168 = arith.addf %165, %167 : vector<4x32xf32>
    %169 = arith.truncf %168 : vector<4x32xf32> to vector<4x32xbf16>
    %c0_70 = arith.constant 0 : index
    %c0_71 = arith.constant 0 : index
    %c0_72 = arith.constant 0 : index
    %170 = vector.load %arg19[%c0_70, %c0_71, %c0_72] : memref<1x4x32xbf16, #tpu.memory_space<vmem>>, vector<1x4x32xbf16>
    %171 = vector.shape_cast %170 : vector<1x4x32xbf16> to vector<4x32xbf16>
    %172 = vector.shape_cast %169 : vector<4x32xbf16> to vector<1x4x32xbf16>
    tpu.vector_store %arg19[%c0_70, %c0_71, %c0_72], %172 {strides = array<i32>} : memref<1x4x32xbf16, #tpu.memory_space<vmem>>, vector<1x4x32xbf16>,
    return
  }
  func.func @transform_0(%arg0: i32) -> (i32, i32, i32) {
    %c0_i32 = arith.constant 0 : i32
    %c0_i32_0 = arith.constant 0 : i32
    %c0_i32_1 = arith.constant 0 : i32
    return %arg0, %c0_i32, %c0_i32_0 : i32, i32, i32
  }
  func.func @transform_1(%arg0: i32) -> (i32, i32, i32) {
    %c0_i32 = arith.constant 0 : i32
    %c0_i32_0 = arith.constant 0 : i32
    %c0_i32_1 = arith.constant 0 : i32
    return %arg0, %c0_i32, %c0_i32_0 : i32, i32, i32
  }
  func.func @transform_2(%arg0: i32) -> (i32, i32) {
    %c0_i32 = arith.constant 0 : i32
    %c0_i32_0 = arith.constant 0 : i32
    %c0_i32_1 = arith.constant 0 : i32
    return %c0_i32, %c0_i32_0 : i32, i32
  }
  func.func @transform_3(%arg0: i32) -> (i32, i32) {
    %c0_i32 = arith.constant 0 : i32
    %c0_i32_0 = arith.constant 0 : i32
    %c0_i32_1 = arith.constant 0 : i32
    return %c0_i32, %c0_i32_0 : i32, i32
  }
  func.func @transform_4(%arg0: i32) -> (i32, i32) {
    %c0_i32 = arith.constant 0 : i32
    %c0_i32_0 = arith.constant 0 : i32
    %c0_i32_1 = arith.constant 0 : i32
    return %c0_i32, %c0_i32_0 : i32, i32
  }
  func.func @transform_5(%arg0: i32) -> (i32, i32) {
    %c0_i32 = arith.constant 0 : i32
    %c0_i32_0 = arith.constant 0 : i32
    %c0_i32_1 = arith.constant 0 : i32
    return %c0_i32, %c0_i32_0 : i32, i32
  }
  func.func @transform_6(%arg0: i32) -> (i32, i32) {
    %c0_i32 = arith.constant 0 : i32
    %c0_i32_0 = arith.constant 0 : i32
    %c0_i32_1 = arith.constant 0 : i32
    return %c0_i32, %c0_i32_0 : i32, i32
  }
  func.func @transform_7(%arg0: i32) -> (i32, i32) {
    %c0_i32 = arith.constant 0 : i32
    %c0_i32_0 = arith.constant 0 : i32
    %c0_i32_1 = arith.constant 0 : i32
    return %c0_i32, %c0_i32_0 : i32, i32
  }
  func.func @transform_8(%arg0: i32) -> (i32, i32) {
    %c0_i32 = arith.constant 0 : i32
    %c0_i32_0 = arith.constant 0 : i32
    %c0_i32_1 = arith.constant 0 : i32
    return %c0_i32, %c0_i32_0 : i32, i32
  }
  func.func @transform_9(%arg0: i32) -> (i32, i32) {
    %c0_i32 = arith.constant 0 : i32
    %c0_i32_0 = arith.constant 0 : i32
    %c0_i32_1 = arith.constant 0 : i32
    return %c0_i32, %c0_i32_0 : i32, i32
  }
  func.func @transform_10(%arg0: i32) -> (i32, i32) {
    %c0_i32 = arith.constant 0 : i32
    %c0_i32_0 = arith.constant 0 : i32
    %c0_i32_1 = arith.constant 0 : i32
    return %c0_i32, %c0_i32_0 : i32, i32
  }
  func.func @transform_11(%arg0: i32) -> (i32, i32) {
    %c0_i32 = arith.constant 0 : i32
    %c0_i32_0 = arith.constant 0 : i32
    %c0_i32_1 = arith.constant 0 : i32
    return %c0_i32, %c0_i32_0 : i32, i32
  }
  func.func @transform_12(%arg0: i32) -> (i32, i32) {
    %c0_i32 = arith.constant 0 : i32
    %c0_i32_0 = arith.constant 0 : i32
    %c0_i32_1 = arith.constant 0 : i32
    return %c0_i32, %c0_i32_0 : i32, i32
  }
  func.func @transform_13(%arg0: i32) -> (i32, i32) {
    %c0_i32 = arith.constant 0 : i32
    %c0_i32_0 = arith.constant 0 : i32
    %c0_i32_1 = arith.constant 0 : i32
    return %c0_i32, %c0_i32_0 : i32, i32
  }
  func.func @transform_14(%arg0: i32) -> (i32, i32) {
    %c0_i32 = arith.constant 0 : i32
    %c0_i32_0 = arith.constant 0 : i32
    %c0_i32_1 = arith.constant 0 : i32
    return %c0_i32, %c0_i32_0 : i32, i32
  }
  func.func @transform_15(%arg0: i32) -> (i32, i32) {
    %c0_i32 = arith.constant 0 : i32
    %c0_i32_0 = arith.constant 0 : i32
    %c0_i32_1 = arith.constant 0 : i32
    return %c0_i32, %c0_i32_0 : i32, i32
  }
  func.func @transform_16(%arg0: i32) -> (i32, i32) {
    %c0_i32 = arith.constant 0 : i32
    %c0_i32_0 = arith.constant 0 : i32
    %c0_i32_1 = arith.constant 0 : i32
    return %c0_i32, %c0_i32_0 : i32, i32
  }
  func.func @transform_17(%arg0: i32) -> (i32, i32) {
    %c0_i32 = arith.constant 0 : i32
    %c0_i32_0 = arith.constant 0 : i32
    %c0_i32_1 = arith.constant 0 : i32
    return %c0_i32, %c0_i32_0 : i32, i32
  }
  func.func @transform_18(%arg0: i32) -> (i32, i32, i32) {
    %c0_i32 = arith.constant 0 : i32
    %c0_i32_0 = arith.constant 0 : i32
    %c0_i32_1 = arith.constant 0 : i32
    return %arg0, %c0_i32, %c0_i32_0 : i32, i32, i32
  }
}

</mosaic_0001>

<bundles_post_ra>
// kernel: _lambda_.11
= control target key start
LH: loop header
LB: loop body
LE: loop exit
PB: predicated region body
PF: predicated region fallthrough
CT: control target
= control target key end

     0   :  { %s1309_s21 = smov 0   ;;  %s1552_s0 = inlined_call_operand.vmem [shape: bf16[2,49,8], index: 0, kind: input, shape index: {}]   ;;  %s1553_s1 = inlined_call_operand.vmem [shape: bf16[2,4,32], index: 1, kind: input, shape index: {}]   ;;  %s1554_s2 = inlined_call_operand.vmem [shape: bf16[8,32], index: 2, kind: input, shape index: {}]   ;;  %s1555_s3 = inlined_call_operand.vmem [shape: bf16[32,32], index: 3, kind: input, shape index: {}]   ;;  %s1556_s4 = inlined_call_operand.vmem [shape: bf16[32,32], index: 4, kind: input, shape index: {}]   ;;  %s1557_s5 = inlined_call_operand.vmem [shape: bf16[32,8], index: 5, kind: input, shape index: {}]   ;;  %s1558_s6 = inlined_call_operand.vmem [shape: bf16[2,49,8], index: 6, kind: output, shape index: {}]  }
   0x1 LB: > { %s1084_s22 = sadd.s32 4294967295, %s1270_s21   ;;  %p1088_p0 = scmp.ge.s32.totalorder %s1270_s21, 1  ;;  %s1270_s21 = sphi %s1309_s21, %s16_s21  }
   0x2   : > { %p221_p1 = scmp.lt.s32.totalorder %s1270_s21, 3 }
   0x4   : > { %p222_p2 = pnand %p1088_p0, %p221_p1 }
   0x5   : > { %p255_p3 = scmp.lt.s32.totalorder (!%p222_p2), %s1084_s22, 1  ;;  %s1272_s13 = smov (!%p222_p2), 112  }
   0x6   : > { %225 = sbr.rel (%p222_p2) target bundleno = 1117 (0x45d), region = 44  ;;  %s1273_s18 = smov (!%p222_p2), 16  }
   0xb   : > { %v1160_v0 = vld [vmem:[%s1555_s3 + $0x8] sm:$0xff]  ;;  %v278_v1 = vld [vmem:[%s1554_s2] sm:$0xf]  ;;  %vm310_vm0 = vcmask 1043456   ;;  %s1560_s22 = smov (!%p255_p3, %s1084_s22), 1  ;;  %vm297_vm1 = vcmask 64512  }
   0xc   : > { %v312_v2 = vsel %vm310_vm0, %v278_v1, 0  ;;  %368 = vmatpush.bf16.msra.mxu1 %v1160_v0  ;;  %v1159_v3 = vld [vmem:[%s1555_s3] sm:$0xff]  ;;  %s1167_s29 = smul.u32 28, %s1560_s22  ;;  %s1090_s30 = sshll.u32 %s1560_s22, 1  ;;  %vm358_vm2 = vcmask 261120   ;;  %vm476_vm3 = vcmask 130048  }
   0xd   : > { %321 = vmatpush.bf16.msra.mxu0 %v312_v2  ;;  %1165 = vmatpush.bf16.msra.mxu2 %v312_v2  ;;  %s263_s9 = scalar_lea.vmem %s1553_s1, %s1090_s30  ;;  %vm595_vm4 = vcmask 31744   ;;  %vm614_vm5 = vcmask 24576   ;;  %vm795_vm6 = vcmask 1041408   ;;  %vm1004_vm7 = vcmask 60416  }
   0xe   : > { %s1338_s12 = scalar_lea.vmem %s1552_s0, %s1167_s29  ;;  %v1340_v4 = vld [vmem:[%s263_s9] sm:$0x3]  ;;  %s1530_s27 = scalar_lea.vmem %s1558_s6, %s1167_s29  ;;  %vm1011_vm8 = vcmask 57344   ;;  %vm1012_vm9 = vsmask.f32 256 }
   0xf   : > { %v1156_v5 = vld [vmem:[%s1338_s12] sm:$0xff]  ;;  %v1346_v6 = vld [vmem:[%s1338_s12 + $0x18] sm:$0x1]  ;;  %v1157_v9 = vld [vmem:[%s1338_s12 + $0x8] sm:$0xff] }
  0x10   : > { %369 = vmatpush.bf16.msra.mxu1 %v1159_v3  ;;  %1104 = vmatmul.msk.bf16.vlgmr.msra.gmra.mxu0 %vm297_vm1, %v1156_v5  ;;  %v292_v7 = vunpack.c.l.b16 %v1346_v6  ;;  %v1158_v10 = vld [vmem:[%s1338_s12 + $0x10] sm:$0xff]  ;;  %vm1013_vm10 = vmand %vm1011_vm8, %vm1012_vm9 }
  0x12   : > { %v296_v8 = vpack.c.b16 %v292_v7, %v292_v7 }
  0x13   : > { %1116 = vmatmul.msk.bf16.vlgmr.msra.gmra.mxu1 %vm358_vm2, %v1340_v4 }
  0x14   : > { %1107 = vmatmul.msk.bf16.vlgmr.msra.gmra.mxu2 %vm297_vm1, %v296_v8 }
  0x20   : > { %1105 = vmatmul.msk.bf16.gmra.mxu0 %vm297_vm1, %v1157_v9 }
  0x30   : > { %1106 = vmatmul.msk.bf16.gmra.mxu0 %vm297_vm1, %v1158_v10 }
  0x8d   : > { %v323_v11 = vpop.f32.mrf.mxu0 }
  0x8e   : > { %v432_v16 = vpack.c.bf16 %v323_v11, %v323_v11 }
  0x90   : > { %v371_v12 = vpop.f32.mrf.mxu1  ;;  %v465_v20 = vunpack.c.l.b16 %v432_v16 }
  0x91   : > { %v450_v13 = vpack.c.bf16 %v371_v12, %v371_v12  ;;  %v1178_v14 = vpack.i.bf16 %v323_v11, %v371_v12 }
  0x93   : > { %1179 = vrot.lane.b32.xlu0 %v1178_v14, %s1272_s13  ;;  %v490_v15 = vsel %vm476_vm3, %v450_v13, 0 }
  0x94   : > { %499 = vmatpush.bf16.xpose.msrb.mxu1 %v490_v15  ;;  %1166 = vmatpush.bf16.xpose.msra.mxu3 %v490_v15 }
  0x95   : > { %v325_v17 = vpop.f32.mrf.mxu0 }
  0x96   : > { %v433_v19 = vpack.c.bf16 %v325_v17, %v325_v17 }
  0x97   : > { %v338_v23 = vpop.f32.mrf.mxu2 }
  0x98   : > { %v373_v18 = vpop.f32.mrf.mxu1  ;;  %v466_v21 = vunpack.c.l.b16 %v433_v19  ;;  %423 = vrot.lane.b32.xlu2 %v338_v23, %s1272_s13  ;;  %v438_v41 = vpack.c.bf16 %v338_v23, %v338_v23  ;;  %v1162_v19 = vld [vmem:[%s1556_s4 + $0x8] sm:$0xff] }
  0x99   : > { %397 = vmatpush.bf16.msrb.mxu2 %v1162_v19 }
  0x9a   : > { %v472_v22 = vpack.c.b16 %v466_v21, %v465_v20  ;;  %v471_v42 = vunpack.c.l.b16 %v438_v41  ;;  %v1161_v21 = vld [vmem:[%s1556_s4] sm:$0xff] }
  0x9b   : > { %413 = vrot.lane.b32.xlu0 %v325_v17, %s1272_s13 }
  0x9c   : > { %1126 = vmatmul.msk.bf16.vlgmr.msrb.gmra.mxu1 %vm476_vm3, %v472_v22  ;;  %v475_v43 = vpack.c.b16 %v471_v42, %v471_v42 }
  0x9d   : > { %v328_v24 = vpop.f32.mrf.mxu0  ;;  %398 = vmatpush.bf16.msrb.mxu2 %v1161_v21 }
  0x9e   : > { %v434_v25 = vpack.c.bf16 %v328_v24, %v328_v24 }
  0x9f   : > { %v340_v26 = vpop.f32.mrf.mxu2 }
  0xa0   : > { %v467_v30 = vunpack.c.l.b16 %v434_v25  ;;  %1125 = vmatmul.msk.bf16.vlgmr.msrb.gmra.mxu2 %vm358_vm2, %v1340_v4 }
  0xa5   : > { %v330_v27 = vpop.f32.mrf.mxu0 }
  0xa6   : > { %v435_v28 = vpack.c.bf16 %v330_v27, %v330_v27  ;;  %v1183_v29 = vpack.i.bf16 %v330_v27, %v328_v24 }
  0xa8   : > { %v468_v31 = vunpack.c.l.b16 %v435_v28  ;;  %1184 = vrot.lane.b32.xlu1 %v1183_v29, %s1272_s13 }
  0xaa   : > { %v473_v32 = vpack.c.b16 %v468_v31, %v467_v30 }
  0xac   : > { %1127 = vmatmul.msk.bf16.vlgmr.msra.gmra.mxu3 %vm476_vm3, %v473_v32 }
  0xad   : > { %v333_v33 = vpop.f32.mrf.mxu0 }
  0xae   : > { %v436_v34 = vpack.c.bf16 %v333_v33, %v333_v33 }
  0xb0   : > { %v469_v38 = vunpack.c.l.b16 %v436_v34 }
  0xb5   : > { %v335_v35 = vpop.f32.mrf.mxu0 }
  0xb6   : > { %v1188_v36 = vpack.i.bf16 %v335_v35, %v333_v33  ;;  %v437_v37 = vpack.c.bf16 %v335_v35, %v335_v35 }
  0xb8   : > { %v470_v39 = vunpack.c.l.b16 %v437_v37  ;;  %1189 = vrot.lane.b32.xlu1 %v1188_v36, %s1272_s13 }
  0xba   : > { %v474_v40 = vpack.c.b16 %v470_v39, %v469_v38 }
  0xbc   : > { %1128 = vmatmul.msk.bf16.gmra.mxu3 %vm476_vm3, %v474_v40 }
  0xcc   : > { %1129 = vmatmul.msk.bf16.gmra.mxu3 %vm476_vm3, %v475_v43 }
  0xf2   : > { %v424_v10 = vpop.permute.xlu2 %423 }
  0xf3   : > { %v445_v11 = vpack.c.bf16 %v424_v10, %v424_v10 }
  0xf5   : > { %v533_v12 = vunpack.c.l.b16 %v445_v11 }
  0xf7   : > { %v537_v14 = vpack.c.b16 %v533_v12, %v533_v12 }
 0x105   : > { %v1180_v44 = vpop.permute.xlu0 %1179 }
 0x106   : > { %v1181_v45 = vunpack.i.l.bf16 %v1180_v44  ;;  %v1182_v46 = vunpack.i.h.bf16 %v1180_v44 }
 0x108   : > { %v451_v47 = vpack.c.bf16 %v1181_v45, %v1181_v45  ;;  %v439_v49 = vpack.c.bf16 %v1182_v46, %v1182_v46 }
 0x10a   : > { %v551_v48 = vsel %vm476_vm3, %v451_v47, 0  ;;  %v527_v52 = vunpack.c.l.b16 %v439_v49 }
 0x10b   : > { %560 = vmatpush.bf16.xpose.msra.mxu1 %v551_v48 }
 0x10d   : > { %v414_v50 = vpop.permute.xlu0 %413 }
 0x10e   : > { %v440_v51 = vpack.c.bf16 %v414_v50, %v414_v50 }
 0x110   : > { %v528_v53 = vunpack.c.l.b16 %v440_v51 }
 0x112   : > { %v534_v54 = vpack.c.b16 %v528_v53, %v527_v52 }
 0x114   : > { %1130 = vmatmul.msk.bf16.vlgmr.msra.gmra.mxu1 %vm476_vm3, %v534_v54 }
 0x119   : > { %v501_v20 = vpop.f32.mrf.mxu1 }
 0x11a   : > { %v1185_v55 = vpop.permute.xlu1 %1184  ;;  %v1381_v32 = vmul.f32 0.25, %v501_v20 }
 0x11b   : > { %v1187_v56 = vunpack.i.h.bf16 %v1185_v55  ;;  %v1186_v57 = vunpack.i.l.bf16 %v1185_v55 }
 0x11c   : > { %v596_v35 = vsel %vm595_vm4, %v1381_v32, -inf }
 0x11d   : > { %v442_v58 = vpack.c.bf16 %v1187_v56, %v1187_v56  ;;  %v441_v59 = vpack.c.bf16 %v1186_v57, %v1186_v57 }
 0x11f   : > { %v530_v60 = vunpack.c.l.b16 %v442_v58  ;;  %v529_v61 = vunpack.c.l.b16 %v441_v59 }
 0x121   : > { %v535_v62 = vpack.c.b16 %v530_v60, %v529_v61  ;;  %v503_v22 = vpop.f32.mrf.mxu1 }
 0x122   : > { %v1391_v41 = vmul.f32 0.25, %v503_v22 }
 0x123   : > { %v400_v57 = vpop.f32.mrf.mxu2 }
 0x124   : > { %1131 = vmatmul.msk.bf16.gmra.mxu1 %vm476_vm3, %v535_v62  ;;  %v599_v44 = vsel %vm595_vm4, %v1391_v41, -inf }
 0x12a   : > { %v1190_v63 = vpop.permute.xlu1 %1189 }
 0x12b   : > { %v1192_v0 = vunpack.i.h.bf16 %v1190_v63  ;;  %v1191_v1 = vunpack.i.l.bf16 %v1190_v63  ;;  %v456_v63 = vpack.c.bf16 %v400_v57, %v400_v57 }
 0x12d   : > { %v444_v2 = vpack.c.bf16 %v1192_v0, %v1192_v0  ;;  %v443_v3 = vpack.c.bf16 %v1191_v1, %v1191_v1  ;;  %v402_v0 = vpop.f32.mrf.mxu2  ;;  %v797_v1 = vsel %vm795_vm6, %v456_v63, 0 }
 0x12e   : > { %806 = vmatpush.bf16.msra.mxu2 %v797_v1 }
 0x12f   : > { %v532_v5 = vunpack.c.l.b16 %v444_v2  ;;  %v531_v7 = vunpack.c.l.b16 %v443_v3  ;;  %v506_v9 = vpop.f32.mrf.mxu3 }
 0x130   : > { %v1399_v46 = vmul.f32 0.25, %v506_v9 }
 0x131   : > { %v536_v8 = vpack.c.b16 %v532_v5, %v531_v7 }
 0x132   : > { %v602_v49 = vsel %vm595_vm4, %v1399_v46, -inf }
 0x134   : > { %1132 = vmatmul.msk.bf16.gmra.mxu1 %vm476_vm3, %v536_v8 }
 0x137   : > { %v508_v13 = vpop.f32.mrf.mxu3 }
 0x138   : > { %v1386_v36 = vmul.f32 0.25, %v508_v13 }
 0x13a   : > { %v605_v39 = vsel %vm595_vm4, %v1386_v36, -inf }
 0x13f   : > { %v1366_v15 = vpop.f32.mrf.mxu3 }
 0x140   : > { %v1421_v9 = vmul.f32 0.25, %v1366_v15 }
 0x142   : > { %v608_v12 = vsel %vm595_vm4, %v1421_v9, -inf }
 0x144   : > { %1133 = vmatmul.msk.bf16.gmra.mxu1 %vm476_vm3, %v537_v14 }
 0x147   : > { %v513_v16 = vpop.f32.mrf.mxu3 }
 0x148   : > { %v1407_v51 = vmul.f32 0.25, %v513_v16 }
 0x14a   : > { %v611_v53 = vsel %vm595_vm4, %v1407_v51, -inf }
 0x14f   : > { %v1368_v17 = vpop.f32.mrf.mxu3 }
 0x157   : > { %v518_v18 = vpop.f32.mrf.mxu3 }
 0x191   : > { %v562_v23 = vpop.f32.mrf.mxu1 }
 0x192   : > { %v588_v24 = vmul.f32 0.25, %v562_v23 }
 0x194   : > { %v618_v25 = vsel %vm595_vm4, %v588_v24, -inf }
 0x195   : > { %619 = vmax.xlane.f32.xlu2 %v618_v25 }
 0x199   : > { %v564_v26 = vpop.f32.mrf.mxu1 }
 0x19a   : > { %v589_v27 = vmul.f32 0.25, %v564_v26 }
 0x19c   : > { %v621_v28 = vsel %vm595_vm4, %v589_v27, -inf }
 0x19d   : > { %622 = vmax.xlane.f32.xlu0 %v621_v28 }
 0x1a1   : > { %v567_v29 = vpop.f32.mrf.mxu1 }
 0x1a2   : > { %v590_v30 = vmul.f32 0.25, %v567_v29 }
 0x1a4   : > { %v624_v31 = vsel %vm595_vm4, %v590_v30, -inf }
 0x1a5   : > { %625 = vmax.xlane.f32.xlu1 %v624_v31 }
 0x1a9   : > { %v569_v33 = vpop.f32.mrf.mxu1 }
 0x1aa   : > { %v591_v4 = vmul.f32 0.25, %v569_v33 }
 0x1ac   : > { %v627_v34 = vsel %vm595_vm4, %v591_v4, -inf }
 0x1ad   : > { %628 = vmax.xlane.f32.xlu2 %v627_v34  ;;  %597 = vmax.xlane.f32.xlu1 %v596_v35 }
 0x1b1   : > { %v572_v37 = vpop.f32.mrf.mxu1 }
 0x1b2   : > { %v592_v38 = vmul.f32 0.25, %v572_v37 }
 0x1b4   : > { %v630_v40 = vsel %vm595_vm4, %v592_v38, -inf }
 0x1b5   : > { %606 = vmax.xlane.f32.xlu1 %v605_v39  ;;  %631 = vmax.xlane.f32.xlu2 %v630_v40 }
 0x1b9   : > { %v574_v42 = vpop.f32.mrf.mxu1 }
 0x1ba   : > { %v1393_v43 = vmul.f32 0.25, %v574_v42 }
 0x1bc   : > { %v633_v45 = vsel %vm595_vm4, %v1393_v43, -inf }
 0x1bd   : > { %600 = vmax.xlane.f32.xlu2 %v599_v44  ;;  %634 = vmax.xlane.f32.xlu0 %v633_v45  ;;  %v1452_v45 = vmul.f32 0.25, %v1368_v17 }
 0x1c1   : > { %v577_v47 = vpop.f32.mrf.mxu1 }
 0x1c2   : > { %v1401_v48 = vmul.f32 0.25, %v577_v47 }
 0x1c4   : > { %v636_v50 = vsel %vm614_vm5, %v1401_v48, -inf }
 0x1c5   : > { %603 = vmax.xlane.f32.xlu0 %v602_v49  ;;  %637 = vmax.xlane.f32.xlu1 %v636_v50  ;;  %v615_v50 = vsel %vm614_vm5, %v1452_v45, -inf }
 0x1c9   : > { %v579_v52 = vpop.f32.mrf.mxu1 }
 0x1cd   : > { %612 = vmax.xlane.f32.xlu1 %v611_v53 }
 0x208   : > { %v620_v54 = vpop.xlane.xlu2 %619 }
 0x209   : > { %v646_v55 = vsub.f32 %v588_v24, %v620_v54 }
 0x20b   : > { %v667_v56 = vmul.f32 1.442695, %v646_v55 }
 0x20d   : > { %1208 = vpow2.f32 %v667_v56 }
 0x210   : > { %v623_v58 = vpop.xlane.xlu0 %622 }
 0x211   : > { %v647_v59 = vsub.f32 %v589_v27, %v623_v58 }
 0x213   : > { %v1411_v60 = vpop.eup %1208  ;;  %v669_v61 = vmul.f32 1.442695, %v647_v59 }
 0x214   : > { %v702_v62 = vsel %vm595_vm4, %v1411_v60, 0.0 }
 0x215   : > { %1210 = vpow2.f32 %v669_v61  ;;  %703 = vadd.xlane.f32.xlu2 %v702_v62 }
 0x218   : > { %v626_v2 = vpop.xlane.xlu1 %625 }
 0x219   : > { %v648_v5 = vsub.f32 %v590_v30, %v626_v2 }
 0x21b   : > { %v1416_v3 = vpop.eup %1210  ;;  %v671_v8 = vmul.f32 1.442695, %v648_v5 }
 0x21c   : > { %v705_v7 = vsel %vm595_vm4, %v1416_v3, 0.0 }
 0x21d   : > { %706 = vadd.xlane.f32.xlu0 %v705_v7  ;;  %1212 = vpow2.f32 %v671_v8 }
 0x220   : > { %v629_v10 = vpop.xlane.xlu2 %628  ;;  %v598_v14 = vpop.xlane.xlu1 %597 }
 0x221   : > { %v649_v11 = vsub.f32 %v591_v4, %v629_v10 }
 0x223   : > { %v673_v13 = vmul.f32 1.442695, %v649_v11  ;;  %v1425_v16 = vpop.eup %1212 }
 0x224   : > { %v708_v20 = vsel %vm595_vm4, %v1425_v16, 0.0 }
 0x225   : > { %609 = vmax.xlane.f32.xlu0 %v608_v12  ;;  %1214 = vpow2.f32 %v673_v13 }
 0x228   : > { %v632_v18 = vpop.xlane.xlu2 %631  ;;  %v607_v23 = vpop.xlane.xlu1 %606 }
 0x229   : > { %v650_v19 = vsub.f32 %v592_v38, %v632_v18  ;;  %v642_v37 = vsub.f32 %v1386_v36, %v607_v23 }
 0x22b   : > { %v1429_v21 = vpop.eup %1214  ;;  %v675_v15 = vmul.f32 1.442695, %v650_v19 }
 0x22c   : > { %v711_v22 = vsel %vm595_vm4, %v1429_v21, 0.0 }
 0x22d   : > { %453 = vrot.lane.b32.xlu2 %v400_v57, %s1272_s13  ;;  %709 = vadd.xlane.f32.xlu0 %v708_v20  ;;  %1216 = vpow2.f32 %v675_v15 }
 0x22e   : > { %712 = vadd.xlane.f32.xlu1 %v711_v22 }
 0x230   : > { %v601_v24 = vpop.xlane.xlu2 %600  ;;  %v635_v25 = vpop.xlane.xlu0 %634 }
 0x231   : > { %v640_v26 = vsub.f32 %v1391_v41, %v601_v24  ;;  %v651_v27 = vsub.f32 %v1393_v43, %v635_v25  ;;  %v659_v43 = vmul.f32 1.442695, %v642_v37 }
 0x233   : > { %v655_v28 = vmul.f32 1.442695, %v640_v26  ;;  %v677_v29 = vmul.f32 1.442695, %v651_v27  ;;  %v1436_v30 = vpop.eup %1216 }
 0x234   : > { %v714_v31 = vsel %vm595_vm4, %v1436_v30, 0.0 }
 0x235   : > { %1218 = vpow2.f32 %v655_v28  ;;  %715 = vadd.xlane.f32.xlu0 %v714_v31 }
 0x236   : > { %1220 = vpow2.f32 %v677_v29 }
 0x238   : > { %v604_v33 = vpop.xlane.xlu0 %603  ;;  %v638_v4 = vpop.xlane.xlu1 %637 }
 0x239   : > { %v641_v34 = vsub.f32 %v1399_v46, %v604_v33  ;;  %v652_v40 = vsub.f32 %v1401_v48, %v638_v4  ;;  %v639_v46 = vsub.f32 %v1381_v32, %v598_v14 }
 0x23b   : > { %v1441_v35 = vpop.eup %1218  ;;  %v657_v38 = vmul.f32 1.442695, %v641_v34  ;;  %v679_v44 = vmul.f32 1.442695, %v652_v40  ;;  %v653_v52 = vmul.f32 1.442695, %v639_v46 }
 0x23c   : > { %v1444_v39 = vpop.eup %1220  ;;  %v684_v41 = vsel %vm595_vm4, %v1441_v35, 0.0 }
 0x23d   : > { %1222 = vpow2.f32 %v657_v38  ;;  %v717_v42 = vsel %vm595_vm4, %v1444_v39, 0.0  ;;  %685 = vadd.xlane.f32.xlu0 %v684_v41 }
 0x23e   : > { %718 = vadd.xlane.f32.xlu1 %v717_v42  ;;  %1224 = vpow2.f32 %v659_v43 }
 0x23f   : > { %1226 = vpow2.f32 %v679_v44 }
 0x240   : > { %v613_v36 = vpop.xlane.xlu1 %612  ;;  %1228 = vpow2.f32 %v653_v52 }
 0x241   : > { %v644_v48 = vsub.f32 %v1407_v51, %v613_v36 }
 0x243   : > { %v1455_v47 = vpop.eup %1222  ;;  %v663_v17 = vmul.f32 1.442695, %v644_v48 }
 0x244   : > { %v687_v49 = vsel %vm595_vm4, %v1455_v47, 0.0  ;;  %v1462_v53 = vpop.eup %1224 }
 0x245   : > { %688 = vadd.xlane.f32.xlu0 %v687_v49  ;;  %v1464_v54 = vpop.eup %1226  ;;  %1230 = vpow2.f32 %v663_v17  ;;  %v690_v51 = vsel %vm595_vm4, %v1462_v53, 0.0 }
 0x246   : > { %616 = vmax.xlane.f32.xlu1 %v615_v50  ;;  %v720_v32 = vsel %vm614_vm5, %v1464_v54, 0.0  ;;  %v1470_v55 = vpop.eup %1228 }
 0x247   : > { %v681_v57 = vsel %vm595_vm4, %v1470_v55, 0.0 }
 0x24b   : > { %v1472_v56 = vpop.eup %1230 }
 0x24c   : > { %v696_v58 = vsel %vm595_vm4, %v1472_v56, 0.0 }
 0x24d   : > { %721 = vadd.xlane.f32.xlu0 %v720_v32 }
 0x24e   : > { %691 = vadd.xlane.f32.xlu1 %v690_v51 }
 0x255   : > { %697 = vadd.xlane.f32.xlu0 %v696_v58 }
 0x256   : > { %682 = vadd.xlane.f32.xlu2 %v681_v57 }
 0x288   : > { %v704_v59 = vpop.xlane.xlu2 %703 }
 0x289   : > { %1232 = vrcp.f32 %v704_v59 }
 0x28f   : > { %v1233_v63 = vpop.eup %1232 }
 0x290   : > { %v454_v61 = vpop.permute.xlu2 %453  ;;  %v707_v62 = vpop.xlane.xlu0 %706  ;;  %v744_v2 = vmul.f32 %v1233_v63, %v1411_v60 }
 0x291   : > { %v457_v0 = vpack.c.bf16 %v454_v61, %v454_v61  ;;  %1234 = vrcp.f32 %v707_v62 }
 0x292   : > { %v758_v7 = vpack.c.bf16 %v744_v2, %v744_v2 }
 0x293   : > { %v858_v1 = vsel %vm795_vm6, %v457_v0, 0 }
 0x294   : > { %867 = vmatpush.bf16.msrb.mxu0 %v858_v1  ;;  %v834_v14 = vunpack.c.l.b16 %v758_v7 }
 0x297   : > { %v1235_v5 = vpop.eup %1234 }
 0x298   : > { %v745_v8 = vmul.f32 %v1235_v5, %v1416_v3  ;;  %v610_v10 = vpop.xlane.xlu0 %609 }
 0x299   : > { %v643_v11 = vsub.f32 %v1421_v9, %v610_v10 }
 0x29a   : > { %v759_v12 = vpack.c.bf16 %v745_v8, %v745_v8 }
 0x29b   : > { %v661_v13 = vmul.f32 1.442695, %v643_v11 }
 0x29c   : > { %v835_v18 = vunpack.c.l.b16 %v759_v12 }
 0x29d   : > { %1236 = vpow2.f32 %v661_v13 }
 0x29e   : > { %v841_v19 = vpack.c.b16 %v835_v18, %v834_v14 }
 0x2a0   : > { %1138 = vmatmul.msk.bf16.vlgmr.msrb.gmra.mxu0 %vm595_vm4, %v841_v19  ;;  %v710_v20 = vpop.xlane.xlu0 %709 }
 0x2a1   : > { %1238 = vrcp.f32 %v710_v20  ;;  %v713_v15 = vpop.xlane.xlu1 %712 }
 0x2a2   : > { %1240 = vrcp.f32 %v713_v15 }
 0x2a3   : > { %v1483_v60 = vpop.eup %1236 }
 0x2a4   : > { %v693_v3 = vsel %vm595_vm4, %v1483_v60, 0.0 }
 0x2a5   : > { %694 = vadd.xlane.f32.xlu1 %v693_v3 }
 0x2a7   : > { %v1239_v22 = vpop.eup %1238 }
 0x2a8   : > { %v746_v9 = vmul.f32 %v1239_v22, %v1425_v16  ;;  %v1241_v23 = vpop.eup %1240  ;;  %v716_v26 = vpop.xlane.xlu0 %715 }
 0x2a9   : > { %v747_v24 = vmul.f32 %v1241_v23, %v1429_v21  ;;  %1242 = vrcp.f32 %v716_v26 }
 0x2aa   : > { %v760_v25 = vpack.c.bf16 %v746_v9, %v746_v9 }
 0x2ab   : > { %v761_v27 = vpack.c.bf16 %v747_v24, %v747_v24 }
 0x2ac   : > { %v836_v28 = vunpack.c.l.b16 %v760_v25 }
 0x2ad   : > { %v837_v29 = vunpack.c.l.b16 %v761_v27 }
 0x2af   : > { %v842_v31 = vpack.c.b16 %v837_v29, %v836_v28  ;;  %v1243_v34 = vpop.eup %1242 }
 0x2b0   : > { %v686_v33 = vpop.xlane.xlu0 %685  ;;  %v748_v37 = vmul.f32 %v1243_v34, %v1436_v30 }
 0x2b1   : > { %1139 = vmatmul.msk.bf16.gmra.mxu0 %vm595_vm4, %v842_v31  ;;  %v719_v4 = vpop.xlane.xlu1 %718 }
 0x2b2   : > { %1244 = vrcp.f32 %v719_v4  ;;  %v762_v42 = vpack.c.bf16 %v748_v37, %v748_v37 }
 0x2b4   : > { %v838_v36 = vunpack.c.l.b16 %v762_v42  ;;  %v1163_v42 = vld [vmem:[%s1557_s5] sm:$0xff] }
 0x2b8   : > { %v1245_v38 = vpop.eup %1244  ;;  %v689_v16 = vpop.xlane.xlu0 %688 }
 0x2b9   : > { %v617_v40 = vpop.xlane.xlu1 %616  ;;  %v749_v41 = vmul.f32 %v1245_v38, %v1444_v39 }
 0x2ba   : > { %v645_v21 = vsub.f32 %v1452_v45, %v617_v40 }
 0x2bb   : > { %v763_v44 = vpack.c.bf16 %v749_v41, %v749_v41 }
 0x2bc   : > { %v665_v43 = vmul.f32 1.442695, %v645_v21  ;;  %v1164_v21 = vld [vmem:[%s1557_s5 + $0x8] sm:$0xff] }
 0x2bd   : > { %v839_v46 = vunpack.c.l.b16 %v763_v44  ;;  %968 = vmatpush.bf16.msrb.mxu3 %v1164_v21 }
 0x2be   : > { %1246 = vpow2.f32 %v665_v43 }
 0x2bf   : > { %v843_v48 = vpack.c.b16 %v839_v46, %v838_v36  ;;  %1248 = vrcp.f32 %v686_v33 }
 0x2c0   : > { %v722_v49 = vpop.xlane.xlu0 %721 }
 0x2c1   : > { %1250 = vrcp.f32 %v722_v49  ;;  %1140 = vmatmul.msk.bf16.gmra.mxu0 %vm595_vm4, %v843_v48  ;;  %v692_v57 = vpop.xlane.xlu1 %691  ;;  %969 = vmatpush.bf16.msrb.mxu3 %v1163_v42 }
 0x2c4   : > { %v1247_v30 = vpop.eup %1246 }
 0x2c5   : > { %v699_v50 = vsel %vm614_vm5, %v1247_v30, 0.0  ;;  %v1249_v52 = vpop.eup %1248 }
 0x2c6   : > { %700 = vadd.xlane.f32.xlu1 %v699_v50  ;;  %v738_v32 = vmul.f32 %v1249_v52, %v1441_v35 }
 0x2c7   : > { %v1251_v17 = vpop.eup %1250 }
 0x2c8   : > { %v750_v39 = vmul.f32 %v1251_v17, %v1464_v54  ;;  %v752_v61 = vpack.c.bf16 %v738_v32, %v738_v32  ;;  %v698_v14 = vpop.xlane.xlu0 %697 }
 0x2c9   : > { %v683_v45 = vpop.xlane.xlu2 %682 }
 0x2ca   : > { %1252 = vrcp.f32 %v683_v45  ;;  %v764_v51 = vpack.c.bf16 %v750_v39, %v750_v39  ;;  %v773_v1 = vunpack.c.l.b16 %v752_v61 }
 0x2cb   : > { %1254 = vrcp.f32 %v692_v57 }
 0x2cc   : > { %v840_v58 = vunpack.c.l.b16 %v764_v51  ;;  %1256 = vrcp.f32 %v689_v16 }
 0x2cd   : > { %1258 = vrcp.f32 %v698_v14 }
 0x2ce   : > { %v844_v63 = vpack.c.b16 %v840_v58, %v840_v58 }
 0x2d0   : > { %v1253_v59 = vpop.eup %1252 }
 0x2d1   : > { %v737_v62 = vmul.f32 %v1253_v59, %v1470_v55  ;;  %1141 = vmatmul.msk.bf16.gmra.mxu0 %vm595_vm4, %v844_v63  ;;  %v1255_v7 = vpop.eup %1254 }
 0x2d2   : > { %v1257_v35 = vpop.eup %1256  ;;  %v740_v54 = vmul.f32 %v1255_v7, %v1462_v53 }
 0x2d3   : > { %v751_v0 = vpack.c.bf16 %v737_v62, %v737_v62  ;;  %v739_v8 = vmul.f32 %v1257_v35, %v1455_v47  ;;  %v1259_v19 = vpop.eup %1258 }
 0x2d4   : > { %v754_v10 = vpack.c.bf16 %v740_v54, %v740_v54  ;;  %v742_v20 = vmul.f32 %v1259_v19, %v1472_v56 }
 0x2d5   : > { %v772_v2 = vunpack.c.l.b16 %v751_v0  ;;  %v753_v11 = vpack.c.bf16 %v739_v8, %v739_v8 }
 0x2d6   : > { %v775_v55 = vunpack.c.l.b16 %v754_v10  ;;  %v756_v22 = vpack.c.bf16 %v742_v20, %v742_v20 }
 0x2d7   : > { %v779_v5 = vpack.c.b16 %v773_v1, %v772_v2  ;;  %v774_v12 = vunpack.c.l.b16 %v753_v11  ;;  %v270_v11 = vld [vmem:[%s1338_s12] sm:$0xff]  }
 0x2d8   : > { %v777_v23 = vunpack.c.l.b16 %v756_v22 }
 0x2d9   : > { %1134 = vmatmul.msk.bf16.vlgmr.msra.gmra.mxu2 %vm595_vm4, %v779_v5  ;;  %v780_v13 = vpack.c.b16 %v775_v55, %v774_v12  ;;  %v923_v55 = vunpack.c.l.bf16 %v270_v11 }
 0x2e9   : > { %1135 = vmatmul.msk.bf16.gmra.mxu2 %vm595_vm4, %v780_v13 }
 0x318   : > { %v695_v18 = vpop.xlane.xlu1 %694 }
 0x319   : > { %1260 = vrcp.f32 %v695_v18  ;;  %v924_v18 = vunpack.c.h.bf16 %v270_v11 }
 0x31d   : > { %v869_v15 = vpop.f32.mrf.mxu0 }
 0x31f   : > { %v1261_v3 = vpop.eup %1260 }
 0x320   : > { %v741_v53 = vmul.f32 %v1261_v3, %v1483_v60  ;;  %v272_v3 = vld [vmem:[%s1338_s12 + $0x8] sm:$0xff]  }
 0x322   : > { %v755_v47 = vpack.c.bf16 %v741_v53, %v741_v53  ;;  %v925_v53 = vunpack.c.l.bf16 %v272_v3 }
 0x324   : > { %v776_v9 = vunpack.c.l.b16 %v755_v47 }
 0x325   : > { %v871_v24 = vpop.f32.mrf.mxu0 }
 0x326   : > { %v1193_v25 = vpack.i.bf16 %v871_v24, %v869_v15  ;;  %v781_v26 = vpack.c.b16 %v777_v23, %v776_v9  ;;  %v926_v23 = vunpack.c.h.bf16 %v272_v3 }
 0x328   : > { %1194 = vrot.lane.b32.xlu0 %v1193_v25, %s1273_s18  ;;  %1136 = vmatmul.msk.bf16.gmra.mxu2 %vm595_vm4, %v781_v26  ;;  %v274_v26 = vld [vmem:[%s1338_s12 + $0x10] sm:$0xff]  }
 0x32e   : > { %v874_v27 = vpop.f32.mrf.mxu0 }
 0x336   : > { %v876_v28 = vpop.f32.mrf.mxu0 }
 0x337   : > { %v1198_v29 = vpack.i.bf16 %v876_v28, %v874_v27  ;;  %v927_v28 = vunpack.c.l.bf16 %v274_v26 }
 0x339   : > { %1199 = vrot.lane.b32.xlu1 %v1198_v29, %s1273_s18  ;;  %v701_v56 = vpop.xlane.xlu1 %700 }
 0x33a   : > { %1262 = vrcp.f32 %v701_v56 }
 0x33e   : > { %v879_v31 = vpop.f32.mrf.mxu0 }
 0x340   : > { %v1263_v33 = vpop.eup %1262 }
 0x341   : > { %v743_v60 = vmul.f32 %v1263_v33, %v1247_v30  ;;  %v928_v33 = vunpack.c.h.bf16 %v274_v26 }
 0x343   : > { %v757_v4 = vpack.c.bf16 %v743_v60, %v743_v60 }
 0x345   : > { %v778_v34 = vunpack.c.l.b16 %v757_v4 }
 0x346   : > { %v881_v37 = vpop.f32.mrf.mxu0 }
 0x347   : > { %v782_v38 = vpack.c.b16 %v778_v34, %v778_v34  ;;  %v1203_v16 = vpack.i.bf16 %v881_v37, %v879_v31  ;;  %v929_v37 = vunpack.c.l.bf16 %v1346_v6 }
 0x349   : > { %1137 = vmatmul.msk.bf16.gmra.mxu2 %vm595_vm4, %v782_v38  ;;  %1204 = vrot.lane.b32.xlu2 %v1203_v16, %s1273_s18 }
 0x34e   : > { %v884_v40 = vpop.f32.mrf.mxu0 }
 0x34f   : > { %907 = vrot.lane.b32.xlu0 %v884_v40, %s1273_s18  ;;  %v1014_v40 = vld [vmem:[%s1530_s27 + $0x18] sm:$0x1] }
 0x356   : > { %v886_v41 = vpop.f32.mrf.mxu0 }
 0x35c   : > { %v808_v43 = vpop.f32.mrf.mxu2 }
 0x364   : > { %v810_v44 = vpop.f32.mrf.mxu2 }
 0x36c   : > { %v813_v50 = vpop.f32.mrf.mxu2 }
 0x374   : > { %v815_v45 = vpop.f32.mrf.mxu2 }
 0x39a   : > { %v1195_v36 = vpop.permute.xlu0 %1194 }
 0x39b   : > { %v1197_v46 = vunpack.i.h.bf16 %v1195_v36  ;;  %v1196_v48 = vunpack.i.l.bf16 %v1195_v36 }
 0x39d   : > { %v917_v49 = vsel %vm476_vm3, %v810_v44, %v1197_v46  ;;  %v916_v30 = vsel %vm476_vm3, %v808_v43, %v1196_v48 }
 0x39e   : > { %v930_v52 = vpack.c.bf16 %v917_v49, %v916_v30 }
 0x3a0   : > { %1150 = vmatmul.msk.bf16.vlgmr.msrb.gmra.mxu3 %vm358_vm2, %v930_v52 }
 0x3a3   : > { %v1205_v61 = vpop.permute.xlu2 %1204 }
 0x3a4   : > { %v1207_v63 = vunpack.i.h.bf16 %v1205_v61  ;;  %v1206_v0 = vunpack.i.l.bf16 %v1205_v61 }
 0x3ab   : > { %v1200_v17 = vpop.permute.xlu1 %1199  ;;  %v818_v58 = vpop.f32.mrf.mxu2 }
 0x3ac   : > { %v1202_v39 = vunpack.i.h.bf16 %v1200_v17  ;;  %v1201_v32 = vunpack.i.l.bf16 %v1200_v17  ;;  %v920_v2 = vsel %vm476_vm3, %v818_v58, %v1206_v0 }
 0x3ae   : > { %v918_v51 = vsel %vm476_vm3, %v813_v50, %v1201_v32  ;;  %v919_v57 = vsel %vm476_vm3, %v815_v45, %v1202_v39 }
 0x3af   : > { %v931_v59 = vpack.c.bf16 %v919_v57, %v918_v51 }
 0x3b1   : > { %1151 = vmatmul.msk.bf16.gmra.mxu3 %vm358_vm2, %v931_v59 }
 0x3b3   : > { %v820_v62 = vpop.f32.mrf.mxu2 }
 0x3b4   : > { %v921_v1 = vsel %vm476_vm3, %v820_v62, %v1207_v63 }
 0x3b5   : > { %v932_v5 = vpack.c.bf16 %v921_v1, %v920_v2 }
 0x3c1   : > { %1152 = vmatmul.msk.bf16.gmra.mxu3 %vm358_vm2, %v932_v5  ;;  %v908_v7 = vpop.permute.xlu0 %907 }
 0x3cc   : > { %v823_v35 = vpop.f32.mrf.mxu2 }
 0x3cd   : > { %v922_v54 = vsel %vm476_vm3, %v823_v35, %v908_v7 }
 0x3ce   : > { %v933_v8 = vpack.c.bf16 %v922_v54, %v922_v54 }
 0x3d1   : > { %1153 = vmatmul.msk.bf16.gmra.mxu3 %vm358_vm2, %v933_v8 }
 0x3d4   : > { %v825_v10 = vpop.f32.mrf.mxu2 }
 0x423   : > { %v971_v12 = vpop.f32.mrf.mxu3 }
 0x424   : > { %v990_v13 = vadd.f32 %v971_v12, %v923_v55 }
 0x426   : > { %v997_v14 = vpack.c.bf16 %v990_v13, %v990_v13 }
 0x428   : > { %1005 = vst.msk [vmem:[%s1530_s27] sm:$0xf] %vm1004_vm7, %v997_v14 }
 0x42b   : > { %v973_v19 = vpop.f32.mrf.mxu3 }
 0x42c   : > { %v991_v20 = vadd.f32 %v973_v19, %v924_v18 }
 0x42e   : > { %v998_v15 = vpack.c.bf16 %v991_v20, %v991_v20 }
 0x430   : > { %1006 = vst.msk [vmem:[%s1530_s27 + $0x4] sm:$0xf] %vm1004_vm7, %v998_v15 }
 0x434   : > { %v976_v22 = vpop.f32.mrf.mxu3 }
 0x435   : > { %v992_v47 = vadd.f32 %v976_v22, %v925_v53 }
 0x437   : > { %v999_v9 = vpack.c.bf16 %v992_v47, %v992_v47 }
 0x439   : > { %1007 = vst.msk [vmem:[%s1530_s27 + $0x8] sm:$0xf] %vm1004_vm7, %v999_v9 }
 0x43c   : > { %v978_v24 = vpop.f32.mrf.mxu3 }
 0x43d   : > { %v993_v25 = vadd.f32 %v978_v24, %v926_v23 }
 0x43f   : > { %v1000_v27 = vpack.c.bf16 %v993_v25, %v993_v25 }
 0x441   : > { %1008 = vst.msk [vmem:[%s1530_s27 + $0xc] sm:$0xf] %vm1004_vm7, %v1000_v27 }
 0x444   : > { %v981_v29 = vpop.f32.mrf.mxu3 }
 0x445   : > { %v994_v56 = vadd.f32 %v981_v29, %v927_v28 }
 0x447   : > { %v1001_v31 = vpack.c.bf16 %v994_v56, %v994_v56 }
 0x449   : > { %1009 = vst.msk [vmem:[%s1530_s27 + $0x10] sm:$0xf] %vm1004_vm7, %v1001_v31 }
 0x44c   : > { %v983_v60 = vpop.f32.mrf.mxu3 }
 0x44d   : > { %v995_v4 = vadd.f32 %v983_v60, %v928_v33 }
 0x44f   : > { %v1002_v34 = vpack.c.bf16 %v995_v4, %v995_v4 }
 0x451   : > { %1010 = vst.msk [vmem:[%s1530_s27 + $0x14] sm:$0xf] %vm1004_vm7, %v1002_v34 }
 0x454   : > { %v986_v38 = vpop.f32.mrf.mxu3 }
 0x455   : > { %v996_v16 = vadd.f32 %v986_v38, %v929_v37 }
 0x457   : > { %v1003_v21 = vpack.c.bf16 %v996_v16, %v996_v16 }
 0x459   : > { %v1015_v41 = vsel %vm1013_vm10, %v1003_v21, %v1014_v40 }
 0x45a   : > { %1016 = vst [vmem:[%s1530_s27 + $0x18] sm:$0x1] %v1015_v41 }
 0x45c   : > { %v988_v42 = vpop.f32.mrf.mxu3 }
 0x45d PF: > { %s16_s21 = sadd.s32 1, %s1270_s21  }
 0x45e   : > { %p13_p4 = scmp.ge.s32.totalorder %s16_s21, 4  }
 0x460   :  { %15 = sbr.rel (!%p13_p4) target bundleno = 1 (0x1), region = 77 }

// kernel: _lambda_.10
= control target key start
LH: loop header
LB: loop body
LE: loop exit
PB: predicated region body
PF: predicated region fallthrough
CT: control target
= control target key end

     0   :  { %15 = vsyncpa [#allocation3], 0  ;;  %s2173_s0 = inlined_call_operand.vmem [shape: bf16[2,49,8], index: 0, kind: input, shape index: {}]   ;;  %s2174_s1 = inlined_call_operand.vmem [shape: bf16[8,16], index: 1, kind: input, shape index: {}]   ;;  %s2175_s2 = inlined_call_operand.hbm [shape: f32[1,16], index: 2, kind: input, shape index: {}]   ;;  %s2176_s3 = inlined_call_operand.hbm [shape: f32[1,16], index: 3, kind: input, shape index: {}]   ;;  %s2177_s4 = inlined_call_operand.vmem [shape: f32[9,16], index: 4, kind: input, shape index: {}]   ;;  %s2178_s5 = inlined_call_operand.hbm [shape: f32[1,16], index: 5, kind: input, shape index: {}]   ;;  %s2179_s6 = inlined_call_operand.hbm [shape: f32[1,16], index: 6, kind: input, shape index: {}]   ;;  %s2180_s7 = inlined_call_operand.vmem [shape: bf16[16,8], index: 7, kind: input, shape index: {}]   ;;  %s2181_s8 = inlined_call_operand.hbm [shape: f32[1,8], index: 8, kind: input, shape index: {}]   ;;  %s2182_s9 = inlined_call_operand.hbm [shape: f32[1,8], index: 9, kind: input, shape index: {}]   ;;  %s2183_s10 = inlined_call_operand.vmem [shape: bf16[2,49,8], index: 10, kind: output, shape index: {}]  }
   0x1   :  { %16 = vsyncpa [#allocation5], 0 }
   0x2   :  { %17 = vsyncpa [#allocation8], 0 }
   0x3   :  { %18 = vsyncpa [#allocation11], 0  ;;  %s1786_s13 = smov 0  }
   0x4 LB: > { %s297_s16 = sshll.u32 %s2176_s3, 4  ;;  %s1795_s17 = sadd.s32 4294967295, %s1723_s13   ;;  %s1723_s13 = sphi %s1786_s13, %s24_s13   ;;  %s298_s16 = int_to_ptr.hbm [resolvable:$true] %s297_s16 }
   0x5   : > { %p1394_p0 = scmp.ge.s32.totalorder %s1723_s13, 1  ;;  %p270_p1 = scmp.lt.s32.totalorder %s1723_s13, 3 }
   0x6   : > { %p1487_p2 = scmp.eq.s32.totalorder %s1795_s17, 0  ;;  %s1725_s19 = smov [#allocation4]  }
   0x7   : > { %p1800_p3 = pnand %p1394_p0, %p270_p1  ;;  %s299_s20 = sshll.u32 %s1725_s19, 4  ;;  %s300_s20 = int_to_ptr.vmem [resolvable:$true] %s299_s20 }
   0x8   : > { %s324_s23 = sshll.u32 %s2179_s6, 4  ;;  %s285_s26 = sshll.u32 %s2175_s2, 4  ;;  %s325_s23 = int_to_ptr.hbm [resolvable:$true] %s324_s23  ;;  %s286_s26 = int_to_ptr.hbm [resolvable:$true] %s285_s26 }
   0x9   : > { %p1468_p4 = pneg %p1800_p3  ;;  %s1726_s28 = smov [#allocation7]  }
   0xa   : > { %s326_s29 = sshll.u32 %s1726_s28, 4  ;;  %s1727_s30 = smov [#allocation2]   ;;  %s327_s29 = int_to_ptr.vmem [resolvable:$true] %s326_s29 }
   0xb   : > { %p1814_p5 = pnand %p1487_p2, %p1468_p4  ;;  %s287_s11 = sshll.u32 %s1727_s30, 4  ;;  %s288_s11 = int_to_ptr.vmem [resolvable:$true] %s287_s11 }
   0xc   : > { %s312_s15 = sshll.u32 %s2178_s5, 4  ;;  %s339_s22 = sshll.u32 %s2181_s8, 4  ;;  %s313_s15 = int_to_ptr.hbm [resolvable:$true] %s312_s15  ;;  %s340_s22 = int_to_ptr.hbm [resolvable:$true] %s339_s22 }
   0xd   : > { %1474 = dma.hbm_to_vmem [thread:$0]  (!%p1814_p5), %s298_s16, 16, %s300_s20, [#allocation5]  }
   0xe   : > { %1480 = dma.hbm_to_vmem [thread:$0]  (!%p1814_p5), %s325_s23, 16, %s327_s29, [#allocation8]  }
   0xf   : > { %1471 = dma.hbm_to_vmem [thread:$0]  (!%p1814_p5), %s286_s26, 16, %s288_s11, [#allocation3]  }
  0x10   : > { %s1728_s24 = smov [#allocation6]   ;;  %s1729_s20 = smov [#allocation9]  }
  0x11   : > { %s314_s16 = sshll.u32 %s1728_s24, 4  ;;  %s341_s23 = sshll.u32 %s1729_s20, 4  ;;  %s315_s16 = int_to_ptr.vmem [resolvable:$true] %s314_s16  ;;  %s342_s23 = int_to_ptr.vmem [resolvable:$true] %s341_s23 }
  0x12   : > { %1477 = dma.hbm_to_vmem [thread:$0]  (!%p1814_p5), %s313_s15, 16, %s315_s16, [#allocation5]  }
  0x13   : > { %s351_s29 = sshll.u32 %s2182_s9, 4  ;;  %s1730_s26 = smov [#allocation10]   ;;  %s352_s29 = int_to_ptr.hbm [resolvable:$true] %s351_s29 }
  0x14   : > { %1483 = dma.hbm_to_vmem [thread:$0]  (!%p1814_p5), %s340_s22, 16, %s342_s23, [#allocation8]  }
  0x15   : > { %s353_s30 = sshll.u32 %s1730_s26, 4  ;;  %374 = sbr.rel (%p1800_p3) target bundleno = 529 (0x211), region = 60  ;;  %s354_s30 = int_to_ptr.vmem [resolvable:$true] %s353_s30 }
  0x16   : > { %1486 = dma.hbm_to_vmem [thread:$0]  (!%p1814_p5), %s352_s29, 16, %s354_s30, [#allocation11]  }
  0x1a   : > { %1706 = dma.done.wait (%p1487_p2), [#allocation3], 16  }
  0x1b   : > { %1708 = vsyncadd (%p1487_p2), [#allocation3], 4294967280 }
  0x1c   : > { %1710 = dma.done.wait (%p1487_p2), [#allocation5], 32  }
  0x1d   : > { %1712 = vsyncadd (%p1487_p2), [#allocation5], 4294967264 }
  0x1e   : > { %1714 = dma.done.wait (%p1487_p2), [#allocation8], 32  }
  0x1f   : > { %1716 = vsyncadd (%p1487_p2), [#allocation8], 4294967264 }
  0x20   : > { %1718 = dma.done.wait (%p1487_p2), [#allocation11], 16  }
  0x21   : > { %1720 = vsyncadd (%p1487_p2), [#allocation11], 4294967280  ;;  %p438_p6 = scmp.lt.s32.totalorder %s1795_s17, 1  ;;  %vm488_vm0 = vcmask 1043456   ;;  %v456_v0 = vld [vmem:[%s2174_s1] sm:$0xf] }
  0x22   : > { %v490_v1 = vsel %vm488_vm0, %v456_v0, 0  ;;  %vm475_vm1 = vcmask 64512   ;;  %v1876_v8 = vld [vmem:[#allocation2] ss:$0 sm:$0xff]  ;;  %v1878_v9 = vld [vmem:[#allocation4] ss:$0 sm:$0xff] }
  0x23   : > { %s2187_s17 = smov (!%p438_p6, %s1795_s17), 1  ;;  %499 = vmatpush.bf16.msra.mxu0 %v490_v1  ;;  %1441 = vmatpush.bf16.msra.mxu2 %v490_v1  ;;  %v1895_v55 = vld [vmem:[%s2177_s4] sm:$0xff]  ;;  %vm696_vm2 = vcmask 1040384   ;;  %vm772_vm3 = vcmask 1045504   ;;  %vm1180_vm4 = vcmask 130048   ;;  %vm1264_vm5 = vcmask 60416  }
  0x24   : > { %s1443_s18 = smul.u32 28, %s2187_s17  ;;  %v1899_v59 = vperm.slane %v1895_v55, 1  ;;  %vm1271_vm6 = vcmask 57344   ;;  %vm1272_vm7 = vsmask.f32 256 }
  0x25   : > { %vm1273_vm8 = vmand %vm1271_vm6, %vm1272_vm7 }
  0x26   : > { %s1867_s12 = scalar_lea.vmem %s2173_s0, %s1443_s18  ;;  %s2151_s28 = scalar_lea.vmem %s2183_s10, %s1443_s18 }
  0x27   : > { %v1437_v2 = vld [vmem:[%s1867_s12] sm:$0xff]  ;;  %v1439_v3 = vld [vmem:[%s1867_s12 + $0x10] sm:$0xff]  ;;  %v455_v4 = vld [vmem:[%s1867_s12 + $0x18] sm:$0x1] }
  0x28   : > { %1423 = vmatmul.msk.bf16.vlgmr.msra.gmra.mxu0 %vm475_vm1, %v1437_v2  ;;  %1425 = vmatmul.msk.bf16.vlgmr.msra.gmra.mxu2 %vm475_vm1, %v1439_v3  ;;  %v470_v5 = vunpack.c.l.b16 %v455_v4  ;;  %v1438_v6 = vld [vmem:[%s1867_s12 + $0x8] sm:$0xff]  ;;  %v1905_v2 = vperm.slane %v1895_v55, 0 }
  0x2a   : > { %v474_v7 = vpack.c.b16 %v470_v5, %v470_v5  ;;  %v722_v5 = vmul.f32 0.0, %v1899_v59 }
  0x38   : > { %1424 = vmatmul.msk.bf16.gmra.mxu0 %vm475_vm1, %v1438_v6  ;;  %1426 = vmatmul.msk.bf16.gmra.mxu2 %vm475_vm1, %v474_v7  ;;  %v1909_v6 = vperm.slane %v1895_v55, 2 }
  0xa5   : > { %v501_v10 = vpop.f32.mrf.mxu0 }
  0xa6   : > { %v524_v11 = vmul.f32 %v1876_v8, %v501_v10 }
  0xa8   : > { %v535_v12 = vadd.f32 %v1878_v9, %v524_v11  ;;  %v707_v11 = vmul.f32 0.0, %v1905_v2 }
  0xaa   : > { %v542_v13 = vadd.f32 3.0, %v535_v12 }
  0xab   : > { %v511_v30 = vpop.f32.mrf.mxu2 }
  0xac   : > { %v549_v14 = vmax.f32 %v542_v13, 0.0  ;;  %v528_v56 = vmul.f32 %v1876_v8, %v511_v30  ;;  %v758_v13 = vmul.f32 0.0, %v1909_v6 }
  0xad   : > { %v503_v15 = vpop.f32.mrf.mxu0 }
  0xae   : > { %v556_v16 = vmin.f32 %v549_v14, 6.0  ;;  %v525_v17 = vmul.f32 %v1876_v8, %v503_v15  ;;  %v539_v1 = vadd.f32 %v1878_v9, %v528_v56 }
  0xb0   : > { %v563_v18 = vmul.f32 %v556_v16, %v535_v12  ;;  %v536_v19 = vadd.f32 %v1878_v9, %v525_v17  ;;  %v546_v7 = vadd.f32 3.0, %v539_v1  ;;  %v736_v12 = vrot.slane %v722_v5, 1 }
  0xb1   : > { %v1914_v16 = vperm.slane %v1895_v55, 3 }
  0xb2   : > { %v570_v20 = vmul.f32 0.16666667, %v563_v18  ;;  %v543_v21 = vadd.f32 3.0, %v536_v19  ;;  %v553_v15 = vmax.f32 %v546_v7, 0.0 }
  0xb3   : > { %v513_v39 = vpop.f32.mrf.mxu2 }
  0xb4   : > { %v584_v22 = vrot.slane %v570_v20, 1  ;;  %v585_v23 = vrot.slane %v570_v20, 2  ;;  %v586_v24 = vrot.slane %v570_v20, 3  ;;  %627 = vst [vmem:[#allocation1 + $0x1] ss:$9 sm:$0xff] %v570_v20  ;;  %v587_v25 = vrot.slane %v570_v20, 4 }
  0xb5   : > { %v550_v26 = vmax.f32 %v543_v21, 0.0  ;;  %v506_v27 = vpop.f32.mrf.mxu0  ;;  %v588_v28 = vrot.slane %v570_v20, 5  ;;  %v589_v31 = vrot.slane %v570_v20, 6  ;;  %v590_v40 = vrot.slane %v570_v20, 7 }
  0xb6   : > { %629 = vst [vmem:[#allocation1 + $0x2] ss:$9 sm:$0xff] %v584_v22  ;;  %v526_v29 = vmul.f32 %v1876_v8, %v506_v27  ;;  %v529_v44 = vmul.f32 %v1876_v8, %v513_v39  ;;  %v1919_v20 = vrot.slane %v758_v13, 2  ;;  %v1922_v21 = vperm.slane %v1895_v55, 4 }
  0xb7   : > { %631 = vst [vmem:[#allocation1 + $0x3] ss:$9 sm:$0xff] %v585_v23  ;;  %v557_v32 = vmin.f32 %v550_v26, 6.0  ;;  %v1926_v23 = vperm.slane %v1895_v55, 5 }
  0xb8   : > { %633 = vst [vmem:[#allocation1 + $0x4] ss:$9 sm:$0xff] %v586_v24  ;;  %v537_v33 = vadd.f32 %v1878_v9, %v526_v29  ;;  %v1889_v50 = vadd.f32 %v1878_v9, %v529_v44 }
  0xb9   : > { %635 = vst [vmem:[#allocation1 + $0x5] ss:$9 sm:$0xff] %v587_v25  ;;  %v564_v34 = vmul.f32 %v557_v32, %v536_v19  ;;  %v750_v19 = vadd.f32 %v736_v12, %v707_v11 }
  0xba   : > { %637 = vst [vmem:[#allocation1 + $0x6] ss:$9 sm:$0xff] %v588_v28  ;;  %v544_v35 = vadd.f32 3.0, %v537_v33  ;;  %v560_v28 = vmin.f32 %v553_v15, 6.0 }
  0xbb   : > { %639 = vst [vmem:[#allocation1 + $0x7] ss:$9 sm:$0xff] %v589_v31  ;;  %v571_v36 = vmul.f32 0.16666667, %v564_v34  ;;  %v516_v14 = vpop.f32.mrf.mxu2  ;;  %v794_v30 = vadd.f32 %v1919_v20, %v750_v19 }
  0xbc   : > { %v551_v37 = vmax.f32 %v544_v35, 0.0  ;;  %v530_v17 = vmul.f32 %v1876_v8, %v516_v14  ;;  %v854_v35 = vmul.f32 0.0, %v1926_v23  ;;  %v567_v39 = vmul.f32 %v560_v28, %v539_v1 }
  0xbd   : > { %v508_v38 = vpop.f32.mrf.mxu0  ;;  %v591_v41 = vrot.slane %v571_v36, 1  ;;  %v592_v43 = vrot.slane %v571_v36, 2  ;;  %v593_v45 = vrot.slane %v571_v36, 3  ;;  %v594_v47 = vrot.slane %v571_v36, 4 }
  0xbe   : > { %v527_v46 = vmul.f32 %v1876_v8, %v508_v38  ;;  %v558_v48 = vmin.f32 %v551_v37, 6.0  ;;  %v595_v49 = vrot.slane %v571_v36, 5  ;;  %v596_v57 = vrot.slane %v571_v36, 6 }
  0xbf   : > { %v597_v60 = vrot.slane %v571_v36, 7  ;;  %v1929_v24 = vadd.f32 %v1878_v9, %v530_v17 }
  0xc0   : > { %v538_v51 = vadd.f32 %v1878_v9, %v527_v46  ;;  %v565_v52 = vmul.f32 %v558_v48, %v537_v33  ;;  %v1949_v46 = vperm.slane %v1895_v55, 6 }
  0xc2   : > { %v640_v42 = vld [vmem:[#allocation1] sm:$0xff]  ;;  %v545_v53 = vadd.f32 3.0, %v538_v51  ;;  %v572_v54 = vmul.f32 0.16666667, %v565_v52  ;;  %v547_v52 = vadd.f32 3.0, %v1889_v50 }
  0xc3   : > { %641 = vst [vmem:[#allocation1 + $0x1] ss:$9 sm:$0xff] %v590_v40  ;;  %v697_v22 = vsel %vm696_vm2, 0.0, %v640_v42  ;;  %v518_v33 = vpop.f32.mrf.mxu2 }
  0xc4   : > { %642 = vst [vmem:[#allocation1 + $0x2] ss:$9 sm:$0xff] %v571_v36  ;;  %v552_v58 = vmax.f32 %v545_v53, 0.0  ;;  %v598_v62 = vrot.slane %v572_v54, 1  ;;  %v599_v63 = vrot.slane %v572_v54, 2  ;;  %v600_v0 = vrot.slane %v572_v54, 3 }
  0xc5   : > { %643 = vst [vmem:[#allocation1 + $0x3] ss:$9 sm:$0xff] %v591_v41  ;;  %v601_v3 = vrot.slane %v572_v54, 4  ;;  %v602_v25 = vrot.slane %v572_v54, 5  ;;  %v603_v26 = vrot.slane %v572_v54, 6  ;;  %v604_v27 = vrot.slane %v572_v54, 7 }
  0xc6   : > { %644 = vst [vmem:[#allocation1 + $0x4] ss:$9 sm:$0xff] %v592_v43  ;;  %v559_v4 = vmin.f32 %v552_v58, 6.0  ;;  %v802_v31 = vmul.f32 %v1914_v16, %v697_v22  ;;  %v817_v32 = vmul.f32 %v1922_v21, %v697_v22  ;;  %v853_v34 = vmul.f32 %v1926_v23, %v697_v22 }
  0xc7   : > { %645 = vst [vmem:[#allocation1 + $0x5] ss:$9 sm:$0xff] %v593_v45  ;;  %v723_v36 = vmul.f32 %v1899_v59, %v697_v22  ;;  %v759_v38 = vmul.f32 %v1909_v6, %v697_v22  ;;  %v1944_v43 = vrot.slane %v854_v35, 2  ;;  %v554_v5 = vmax.f32 %v547_v52, 0.0 }
  0xc8   : > { %646 = vst [vmem:[#allocation1 + $0x6] ss:$9 sm:$0xff] %v594_v47  ;;  %v566_v10 = vmul.f32 %v559_v4, %v538_v51  ;;  %v809_v40 = vadd.f32 %v802_v31, %v794_v30  ;;  %v831_v41 = vrot.slane %v817_v32, 1  ;;  %v869_v42 = vrot.slane %v853_v34, 2 }
  0xc9   : > { %647 = vst [vmem:[#allocation1 + $0x7] ss:$9 sm:$0xff] %v595_v49  ;;  %v737_v44 = vrot.slane %v723_v36, 1  ;;  %v1952_v47 = vperm.slane %v1895_v55, 7  ;;  %v775_v48 = vrot.slane %v759_v38, 2  ;;  %v708_v51 = vmul.f32 %v1905_v2, %v697_v22 }
  0xca   : > { %v1917_v18 = vmul.f32 0.16666667, %v566_v10  ;;  %v1957_v49 = vld [vmem:[%s2177_s4 + $0x8] ss:$0 sm:$0xff]  ;;  %v845_v53 = vadd.f32 %v831_v41, %v809_v40 }
  0xcb   : > { %v751_v55 = vadd.f32 %v737_v44, %v708_v51 }
  0xcc   : > { %v605_v29 = vrot.slane %v1917_v18, 1  ;;  %v606_v9 = vrot.slane %v1917_v18, 2  ;;  %v607_v37 = vrot.slane %v1917_v18, 3  ;;  %v608_v4 = vrot.slane %v1917_v18, 4 }
  0xcd   : > { %v609_v11 = vrot.slane %v1917_v18, 5  ;;  %v610_v12 = vrot.slane %v1917_v18, 6  ;;  %v611_v13 = vrot.slane %v1917_v18, 7 }
  0xd0   : > { %v1901_v61 = vld [vmem:[#allocation1] sm:$0xff] }
  0xd1   : > { %649 = vst [vmem:[#allocation1 + $0x1] ss:$9 sm:$0xff] %v596_v57  ;;  %v698_v45 = vsel %vm696_vm2, 0.0, %v1901_v61  ;;  %v871_v57 = vsel %vm772_vm3, %v869_v42, %v1944_v43 }
  0xd2   : > { %650 = vst [vmem:[#allocation1 + $0x2] ss:$9 sm:$0xff] %v597_v60  ;;  %v724_v56 = vmul.f32 %v1899_v59, %v698_v45  ;;  %v760_v58 = vmul.f32 %v1909_v6, %v698_v45  ;;  %v899_v60 = vmul.f32 %v1949_v46, %v698_v45  ;;  %v914_v61 = vmul.f32 %v1952_v47, %v698_v45 }
  0xd3   : > { %651 = vst [vmem:[#allocation1 + $0x3] ss:$9 sm:$0xff] %v572_v54  ;;  %v1961_v54 = vmul.f32 0.16666667, %v567_v39  ;;  %v803_v1 = vmul.f32 %v1914_v16, %v698_v45  ;;  %v891_v7 = vadd.f32 %v871_v57, %v845_v53  ;;  %v855_v10 = vmul.f32 %v1926_v23, %v698_v45 }
  0xd4   : > { %652 = vst [vmem:[#allocation1 + $0x4] ss:$9 sm:$0xff] %v598_v62  ;;  %v776_v62 = vsel %vm772_vm3, %v775_v48, %v1919_v20  ;;  %v738_v17 = vrot.slane %v724_v56, 1  ;;  %v777_v19 = vrot.slane %v760_v58, 2  ;;  %v709_v31 = vmul.f32 %v1905_v2, %v698_v45 }
  0xd5   : > { %653 = vst [vmem:[#allocation1 + $0x5] ss:$9 sm:$0xff] %v599_v63  ;;  %v950_v63 = vmul.f32 %v1957_v49, %v698_v45  ;;  %v795_v15 = vadd.f32 %v776_v62, %v751_v55  ;;  %v906_v22 = vadd.f32 %v899_v60, %v891_v7  ;;  %v612_v32 = vrot.slane %v1961_v54, 1  ;;  %v2003_v55 = vld [vmem:[#allocation6] ss:$0 sm:$0xff] }
  0xd6   : > { %654 = vst [vmem:[#allocation1 + $0x6] ss:$9 sm:$0xff] %v600_v0  ;;  %v951_v0 = vmul.f32 0.0, %v1957_v49  ;;  %v613_v33 = vrot.slane %v1961_v54, 2  ;;  %v752_v34 = vadd.f32 %v738_v17, %v709_v31  ;;  %v778_v35 = vsel %vm772_vm3, %v777_v19, %v1919_v20  ;;  %v2015_v19 = vld [vmem:[#allocation7] ss:$0 sm:$0xff] }
  0xd7   : > { %655 = vst [vmem:[#allocation1 + $0x7] ss:$9 sm:$0xff] %v601_v3  ;;  %v818_v3 = vmul.f32 %v1922_v21, %v698_v45  ;;  %v810_v28 = vadd.f32 %v803_v1, %v795_v15  ;;  %v614_v53 = vrot.slane %v1961_v54, 3  ;;  %v616_v7 = vrot.slane %v1961_v54, 5 }
  0xd8   : > { %v796_v51 = vadd.f32 %v778_v35, %v752_v34 }
  0xde   : > { %v1931_v8 = vld [vmem:[#allocation1] sm:$0xff] }
  0xdf   : > { %657 = vst [vmem:[#allocation1 + $0x1] ss:$9 sm:$0xff] %v602_v25  ;;  %v928_v25 = vrot.slane %v914_v61, 1  ;;  %v699_v30 = vsel %vm696_vm2, 0.0, %v1931_v8 }
  0xe0   : > { %658 = vst [vmem:[#allocation1 + $0x2] ss:$9 sm:$0xff] %v603_v26  ;;  %v964_v26 = vrot.slane %v950_v63, 2  ;;  %v725_v36 = vmul.f32 %v1899_v59, %v699_v30  ;;  %v761_v39 = vmul.f32 %v1909_v6, %v699_v30  ;;  %v804_v40 = vmul.f32 %v1914_v16, %v699_v30 }
  0xe1   : > { %659 = vst [vmem:[#allocation1 + $0x3] ss:$9 sm:$0xff] %v604_v27  ;;  %v1980_v27 = vrot.slane %v951_v0, 2  ;;  %v819_v41 = vmul.f32 %v1922_v21, %v699_v30  ;;  %v856_v44 = vmul.f32 %v1926_v23, %v699_v30  ;;  %v900_v45 = vmul.f32 %v1949_v46, %v699_v30 }
  0xe2   : > { %660 = vst [vmem:[#allocation1 + $0x4] ss:$9 sm:$0xff] %v1917_v18  ;;  %v872_v18 = vrot.slane %v855_v10, 2  ;;  %v915_v48 = vmul.f32 %v1952_v47, %v699_v30  ;;  %v952_v52 = vmul.f32 %v1957_v49, %v699_v30  ;;  %v739_v56 = vrot.slane %v725_v36, 1 }
  0xe3   : > { %661 = vst [vmem:[#allocation1 + $0x5] ss:$9 sm:$0xff] %v605_v29  ;;  %v832_v29 = vrot.slane %v818_v3, 1  ;;  %v966_v8 = vsel %vm772_vm3, %v964_v26, %v1980_v27  ;;  %v779_v61 = vrot.slane %v761_v39, 2  ;;  %v811_v62 = vadd.f32 %v804_v40, %v796_v51 }
  0xe4   : > { %662 = vst [vmem:[#allocation1 + $0x6] ss:$9 sm:$0xff] %v606_v9  ;;  %v561_v9 = vmin.f32 %v554_v5, 6.0  ;;  %v873_v42 = vsel %vm772_vm3, %v872_v18, %v1944_v43  ;;  %v833_v63 = vrot.slane %v819_v41, 1  ;;  %v710_v0 = vmul.f32 %v1905_v2, %v699_v30 }
  0xe5   : > { %663 = vst [vmem:[#allocation1 + $0x7] ss:$9 sm:$0xff] %v607_v37  ;;  %v942_v37 = vadd.f32 %v928_v25, %v906_v22  ;;  %v846_v38 = vadd.f32 %v832_v29, %v810_v28  ;;  %v874_v1 = vrot.slane %v856_v44, 2  ;;  %v615_v5 = vrot.slane %v1961_v54, 4 }
  0xe6   : > { %v568_v60 = vmul.f32 %v561_v9, %v1889_v50  ;;  %v618_v50 = vrot.slane %v1961_v54, 7  ;;  %v753_v15 = vadd.f32 %v739_v56, %v710_v0  ;;  %v780_v25 = vsel %vm772_vm3, %v779_v61, %v1919_v20 }
  0xe7   : > { %v985_v57 = vadd.f32 %v966_v8, %v942_v37  ;;  %v892_v58 = vadd.f32 %v873_v42, %v846_v38  ;;  %v847_v26 = vadd.f32 %v833_v63, %v811_v62  ;;  %v875_v29 = vsel %vm772_vm3, %v874_v1, %v1944_v43 }
  0xe8   : > { %v2017_v22 = vmul.f32 0.16666667, %v568_v60  ;;  %v797_v9 = vadd.f32 %v780_v25, %v753_v15 }
  0xe9   : > { %v907_v3 = vadd.f32 %v900_v45, %v892_v58  ;;  %v996_v17 = vmul.f32 %v2003_v55, %v985_v57  ;;  %v893_v37 = vadd.f32 %v875_v29, %v847_v26 }
  0xea   : > { %v619_v36 = vrot.slane %v2017_v22, 1  ;;  %v620_v0 = vrot.slane %v2017_v22, 2 }
  0xeb   : > { %v1007_v35 = vadd.f32 %v2015_v19, %v996_v17  ;;  %v623_v17 = vrot.slane %v2017_v22, 5 }
  0xec   : > { %v664_v14 = vld [vmem:[#allocation1] sm:$0xff] }
  0xed   : > { %665 = vst [vmem:[#allocation1 + $0x1] ss:$9 sm:$0xff] %v608_v4  ;;  %v929_v4 = vrot.slane %v915_v48, 1  ;;  %v2010_v10 = vsel %vm696_vm2, 0.0, %v664_v14  ;;  %v548_v14 = vadd.f32 3.0, %v1929_v24  ;;  %v1014_v48 = vadd.f32 3.0, %v1007_v35 }
  0xee   : > { %666 = vst [vmem:[#allocation1 + $0x2] ss:$9 sm:$0xff] %v609_v11  ;;  %v967_v11 = vrot.slane %v952_v52, 2  ;;  %v805_v28 = vmul.f32 %v1914_v16, %v2010_v10  ;;  %v857_v31 = vmul.f32 %v1926_v23, %v2010_v10  ;;  %v901_v18 = vmul.f32 %v1949_v46, %v2010_v10 }
  0xef   : > { %667 = vst [vmem:[#allocation1 + $0x3] ss:$9 sm:$0xff] %v610_v12  ;;  %v617_v12 = vrot.slane %v1961_v54, 6  ;;  %v943_v30 = vadd.f32 %v929_v4, %v907_v3  ;;  %v953_v34 = vmul.f32 %v1957_v49, %v2010_v10  ;;  %v555_v44 = vmax.f32 %v548_v14, 0.0 }
  0xf0   : > { %668 = vst [vmem:[#allocation1 + $0x4] ss:$9 sm:$0xff] %v611_v13  ;;  %v812_v8 = vadd.f32 %v805_v28, %v797_v9  ;;  %v876_v40 = vrot.slane %v857_v31, 2  ;;  %v908_v41 = vadd.f32 %v901_v18, %v893_v37  ;;  %v1021_v63 = vmax.f32 %v1014_v48, 0.0 }
  0xf1   : > { %669 = vst [vmem:[#allocation1 + $0x5] ss:$9 sm:$0xff] %v1961_v54  ;;  %v820_v54 = vmul.f32 %v1922_v21, %v2010_v10  ;;  %v969_v45 = vrot.slane %v953_v34, 2  ;;  %v562_v58 = vmin.f32 %v555_v44, 6.0  ;;  %v726_v3 = vmul.f32 %v1899_v59, %v2010_v10 }
  0xf2   : > { %670 = vst [vmem:[#allocation1 + $0x6] ss:$9 sm:$0xff] %v612_v32  ;;  %v916_v32 = vmul.f32 %v1952_v47, %v2010_v10  ;;  %v877_v56 = vsel %vm772_vm3, %v876_v40, %v1944_v43  ;;  %v621_v4 = vrot.slane %v2017_v22, 3  ;;  %v1028_v14 = vmin.f32 %v1021_v63, 6.0 }
  0xf3   : > { %671 = vst [vmem:[#allocation1 + $0x7] ss:$9 sm:$0xff] %v613_v33  ;;  %v968_v33 = vsel %vm772_vm3, %v967_v11, %v1980_v27  ;;  %v834_v38 = vrot.slane %v820_v54, 1  ;;  %v970_v62 = vsel %vm772_vm3, %v969_v45, %v1980_v27  ;;  %v569_v15 = vmul.f32 %v562_v58, %v1929_v24 }
  0xf4   : > { %v986_v39 = vadd.f32 %v968_v33, %v943_v30  ;;  %v930_v42 = vrot.slane %v916_v32, 1  ;;  %v624_v28 = vrot.slane %v2017_v22, 6  ;;  %v740_v29 = vrot.slane %v726_v3, 1 }
  0xf5   : > { %v848_v52 = vadd.f32 %v834_v38, %v812_v8  ;;  %v625_v30 = vrot.slane %v2017_v22, 7  ;;  %v576_v24 = vmul.f32 0.16666667, %v569_v15  ;;  %v711_v33 = vmul.f32 %v1905_v2, %v2010_v10 }
  0xf6   : > { %v944_v57 = vadd.f32 %v930_v42, %v908_v41  ;;  %v1035_v34 = vmul.f32 %v1028_v14, %v1007_v35 }
  0xf7   : > { %v894_v11 = vadd.f32 %v877_v56, %v848_v52  ;;  %v754_v37 = vadd.f32 %v740_v29, %v711_v33 }
  0xf8   : > { %v1042_v41 = vmul.f32 0.16666667, %v1035_v34 }
  0xfa   : > { %v672_v13 = vld [vmem:[#allocation1] sm:$0xff] }
  0xfb   : > { %673 = vst [vmem:[#allocation1 + $0x1] ss:$9 sm:$0xff] %v614_v53  ;;  %v2042_v51 = vsel %vm696_vm2, 0.0, %v672_v13  ;;  %v997_v53 = vmul.f32 %v2003_v55, %v986_v39  ;;  %v987_v13 = vadd.f32 %v970_v62, %v944_v57  ;;  %v1056_v57 = vrot.slane %v1042_v41, 1 }
  0xfc   : > { %674 = vst [vmem:[#allocation1 + $0x2] ss:$9 sm:$0xff] %v615_v5  ;;  %v902_v60 = vmul.f32 %v1949_v46, %v2042_v51  ;;  %v917_v61 = vmul.f32 %v1952_v47, %v2042_v51  ;;  %v954_v1 = vmul.f32 %v1957_v49, %v2042_v51  ;;  %v806_v39 = vmul.f32 %v1914_v16, %v2042_v51 }
  0xfd   : > { %675 = vst [vmem:[#allocation1 + $0x3] ss:$9 sm:$0xff] %v616_v7  ;;  %v762_v7 = vmul.f32 %v1909_v6, %v2010_v10  ;;  %v998_v32 = vmul.f32 %v2003_v55, %v987_v13  ;;  %v821_v10 = vmul.f32 %v1922_v21, %v2042_v51  ;;  %v858_v35 = vmul.f32 %v1926_v23, %v2042_v51 }
  0xfe   : > { %676 = vst [vmem:[#allocation1 + $0x4] ss:$9 sm:$0xff] %v617_v12  ;;  %v1008_v12 = vadd.f32 %v2015_v19, %v997_v53  ;;  %v909_v25 = vadd.f32 %v902_v60, %v894_v11  ;;  %v931_v26 = vrot.slane %v917_v61, 1  ;;  %v971_v54 = vrot.slane %v954_v1, 2  ;;  %v1440_v11 = vld [vmem:[%s2180_s7] sm:$0xff] }
  0xff   : > { %677 = vst [vmem:[#allocation1 + $0x5] ss:$9 sm:$0xff] %v618_v50  ;;  %v622_v50 = vrot.slane %v2017_v22, 4  ;;  %v781_v31 = vrot.slane %v762_v7, 2  ;;  %v1009_v38 = vadd.f32 %v2015_v19, %v998_v32  ;;  %v835_v52 = vrot.slane %v821_v10, 1  ;;  %1200 = vmatpush.bf16.msra.mxu1 %v1440_v11  ;;  %1442 = vmatpush.bf16.msra.mxu3 %v1440_v11 }
 0x100   : > { %678 = vst [vmem:[#allocation1 + $0x6] ss:$9 sm:$0xff] %v2017_v22  ;;  %v1015_v18 = vadd.f32 3.0, %v1008_v12  ;;  %v945_v9 = vadd.f32 %v931_v26, %v909_v25  ;;  %v727_v53 = vmul.f32 %v1899_v59, %v2042_v51  ;;  %v878_v60 = vrot.slane %v858_v35, 2 }
 0x101   : > { %679 = vst [vmem:[#allocation1 + $0x7] ss:$9 sm:$0xff] %v619_v36  ;;  %v972_v36 = vsel %vm772_vm3, %v971_v54, %v1980_v27  ;;  %v782_v22 = vsel %vm772_vm3, %v781_v31, %v1919_v20  ;;  %v1016_v45 = vadd.f32 3.0, %v1009_v38  ;;  %v763_v61 = vmul.f32 %v1909_v6, %v2042_v51 }
 0x102   : > { %v1022_v8 = vmax.f32 %v1015_v18, 0.0  ;;  %v988_v40 = vadd.f32 %v972_v36, %v945_v9  ;;  %v798_v42 = vadd.f32 %v782_v22, %v754_v37  ;;  %v1057_v62 = vrot.slane %v1042_v41, 2 }
 0x103   : > { %v1059_v1 = vrot.slane %v1042_v41, 4  ;;  %v1060_v7 = vrot.slane %v1042_v41, 5  ;;  %v741_v13 = vrot.slane %v727_v53, 1  ;;  %v783_v25 = vrot.slane %v763_v61, 2 }
 0x104   : > { %v1029_v44 = vmin.f32 %v1022_v8, 6.0  ;;  %v813_v48 = vadd.f32 %v806_v39, %v798_v42  ;;  %v999_v56 = vmul.f32 %v2003_v55, %v988_v40  ;;  %v712_v14 = vmul.f32 %v1905_v2, %v2042_v51 }
 0x105   : > { %v784_v32 = vsel %vm772_vm3, %v783_v25, %v1919_v20 }
 0x106   : > { %v1036_v3 = vmul.f32 %v1029_v44, %v1008_v12  ;;  %v1010_v15 = vadd.f32 %v2015_v19, %v999_v56  ;;  %v755_v31 = vadd.f32 %v741_v13, %v712_v14 }
 0x108   : > { %v680_v5 = vld [vmem:[#allocation1] sm:$0xff]  ;;  %v1017_v18 = vadd.f32 3.0, %v1010_v15  ;;  %v799_v22 = vadd.f32 %v784_v32, %v755_v31 }
 0x109   : > { %681 = vst [vmem:[#allocation1 + $0x1] ss:$9 sm:$0xff] %v620_v0  ;;  %v702_v63 = vsel %vm696_vm2, 0.0, %v680_v5  ;;  %v1058_v0 = vrot.slane %v1042_v41, 3  ;;  %v879_v5 = vsel %vm772_vm3, %v878_v60, %v1944_v43 }
 0x10a   : > { %682 = vst [vmem:[#allocation1 + $0x2] ss:$9 sm:$0xff] %v621_v4  ;;  %v1023_v4 = vmax.f32 %v1016_v45, 0.0  ;;  %v903_v12 = vmul.f32 %v1949_v46, %v702_v63  ;;  %v918_v26 = vmul.f32 %v1952_v47, %v702_v63  ;;  %v955_v54 = vmul.f32 %v1957_v49, %v702_v63 }
 0x10b   : > { %683 = vst [vmem:[#allocation1 + $0x3] ss:$9 sm:$0xff] %v622_v50  ;;  %v849_v50 = vadd.f32 %v835_v52, %v813_v48  ;;  %v807_v9 = vmul.f32 %v1914_v16, %v702_v63  ;;  %v822_v34 = vmul.f32 %v1922_v21, %v702_v63  ;;  %v859_v36 = vmul.f32 %v1926_v23, %v702_v63 }
 0x10c   : > { %684 = vst [vmem:[#allocation1 + $0x4] ss:$9 sm:$0xff] %v623_v17  ;;  %v1061_v17 = vrot.slane %v1042_v41, 6  ;;  %v1030_v29 = vmin.f32 %v1023_v4, 6.0  ;;  %v932_v33 = vrot.slane %v918_v26, 1  ;;  %v973_v51 = vrot.slane %v955_v54, 2 }
 0x10d   : > { %685 = vst [vmem:[#allocation1 + $0x5] ss:$9 sm:$0xff] %v624_v28  ;;  %v1043_v28 = vmul.f32 0.16666667, %v1036_v3  ;;  %v728_v8 = vmul.f32 %v1899_v59, %v702_v63  ;;  %v1024_v39 = vmax.f32 %v1017_v18, 0.0  ;;  %v764_v10 = vmul.f32 %v1909_v6, %v702_v63 }
 0x10e   : > { %686 = vst [vmem:[#allocation1 + $0x6] ss:$9 sm:$0xff] %v625_v30  ;;  %v895_v30 = vadd.f32 %v879_v5, %v849_v50  ;;  %v1037_v37 = vmul.f32 %v1030_v29, %v1009_v38  ;;  %v836_v35 = vrot.slane %v822_v34, 1  ;;  %v974_v44 = vsel %vm772_vm3, %v973_v51, %v1980_v27 }
 0x10f   : > { %687 = vst [vmem:[#allocation1 + $0x7] ss:$9 sm:$0xff] %v576_v24  ;;  %v1062_v42 = vrot.slane %v1043_v28, 1  ;;  %v880_v45 = vrot.slane %v859_v36, 2  ;;  %v1063_v52 = vrot.slane %v1043_v28, 2  ;;  %v742_v56 = vrot.slane %v728_v8, 1 }
 0x110   : > { %v910_v24 = vadd.f32 %v903_v12, %v895_v30  ;;  %v2107_v48 = vmul.f32 0.16666667, %v1037_v37  ;;  %v1031_v38 = vmin.f32 %v1024_v39, 6.0  ;;  %v785_v60 = vrot.slane %v764_v10, 2 }
 0x111   : > { %v1065_v6 = vrot.slane %v1043_v28, 4  ;;  %v881_v3 = vsel %vm772_vm3, %v880_v45, %v1944_v43  ;;  %v1067_v4 = vrot.slane %v1043_v28, 6  ;;  %v905_v10 = vmul.f32 0.0, %v1949_v46 }
 0x112   : > { %v946_v40 = vadd.f32 %v932_v33, %v910_v24  ;;  %v1068_v13 = vrot.slane %v2107_v48, 1  ;;  %v1070_v34 = vrot.slane %v2107_v48, 3  ;;  %v1071_v37 = vrot.slane %v2107_v48, 4 }
 0x113   : > { %v1072_v8 = vrot.slane %v2107_v48, 5 }
 0x114   : > { %v989_v61 = vadd.f32 %v974_v44, %v946_v40  ;;  %v920_v40 = vmul.f32 0.0, %v1952_v47 }
 0x116   : > { %v688_v58 = vld [vmem:[#allocation1] sm:$0xff]  ;;  %v934_v45 = vrot.slane %v920_v40, 1 }
 0x117   : > { %1098 = vst [vmem:[#allocation1] ss:$9 sm:$0xff] %v1042_v41  ;;  %v814_v41 = vadd.f32 %v807_v9, %v799_v22  ;;  %v703_v59 = vsel %vm696_vm2, 0.0, %v688_v58  ;;  %v1038_v58 = vmul.f32 %v1031_v38, %v1010_v15 }
 0x118   : > { %1100 = vst [vmem:[#allocation1 + $0x1] ss:$9 sm:$0xff] %v1056_v57  ;;  %v1064_v57 = vrot.slane %v1043_v28, 3  ;;  %v904_v11 = vmul.f32 %v1949_v46, %v703_v59  ;;  %v919_v50 = vmul.f32 %v1952_v47, %v703_v59  ;;  %v808_v5 = vmul.f32 %v1914_v16, %v703_v59 }
 0x119   : > { %1102 = vst [vmem:[#allocation1 + $0x2] ss:$9 sm:$0xff] %v1057_v62  ;;  %v713_v62 = vmul.f32 %v1905_v2, %v702_v63  ;;  %v786_v2 = vsel %vm772_vm3, %v785_v60, %v1919_v20  ;;  %v956_v63 = vmul.f32 %v1957_v49, %v703_v59  ;;  %v823_v25 = vmul.f32 %v1922_v21, %v703_v59 }
 0x11a   : > { %1104 = vst [vmem:[#allocation1 + $0x3] ss:$9 sm:$0xff] %v1058_v0  ;;  %v850_v0 = vadd.f32 %v836_v35, %v814_v41  ;;  %v860_v15 = vmul.f32 %v1926_v23, %v703_v59  ;;  %v1045_v20 = vmul.f32 0.16666667, %v1038_v58  ;;  %v1069_v23 = vrot.slane %v2107_v48, 2 }
 0x11b   : > { %1106 = vst [vmem:[#allocation1 + $0x4] ss:$9 sm:$0xff] %v1059_v1  ;;  %v1066_v1 = vrot.slane %v1043_v28, 5  ;;  %v975_v54 = vrot.slane %v956_v63, 2  ;;  %v837_v30 = vrot.slane %v823_v25, 1 }
 0x11c   : > { %1108 = vst [vmem:[#allocation1 + $0x5] ss:$9 sm:$0xff] %v1060_v7  ;;  %v756_v7 = vadd.f32 %v742_v56, %v713_v62  ;;  %v896_v12 = vadd.f32 %v881_v3, %v850_v0  ;;  %v882_v31 = vrot.slane %v860_v15, 2  ;;  %v1075_v21 = vrot.slane %v1045_v20, 2 }
 0x11d   : > { %1110 = vst [vmem:[#allocation1 + $0x6] ss:$9 sm:$0xff] %v1061_v17  ;;  %v1000_v17 = vmul.f32 %v2003_v55, %v989_v61  ;;  %v976_v16 = vsel %vm772_vm3, %v975_v54, %v1980_v27  ;;  %v1074_v35 = vrot.slane %v1045_v20, 1  ;;  %v1076_v38 = vrot.slane %v1045_v20, 3 }
 0x11e   : > { %1112 = vst [vmem:[#allocation1 + $0x7] ss:$9 sm:$0xff] %v1043_v28  ;;  %v800_v26 = vadd.f32 %v786_v2, %v756_v7  ;;  %v911_v14 = vadd.f32 %v904_v11, %v896_v12  ;;  %v933_v28 = vrot.slane %v919_v50, 1  ;;  %v883_v9 = vsel %vm772_vm3, %v882_v31, %v1944_v43 }
 0x11f   : > { %v1011_v49 = vadd.f32 %v2015_v19, %v1000_v17  ;;  %v1073_v43 = vrot.slane %v2107_v48, 6  ;;  %v1078_v60 = vrot.slane %v1045_v20, 5 }
 0x120   : > { %v815_v29 = vadd.f32 %v808_v5, %v800_v26  ;;  %v947_v18 = vadd.f32 %v933_v28, %v911_v14 }
 0x121   : > { %v1018_v32 = vadd.f32 3.0, %v1011_v49 }
 0x122   : > { %v851_v24 = vadd.f32 %v837_v30, %v815_v29  ;;  %v990_v36 = vadd.f32 %v976_v16, %v947_v18 }
 0x123   : > { %v1025_v22 = vmax.f32 %v1018_v32, 0.0 }
 0x124   : > { %v897_v39 = vadd.f32 %v883_v9, %v851_v24  ;;  %v1001_v41 = vmul.f32 %v2003_v55, %v990_v36  ;;  %v449_v9 = vld [vmem:[%s1867_s12] sm:$0xff]  }
 0x125   : > { %v1113_v53 = vld [vmem:[#allocation1] sm:$0xff] }
 0x126   : > { %1114 = vst [vmem:[#allocation1] ss:$9 sm:$0xff] %v1062_v42  ;;  %v1032_v42 = vmin.f32 %v1025_v22, 6.0  ;;  %v912_v44 = vadd.f32 %v905_v10, %v897_v39 }
 0x127   : > { %1115 = vst [vmem:[#allocation1 + $0x1] ss:$9 sm:$0xff] %v1063_v52  ;;  %v1012_v52 = vadd.f32 %v2015_v19, %v1001_v41 }
 0x128   : > { %1116 = vst [vmem:[#allocation1 + $0x2] ss:$9 sm:$0xff] %v1064_v57  ;;  %v948_v56 = vadd.f32 %v934_v45, %v912_v44  ;;  %v1077_v57 = vrot.slane %v1045_v20, 4  ;;  %v451_v44 = vld [vmem:[%s1867_s12 + $0x8] sm:$0xff]  }
 0x129   : > { %1117 = vst [vmem:[#allocation1 + $0x3] ss:$9 sm:$0xff] %v1065_v6  ;;  %v1019_v46 = vadd.f32 3.0, %v1012_v52  ;;  %v1079_v6 = vrot.slane %v1045_v20, 6 }
 0x12a   : > { %1118 = vst [vmem:[#allocation1 + $0x4] ss:$9 sm:$0xff] %v1066_v1  ;;  %v991_v59 = vadd.f32 %v1980_v27, %v948_v56 }
 0x12b   : > { %1119 = vst [vmem:[#allocation1 + $0x5] ss:$9 sm:$0xff] %v1067_v4  ;;  %v1026_v61 = vmax.f32 %v1019_v46, 0.0 }
 0x12c   : > { %1120 = vst [vmem:[#allocation1 + $0x6] ss:$9 sm:$0xff] %v2107_v48  ;;  %v1002_v0 = vmul.f32 %v2003_v55, %v991_v59 }
 0x12d   : > { %1121 = vst [vmem:[#allocation1 + $0x7] ss:$9 sm:$0xff] %v1068_v13  ;;  %v1033_v4 = vmin.f32 %v1026_v61, 6.0  ;;  %v453_v61 = vld [vmem:[%s1867_s12 + $0x10] sm:$0xff]  }
 0x12e   : > { %v1013_v7 = vadd.f32 %v2015_v19, %v1002_v0 }
 0x12f   : > { %v1040_v27 = vmul.f32 %v1033_v4, %v1012_v52 }
 0x130   : > { %v1020_v11 = vadd.f32 3.0, %v1013_v7 }
 0x131   : > { %v1047_v50 = vmul.f32 0.16666667, %v1040_v27 }
 0x132   : > { %v1027_v17 = vmax.f32 %v1020_v11, 0.0 }
 0x133   : > { %v1086_v55 = vrot.slane %v1047_v50, 1  ;;  %v1087_v25 = vrot.slane %v1047_v50, 2  ;;  %v1088_v15 = vrot.slane %v1047_v50, 3  ;;  %v1089_v19 = vrot.slane %v1047_v50, 4 }
 0x134   : > { %v1122_v33 = vld [vmem:[#allocation1] sm:$0xff]  ;;  %v1034_v12 = vmin.f32 %v1027_v17, 6.0  ;;  %v1090_v28 = vrot.slane %v1047_v50, 5  ;;  %v1091_v54 = vrot.slane %v1047_v50, 6 }
 0x135   : > { %1130 = vst [vmem:[#allocation1 + $0x7] ss:$9 sm:$0xff] %v1075_v21  ;;  %v1168_v51 = vpack.c.bf16 %v1122_v33, %v1113_v53  ;;  %v1039_v53 = vmul.f32 %v1032_v42, %v1011_v49  ;;  %v1518_v33 = vld [vmem:[#allocation9] ss:$0 sm:$0xff] }
 0x136   : > { %1123 = vst [vmem:[#allocation1] ss:$9 sm:$0xff] %v1069_v23  ;;  %v1041_v26 = vmul.f32 %v1034_v12, %v1013_v7 }
 0x137   : > { %1124 = vst [vmem:[#allocation1 + $0x1] ss:$9 sm:$0xff] %v1070_v34  ;;  %1431 = vmatmul.msk.bf16.vlgmr.msra.gmra.mxu1 %vm1180_vm4, %v1168_v51  ;;  %v1046_v47 = vmul.f32 0.16666667, %v1039_v53  ;;  %v1519_v34 = vld [vmem:[#allocation10] ss:$0 sm:$0xff]  ;;  %v1245_v53 = vunpack.c.l.bf16 %v451_v44 }
 0x138   : > { %1125 = vst [vmem:[#allocation1 + $0x2] ss:$9 sm:$0xff] %v1071_v37  ;;  %v1048_v14 = vmul.f32 0.16666667, %v1041_v26  ;;  %v1243_v37 = vunpack.c.l.bf16 %v449_v9 }
 0x139   : > { %1126 = vst [vmem:[#allocation1 + $0x3] ss:$9 sm:$0xff] %v1072_v8  ;;  %v1080_v62 = vrot.slane %v1046_v47, 1  ;;  %v1081_v1 = vrot.slane %v1046_v47, 2  ;;  %v1082_v3 = vrot.slane %v1046_v47, 3  ;;  %v1083_v58 = vrot.slane %v1046_v47, 4 }
 0x13a   : > { %1127 = vst [vmem:[#allocation1 + $0x4] ss:$9 sm:$0xff] %v1073_v43  ;;  %v1084_v2 = vrot.slane %v1046_v47, 5  ;;  %v1085_v5 = vrot.slane %v1046_v47, 6  ;;  %v1092_v49 = vrot.slane %v1048_v14, 1  ;;  %v1093_v29 = vrot.slane %v1048_v14, 2 }
 0x13b   : > { %1128 = vst [vmem:[#allocation1 + $0x5] ss:$9 sm:$0xff] %v1045_v20  ;;  %v1094_v30 = vrot.slane %v1048_v14, 3  ;;  %v1095_v31 = vrot.slane %v1048_v14, 4  ;;  %v1096_v18 = vrot.slane %v1048_v14, 5  ;;  %v1097_v16 = vrot.slane %v1048_v14, 6 }
 0x13c   : > { %1129 = vst [vmem:[#allocation1 + $0x6] ss:$9 sm:$0xff] %v1074_v35  ;;  %v1244_v43 = vunpack.c.h.bf16 %v449_v9 }
 0x143   : > { %v1131_v48 = vld [vmem:[#allocation1] sm:$0xff] }
 0x144   : > { %1132 = vst [vmem:[#allocation1] ss:$9 sm:$0xff] %v1076_v38 }
 0x145   : > { %1133 = vst [vmem:[#allocation1 + $0x1] ss:$9 sm:$0xff] %v1077_v57 }
 0x146   : > { %1134 = vst [vmem:[#allocation1 + $0x2] ss:$9 sm:$0xff] %v1078_v60 }
 0x147   : > { %1135 = vst [vmem:[#allocation1 + $0x3] ss:$9 sm:$0xff] %v1079_v6 }
 0x148   : > { %1136 = vst [vmem:[#allocation1 + $0x4] ss:$9 sm:$0xff] %v1046_v47 }
 0x149   : > { %1137 = vst [vmem:[#allocation1 + $0x5] ss:$9 sm:$0xff] %v1080_v62 }
 0x14a   : > { %1138 = vst [vmem:[#allocation1 + $0x6] ss:$9 sm:$0xff] %v1081_v1  ;;  %v1247_v1 = vunpack.c.l.bf16 %v453_v61 }
 0x14b   : > { %1139 = vst [vmem:[#allocation1 + $0x7] ss:$9 sm:$0xff] %v1082_v3 }
 0x152   : > { %v1140_v13 = vld [vmem:[#allocation1] sm:$0xff] }
 0x153   : > { %v1169_v63 = vpack.c.bf16 %v1140_v13, %v1131_v48  ;;  %1141 = vst [vmem:[#allocation1] ss:$9 sm:$0xff] %v1083_v58  ;;  %v1246_v48 = vunpack.c.h.bf16 %v451_v44 }
 0x154   : > { %1142 = vst [vmem:[#allocation1 + $0x1] ss:$9 sm:$0xff] %v1084_v2 }
 0x155   : > { %1432 = vmatmul.msk.bf16.gmra.mxu1 %vm1180_vm4, %v1169_v63  ;;  %1143 = vst [vmem:[#allocation1 + $0x2] ss:$9 sm:$0xff] %v1085_v5  ;;  %v1520_v5 = vld [vmem:[%s1867_s12 + $0x18] sm:$0x1] }
 0x156   : > { %1144 = vst [vmem:[#allocation1 + $0x3] ss:$9 sm:$0xff] %v1047_v50  ;;  %v1248_v50 = vunpack.c.h.bf16 %v453_v61 }
 0x157   : > { %1145 = vst [vmem:[#allocation1 + $0x4] ss:$9 sm:$0xff] %v1086_v55  ;;  %v1249_v55 = vunpack.c.l.bf16 %v1520_v5 }
 0x158   : > { %1146 = vst [vmem:[#allocation1 + $0x5] ss:$9 sm:$0xff] %v1087_v25 }
 0x159   : > { %1147 = vst [vmem:[#allocation1 + $0x6] ss:$9 sm:$0xff] %v1088_v15  ;;  %v1274_v15 = vld [vmem:[%s2151_s28 + $0x18] sm:$0x1] }
 0x15a   : > { %1148 = vst [vmem:[#allocation1 + $0x7] ss:$9 sm:$0xff] %v1089_v19 }
 0x161   : > { %v1149_v20 = vld [vmem:[#allocation1] sm:$0xff] }
 0x162   : > { %1150 = vst [vmem:[#allocation1] ss:$9 sm:$0xff] %v1090_v28 }
 0x163   : > { %1151 = vst [vmem:[#allocation1 + $0x1] ss:$9 sm:$0xff] %v1091_v54 }
 0x164   : > { %1152 = vst [vmem:[#allocation1 + $0x2] ss:$9 sm:$0xff] %v1048_v14 }
 0x165   : > { %1153 = vst [vmem:[#allocation1 + $0x3] ss:$9 sm:$0xff] %v1092_v49 }
 0x166   : > { %1154 = vst [vmem:[#allocation1 + $0x4] ss:$9 sm:$0xff] %v1093_v29 }
 0x167   : > { %1155 = vst [vmem:[#allocation1 + $0x5] ss:$9 sm:$0xff] %v1094_v30 }
 0x168   : > { %1156 = vst [vmem:[#allocation1 + $0x6] ss:$9 sm:$0xff] %v1095_v31 }
 0x169   : > { %1157 = vst [vmem:[#allocation1 + $0x7] ss:$9 sm:$0xff] %v1096_v18 }
 0x170   : > { %v1158_v21 = vld [vmem:[#allocation1] sm:$0xff] }
 0x171   : > { %v1170_v32 = vpack.c.bf16 %v1158_v21, %v1149_v20  ;;  %1159 = vst [vmem:[#allocation1] ss:$9 sm:$0xff] %v1097_v16 }
 0x173   : > { %1433 = vmatmul.msk.bf16.vlgmr.msra.gmra.mxu3 %vm1180_vm4, %v1170_v32 }
 0x178   : > { %v1160_v24 = vld [vmem:[#allocation1] sm:$0xff] }
 0x179   : > { %v1171_v23 = vpack.c.bf16 %v1160_v24, %v1160_v24 }
 0x183   : > { %1434 = vmatmul.msk.bf16.gmra.mxu3 %vm1180_vm4, %v1171_v23 }
 0x1b4   : > { %v1202_v51 = vpop.f32.mrf.mxu1 }
 0x1b5   : > { %v1225_v36 = vmul.f32 %v1518_v33, %v1202_v51 }
 0x1b7   : > { %v1236_v8 = vadd.f32 %v1519_v34, %v1225_v36 }
 0x1b9   : > { %v1250_v22 = vadd.f32 %v1243_v37, %v1236_v8 }
 0x1bb   : > { %v1257_v39 = vpack.c.bf16 %v1250_v22, %v1250_v22 }
 0x1bc   : > { %v1204_v10 = vpop.f32.mrf.mxu1 }
 0x1bd   : > { %1265 = vst.msk [vmem:[%s2151_s28] sm:$0xf] %vm1264_vm5, %v1257_v39  ;;  %v1226_v40 = vmul.f32 %v1518_v33, %v1204_v10 }
 0x1bf   : > { %v1237_v41 = vadd.f32 %v1519_v34, %v1226_v40 }
 0x1c1   : > { %v1251_v35 = vadd.f32 %v1244_v43, %v1237_v41 }
 0x1c3   : > { %v1258_v42 = vpack.c.bf16 %v1251_v35, %v1251_v35 }
 0x1c5   : > { %1266 = vst.msk [vmem:[%s2151_s28 + $0x4] sm:$0xf] %vm1264_vm5, %v1258_v42 }
 0x1d2   : > { %v1207_v45 = vpop.f32.mrf.mxu1 }
 0x1d3   : > { %v1227_v52 = vmul.f32 %v1518_v33, %v1207_v45 }
 0x1d5   : > { %v1238_v56 = vadd.f32 %v1519_v34, %v1227_v52 }
 0x1d7   : > { %v1252_v46 = vadd.f32 %v1245_v53, %v1238_v56 }
 0x1d9   : > { %v1259_v38 = vpack.c.bf16 %v1252_v46, %v1252_v46 }
 0x1da   : > { %v1209_v47 = vpop.f32.mrf.mxu1 }
 0x1db   : > { %1267 = vst.msk [vmem:[%s2151_s28 + $0x8] sm:$0xf] %vm1264_vm5, %v1259_v38  ;;  %v1228_v57 = vmul.f32 %v1518_v33, %v1209_v47 }
 0x1dd   : > { %v1239_v59 = vadd.f32 %v1519_v34, %v1228_v57 }
 0x1df   : > { %v1253_v60 = vadd.f32 %v1246_v48, %v1239_v59 }
 0x1e1   : > { %v1260_v6 = vpack.c.bf16 %v1253_v60, %v1253_v60 }
 0x1e3   : > { %1268 = vst.msk [vmem:[%s2151_s28 + $0xc] sm:$0xf] %vm1264_vm5, %v1260_v6 }
 0x1f6   : > { %v1212_v62 = vpop.f32.mrf.mxu3 }
 0x1f7   : > { %v1229_v0 = vmul.f32 %v1518_v33, %v1212_v62 }
 0x1f9   : > { %v1240_v3 = vadd.f32 %v1519_v34, %v1229_v0 }
 0x1fb   : > { %v1254_v4 = vadd.f32 %v1247_v1, %v1240_v3 }
 0x1fd   : > { %v1261_v7 = vpack.c.bf16 %v1254_v4, %v1254_v4 }
 0x1fe   : > { %v1214_v27 = vpop.f32.mrf.mxu3 }
 0x1ff   : > { %1269 = vst.msk [vmem:[%s2151_s28 + $0x10] sm:$0xf] %vm1264_vm5, %v1261_v7  ;;  %v1230_v11 = vmul.f32 %v1518_v33, %v1214_v27 }
 0x201   : > { %v1241_v58 = vadd.f32 %v1519_v34, %v1230_v11 }
 0x203   : > { %v1255_v13 = vadd.f32 %v1248_v50, %v1241_v58 }
 0x205   : > { %v1262_v2 = vpack.c.bf16 %v1255_v13, %v1255_v13 }
 0x206   : > { %v1217_v63 = vpop.f32.mrf.mxu3 }
 0x207   : > { %1270 = vst.msk [vmem:[%s2151_s28 + $0x14] sm:$0xf] %vm1264_vm5, %v1262_v2  ;;  %v1231_v17 = vmul.f32 %v1518_v33, %v1217_v63 }
 0x209   : > { %v1242_v25 = vadd.f32 %v1519_v34, %v1231_v17 }
 0x20b   : > { %v1256_v12 = vadd.f32 %v1249_v55, %v1242_v25 }
 0x20d   : > { %v1263_v19 = vpack.c.bf16 %v1256_v12, %v1256_v12 }
 0x20e   : > { %v1219_v26 = vpop.f32.mrf.mxu3 }
 0x20f   : > { %v1275_v14 = vsel %vm1273_vm8, %v1263_v19, %v1274_v15 }
 0x210   : > { %1276 = vst [vmem:[%s2151_s28 + $0x18] sm:$0x1] %v1275_v14 }
 0x211 PF: > { %s24_s13 = sadd.s32 1, %s1723_s13  }
 0x212   : > { %p21_p7 = scmp.ge.s32.totalorder %s24_s13, 4  }
 0x214   :  { %23 = sbr.rel (!%p21_p7) target bundleno = 4 (0x4), region = 129 }
 0x219   :  { %1298 = vsyncpa [#allocation3], 1 }
 0x21a   :  { %1300 = vsyncpa [#allocation3 + $0x1], 1 }
 0x21b   :  { %1301 = vsyncpa [#allocation5], 1 }
 0x21c   :  { %1302 = vsyncpa [#allocation8], 1 }
 0x21d   :  { %1303 = vsyncpa [#allocation11], 1 }

// kernel: _lambda_.9
= control target key start
LH: loop header
LB: loop body
LE: loop exit
PB: predicated region body
PF: predicated region fallthrough
CT: control target
= control target key end

     0   :  { %s2132_s0 = inlined_call_operand.vmem [shape: bf16[2,4,32], index: 0, kind: input, shape index: {}]   ;;  %s2133_s1 = inlined_call_operand.vmem [shape: bf16[2,49,8], index: 1, kind: input, shape index: {}]   ;;  %s2134_s2 = inlined_call_operand.vmem [shape: bf16[32,32], index: 2, kind: input, shape index: {}]   ;;  %s2135_s3 = inlined_call_operand.vmem [shape: bf16[8,32], index: 3, kind: input, shape index: {}]   ;;  %s2136_s4 = inlined_call_operand.vmem [shape: bf16[8,32], index: 4, kind: input, shape index: {}]   ;;  %s2137_s5 = inlined_call_operand.vmem [shape: bf16[32,32], index: 5, kind: input, shape index: {}]   ;;  %s2138_s6 = inlined_call_operand.vmem [shape: f32[1,32], index: 6, kind: input, shape index: {}]   ;;  %s2139_s7 = inlined_call_operand.vmem [shape: f32[1,32], index: 7, kind: input, shape index: {}]   ;;  %s2140_s8 = inlined_call_operand.vmem [shape: bf16[32,32], index: 8, kind: input, shape index: {}]   ;;  %s2141_s9 = inlined_call_operand.vmem [shape: bf16[32,32], index: 9, kind: input, shape index: {}]   ;;  %s2142_s10 = inlined_call_operand.vmem [shape: bf16[32,32], index: 10, kind: input, shape index: {}]   ;;  %s2143_s11 = inlined_call_operand.vmem [shape: bf16[32,32], index: 11, kind: input, shape index: {}]   ;;  %s2144_s12 = inlined_call_operand.vmem [shape: f32[1,32], index: 12, kind: input, shape index: {}]   ;;  %s2145_s13 = inlined_call_operand.vmem [shape: f32[1,32], index: 13, kind: input, shape index: {}]   ;;  %s2146_s14 = inlined_call_operand.vmem [shape: bf16[32,64], index: 14, kind: input, shape index: {}]   ;;  %s2147_s15 = inlined_call_operand.vmem [shape: f32[1,64], index: 15, kind: input, shape index: {}]   ;;  %s2148_s16 = inlined_call_operand.vmem [shape: bf16[64,32], index: 16, kind: input, shape index: {}]   ;;  %s2149_s17 = inlined_call_operand.hbm [shape: f32[1,32], index: 17, kind: input, shape index: {}]   ;;  %s2150_s18 = inlined_call_operand.vmem [shape: bf16[2,4,32], index: 18, kind: output, shape index: {}]  }
   0x1   :  { %2152 = sst [smem:[#allocation5_spill]] %s2132_s0 }
   0x2   :  { %2153 = sst [smem:[#allocation6_spill]] %s2133_s1 }
   0x3   :  { %2154 = sst [smem:[#allocation7_spill]] %s2134_s2 }
   0x4   :  { %23 = vsyncpa [#allocation3], 0  ;;  %s1946_s27 = smov 0  }
   0x5 LB: > { %s1581_s28 = sadd.s32 4294967295, %s1844_s27   ;;  %p1583_p0 = scmp.ge.s32.totalorder %s1844_s27, 1  ;;  %s1844_s27 = sphi %s1946_s27, %s29_s27  }
   0x6   : > { %p448_p1 = scmp.lt.s32.totalorder %s1844_s27, 3  ;;  %s505_s0 = sshll.u32 %s2149_s17, 4  ;;  %s506_s0 = int_to_ptr.hbm [resolvable:$true] %s505_s0 }
   0x7   : > { %p1731_p3 = scmp.eq.s32.totalorder %s1581_s28, 0  ;;  %s1846_s19 = smov [#allocation2]  }
   0x8   : > { %p449_p2 = pnand %p1583_p0, %p448_p1  ;;  %s507_s1 = sshll.u32 %s1846_s19, 4  ;;  %s508_s1 = int_to_ptr.vmem [resolvable:$true] %s507_s1 }
   0xa   : > { %p1727_p4 = pneg %p449_p2  ;;  %535 = sbr.rel (%p449_p2) target bundleno = 2954 (0xb8a), region = 92 }
   0xc   : > { %p1728_p5 = pnand %p1731_p3, %p1727_p4 }
   0xe   : > { %1730 = dma.hbm_to_vmem [thread:$0]  (!%p1728_p5), %s506_s0, 16, %s508_s1, [#allocation3]  }
   0xf   : > { %1839 = dma.done.wait (%p1731_p3), [#allocation3], 16  }
  0x10   : > { %1841 = vsyncadd (%p1731_p3), [#allocation3], 4294967280  ;;  %p593_p6 = scmp.lt.s32.totalorder %s1581_s28, 1  ;;  %vm681_vm0 = vcmask 1043456   ;;  %s2155_s2 = sld [smem:[#allocation6_spill]]  ;;  %vm668_vm1 = vcmask 64512  }
  0x11   : > { %v649_v0 = vld [vmem:[%s2135_s3] sm:$0xf]  ;;  %s2156_s30 = sld [smem:[#allocation7_spill]]  ;;  %vm632_vm2 = vcmask 261120   ;;  %s1847_s24 = smov 112   ;;  %vm853_vm3 = vcmask 130048  }
  0x12   : > { %s2159_s28 = smov (!%p593_p6, %s1581_s28), 1  ;;  %v683_v1 = vsel %vm681_vm0, %v649_v0, 0  ;;  %s2157_s22 = sld [smem:[#allocation5_spill]]  ;;  %v713_v34 = vld [vmem:[%s2136_s4] sm:$0xf]  ;;  %vm930_vm4 = vcmask 396288  }
  0x13   : > { %s1722_s20 = smul.u32 28, %s2159_s28  ;;  %692 = vmatpush.bf16.msra.mxu1 %v683_v1  ;;  %s1588_s0 = sshll.u32 %s2159_s28, 1  ;;  %v715_v37 = vsel %vm681_vm0, %v713_v34, 0  ;;  %vm980_vm5 = vcmask 1040384   ;;  %vm976_vm6 = vcmask 400384   ;;  %vm1080_vm7 = vcmask 257024  }
  0x14   : > { %724 = vmatpush.bf16.msra.mxu2 %v715_v37  ;;  %s1849_s19 = smov 16   ;;  %vm1296_vm12 = vcmask 1041408   ;;  %vm1267_vm13 = vcmask 27648   ;;  %vm1292_vm14 = vcmask 31744  }
  0x16   : > { %s601_s23 = scalar_lea.vmem %s2155_s2, %s1722_s20  ;;  %s605_s20 = scalar_lea.vmem %s2150_s18, %s1588_s0 }
  0x17   : > { %v1701_v2 = vld [vmem:[%s601_s23] sm:$0xff]  ;;  %v1968_v3 = vld [vmem:[%s601_s23 + $0x8] sm:$0xff]  ;;  %v1703_v7 = vld [vmem:[%s601_s23 + $0x10] sm:$0xff] }
  0x18   : > { %1612 = vmatmul.msk.bf16.vlgmr.msra.gmra.mxu1 %vm668_vm1, %v1701_v2  ;;  %v1705_v4 = vld [vmem:[%s2156_s30 + $0x8] sm:$0xff]  ;;  %v1704_v5 = vld [vmem:[%s2156_s30] sm:$0xff]  ;;  %s596_s2 = scalar_lea.vmem %s2157_s22, %s1588_s0  ;;  %v615_v8 = vld [vmem:[%s601_s23 + $0x18] sm:$0x1]  ;;  %1616 = vmatmul.msk.bf16.vlgmr.msra.gmra.mxu2 %vm668_vm1, %v1701_v2 }
  0x19   : > { %642 = vmatpush.bf16.msra.mxu0 %v1705_v4  ;;  %v1984_v6 = vld [vmem:[%s596_s2] sm:$0x3]  ;;  %v663_v9 = vunpack.c.l.b16 %v615_v8 }
  0x1b   : > { %v667_v10 = vpack.c.b16 %v663_v9, %v663_v9 }
  0x1d   : > { %643 = vmatpush.bf16.msra.mxu0 %v1704_v5 }
  0x20   : > { %1599 = vmatmul.msk.bf16.vlgmr.msra.gmra.mxu0 %vm632_vm2, %v1984_v6 }
  0x28   : > { %1613 = vmatmul.msk.bf16.gmra.mxu1 %vm668_vm1, %v1968_v3  ;;  %1617 = vmatmul.msk.bf16.gmra.mxu2 %vm668_vm1, %v1968_v3 }
  0x38   : > { %1614 = vmatmul.msk.bf16.gmra.mxu1 %vm668_vm1, %v1703_v7  ;;  %1618 = vmatmul.msk.bf16.gmra.mxu2 %vm668_vm1, %v1703_v7 }
  0x48   : > { %1615 = vmatmul.msk.bf16.gmra.mxu1 %vm668_vm1, %v667_v10  ;;  %1619 = vmatmul.msk.bf16.gmra.mxu2 %vm668_vm1, %v667_v10 }
  0x95   : > { %v694_v11 = vpop.f32.mrf.mxu1 }
  0x96   : > { %v779_v12 = vpack.c.bf16 %v694_v11, %v694_v11 }
  0x98   : > { %v842_v15 = vunpack.c.l.b16 %v779_v12 }
  0x9d   : > { %v696_v13 = vpop.f32.mrf.mxu1  ;;  %v645_v25 = vpop.f32.mrf.mxu0 }
  0x9e   : > { %v780_v14 = vpack.c.bf16 %v696_v13, %v696_v13  ;;  %v1756_v22 = vpack.i.bf16 %v696_v13, %v694_v11  ;;  %746 = vrot.lane.b32.xlu2 %v645_v25, %s1847_s24  ;;  %v749_v48 = vpack.c.bf16 %v645_v25, %v645_v25 }
  0xa0   : > { %v843_v16 = vunpack.c.l.b16 %v780_v14 }
  0xa2   : > { %v849_v17 = vpack.c.b16 %v843_v16, %v842_v15 }
  0xa4   : > { %v858_v47 = vsel %vm853_vm3, %v849_v17, 0  ;;  %v726_v17 = vpop.f32.mrf.mxu2 }
  0xa5   : > { %v699_v18 = vpop.f32.mrf.mxu1  ;;  %v647_v36 = vpop.f32.mrf.mxu0 }
  0xa6   : > { %v781_v41 = vpack.c.bf16 %v699_v18, %v699_v18 }
  0xa8   : > { %v844_v44 = vunpack.c.l.b16 %v781_v41 }
  0xad   : > { %v701_v19 = vpop.f32.mrf.mxu1 }
  0xae   : > { %v1751_v20 = vpack.i.bf16 %v701_v19, %v699_v18  ;;  %v782_v39 = vpack.c.bf16 %v701_v19, %v701_v19 }
  0xb0   : > { %1752 = vrot.lane.b32.xlu1 %v1751_v20, %s1847_s24  ;;  %v845_v42 = vunpack.c.l.b16 %v782_v39 }
  0xb2   : > { %v850_v45 = vpack.c.b16 %v845_v42, %v844_v44  ;;  %v1848_v42 = vmov 0  }
  0xb4   : > { %v861_v46 = vsel %vm853_vm3, %v850_v45, 0 }
  0xb5   : > { %v704_v21 = vpop.f32.mrf.mxu1 }
  0xb6   : > { %v783_v29 = vpack.c.bf16 %v704_v21, %v704_v21 }
  0xb8   : > { %1757 = vrot.lane.b32.xlu1 %v1756_v22, %s1847_s24  ;;  %v846_v38 = vunpack.c.l.b16 %v783_v29 }
  0xbd   : > { %v706_v23 = vpop.f32.mrf.mxu1 }
  0xbe   : > { %v784_v27 = vpack.c.bf16 %v706_v23, %v706_v23  ;;  %v1746_v31 = vpack.i.bf16 %v706_v23, %v704_v21  ;;  %v728_v21 = vpop.f32.mrf.mxu2 }
  0xc0   : > { %v847_v32 = vunpack.c.l.b16 %v784_v27 }
  0xc2   : > { %v851_v40 = vpack.c.b16 %v847_v32, %v846_v38 }
  0xc4   : > { %v864_v43 = vsel %vm853_vm3, %v851_v40, 0 }
  0xc5   : > { %v709_v24 = vpop.f32.mrf.mxu1 }
  0xc6   : > { %v785_v26 = vpack.c.bf16 %v709_v24, %v709_v24  ;;  %770 = vrot.lane.b32.xlu0 %v709_v24, %s1847_s24  ;;  %v731_v22 = vpop.f32.mrf.mxu2 }
  0xc7   : > { %v823_v40 = vpack.c.bf16 %v731_v22, %v731_v22 }
  0xc8   : > { %v848_v28 = vunpack.c.l.b16 %v785_v26 }
  0xca   : > { %v852_v30 = vpack.c.b16 %v848_v28, %v848_v28 }
  0xcc   : > { %v867_v33 = vsel %vm853_vm3, %v852_v30, 0 }
  0xcd   : > { %v711_v35 = vpop.f32.mrf.mxu1  ;;  %873 = vmatpush.bf16.xpose.msra.mxu3 %v867_v33 }
  0xce   : > { %1747 = vrot.lane.b32.xlu0 %v1746_v31, %s1847_s24  ;;  %v733_v24 = vpop.f32.mrf.mxu2 }
  0xcf   : > { %v1771_v34 = vpack.i.bf16 %v726_v17, %v733_v24  ;;  %v824_v41 = vpack.c.bf16 %v733_v24, %v733_v24 }
  0xd5   : > { %874 = vmatpush.bf16.xpose.msra.mxu3 %v864_v43  ;;  %v982_v43 = vsel %vm980_vm5, 65535, %v1848_v42 }
  0xd6   : > { %v736_v28 = vpop.f32.mrf.mxu2 }
  0xd7   : > { %v825_v38 = vpack.c.bf16 %v736_v28, %v736_v28 }
  0xd9   : > { %v966_v45 = vunpack.c.l.b16 %v825_v38 }
  0xdd   : > { %875 = vmatpush.bf16.xpose.msra.mxu3 %v861_v46 }
  0xde   : > { %v738_v29 = vpop.f32.mrf.mxu2 }
  0xdf   : > { %v1766_v32 = vpack.i.bf16 %v731_v22, %v738_v29  ;;  %v826_v39 = vpack.c.bf16 %v738_v29, %v738_v29 }
  0xe1   : > { %v967_v46 = vunpack.c.l.b16 %v826_v39 }
  0xe5   : > { %876 = vmatpush.bf16.xpose.msra.mxu3 %v858_v47  ;;  %v964_v47 = vunpack.c.l.b16 %v823_v40 }
  0xe6   : > { %v741_v30 = vpop.f32.mrf.mxu2 }
  0xe7   : > { %v1761_v31 = vpack.i.bf16 %v736_v28, %v741_v30  ;;  %v827_v35 = vpack.c.bf16 %v741_v30, %v741_v30 }
  0xe9   : > { %1762 = vrot.lane.b32.xlu1 %v1761_v31, %s1847_s24  ;;  %v968_v36 = vunpack.c.l.b16 %v827_v35 }
  0xeb   : > { %v972_v37 = vpack.c.b16 %v968_v36, %v968_v36 }
  0xec   : > { %1620 = vmatmul.msk.bf16.vlgmr.msra.gmra.mxu3 %vm853_vm3, %v749_v48  ;;  %v965_v48 = vunpack.c.l.b16 %v824_v41 }
  0xed   : > { %v984_v44 = vand.u32 %v982_v43, %v972_v37 }
  0xee   : > { %v743_v33 = vpop.f32.mrf.mxu2 }
  0xef   : > { %990 = vmatpush.bf16.msrb.mxu3 %v984_v44 }
  0xf1   : > { %1767 = vrot.lane.b32.xlu1 %v1766_v32, %s1847_s24 }
  0xf8   : > { %v747_v19 = vpop.permute.xlu2 %746 }
  0xf9   : > { %v750_v20 = vpack.c.bf16 %v747_v19, %v747_v19  ;;  %1772 = vrot.lane.b32.xlu1 %v1771_v34, %s1847_s24 }
 0x122   : > { %v1753_v52 = vpop.permute.xlu1 %1752 }
 0x123   : > { %v1755_v55 = vunpack.i.h.bf16 %v1753_v52  ;;  %v1754_v57 = vunpack.i.l.bf16 %v1753_v52  ;;  %v970_v52 = vpack.c.b16 %v965_v48, %v964_v47 }
 0x125   : > { %v789_v62 = vpack.c.bf16 %v1755_v55, %v1755_v55  ;;  %v788_v63 = vpack.c.bf16 %v1754_v57, %v1754_v57 }
 0x127   : > { %v892_v4 = vunpack.c.l.b16 %v789_v62  ;;  %v891_v5 = vunpack.c.l.b16 %v788_v63 }
 0x129   : > { %v897_v12 = vpack.c.b16 %v892_v4, %v891_v5 }
 0x12a   : > { %v1758_v2 = vpop.permute.xlu1 %1757 }
 0x12b   : > { %v1760_v7 = vunpack.i.h.bf16 %v1758_v2  ;;  %v1759_v8 = vunpack.i.l.bf16 %v1758_v2  ;;  %v907_v15 = vsel %vm853_vm3, %v897_v12, 0 }
 0x12d   : > { %v787_v10 = vpack.c.bf16 %v1760_v7, %v1760_v7  ;;  %v786_v11 = vpack.c.bf16 %v1759_v8, %v1759_v8 }
 0x12f   : > { %v890_v13 = vunpack.c.l.b16 %v787_v10  ;;  %v889_v14 = vunpack.c.l.b16 %v786_v11 }
 0x131   : > { %v896_v16 = vpack.c.b16 %v890_v13, %v889_v14 }
 0x133   : > { %v904_v18 = vsel %vm853_vm3, %v896_v16, 0 }
 0x138   : > { %v771_v49 = vpop.permute.xlu0 %770 }
 0x139   : > { %v792_v50 = vpack.c.bf16 %v771_v49, %v771_v49  ;;  %v821_v49 = vpack.c.bf16 %v726_v17, %v726_v17 }
 0x13b   : > { %v895_v51 = vunpack.c.l.b16 %v792_v50  ;;  %v822_v50 = vpack.c.bf16 %v728_v21, %v728_v21 }
 0x13d   : > { %v899_v53 = vpack.c.b16 %v895_v51, %v895_v51  ;;  %v971_v51 = vpack.c.b16 %v967_v46, %v966_v45  ;;  %v1707_v46 = vld [vmem:[%s2137_s5 + $0x8] sm:$0xff] }
 0x13f   : > { %v913_v54 = vsel %vm853_vm3, %v899_v53, 0  ;;  %991 = vmatpush.bf16.msrb.mxu3 %v971_v51  ;;  %v962_v53 = vunpack.c.l.b16 %v821_v49  ;;  %v1706_v49 = vld [vmem:[%s2137_s5] sm:$0xff] }
 0x140   : > { %919 = vmatpush.bf16.xpose.msrb.mxu0 %v913_v54  ;;  %v1748_v56 = vpop.permute.xlu0 %1747  ;;  %v963_v54 = vunpack.c.l.b16 %v822_v50 }
 0x141   : > { %v1750_v58 = vunpack.i.h.bf16 %v1748_v56  ;;  %v1749_v59 = vunpack.i.l.bf16 %v1748_v56 }
 0x142   : > { %v969_v55 = vpack.c.b16 %v963_v54, %v962_v53  ;;  %v608_v53 = vunpack.c.l.bf16 %v1984_v6 }
 0x143   : > { %v791_v60 = vpack.c.bf16 %v1750_v58, %v1750_v58  ;;  %v790_v61 = vpack.c.bf16 %v1749_v59, %v1749_v59  ;;  %992 = vmatpush.bf16.msrb.mxu3 %v970_v52 }
 0x145   : > { %v894_v0 = vunpack.c.l.b16 %v791_v60  ;;  %v893_v1 = vunpack.c.l.b16 %v790_v61 }
 0x147   : > { %v898_v3 = vpack.c.b16 %v894_v0, %v893_v1  ;;  %993 = vmatpush.bf16.msrb.mxu3 %v969_v55 }
 0x149   : > { %v910_v9 = vsel %vm853_vm3, %v898_v3, 0 }
 0x14a   : > { %920 = vmatpush.bf16.xpose.msrb.mxu0 %v910_v9 }
 0x14b   : > { %1070 = vmatpush.bf16.msra.mxu3 %v1707_v46 }
 0x14f   : > { %1071 = vmatpush.bf16.msra.mxu3 %v1706_v49 }
 0x152   : > { %921 = vmatpush.bf16.xpose.msrb.mxu0 %v907_v15 }
 0x15a   : > { %922 = vmatpush.bf16.xpose.msrb.mxu0 %v904_v18 }
 0x15b   : > { %v1763_v1 = vpop.permute.xlu1 %1762 }
 0x15c   : > { %v1764_v2 = vunpack.i.l.bf16 %v1763_v1  ;;  %v1765_v9 = vunpack.i.h.bf16 %v1763_v1 }
 0x15e   : > { %v834_v3 = vpack.c.bf16 %v1764_v2, %v1764_v2  ;;  %v832_v11 = vpack.c.bf16 %v1765_v9, %v1765_v9  ;;  %v1710_v9 = vld [vmem:[%s2141_s9] sm:$0xff] }
 0x160   : > { %v1012_v4 = vunpack.c.l.b16 %v834_v3  ;;  %v1010_v14 = vunpack.c.l.b16 %v832_v11  ;;  %v1712_v11 = vld [vmem:[%s2142_s10] sm:$0xff] }
 0x161   : > { %1621 = vmatmul.msk.bf16.vlgmr.msrb.gmra.mxu0 %vm853_vm3, %v750_v20 }
 0x162   : > { %v1016_v5 = vpack.c.b16 %v1012_v4, %v1012_v4 }
 0x163   : > { %v1768_v8 = vpop.permute.xlu1 %1767 }
 0x164   : > { %v1024_v7 = vand.u32 %v1016_v5, %v982_v43  ;;  %v1769_v10 = vunpack.i.l.bf16 %v1768_v8  ;;  %v1770_v12 = vunpack.i.h.bf16 %v1768_v8  ;;  %v1713_v8 = vld [vmem:[%s2142_s10 + $0x8] sm:$0xff] }
 0x166   : > { %1030 = vmatpush.bf16.msra.mxu0 %v1024_v7  ;;  %v833_v13 = vpack.c.bf16 %v1769_v10, %v1769_v10  ;;  %v830_v15 = vpack.c.bf16 %v1770_v12, %v1770_v12  ;;  %v1708_v10 = vld [vmem:[%s2140_s8] sm:$0xff] }
 0x168   : > { %v1011_v16 = vunpack.c.l.b16 %v833_v13  ;;  %v1008_v19 = vunpack.c.l.b16 %v830_v15 }
 0x16b   : > { %v1773_v17 = vpop.permute.xlu1 %1772 }
 0x16c   : > { %v1774_v18 = vunpack.i.l.bf16 %v1773_v17 }
 0x16e   : > { %v831_v20 = vpack.c.bf16 %v1774_v18, %v1774_v18 }
 0x16f   : > { %v878_v23 = vpop.f32.mrf.mxu3 }
 0x170   : > { %v928_v25 = vmul.f32 0.25, %v878_v23  ;;  %v1009_v22 = vunpack.c.l.b16 %v831_v20 }
 0x172   : > { %v931_v26 = vsel %vm930_vm4, %v928_v25, -inf  ;;  %v1014_v23 = vpack.c.b16 %v1009_v22, %v1008_v19 }
 0x173   : > { %932 = vmax.xlane.f32.xlu0 %v931_v26  ;;  %v1775_v26 = vunpack.i.h.bf16 %v1773_v17 }
 0x175   : > { %v828_v28 = vpack.c.bf16 %v1775_v26, %v1775_v26 }
 0x177   : > { %v880_v27 = vpop.f32.mrf.mxu3  ;;  %v1006_v30 = vunpack.c.l.b16 %v828_v28 }
 0x1de   : > { %v924_v56 = vpop.f32.mrf.mxu0 }
 0x1df   : > { %v929_v57 = vmul.f32 0.25, %v924_v56 }
 0x1e1   : > { %v934_v58 = vsel %vm930_vm4, %v929_v57, -inf }
 0x1e2   : > { %935 = vmax.xlane.f32.xlu2 %v934_v58  ;;  %v1850_v58 = vmov 32.0  }
 0x1e6   : > { %v933_v59 = vpop.xlane.xlu0 %932  ;;  %v926_v60 = vpop.f32.mrf.mxu0 }
 0x1e7   : > { %v937_v61 = vsub.f32 %v928_v25, %v933_v59  ;;  %v1711_v59 = vld [vmem:[%s2141_s9 + $0x8] sm:$0xff] }
 0x1e8   : > { %v1709_v60 = vld [vmem:[%s2140_s8 + $0x8] sm:$0xff]  ;;  %1173 = vmatpush.bf16.msrb.mxu2 %v1711_v59 }
 0x1e9   : > { %v939_v62 = vmul.f32 1.442695, %v937_v61  ;;  %1144 = vmatpush.bf16.msrb.mxu1 %v1709_v60 }
 0x1eb   : > { %1782 = vpow2.f32 %v939_v62 }
 0x1ec   : > { %1174 = vmatpush.bf16.msrb.mxu2 %v1710_v9 }
 0x1ed   : > { %1145 = vmatpush.bf16.msrb.mxu1 %v1708_v10 }
 0x1f1   : > { %v1783_v63 = vpop.eup %1782 }
 0x1f2   : > { %v943_v0 = vsel %vm930_vm4, %v1783_v63, 0.0 }
 0x1f3   : > { %944 = vadd.xlane.f32.xlu0 %v943_v0 }
 0x1fa   : > { %802 = vrot.lane.b32.xlu2 %v728_v21, %s1847_s24  ;;  %v1015_v21 = vpack.c.b16 %v1011_v16, %v1010_v14 }
 0x1fc   : > { %1031 = vmatpush.bf16.msra.mxu0 %v1015_v21  ;;  %v1776_v21 = vld [vmem:[%s2138_s6] ss:$0 sm:$0xff] }
 0x200   : > { %1032 = vmatpush.bf16.msra.mxu0 %v1014_v23 }
 0x255   : > { %v936_v24 = vpop.xlane.xlu2 %935 }
 0x256   : > { %v938_v25 = vsub.f32 %v929_v57, %v936_v24  ;;  %v1777_v24 = vld [vmem:[%s2139_s7] ss:$0 sm:$0xff] }
 0x258   : > { %v941_v27 = vmul.f32 1.442695, %v938_v25 }
 0x25a   : > { %1784 = vpow2.f32 %v941_v27 }
 0x25d   : > { %v803_v29 = vpop.permute.xlu2 %802 }
 0x25e   : > { %v829_v31 = vpack.c.bf16 %v803_v29, %v803_v29 }
 0x260   : > { %v1785_v32 = vpop.eup %1784  ;;  %v1007_v33 = vunpack.c.l.b16 %v829_v31 }
 0x261   : > { %v946_v34 = vsel %vm930_vm4, %v1785_v32, 0.0 }
 0x262   : > { %v1013_v35 = vpack.c.b16 %v1007_v33, %v1006_v30  ;;  %947 = vadd.xlane.f32.xlu1 %v946_v34 }
 0x264   : > { %1033 = vmatpush.bf16.msra.mxu0 %v1013_v35 }
 0x266   : > { %v945_v36 = vpop.xlane.xlu0 %944 }
 0x267   : > { %1786 = vrcp.f32 %v945_v36 }
 0x268   : > { %1202 = vmatpush.bf16.msrb.mxu0 %v1713_v8 }
 0x26c   : > { %1203 = vmatpush.bf16.msrb.mxu0 %v1712_v11 }
 0x26d   : > { %v1787_v37 = vpop.eup %1786 }
 0x26e   : > { %v951_v38 = vmul.f32 %v1787_v37, %v1783_v63 }
 0x270   : > { %v953_v39 = vpack.c.bf16 %v951_v38, %v951_v38 }
 0x272   : > { %1622 = vmatmul.msk.bf16.vlgmr.msrb.gmra.mxu3 %vm976_vm6, %v953_v39 }
 0x2d5   : > { %v948_v40 = vpop.xlane.xlu1 %947 }
 0x2d6   : > { %1788 = vrcp.f32 %v948_v40 }
 0x2d7   : > { %1790 = vrcp.f32 %v1850_v58 }
 0x2dc   : > { %v1789_v41 = vpop.eup %1788 }
 0x2dd   : > { %v952_v42 = vmul.f32 %v1789_v41, %v1785_v32  ;;  %v1791_v6 = vpop.eup %1790 }
 0x2de   : > { %v1085_v61 = vmul.f32 32.0, %v1791_v6  ;;  %vm1089_vm8 = vweird.f32 %v1791_v6 }
 0x2df   : > { %v954_v43 = vpack.c.bf16 %v952_v42, %v952_v42 }
 0x2e0   : > { %v1086_v62 = vsub.f32 1.0, %v1085_v61 }
 0x2e1   : > { %1623 = vmatmul.msk.bf16.vlgmr.msra.gmra.mxu0 %vm976_vm6, %v954_v43 }
 0x2e2   : > { %v1087_v63 = vmul.f32 %v1791_v6, %v1086_v62 }
 0x2e4   : > { %v1088_v0 = vadd.f32 %v1791_v6, %v1087_v63 }
 0x2e6   : > { %v2042_v1 = vsel %vm1089_vm8, %v1791_v6, %v1088_v0 }
 0x2f5   : > { %v995_v44 = vpop.f32.mrf.mxu3 }
 0x2fd   : > { %v997_v45 = vpop.f32.mrf.mxu3 }
 0x35e   : > { %v1035_v47 = vpop.f32.mrf.mxu0 }
 0x35f   : > { %1040 = vrot.lane.b32.xlu0 %v1035_v47, %s1849_s19 }
 0x366   : > { %v1037_v48 = vpop.f32.mrf.mxu0 }
 0x3d1   : > { %v1041_v50 = vpop.permute.xlu0 %1040 }
 0x3d2   : > { %v1043_v51 = vsel %vm853_vm3, %v995_v44, %v1041_v50 }
 0x3d3   : > { %v1044_v52 = vpack.c.bf16 %v1043_v51, %v1043_v51 }
 0x3d5   : > { %1632 = vmatmul.msk.bf16.vlgmr.msra.gmra.mxu3 %vm632_vm2, %v1044_v52 }
 0x458   : > { %v1073_v54 = vpop.f32.mrf.mxu3 }
 0x459   : > { %v2032_v55 = vadd.f32 %v1073_v54, %v608_v53 }
 0x45b   : > { %v1081_v56 = vsel %vm1080_vm7, %v2032_v55, 0.0 }
 0x45c   : > { %1082 = vadd.xlane.f32.xlu2 %v1081_v56 }
 0x460   : > { %v1075_v57 = vpop.f32.mrf.mxu3 }
 0x4cf   : > { %v1083_v2 = vpop.xlane.xlu2 %1082 }
 0x4d0   : > { %v1091_v3 = vmul.f32 %v2042_v1, %v1083_v2 }
 0x4d2   : > { %v1092_v4 = vsub.f32 %v2032_v55, %v1091_v3 }
 0x4d4   : > { %v1093_v5 = vmul.f32 %v1092_v4, %v1092_v4 }
 0x4d6   : > { %v1094_v7 = vsel %vm1080_vm7, %v1093_v5, 0.0 }
 0x4d7   : > { %1095 = vadd.xlane.f32.xlu1 %v1094_v7 }
 0x54a   : > { %v1096_v12 = vpop.xlane.xlu1 %1095 }
 0x54b   : > { %v1097_v13 = vmul.f32 %v1096_v12, %v2042_v1 }
 0x54d   : > { %v1098_v14 = vadd.f32 1e-05, %v1097_v13  ;;  %v1715_v13 = vld [vmem:[%s2143_s11 + $0x8] sm:$0xff] }
 0x54f   : > { %1792 = vrsqrt.f32 %v1098_v14  ;;  %vm1105_vm10 = vweird.f32 %v1098_v14 }
 0x555   : > { %v1793_v15 = vpop.eup %1792 }
 0x556   : > { %v1100_v16 = vmul.f32 %v1793_v15, %v1098_v14  ;;  %vm1106_vm9 = vweird.f32 %v1793_v15 }
 0x557   : > { %vm1107_vm11 = vmor %vm1105_vm10, %vm1106_vm9 }
 0x558   : > { %v1101_v17 = vmul.f32 %v1793_v15, %v1100_v16  ;;  %v1714_v16 = vld [vmem:[%s2143_s11] sm:$0xff] }
 0x55a   : > { %v1102_v18 = vmul.f32 0.5, %v1101_v17 }
 0x55c   : > { %v1103_v19 = vsub.f32 1.5, %v1102_v18 }
 0x55e   : > { %v1104_v20 = vmul.f32 %v1793_v15, %v1103_v19 }
 0x560   : > { %v1108_v22 = vsel %vm1107_vm11, %v1793_v15, %v1104_v20 }
 0x561   : > { %v1109_v23 = vmul.f32 %v1108_v22, %v1092_v4 }
 0x563   : > { %v1113_v25 = vmul.f32 %v1776_v21, %v1109_v23 }
 0x565   : > { %v1117_v26 = vadd.f32 %v1777_v24, %v1113_v25 }
 0x567   : > { %v1118_v27 = vpack.c.bf16 %v1117_v26, %v1117_v26 }
 0x569   : > { %1641 = vmatmul.msk.bf16.vlgmr.msrb.gmra.mxu1 %vm632_vm2, %v1118_v27  ;;  %1650 = vmatmul.msk.bf16.vlgmr.msrb.gmra.mxu2 %vm632_vm2, %v1118_v27 }
 0x56a   : > { %1659 = vmatmul.msk.bf16.vlgmr.msrb.gmra.mxu0 %vm632_vm2, %v1118_v27 }
 0x5e6   : > { %v1147_v28 = vpop.f32.mrf.mxu1 }
 0x5e7   : > { %v1205_v29 = vpop.f32.mrf.mxu0  ;;  %1210 = vrot.lane.b32.xlu1 %v1147_v28, %s1847_s24  ;;  %v1213_v38 = vpack.c.bf16 %v1147_v28, %v1147_v28 }
 0x5e8   : > { %v1225_v30 = vpack.c.bf16 %v1205_v29, %v1205_v29 }
 0x5ea   : > { %v1298_v31 = vsel %vm1296_vm12, %v1225_v30, 0 }
 0x5eb   : > { %1307 = vmatpush.bf16.msra.mxu2 %v1298_v31 }
 0x5ec   : > { %v1176_v32 = vpop.f32.mrf.mxu2 }
 0x5ed   : > { %v1219_v33 = vpack.c.bf16 %v1176_v32, %v1176_v32  ;;  %1216 = vrot.lane.b32.xlu0 %v1176_v32, %s1847_s24 }
 0x5ee   : > { %v1149_v34 = vpop.f32.mrf.mxu1 }
 0x5ef   : > { %v1207_v35 = vpop.f32.mrf.mxu0  ;;  %v1231_v36 = vsel %vm853_vm3, %v1219_v33, 0 }
 0x5f0   : > { %1240 = vmatpush.bf16.xpose.msrb.mxu3 %v1231_v36 }
 0x5f4   : > { %v1178_v37 = vpop.f32.mrf.mxu2 }
 0x5f7   : > { %1660 = vmatmul.msk.bf16.vlgmr.msrb.gmra.mxu3 %vm853_vm3, %v1213_v38 }
 0x5f8   : > { %1363 = vmatpush.bf16.msra.mxu3 %v1715_v13 }
 0x5fc   : > { %1364 = vmatpush.bf16.msra.mxu3 %v1714_v16 }
 0x659   : > { %v1211_v42 = vpop.permute.xlu1 %1210 }
 0x65a   : > { %v1214_v43 = vpack.c.bf16 %v1211_v42, %v1211_v42 }
 0x65f   : > { %v1217_v39 = vpop.permute.xlu0 %1216 }
 0x660   : > { %v1220_v40 = vpack.c.bf16 %v1217_v39, %v1217_v39  ;;  %v1778_v39 = vld [vmem:[%s2144_s12] ss:$0 sm:$0xff] }
 0x662   : > { %v1250_v41 = vsel %vm853_vm3, %v1220_v40, 0 }
 0x663   : > { %1259 = vmatpush.bf16.xpose.msra.mxu1 %v1250_v41 }
 0x66a   : > { %1661 = vmatmul.msk.bf16.vlgmr.msra.gmra.mxu1 %vm853_vm3, %v1214_v43 }
 0x67a   : > { %v1242_v44 = vpop.f32.mrf.mxu3 }
 0x67b   : > { %v1265_v45 = vmul.f32 0.25, %v1242_v44 }
 0x67d   : > { %v1268_v46 = vsel %vm1267_vm13, %v1265_v45, -inf }
 0x67e   : > { %1269 = vmax.xlane.f32.xlu2 %v1268_v46  ;;  %v1720_v46 = vld [vmem:[%s2148_s16 + $0x10] sm:$0xff] }
 0x682   : > { %v1244_v47 = vpop.f32.mrf.mxu3 }
 0x683   : > { %v1719_v47 = vld [vmem:[%s2148_s16 + $0x8] sm:$0xff] }
 0x696   : > { %1222 = vrot.lane.b32.xlu2 %v1205_v29, %s1847_s24  ;;  %v1717_v29 = vld [vmem:[%s2146_s14 + $0x8] sm:$0xff] }
 0x697   : > { %1433 = vmatpush.bf16.msrb.mxu1 %v1717_v29 }
 0x6e7   : > { %v1261_v48 = vpop.f32.mrf.mxu1 }
 0x6e8   : > { %v1266_v49 = vmul.f32 0.25, %v1261_v48  ;;  %v1718_v48 = vld [vmem:[%s2148_s16] sm:$0xff] }
 0x6ea   : > { %v1271_v50 = vsel %vm1267_vm13, %v1266_v49, -inf }
 0x6eb   : > { %1272 = vmax.xlane.f32.xlu0 %v1271_v50 }
 0x6ef   : > { %v1263_v51 = vpop.f32.mrf.mxu1 }
 0x6f1   : > { %v1270_v52 = vpop.xlane.xlu2 %1269 }
 0x6f2   : > { %v1274_v53 = vsub.f32 %v1265_v45, %v1270_v52  ;;  %v1721_v45 = vld [vmem:[%s2148_s16 + $0x18] sm:$0xff] }
 0x6f3   : > { %1486 = vmatpush.bf16.msrb.mxu2 %v1721_v45 }
 0x6f4   : > { %v1276_v54 = vmul.f32 1.442695, %v1274_v53 }
 0x6f6   : > { %1794 = vpow2.f32 %v1276_v54 }
 0x6f7   : > { %1487 = vmatpush.bf16.msrb.mxu2 %v1720_v46 }
 0x6f9   : > { %v1223_v56 = vpop.permute.xlu2 %1222 }
 0x6fa   : > { %v1226_v57 = vpack.c.bf16 %v1223_v56, %v1223_v56 }
 0x6fb   : > { %1488 = vmatpush.bf16.msrb.mxu2 %v1719_v47 }
 0x6fc   : > { %v1795_v58 = vpop.eup %1794  ;;  %v1317_v59 = vsel %vm1296_vm12, %v1226_v57, 0 }
 0x6fd   : > { %1326 = vmatpush.bf16.msra.mxu0 %v1317_v59  ;;  %v1280_v60 = vsel %vm1267_vm13, %v1795_v58, 0.0 }
 0x6fe   : > { %1281 = vadd.xlane.f32.xlu0 %v1280_v60  ;;  %v1781_v60 = vld [vmem:[#allocation2] ss:$0 sm:$0xff] }
 0x6ff   : > { %1489 = vmatpush.bf16.msrb.mxu2 %v1718_v48 }
 0x75e   : > { %v1273_v6 = vpop.xlane.xlu0 %1272 }
 0x75f   : > { %v1275_v61 = vsub.f32 %v1266_v49, %v1273_v6  ;;  %v1780_v49 = vld [vmem:[%s2147_s15] ss:$0 sm:$0xff] }
 0x761   : > { %v1278_v62 = vmul.f32 1.442695, %v1275_v61 }
 0x763   : > { %1796 = vpow2.f32 %v1278_v62 }
 0x769   : > { %v1797_v63 = vpop.eup %1796 }
 0x76a   : > { %v1283_v0 = vsel %vm1267_vm13, %v1797_v63, 0.0 }
 0x76b   : > { %1284 = vadd.xlane.f32.xlu1 %v1283_v0 }
 0x771   : > { %v1282_v2 = vpop.xlane.xlu0 %1281 }
 0x772   : > { %1798 = vrcp.f32 %v1282_v2 }
 0x778   : > { %v1799_v3 = vpop.eup %1798 }
 0x779   : > { %v1288_v4 = vmul.f32 %v1799_v3, %v1795_v58 }
 0x77b   : > { %v1290_v5 = vpack.c.bf16 %v1288_v4, %v1288_v4 }
 0x77d   : > { %1662 = vmatmul.msk.bf16.vlgmr.msra.gmra.mxu2 %vm1292_vm14, %v1290_v5 }
 0x7de   : > { %v1285_v7 = vpop.xlane.xlu1 %1284 }
 0x7df   : > { %1800 = vrcp.f32 %v1285_v7 }
 0x7e5   : > { %v1801_v8 = vpop.eup %1800 }
 0x7e6   : > { %v1289_v9 = vmul.f32 %v1801_v8, %v1797_v63 }
 0x7e8   : > { %v1291_v10 = vpack.c.bf16 %v1289_v9, %v1289_v9 }
 0x7ea   : > { %1663 = vmatmul.msk.bf16.vlgmr.msra.gmra.mxu0 %vm1292_vm14, %v1291_v10 }
 0x800   : > { %v1309_v11 = vpop.f32.mrf.mxu2 }
 0x808   : > { %v1311_v12 = vpop.f32.mrf.mxu2 }
 0x867   : > { %v1328_v14 = vpop.f32.mrf.mxu0 }
 0x868   : > { %1333 = vrot.lane.b32.xlu0 %v1328_v14, %s1849_s19 }
 0x86f   : > { %v1330_v15 = vpop.f32.mrf.mxu0 }
 0x8da   : > { %v1334_v17 = vpop.permute.xlu0 %1333 }
 0x8db   : > { %v1336_v18 = vsel %vm853_vm3, %v1309_v11, %v1334_v17  ;;  %vm1502_vm3 = vcmask 254976  }
 0x8dc   : > { %v1337_v19 = vpack.c.bf16 %v1336_v18, %v1336_v18 }
 0x8de   : > { %1672 = vmatmul.msk.bf16.vlgmr.msra.gmra.mxu3 %vm632_vm2, %v1337_v19 }
 0x961   : > { %v1366_v20 = vpop.f32.mrf.mxu3 }
 0x962   : > { %v1370_v21 = vadd.f32 %v1366_v20, %v2032_v55  ;;  %v1716_v55 = vld [vmem:[%s2146_s14] sm:$0xff] }
 0x963   : > { %1434 = vmatpush.bf16.msrb.mxu1 %v1716_v55 }
 0x964   : > { %v1373_v22 = vsel %vm1080_vm7, %v1370_v21, 0.0 }
 0x965   : > { %1374 = vadd.xlane.f32.xlu2 %v1373_v22 }
 0x969   : > { %v1368_v23 = vpop.f32.mrf.mxu3 }
 0x9d8   : > { %v1375_v24 = vpop.xlane.xlu2 %1374 }
 0x9d9   : > { %v1376_v25 = vmul.f32 %v1375_v24, %v2042_v1 }
 0x9db   : > { %v1377_v26 = vsub.f32 %v1370_v21, %v1376_v25 }
 0x9dd   : > { %v1378_v27 = vmul.f32 %v1377_v26, %v1377_v26 }
 0x9df   : > { %v1379_v28 = vsel %vm1080_vm7, %v1378_v27, 0.0 }
 0x9e0   : > { %1380 = vadd.xlane.f32.xlu1 %v1379_v28 }
 0xa53   : > { %v1381_v30 = vpop.xlane.xlu1 %1380 }
 0xa54   : > { %v1382_v31 = vmul.f32 %v1381_v30, %v2042_v1  ;;  %v1779_v1 = vld [vmem:[%s2145_s13] ss:$0 sm:$0xff] }
 0xa56   : > { %v1383_v32 = vadd.f32 1e-05, %v1382_v31 }
 0xa58   : > { %1802 = vrsqrt.f32 %v1383_v32  ;;  %vm1390_vm0 = vweird.f32 %v1383_v32 }
 0xa5e   : > { %v1803_v33 = vpop.eup %1802 }
 0xa5f   : > { %v1385_v34 = vmul.f32 %v1803_v33, %v1383_v32  ;;  %vm1391_vm15 = vweird.f32 %v1803_v33 }
 0xa60   : > { %vm1392_vm1 = vmor %vm1390_vm0, %vm1391_vm15 }
 0xa61   : > { %v1386_v35 = vmul.f32 %v1803_v33, %v1385_v34 }
 0xa63   : > { %v1387_v36 = vmul.f32 0.5, %v1386_v35 }
 0xa65   : > { %v1388_v37 = vsub.f32 1.5, %v1387_v36 }
 0xa67   : > { %v1389_v38 = vmul.f32 %v1803_v33, %v1388_v37 }
 0xa69   : > { %v1393_v40 = vsel %vm1392_vm1, %v1803_v33, %v1389_v38 }
 0xa6a   : > { %v1394_v41 = vmul.f32 %v1393_v40, %v1377_v26 }
 0xa6c   : > { %v1398_v42 = vmul.f32 %v1778_v39, %v1394_v41 }
 0xa6e   : > { %v1402_v43 = vadd.f32 %v1779_v1, %v1398_v42 }
 0xa70   : > { %v1403_v44 = vpack.c.bf16 %v1402_v43, %v1402_v43 }
 0xa72   : > { %1681 = vmatmul.msk.bf16.vlgmr.msrb.gmra.mxu1 %vm632_vm2, %v1403_v44  ;;  %vm1478_vm2 = vcmask 523264  }
 0xaef   : > { %v1436_v50 = vpop.f32.mrf.mxu1 }
 0xaf0   : > { %v1437_v51 = vadd.f32 %v1780_v49, %v1436_v50 }
 0xaf2   : > { %v1440_v52 = vadd.f32 3.0, %v1437_v51 }
 0xaf4   : > { %v1441_v53 = vmax.f32 %v1440_v52, 0.0 }
 0xaf6   : > { %v1442_v54 = vmin.f32 %v1441_v53, 6.0 }
 0xaf7   : > { %v1438_v56 = vpop.f32.mrf.mxu1 }
 0xaf8   : > { %v1443_v57 = vmul.f32 %v1442_v54, %v1437_v51 }
 0xafa   : > { %v1444_v58 = vmul.f32 0.16666667, %v1443_v57 }
 0xafc   : > { %v1445_v59 = vpack.c.bf16 %v1444_v58, %v1444_v58 }
 0xafe   : > { %1698 = vmatmul.msk.bf16.vlgmr.msrb.gmra.mxu2 %vm1478_vm2, %v1445_v59 }
 0xb81   : > { %v1491_v6 = vpop.f32.mrf.mxu2 }
 0xb82   : > { %v1495_v61 = vadd.f32 %v1491_v6, %v1370_v21 }
 0xb84   : > { %v1500_v62 = vadd.f32 %v1781_v60, %v1495_v61 }
 0xb86   : > { %v1501_v63 = vpack.c.bf16 %v1500_v62, %v1500_v62 }
 0xb88   : > { %1503 = vst.msk [vmem:[%s605_s20] sm:$0x3] %vm1502_vm3, %v1501_v63 }
 0xb89   : > { %v1493_v0 = vpop.f32.mrf.mxu2 }
 0xb8a PF: > { %s29_s27 = sadd.s32 1, %s1844_s27  }
 0xb8b   : > { %p26_p7 = scmp.ge.s32.totalorder %s29_s27, 4  }
 0xb8d   :  { %28 = sbr.rel (!%p26_p7) target bundleno = 5 (0x5), region = 130 }
 0xb92   :  { %1523 = vsyncpa [#allocation3], 1 }
 0xb93   :  { %1525 = vsyncpa [#allocation3 + $0x1], 1 }

// kernel: _lambda_.15
= control target key start
LH: loop header
LB: loop body
LE: loop exit
PB: predicated region body
PF: predicated region fallthrough
CT: control target
= control target key end

     0   :  { %s1285_s0 = inlined_call_operand.vmem [shape: bf16[2,49,8], index: 0, kind: input, shape index: {}]   ;;  %s1286_s1 = inlined_call_operand.vmem [shape: bf16[2,1,32], index: 1, kind: input, shape index: {}]   ;;  %s1287_s2 = inlined_call_operand.hbm [shape: bf16[8,16], index: 2, kind: input, shape index: {}]   ;;  %s1288_s3 = inlined_call_operand.vmem [shape: f32[1,16], index: 3, kind: input, shape index: {}]   ;;  %s1289_s4 = inlined_call_operand.hbm [shape: f32[1,16], index: 4, kind: input, shape index: {}]   ;;  %s1290_s5 = inlined_call_operand.vmem [shape: bf16[16,32], index: 5, kind: input, shape index: {}]   ;;  %s1291_s6 = inlined_call_operand.vmem [shape: bf16[32,32], index: 6, kind: input, shape index: {}]   ;;  %s1292_s7 = inlined_call_operand.hbm [shape: f32[1,32], index: 7, kind: input, shape index: {}]   ;;  %s1293_s8 = inlined_call_operand.vmem [shape: bf16[32,10], index: 8, kind: input, shape index: {}]   ;;  %s1294_s9 = inlined_call_operand.hbm [shape: f32[1,10], index: 9, kind: input, shape index: {}]   ;;  %s1295_s10 = inlined_call_operand.hbm [shape: f32[2,1,10], index: 10, kind: output, shape index: {}]  }
   0x1   :  { %1297 = sst [smem:[#allocation17_spill]] %s1287_s2 }
   0x2   :  { %1298 = sst [smem:[#allocation18_spill]] %s1289_s4 }
   0x3   :  { %15 = vsyncpa [#allocation3], 0 }
   0x4   :  { %16 = vsyncpa [#allocation6], 0 }
   0x5   :  { %17 = vsyncpa [#allocation9], 0 }
   0x6   :  { %18 = vsyncpa [#allocation4], 0 }
   0x7   :  { %20 = vsyncpa [#allocation4 + $0x1], 0  ;;  %s1119_s13 = smov 0   ;;  %s1121_s14 = smov 0  }
   0x8   :  { %s1123_s15 = smov 0   ;;  %s1125_s16 = smov 0  }
   0x9 LB: > { %1299 = sst [smem:[#allocation15_spill]] %s1053_s15  ;;  %s1140_s17 = sadd.s32 4294967295, %s1057_s16   ;;  %s1057_s16 = sphi %s1125_s16, %s1311_s16   ;;  %s1053_s15 = sphi %s1123_s15, %s1308_s15   ;;  %s1049_s14 = sphi %s1121_s14, %s1310_s14   ;;  %s1045_s13 = sphi %s1119_s13, %s1309_s13  }
   0xa   : > { %s721_s18 = sadd.s32 4294967294, %s1057_s16   ;;  %s1144_s19 = sadd.s32 1, %s1057_s16  }
   0xb   : > { %s253_s20 = sadd.s32 1, %s1053_s15  ;;  %s250_s21 = ssub.s32 %s1057_s16, %s1144_s19 }
   0xc   : > { %p263_p0 = scmp.ne.s32.totalorder %s1053_s15, %s1049_s14  ;;  %p251_p1 = scmp.eq.s32.totalorder %s250_s21, 0 }
   0xd   : > { %p264_p2 = scmp.eq.s32.totalorder %s1140_s17, 1  ;;  %p269_p3 = scmp.ne.s32.totalorder %s1049_s14, %s1045_s13 }
   0xe   : > { %p270_p4 = scmp.eq.s32.totalorder %s721_s18, 1  ;;  %p722_p7 = scmp.ge.s32.totalorder %s1057_s16, 1 }
   0xf   : > { %s1155_s22 = scalar_select %p251_p1, %s1053_s15, %s253_s20  }
  0x10   : > { %p1157_p5 = por %p264_p2, %p263_p0  ;;  %p1161_p6 = por %p270_p4, %p269_p3 }
  0x11   : > { %1300 = sst [smem:[#allocation16_spill]] %s1155_s22  ;;  %p277_p8 = scmp.lt.s32.totalorder %s1057_s16, 3 }
  0x12   : > { %p815_p9 = scmp.eq.s32.totalorder %s1140_s17, 0  ;;  %s1304_s4 = sld [smem:[#allocation18_spill]] }
  0x13   : > { %p1168_p10 = pnand %p722_p7, %p277_p8  ;;  %s1059_s29 = smov [#allocation5]  }
  0x14   : > { %s306_s30 = sshll.u32 %s1059_s29, 4  ;;  %s1305_s2 = sld [smem:[#allocation17_spill]]  ;;  %s307_s30 = int_to_ptr.vmem [resolvable:$true] %s306_s30 }
  0x15   : > { %p798_p11 = pneg %p1168_p10  ;;  %s322_s27 = sshll.u32 %s1292_s7, 4  ;;  %s323_s27 = int_to_ptr.hbm [resolvable:$true] %s322_s27 }
  0x16   : > { %s1060_s29 = smov [#allocation2]   ;;  %s1061_s22 = smov [#allocation7]  }
  0x17   : > { %p1182_p12 = pnand %p815_p9, %p798_p11  ;;  %s324_s15 = sshll.u32 %s1061_s22, 4  ;;  %s325_s15 = int_to_ptr.vmem [resolvable:$true] %s324_s15 }
  0x18   : > { %s304_s28 = sshll.u32 %s1304_s4, 4  ;;  %s291_s4 = sshll.u32 %s1060_s29, 4  ;;  %s305_s28 = int_to_ptr.hbm [resolvable:$true] %s304_s28  ;;  %s292_s4 = int_to_ptr.vmem [resolvable:$true] %s291_s4 }
  0x19   : > { %804 = dma.hbm_to_vmem [thread:$0]  (!%p1182_p12), %s305_s28, 16, %s307_s30, [#allocation6]  }
  0x1a   : > { %s289_s18 = sshll.u32 %s1305_s2, 4  ;;  %s337_s2 = sshll.u32 %s1294_s9, 4  ;;  %s290_s18 = int_to_ptr.hbm [resolvable:$true] %s289_s18  ;;  %s338_s2 = int_to_ptr.hbm [resolvable:$true] %s337_s2 }
  0x1b   : > { %801 = dma.hbm_to_vmem [thread:$0]  (!%p1182_p12), %s290_s18, 64, %s292_s4, [#allocation3]  }
  0x1c   : > { %807 = dma.hbm_to_vmem [thread:$0]  (!%p1182_p12), %s323_s27, 16, %s325_s15, [#allocation6]  }
  0x1d   : > { %s1062_s21 = smov [#allocation8]   ;;  %366 = sbr.rel (%p1168_p10) target bundleno = 498 (0x1f2), region = 60 }
  0x1e   : > { %s339_s26 = sshll.u32 %s1062_s21, 4  ;;  %s340_s26 = int_to_ptr.vmem [resolvable:$true] %s339_s26 }
  0x1f   : > { %810 = dma.hbm_to_vmem [thread:$0]  (!%p1182_p12), %s338_s2, 16, %s340_s26, [#allocation9]  }
  0x22   : > { %1028 = dma.done.wait (%p815_p9), [#allocation3], 64  }
  0x23   : > { %1030 = vsyncadd (%p815_p9), [#allocation3], 4294967232 }
  0x24   : > { %1032 = dma.done.wait (%p815_p9), [#allocation6], 32  }
  0x25   : > { %1034 = vsyncadd (%p815_p9), [#allocation6], 4294967264 }
  0x26   : > { %1036 = dma.done.wait (%p815_p9), [#allocation9], 16  }
  0x27   : > { %1038 = vsyncadd (%p815_p9), [#allocation9], 4294967280  ;;  %p422_p13 = scmp.lt.s32.totalorder %s1140_s17, 1  ;;  %vm479_vm0 = vcmask 1043456   ;;  %v475_v0 = vld [vmem:[#allocation2] sm:$0xf]  ;;  %s612_s20 = scalar_lea.hbm %s1295_s10, %s1140_s17 }
  0x28   : > { %vm445_vm1 = vcmask 64512   ;;  %v1063_v3 = vmov 49.0   ;;  %v481_v4 = vsel %vm479_vm0, %v475_v0, 0  ;;  %v762_v9 = vld [vmem:[%s1291_s6 + $0x8] sm:$0xff]  ;;  %vm457_vm2 = vcmask 57344   ;;  %v761_v42 = vld [vmem:[%s1291_s6] sm:$0xff] }
  0x29   : > { %s1216_s2 = scalar_select %p422_p13, %s1140_s17, 1  ;;  %861 = vrcp.f32 %v1063_v3  ;;  %490 = vmatpush.bf16.msra.mxu0 %v481_v4  ;;  %530 = vmatpush.bf16.msra.mxu1 %v762_v9  ;;  %v760_v43 = vld [vmem:[%s1290_s5] sm:$0xff]  ;;  %vm520_vm4 = vcmask 261120   ;;  %vm543_vm5 = vcmask 130048   ;;  %v764_v54 = vld [vmem:[%s1293_s8 + $0x8] sm:$0xff]  ;;  %vm601_vm6 = vcmask 73728  }
  0x2a   : > { %554 = vmatpush.bf16.msra.mxu2 %v760_v43  ;;  %v496_v45 = vld [vmem:[%s1288_s3] sm:$0x1]  ;;  %v498_v47 = vld [vmem:[#allocation5] sm:$0x1]  ;;  %594 = vmatpush.bf16.msra.mxu3 %v764_v54  ;;  %v560_v57 = vld [vmem:[#allocation7] sm:$0x1] }
  0x2b   : > { %s779_s4 = smul.u32 28, %s1216_s2  ;;  %s429_s11 = scalar_lea.vmem %s1286_s1, %s1216_s2  ;;  %v763_v55 = vld [vmem:[%s1293_s8] sm:$0xff]  ;;  %v572_v3 = vld [vmem:[#allocation8] sm:$0x1] }
  0x2c   : > { %v500_v44 = vld [vmem:[%s429_s11] sm:$0x1]  ;;  %s420_s28 = sand.u32 1, %s1049_s14   ;;  %s616_s11 = sshll.u32 %s612_s20, 4  ;;  %s617_s11 = int_to_ptr.hbm [resolvable:$true] %s616_s11 }
  0x2d   : > { %s426_s25 = scalar_lea.vmem %s1285_s0, %s779_s4  ;;  %531 = vmatpush.bf16.msra.mxu1 %v761_v42  ;;  %s421_s27 = scalar_lea.vmem [#allocation10], %s420_s28 }
  0x2e   : > { %v766_v1 = vld [vmem:[%s426_s25] sm:$0xff]   ;;  %v777_v2 = vld [vmem:[%s426_s25 + $0x8] sm:$0xff]   ;;  %v778_v8 = vld [vmem:[%s426_s25 + $0x10] sm:$0xff]   ;;  %595 = vmatpush.bf16.msra.mxu3 %v763_v55  ;;  %s614_s29 = sshll.u32 %s421_s27, 4  ;;  %s604_s12 = scalar_lea.sflag [#allocation4], %s420_s28  ;;  %s615_s29 = int_to_ptr.vmem [resolvable:$true] %s614_s29 }
  0x2f   : > { %v767_v5 = vunpack.c.l.bf16 %v766_v1  ;;  %v768_v6 = vunpack.c.h.bf16 %v766_v1  ;;  %v771_v7 = vunpack.c.l.bf16 %v777_v2  ;;  %v772_v10 = vunpack.c.h.bf16 %v777_v2  ;;  %v437_v15 = vld [vmem:[%s426_s25 + $0x18] sm:$0x1]  ;;  %v862_v19 = vpop.eup %861  ;;  %s997_s21 = sshra.s32 %s617_s11, 4  ;;  %s1003_s2 = scalar_lea.hbm %s1295_s10, 2  ;;  %s998_s21 = int_to_ptr.hbm [resolvable:$true] %s997_s21 }
  0x30   : > { %v775_v11 = vunpack.c.l.bf16 %v778_v8  ;;  %v776_v17 = vunpack.c.h.bf16 %v778_v8  ;;  %v444_v21 = vunpack.c.l.bf16 %v437_v15  ;;  %v467_v25 = vmul.f32 49.0, %v862_v19  ;;  %743 = vmatmul.msk.bf16.vlgmr.msra.gmra.mxu1 %vm520_vm4, %v500_v44  ;;  %s999_s26 = scalar_lea.hbm %s998_s21, 1  ;;  %p1004_p3 = scmp.lt.s32.totalorder %s998_s21, %s1295_s10 }
  0x31   : > { %v446_v12 = vsel %vm445_vm1, %v767_v5, 0.0  ;;  %v447_v13 = vsel %vm445_vm1, %v768_v6, 0.0  ;;  %v449_v14 = vsel %vm445_vm1, %v771_v7, 0.0  ;;  %v451_v18 = vsel %vm445_vm1, %v772_v10, 0.0  ;;  %p1000_p0 = scmp.ne.s32.totalorder %s998_s21, %s999_s26  ;;  %p1005_p4 = scmp.lt.s32.totalorder %s1003_s2, %s999_s26 }
  0x32   : > { %v448_v16 = vadd.f32 %v447_v13, %v446_v12  ;;  %v453_v22 = vsel %vm445_vm1, %v775_v11, 0.0  ;;  %v455_v24 = vsel %vm445_vm1, %v776_v17, 0.0  ;;  %v458_v27 = vsel %vm457_vm2, %v444_v21, 0.0 }
  0x33   : > { %v468_v29 = vsub.f32 1.0, %v467_v25  ;;  %vm471_vm3 = vweird.f32 %v862_v19  ;;  %p1001_p1 = pnand %p1000_p0, %p1157_p5  ;;  %p1006_p7 = por %p1005_p4, %p1004_p3 }
  0x34   : > { %v450_v20 = vadd.f32 %v449_v14, %v448_v16 }
  0x35   : > { %v469_v32 = vmul.f32 %v862_v19, %v468_v29  ;;  %p1002_p2 = pneg %p1001_p1 }
  0x36   : > { %v452_v23 = vadd.f32 %v451_v18, %v450_v20 }
  0x37   : > { %v470_v35 = vadd.f32 %v862_v19, %v469_v32  ;;  %p1007_p8 = pnand %p1006_p7, %p1002_p2 }
  0x38   : > { %v454_v26 = vadd.f32 %v453_v22, %v452_v23 }
  0x39   : > { %v472_v38 = vsel %vm471_vm3, %v862_v19, %v470_v35 }
  0x3a   : > { %v456_v28 = vadd.f32 %v455_v24, %v454_v26 }
  0x3c   : > { %v459_v30 = vadd.f32 %v458_v27, %v456_v28 }
  0x3e   : > { %v460_v31 = vrot.slane %v459_v30, 4 }
  0x40   : > { %v461_v33 = vadd.f32 %v460_v31, %v459_v30 }
  0x42   : > { %v462_v34 = vrot.slane %v461_v33, 2 }
  0x44   : > { %v463_v36 = vadd.f32 %v462_v34, %v461_v33 }
  0x46   : > { %v464_v37 = vrot.slane %v463_v36, 1 }
  0x48   : > { %v465_v39 = vadd.f32 %v464_v37, %v463_v36 }
  0x4a   : > { %v473_v40 = vmul.f32 %v472_v38, %v465_v39 }
  0x4c   : > { %v474_v41 = vpack.c.bf16 %v473_v40, %v473_v40 }
  0x4e   : > { %734 = vmatmul.msk.bf16.vlgmr.msra.gmra.mxu0 %vm445_vm1, %v474_v41 }
  0xad   : > { %v533_v52 = vpop.f32.mrf.mxu1 }
  0xb5   : > { %v535_v53 = vpop.f32.mrf.mxu1 }
  0xcb   : > { %v492_v46 = vpop.f32.mrf.mxu0 }
  0xcc   : > { %v497_v48 = vmul.f32 %v496_v45, %v492_v46 }
  0xce   : > { %v499_v49 = vadd.f32 %v498_v47, %v497_v48 }
  0xd0   : > { %v501_v50 = vpack.c.bf16 %v499_v49, %v499_v49 }
  0xd2   : > { %748 = vmatmul.msk.bf16.vlgmr.msra.gmra.mxu2 %vm543_vm5, %v501_v50 }
  0xd3   : > { %v494_v51 = vpop.f32.mrf.mxu0 }
 0x155   : > { %v556_v56 = vpop.f32.mrf.mxu2 }
 0x156   : > { %v557_v58 = vadd.f32 %v556_v56, %v533_v52 }
 0x158   : > { %v561_v59 = vadd.f32 %v560_v57, %v557_v58 }
 0x15a   : > { %v562_v60 = vadd.f32 3.0, %v561_v59 }
 0x15c   : > { %v563_v61 = vmax.f32 %v562_v60, 0.0 }
 0x15d   : > { %v558_v62 = vpop.f32.mrf.mxu2 }
 0x15e   : > { %v564_v63 = vmin.f32 %v563_v61, 6.0 }
 0x160   : > { %v565_v0 = vmul.f32 %v564_v63, %v561_v59 }
 0x162   : > { %v566_v1 = vmul.f32 0.16666667, %v565_v0 }
 0x164   : > { %v567_v2 = vpack.c.bf16 %v566_v1, %v566_v1 }
 0x166   : > { %757 = vmatmul.msk.bf16.vlgmr.msra.gmra.mxu3 %vm520_vm4, %v567_v2 }
 0x1e9   : > { %v597_v4 = vpop.f32.mrf.mxu3 }
 0x1ea   : > { %v598_v5 = vadd.f32 %v597_v4, %v572_v3 }
 0x1ec   : > { %602 = vst.msk [vmem:[%s421_s27] sm:$0x1] %vm601_vm6, %v598_v5 }
 0x1ed   : > { %1010 = shalt.err (!%p1007_p8)
}
 0x1ee   : > { %796 = dma.vmem_to_hbm [thread:$0]  (%p1157_p5), %s615_s29, 16, %s617_s11, %s604_s12  }
 0x1f1   : > { %v599_v6 = vpop.f32.mrf.mxu3 }
 0x1f2 PF: > { %p823_p9 = scmp.ge.s32.totalorder %s1057_s16, 2  ;;  %s628_s25 = sand.u32 1, %s1045_s13  }
 0x1f3   : > { %s629_s28 = scalar_lea.sflag [#allocation4], %s628_s25 }
 0x1f4   : > { %p812_p10 = pnand %p823_p9, %p1161_p6 }
 0x1f6   : > { %p813_p11 = pneg %p812_p10 }
 0x1f8   : > { %1040 = dma.done.wait (%p813_p11), %s629_s28, 16  }
 0x1f9   : > { %1042 = vsyncadd (%p813_p11), %s629_s28, 4294967280  ;;  %s1307_s30 = sld [smem:[#allocation15_spill]]  ;;  %p23_p12 = scmp.ge.s32.totalorder %s1144_s19, 4  }
 0x1fa   : > { %s1308_s15 = sld [smem:[#allocation16_spill]]  ;;  %s1309_s13 = smov %s1049_s14 }
 0x1fb   : > { %s1311_s16 = smov %s1144_s19  ;;  %25 = sbr.rel (!%p23_p12) target bundleno = 9 (0x9), region = 115 }
 0x1ff   : > { %s1310_s14 = smov %s1307_s30 }
 0x200   :  { %634 = vsyncpa [#allocation3], 1 }
 0x201   :  { %636 = vsyncpa [#allocation3 + $0x1], 1 }
 0x202   :  { %637 = vsyncpa [#allocation6], 1 }
 0x203   :  { %638 = vsyncpa [#allocation9], 1 }
 0x204   :  { %639 = vsyncpa [#allocation4], 1 }
 0x205   :  { %641 = vsyncpa [#allocation4 + $0x1], 1 }

// kernel: _lambda_.12
= control target key start
LH: loop header
LB: loop body
LE: loop exit
PB: predicated region body
PF: predicated region fallthrough
CT: control target
= control target key end

     0   :  { %s2527_s0 = inlined_call_operand.vmem [shape: bf16[2,4,32], index: 0, kind: input, shape index: {}]   ;;  %s2528_s1 = inlined_call_operand.vmem [shape: bf16[2,49,8], index: 1, kind: input, shape index: {}]   ;;  %s2529_s2 = inlined_call_operand.vmem [shape: bf16[32,32], index: 2, kind: input, shape index: {}]   ;;  %s2530_s3 = inlined_call_operand.vmem [shape: bf16[8,32], index: 3, kind: input, shape index: {}]   ;;  %s2531_s4 = inlined_call_operand.vmem [shape: bf16[8,32], index: 4, kind: input, shape index: {}]   ;;  %s2532_s5 = inlined_call_operand.vmem [shape: bf16[32,32], index: 5, kind: input, shape index: {}]   ;;  %s2533_s6 = inlined_call_operand.hbm [shape: f32[1,32], index: 6, kind: input, shape index: {}]   ;;  %s2534_s7 = inlined_call_operand.hbm [shape: f32[1,32], index: 7, kind: input, shape index: {}]   ;;  %s2535_s8 = inlined_call_operand.vmem [shape: bf16[32,32], index: 8, kind: input, shape index: {}]   ;;  %s2536_s9 = inlined_call_operand.vmem [shape: bf16[32,32], index: 9, kind: input, shape index: {}]   ;;  %s2537_s10 = inlined_call_operand.vmem [shape: bf16[32,32], index: 10, kind: input, shape index: {}]   ;;  %s2538_s11 = inlined_call_operand.vmem [shape: bf16[32,32], index: 11, kind: input, shape index: {}]   ;;  %s2539_s12 = inlined_call_operand.hbm [shape: f32[1,32], index: 12, kind: input, shape index: {}]   ;;  %s2540_s13 = inlined_call_operand.hbm [shape: f32[1,32], index: 13, kind: input, shape index: {}]   ;;  %s2541_s14 = inlined_call_operand.vmem [shape: bf16[32,64], index: 14, kind: input, shape index: {}]   ;;  %s2542_s15 = inlined_call_operand.hbm [shape: f32[1,64], index: 15, kind: input, shape index: {}]   ;;  %s2543_s16 = inlined_call_operand.vmem [shape: bf16[64,32], index: 16, kind: input, shape index: {}]   ;;  %s2544_s17 = inlined_call_operand.hbm [shape: f32[1,32], index: 17, kind: input, shape index: {}]   ;;  %s2545_s18 = inlined_call_operand.vmem [shape: bf16[2,4,32], index: 18, kind: output, shape index: {}]  }
   0x1   :  { %2547 = sst [smem:[#allocation16_spill]] %s2527_s0 }
   0x2   :  { %2548 = sst [smem:[#allocation17_spill]] %s2528_s1 }
   0x3   :  { %2549 = sst [smem:[#allocation18_spill]] %s2529_s2 }
   0x4   :  { %2550 = sst [smem:[#allocation19_spill]] %s2533_s6 }
   0x5   :  { %2551 = sst [smem:[#allocation20_spill]] %s2534_s7 }
   0x6   :  { %2552 = sst [smem:[#allocation21_spill]] %s2540_s13 }
   0x7   :  { %23 = vsyncpa [#allocation3], 0 }
   0x8   :  { %24 = vsyncpa [#allocation5], 0 }
   0x9   :  { %25 = vsyncpa [#allocation8], 0 }
   0xa   :  { %26 = vsyncpa [#allocation11], 0  ;;  %s2294_s27 = smov 0  }
   0xb LB: > { %s2553_s7 = sld [smem:[#allocation20_spill]]  ;;  %s2303_s0 = sadd.s32 4294967295, %s2187_s27   ;;  %s2187_s27 = sphi %s2294_s27, %s32_s27  }
   0xc   : > { %p1704_p0 = scmp.ge.s32.totalorder %s2187_s27, 1  ;;  %p451_p1 = scmp.lt.s32.totalorder %s2187_s27, 3 }
   0xd   : > { %p1897_p2 = scmp.eq.s32.totalorder %s2303_s0, 0  ;;  %s2189_s1 = smov [#allocation4]  }
   0xe   : > { %p2308_p3 = pnand %p1704_p0, %p451_p1  ;;  %s489_s20 = sshll.u32 %s2189_s1, 4  ;;  %s490_s20 = int_to_ptr.vmem [resolvable:$true] %s489_s20 }
   0xf   : > { %s2555_s13 = sld [smem:[#allocation21_spill]]  ;;  %s2190_s28 = smov [#allocation7]  }
  0x10   : > { %p1878_p4 = pneg %p2308_p3  ;;  %s2556_s6 = sld [smem:[#allocation19_spill]] }
  0x11   : > { %s487_s30 = sshll.u32 %s2553_s7, 4  ;;  %s525_s29 = sshll.u32 %s2190_s28, 4  ;;  %s488_s30 = int_to_ptr.hbm [resolvable:$true] %s487_s30  ;;  %s526_s29 = int_to_ptr.vmem [resolvable:$true] %s525_s29 }
  0x12   : > { %p2322_p5 = pnand %p1897_p2, %p1878_p4  ;;  %s2191_s1 = smov [#allocation2]  }
  0x13   : > { %s477_s21 = sshll.u32 %s2191_s1, 4  ;;  %s511_s24 = sshll.u32 %s2539_s12, 4  ;;  %s478_s21 = int_to_ptr.vmem [resolvable:$true] %s477_s21  ;;  %s512_s24 = int_to_ptr.hbm [resolvable:$true] %s511_s24 }
  0x14   : > { %1884 = dma.hbm_to_vmem [thread:$0]  (!%p2322_p5), %s488_s30, 16, %s490_s20, [#allocation5]  }
  0x15   : > { %s523_s2 = sshll.u32 %s2555_s13, 4  ;;  %s538_s7 = sshll.u32 %s2542_s15, 4  ;;  %s524_s2 = int_to_ptr.hbm [resolvable:$true] %s523_s2  ;;  %s539_s7 = int_to_ptr.hbm [resolvable:$true] %s538_s7 }
  0x16   : > { %s475_s25 = sshll.u32 %s2556_s6, 4  ;;  %s2192_s13 = smov [#allocation6]   ;;  %s476_s25 = int_to_ptr.hbm [resolvable:$true] %s475_s25 }
  0x17   : > { %1890 = dma.hbm_to_vmem [thread:$0]  (!%p2322_p5), %s524_s2, 16, %s526_s29, [#allocation8]  }
  0x18   : > { %1881 = dma.hbm_to_vmem [thread:$0]  (!%p2322_p5), %s476_s25, 16, %s478_s21, [#allocation3]  }
  0x19   : > { %s513_s30 = sshll.u32 %s2192_s13, 4  ;;  %s2193_s20 = smov [#allocation9]   ;;  %s514_s30 = int_to_ptr.vmem [resolvable:$true] %s513_s30 }
  0x1a   : > { %1887 = dma.hbm_to_vmem [thread:$0]  (!%p2322_p5), %s512_s24, 16, %s514_s30, [#allocation5]  }
  0x1b   : > { %s540_s2 = sshll.u32 %s2193_s20, 4  ;;  %s553_s22 = sshll.u32 %s2544_s17, 4  ;;  %s541_s2 = int_to_ptr.vmem [resolvable:$true] %s540_s2  ;;  %s554_s22 = int_to_ptr.hbm [resolvable:$true] %s553_s22 }
  0x1c   : > { %1893 = dma.hbm_to_vmem [thread:$0]  (!%p2322_p5), %s539_s7, 16, %s541_s2, [#allocation8]  }
  0x1d   : > { %s2194_s25 = smov [#allocation10]   ;;  %583 = sbr.rel (%p2308_p3) target bundleno = 2979 (0xba3), region = 92 }
  0x1e   : > { %s555_s6 = sshll.u32 %s2194_s25, 4  ;;  %s556_s6 = int_to_ptr.vmem [resolvable:$true] %s555_s6 }
  0x1f   : > { %1896 = dma.hbm_to_vmem [thread:$0]  (!%p2322_p5), %s554_s22, 16, %s556_s6, [#allocation11]  }
  0x22   : > { %2170 = dma.done.wait (%p1897_p2), [#allocation3], 16  }
  0x23   : > { %2172 = vsyncadd (%p1897_p2), [#allocation3], 4294967280 }
  0x24   : > { %2174 = dma.done.wait (%p1897_p2), [#allocation5], 32  }
  0x25   : > { %2176 = vsyncadd (%p1897_p2), [#allocation5], 4294967264 }
  0x26   : > { %2178 = dma.done.wait (%p1897_p2), [#allocation8], 32  }
  0x27   : > { %2180 = vsyncadd (%p1897_p2), [#allocation8], 4294967264 }
  0x28   : > { %2182 = dma.done.wait (%p1897_p2), [#allocation11], 16  }
  0x29   : > { %2184 = vsyncadd (%p1897_p2), [#allocation11], 4294967280  ;;  %p666_p6 = scmp.lt.s32.totalorder %s2303_s0, 1  ;;  %vm754_vm0 = vcmask 1043456   ;;  %s2558_s26 = sld [smem:[#allocation17_spill]]  ;;  %vm741_vm1 = vcmask 64512  }
  0x2a   : > { %v722_v0 = vld [vmem:[%s2530_s3] sm:$0xf]  ;;  %s2559_s20 = sld [smem:[#allocation18_spill]]  ;;  %vm705_vm2 = vcmask 261120   ;;  %s2195_s13 = smov 112   ;;  %vm926_vm3 = vcmask 130048  }
  0x2b   : > { %s2562_s0 = smov (!%p666_p6, %s2303_s0), 1  ;;  %v756_v1 = vsel %vm754_vm0, %v722_v0, 0  ;;  %s2560_s6 = sld [smem:[#allocation16_spill]]  ;;  %v786_v34 = vld [vmem:[%s2531_s4] sm:$0xf]  ;;  %vm1003_vm4 = vcmask 396288  }
  0x2c   : > { %s1853_s7 = smul.u32 28, %s2562_s0  ;;  %765 = vmatpush.bf16.msra.mxu1 %v756_v1  ;;  %s1719_s2 = sshll.u32 %s2562_s0, 1  ;;  %v788_v37 = vsel %vm754_vm0, %v786_v34, 0  ;;  %vm1053_vm5 = vcmask 1040384   ;;  %vm1049_vm6 = vcmask 400384   ;;  %vm1153_vm7 = vcmask 257024  }
  0x2d   : > { %797 = vmatpush.bf16.msra.mxu2 %v788_v37  ;;  %s2197_s24 = smov 16   ;;  %vm1369_vm12 = vcmask 1041408   ;;  %vm1340_vm13 = vcmask 27648   ;;  %vm1365_vm14 = vcmask 31744  }
  0x2f   : > { %s674_s21 = scalar_lea.vmem %s2558_s26, %s1853_s7 }
  0x30   : > { %v1832_v2 = vld [vmem:[%s674_s21] sm:$0xff]  ;;  %v2378_v3 = vld [vmem:[%s674_s21 + $0x8] sm:$0xff]  ;;  %v1834_v7 = vld [vmem:[%s674_s21 + $0x10] sm:$0xff] }
  0x31   : > { %1743 = vmatmul.msk.bf16.vlgmr.msra.gmra.mxu1 %vm741_vm1, %v1832_v2  ;;  %v1836_v4 = vld [vmem:[%s2559_s20 + $0x8] sm:$0xff]  ;;  %v1835_v5 = vld [vmem:[%s2559_s20] sm:$0xff]  ;;  %s669_s7 = scalar_lea.vmem %s2560_s6, %s1719_s2  ;;  %v688_v8 = vld [vmem:[%s674_s21 + $0x18] sm:$0x1]  ;;  %1747 = vmatmul.msk.bf16.vlgmr.msra.gmra.mxu2 %vm741_vm1, %v1832_v2 }
  0x32   : > { %715 = vmatpush.bf16.msra.mxu0 %v1836_v4  ;;  %v2394_v6 = vld [vmem:[%s669_s7] sm:$0x3]  ;;  %v736_v9 = vunpack.c.l.b16 %v688_v8 }
  0x34   : > { %v740_v10 = vpack.c.b16 %v736_v9, %v736_v9 }
  0x36   : > { %716 = vmatpush.bf16.msra.mxu0 %v1835_v5 }
  0x39   : > { %1730 = vmatmul.msk.bf16.vlgmr.msra.gmra.mxu0 %vm705_vm2, %v2394_v6 }
  0x41   : > { %1744 = vmatmul.msk.bf16.gmra.mxu1 %vm741_vm1, %v2378_v3  ;;  %1748 = vmatmul.msk.bf16.gmra.mxu2 %vm741_vm1, %v2378_v3 }
  0x51   : > { %1745 = vmatmul.msk.bf16.gmra.mxu1 %vm741_vm1, %v1834_v7  ;;  %1749 = vmatmul.msk.bf16.gmra.mxu2 %vm741_vm1, %v1834_v7 }
  0x61   : > { %1746 = vmatmul.msk.bf16.gmra.mxu1 %vm741_vm1, %v740_v10  ;;  %1750 = vmatmul.msk.bf16.gmra.mxu2 %vm741_vm1, %v740_v10 }
  0xae   : > { %v767_v11 = vpop.f32.mrf.mxu1 }
  0xaf   : > { %v852_v12 = vpack.c.bf16 %v767_v11, %v767_v11 }
  0xb1   : > { %v915_v15 = vunpack.c.l.b16 %v852_v12 }
  0xb6   : > { %v769_v13 = vpop.f32.mrf.mxu1  ;;  %v718_v25 = vpop.f32.mrf.mxu0 }
  0xb7   : > { %v853_v14 = vpack.c.bf16 %v769_v13, %v769_v13  ;;  %v1937_v22 = vpack.i.bf16 %v769_v13, %v767_v11  ;;  %819 = vrot.lane.b32.xlu2 %v718_v25, %s2195_s13  ;;  %v822_v48 = vpack.c.bf16 %v718_v25, %v718_v25 }
  0xb9   : > { %v916_v16 = vunpack.c.l.b16 %v853_v14 }
  0xbb   : > { %v922_v17 = vpack.c.b16 %v916_v16, %v915_v15 }
  0xbd   : > { %v931_v47 = vsel %vm926_vm3, %v922_v17, 0  ;;  %v799_v17 = vpop.f32.mrf.mxu2 }
  0xbe   : > { %v772_v18 = vpop.f32.mrf.mxu1  ;;  %v720_v36 = vpop.f32.mrf.mxu0 }
  0xbf   : > { %v854_v41 = vpack.c.bf16 %v772_v18, %v772_v18 }
  0xc1   : > { %v917_v44 = vunpack.c.l.b16 %v854_v41 }
  0xc6   : > { %v774_v19 = vpop.f32.mrf.mxu1 }
  0xc7   : > { %v1932_v20 = vpack.i.bf16 %v774_v19, %v772_v18  ;;  %v855_v39 = vpack.c.bf16 %v774_v19, %v774_v19 }
  0xc9   : > { %1933 = vrot.lane.b32.xlu1 %v1932_v20, %s2195_s13  ;;  %v918_v42 = vunpack.c.l.b16 %v855_v39 }
  0xcb   : > { %v923_v45 = vpack.c.b16 %v918_v42, %v917_v44  ;;  %v2196_v42 = vmov 0  }
  0xcd   : > { %v934_v46 = vsel %vm926_vm3, %v923_v45, 0 }
  0xce   : > { %v777_v21 = vpop.f32.mrf.mxu1 }
  0xcf   : > { %v856_v29 = vpack.c.bf16 %v777_v21, %v777_v21 }
  0xd1   : > { %1938 = vrot.lane.b32.xlu1 %v1937_v22, %s2195_s13  ;;  %v919_v38 = vunpack.c.l.b16 %v856_v29 }
  0xd6   : > { %v779_v23 = vpop.f32.mrf.mxu1 }
  0xd7   : > { %v857_v27 = vpack.c.bf16 %v779_v23, %v779_v23  ;;  %v1927_v31 = vpack.i.bf16 %v779_v23, %v777_v21  ;;  %v801_v21 = vpop.f32.mrf.mxu2 }
  0xd9   : > { %v920_v32 = vunpack.c.l.b16 %v857_v27 }
  0xdb   : > { %v924_v40 = vpack.c.b16 %v920_v32, %v919_v38 }
  0xdd   : > { %v937_v43 = vsel %vm926_vm3, %v924_v40, 0 }
  0xde   : > { %v782_v24 = vpop.f32.mrf.mxu1 }
  0xdf   : > { %v858_v26 = vpack.c.bf16 %v782_v24, %v782_v24  ;;  %843 = vrot.lane.b32.xlu0 %v782_v24, %s2195_s13  ;;  %v804_v22 = vpop.f32.mrf.mxu2 }
  0xe0   : > { %v896_v40 = vpack.c.bf16 %v804_v22, %v804_v22 }
  0xe1   : > { %v921_v28 = vunpack.c.l.b16 %v858_v26 }
  0xe3   : > { %v925_v30 = vpack.c.b16 %v921_v28, %v921_v28 }
  0xe5   : > { %v940_v33 = vsel %vm926_vm3, %v925_v30, 0 }
  0xe6   : > { %v784_v35 = vpop.f32.mrf.mxu1  ;;  %946 = vmatpush.bf16.xpose.msra.mxu3 %v940_v33 }
  0xe7   : > { %1928 = vrot.lane.b32.xlu0 %v1927_v31, %s2195_s13  ;;  %v806_v24 = vpop.f32.mrf.mxu2 }
  0xe8   : > { %v1952_v34 = vpack.i.bf16 %v799_v17, %v806_v24  ;;  %v897_v41 = vpack.c.bf16 %v806_v24, %v806_v24 }
  0xee   : > { %947 = vmatpush.bf16.xpose.msra.mxu3 %v937_v43  ;;  %v1055_v43 = vsel %vm1053_vm5, 65535, %v2196_v42 }
  0xef   : > { %v809_v28 = vpop.f32.mrf.mxu2 }
  0xf0   : > { %v898_v38 = vpack.c.bf16 %v809_v28, %v809_v28 }
  0xf2   : > { %v1039_v45 = vunpack.c.l.b16 %v898_v38 }
  0xf6   : > { %948 = vmatpush.bf16.xpose.msra.mxu3 %v934_v46 }
  0xf7   : > { %v811_v29 = vpop.f32.mrf.mxu2 }
  0xf8   : > { %v1947_v32 = vpack.i.bf16 %v804_v22, %v811_v29  ;;  %v899_v39 = vpack.c.bf16 %v811_v29, %v811_v29 }
  0xfa   : > { %v1040_v46 = vunpack.c.l.b16 %v899_v39 }
  0xfe   : > { %949 = vmatpush.bf16.xpose.msra.mxu3 %v931_v47  ;;  %v1037_v47 = vunpack.c.l.b16 %v896_v40 }
  0xff   : > { %v814_v30 = vpop.f32.mrf.mxu2 }
 0x100   : > { %v1942_v31 = vpack.i.bf16 %v809_v28, %v814_v30  ;;  %v900_v35 = vpack.c.bf16 %v814_v30, %v814_v30 }
 0x102   : > { %1943 = vrot.lane.b32.xlu1 %v1942_v31, %s2195_s13  ;;  %v1041_v36 = vunpack.c.l.b16 %v900_v35 }
 0x104   : > { %v1045_v37 = vpack.c.b16 %v1041_v36, %v1041_v36 }
 0x105   : > { %1751 = vmatmul.msk.bf16.vlgmr.msra.gmra.mxu3 %vm926_vm3, %v822_v48  ;;  %v1038_v48 = vunpack.c.l.b16 %v897_v41 }
 0x106   : > { %v1057_v44 = vand.u32 %v1055_v43, %v1045_v37 }
 0x107   : > { %v816_v33 = vpop.f32.mrf.mxu2 }
 0x108   : > { %1063 = vmatpush.bf16.msrb.mxu3 %v1057_v44 }
 0x10a   : > { %1948 = vrot.lane.b32.xlu1 %v1947_v32, %s2195_s13 }
 0x111   : > { %v820_v19 = vpop.permute.xlu2 %819 }
 0x112   : > { %v823_v20 = vpack.c.bf16 %v820_v19, %v820_v19  ;;  %1953 = vrot.lane.b32.xlu1 %v1952_v34, %s2195_s13 }
 0x13b   : > { %v1934_v52 = vpop.permute.xlu1 %1933 }
 0x13c   : > { %v1936_v55 = vunpack.i.h.bf16 %v1934_v52  ;;  %v1935_v57 = vunpack.i.l.bf16 %v1934_v52  ;;  %v1043_v52 = vpack.c.b16 %v1038_v48, %v1037_v47 }
 0x13e   : > { %v862_v62 = vpack.c.bf16 %v1936_v55, %v1936_v55  ;;  %v861_v63 = vpack.c.bf16 %v1935_v57, %v1935_v57 }
 0x140   : > { %v965_v4 = vunpack.c.l.b16 %v862_v62  ;;  %v964_v5 = vunpack.c.l.b16 %v861_v63 }
 0x142   : > { %v970_v12 = vpack.c.b16 %v965_v4, %v964_v5 }
 0x143   : > { %v1939_v2 = vpop.permute.xlu1 %1938 }
 0x144   : > { %v1941_v7 = vunpack.i.h.bf16 %v1939_v2  ;;  %v1940_v8 = vunpack.i.l.bf16 %v1939_v2  ;;  %v980_v15 = vsel %vm926_vm3, %v970_v12, 0 }
 0x146   : > { %v860_v10 = vpack.c.bf16 %v1941_v7, %v1941_v7  ;;  %v859_v11 = vpack.c.bf16 %v1940_v8, %v1940_v8 }
 0x148   : > { %v963_v13 = vunpack.c.l.b16 %v860_v10  ;;  %v962_v14 = vunpack.c.l.b16 %v859_v11 }
 0x14a   : > { %v969_v16 = vpack.c.b16 %v963_v13, %v962_v14 }
 0x14c   : > { %v977_v18 = vsel %vm926_vm3, %v969_v16, 0 }
 0x151   : > { %v844_v49 = vpop.permute.xlu0 %843 }
 0x152   : > { %v865_v50 = vpack.c.bf16 %v844_v49, %v844_v49  ;;  %v894_v49 = vpack.c.bf16 %v799_v17, %v799_v17 }
 0x154   : > { %v968_v51 = vunpack.c.l.b16 %v865_v50  ;;  %v895_v50 = vpack.c.bf16 %v801_v21, %v801_v21 }
 0x156   : > { %v972_v53 = vpack.c.b16 %v968_v51, %v968_v51  ;;  %v1044_v51 = vpack.c.b16 %v1040_v46, %v1039_v45  ;;  %v1838_v46 = vld [vmem:[%s2532_s5 + $0x8] sm:$0xff] }
 0x158   : > { %v986_v54 = vsel %vm926_vm3, %v972_v53, 0  ;;  %1064 = vmatpush.bf16.msrb.mxu3 %v1044_v51  ;;  %v1035_v53 = vunpack.c.l.b16 %v894_v49  ;;  %v1837_v49 = vld [vmem:[%s2532_s5] sm:$0xff] }
 0x159   : > { %992 = vmatpush.bf16.xpose.msrb.mxu0 %v986_v54  ;;  %v1929_v56 = vpop.permute.xlu0 %1928  ;;  %v1036_v54 = vunpack.c.l.b16 %v895_v50 }
 0x15a   : > { %v1931_v58 = vunpack.i.h.bf16 %v1929_v56  ;;  %v1930_v59 = vunpack.i.l.bf16 %v1929_v56 }
 0x15b   : > { %v1042_v55 = vpack.c.b16 %v1036_v54, %v1035_v53  ;;  %v681_v53 = vunpack.c.l.bf16 %v2394_v6 }
 0x15c   : > { %v864_v60 = vpack.c.bf16 %v1931_v58, %v1931_v58  ;;  %v863_v61 = vpack.c.bf16 %v1930_v59, %v1930_v59  ;;  %1065 = vmatpush.bf16.msrb.mxu3 %v1043_v52 }
 0x15e   : > { %v967_v0 = vunpack.c.l.b16 %v864_v60  ;;  %v966_v1 = vunpack.c.l.b16 %v863_v61 }
 0x160   : > { %v971_v3 = vpack.c.b16 %v967_v0, %v966_v1  ;;  %1066 = vmatpush.bf16.msrb.mxu3 %v1042_v55 }
 0x162   : > { %v983_v9 = vsel %vm926_vm3, %v971_v3, 0 }
 0x163   : > { %993 = vmatpush.bf16.xpose.msrb.mxu0 %v983_v9 }
 0x164   : > { %1143 = vmatpush.bf16.msra.mxu3 %v1838_v46 }
 0x168   : > { %1144 = vmatpush.bf16.msra.mxu3 %v1837_v49 }
 0x16b   : > { %994 = vmatpush.bf16.xpose.msrb.mxu0 %v980_v15 }
 0x173   : > { %995 = vmatpush.bf16.xpose.msrb.mxu0 %v977_v18 }
 0x174   : > { %v1944_v1 = vpop.permute.xlu1 %1943 }
 0x175   : > { %v1945_v2 = vunpack.i.l.bf16 %v1944_v1  ;;  %v1946_v9 = vunpack.i.h.bf16 %v1944_v1 }
 0x177   : > { %v907_v3 = vpack.c.bf16 %v1945_v2, %v1945_v2  ;;  %v905_v11 = vpack.c.bf16 %v1946_v9, %v1946_v9  ;;  %v1841_v9 = vld [vmem:[%s2536_s9] sm:$0xff] }
 0x179   : > { %v1085_v4 = vunpack.c.l.b16 %v907_v3  ;;  %v1083_v14 = vunpack.c.l.b16 %v905_v11  ;;  %v1843_v11 = vld [vmem:[%s2537_s10] sm:$0xff] }
 0x17a   : > { %1752 = vmatmul.msk.bf16.vlgmr.msrb.gmra.mxu0 %vm926_vm3, %v823_v20 }
 0x17b   : > { %v1089_v5 = vpack.c.b16 %v1085_v4, %v1085_v4 }
 0x17c   : > { %v1949_v8 = vpop.permute.xlu1 %1948 }
 0x17d   : > { %v1097_v7 = vand.u32 %v1089_v5, %v1055_v43  ;;  %v1950_v10 = vunpack.i.l.bf16 %v1949_v8  ;;  %v1951_v12 = vunpack.i.h.bf16 %v1949_v8  ;;  %v1844_v8 = vld [vmem:[%s2537_s10 + $0x8] sm:$0xff] }
 0x17f   : > { %1103 = vmatpush.bf16.msra.mxu0 %v1097_v7  ;;  %v906_v13 = vpack.c.bf16 %v1950_v10, %v1950_v10  ;;  %v903_v15 = vpack.c.bf16 %v1951_v12, %v1951_v12  ;;  %v1839_v10 = vld [vmem:[%s2535_s8] sm:$0xff] }
 0x181   : > { %v1084_v16 = vunpack.c.l.b16 %v906_v13  ;;  %v1081_v19 = vunpack.c.l.b16 %v903_v15 }
 0x184   : > { %v1954_v17 = vpop.permute.xlu1 %1953 }
 0x185   : > { %v1955_v18 = vunpack.i.l.bf16 %v1954_v17 }
 0x187   : > { %v904_v20 = vpack.c.bf16 %v1955_v18, %v1955_v18 }
 0x188   : > { %v951_v23 = vpop.f32.mrf.mxu3 }
 0x189   : > { %v1001_v25 = vmul.f32 0.25, %v951_v23  ;;  %v1082_v22 = vunpack.c.l.b16 %v904_v20 }
 0x18b   : > { %v1004_v26 = vsel %vm1003_vm4, %v1001_v25, -inf  ;;  %v1087_v23 = vpack.c.b16 %v1082_v22, %v1081_v19 }
 0x18c   : > { %1005 = vmax.xlane.f32.xlu0 %v1004_v26  ;;  %v1956_v26 = vunpack.i.h.bf16 %v1954_v17 }
 0x18e   : > { %v901_v28 = vpack.c.bf16 %v1956_v26, %v1956_v26 }
 0x190   : > { %v953_v27 = vpop.f32.mrf.mxu3  ;;  %v1079_v30 = vunpack.c.l.b16 %v901_v28 }
 0x1f7   : > { %v997_v56 = vpop.f32.mrf.mxu0 }
 0x1f8   : > { %v1002_v57 = vmul.f32 0.25, %v997_v56 }
 0x1fa   : > { %v1007_v58 = vsel %vm1003_vm4, %v1002_v57, -inf }
 0x1fb   : > { %1008 = vmax.xlane.f32.xlu2 %v1007_v58  ;;  %v2198_v58 = vmov 32.0  }
 0x1ff   : > { %v1006_v59 = vpop.xlane.xlu0 %1005  ;;  %v999_v60 = vpop.f32.mrf.mxu0 }
 0x200   : > { %v1010_v61 = vsub.f32 %v1001_v25, %v1006_v59  ;;  %v1842_v59 = vld [vmem:[%s2536_s9 + $0x8] sm:$0xff] }
 0x201   : > { %v1840_v60 = vld [vmem:[%s2535_s8 + $0x8] sm:$0xff]  ;;  %1246 = vmatpush.bf16.msrb.mxu2 %v1842_v59 }
 0x202   : > { %v1012_v62 = vmul.f32 1.442695, %v1010_v61  ;;  %1217 = vmatpush.bf16.msrb.mxu1 %v1840_v60 }
 0x204   : > { %1963 = vpow2.f32 %v1012_v62 }
 0x205   : > { %1247 = vmatpush.bf16.msrb.mxu2 %v1841_v9 }
 0x206   : > { %1218 = vmatpush.bf16.msrb.mxu1 %v1839_v10 }
 0x20a   : > { %v1964_v63 = vpop.eup %1963 }
 0x20b   : > { %v1016_v0 = vsel %vm1003_vm4, %v1964_v63, 0.0 }
 0x20c   : > { %1017 = vadd.xlane.f32.xlu0 %v1016_v0 }
 0x213   : > { %875 = vrot.lane.b32.xlu2 %v801_v21, %s2195_s13  ;;  %v1088_v21 = vpack.c.b16 %v1084_v16, %v1083_v14 }
 0x215   : > { %1104 = vmatpush.bf16.msra.mxu0 %v1088_v21  ;;  %v1957_v21 = vld [vmem:[#allocation2] ss:$0 sm:$0xff] }
 0x219   : > { %1105 = vmatpush.bf16.msra.mxu0 %v1087_v23 }
 0x26e   : > { %v1009_v24 = vpop.xlane.xlu2 %1008 }
 0x26f   : > { %v1011_v25 = vsub.f32 %v1002_v57, %v1009_v24  ;;  %v1958_v24 = vld [vmem:[#allocation4] ss:$0 sm:$0xff] }
 0x271   : > { %v1014_v27 = vmul.f32 1.442695, %v1011_v25 }
 0x273   : > { %1965 = vpow2.f32 %v1014_v27 }
 0x276   : > { %v876_v29 = vpop.permute.xlu2 %875 }
 0x277   : > { %v902_v31 = vpack.c.bf16 %v876_v29, %v876_v29 }
 0x279   : > { %v1966_v32 = vpop.eup %1965  ;;  %v1080_v33 = vunpack.c.l.b16 %v902_v31 }
 0x27a   : > { %v1019_v34 = vsel %vm1003_vm4, %v1966_v32, 0.0 }
 0x27b   : > { %v1086_v35 = vpack.c.b16 %v1080_v33, %v1079_v30  ;;  %1020 = vadd.xlane.f32.xlu1 %v1019_v34 }
 0x27d   : > { %1106 = vmatpush.bf16.msra.mxu0 %v1086_v35 }
 0x27f   : > { %v1018_v36 = vpop.xlane.xlu0 %1017 }
 0x280   : > { %1967 = vrcp.f32 %v1018_v36 }
 0x281   : > { %1275 = vmatpush.bf16.msrb.mxu0 %v1844_v8 }
 0x285   : > { %1276 = vmatpush.bf16.msrb.mxu0 %v1843_v11 }
 0x286   : > { %v1968_v37 = vpop.eup %1967 }
 0x287   : > { %v1024_v38 = vmul.f32 %v1968_v37, %v1964_v63 }
 0x289   : > { %v1026_v39 = vpack.c.bf16 %v1024_v38, %v1024_v38 }
 0x28b   : > { %1753 = vmatmul.msk.bf16.vlgmr.msrb.gmra.mxu3 %vm1049_vm6, %v1026_v39 }
 0x2ee   : > { %v1021_v40 = vpop.xlane.xlu1 %1020 }
 0x2ef   : > { %1969 = vrcp.f32 %v1021_v40 }
 0x2f0   : > { %1971 = vrcp.f32 %v2198_v58 }
 0x2f5   : > { %v1970_v41 = vpop.eup %1969 }
 0x2f6   : > { %v1025_v42 = vmul.f32 %v1970_v41, %v1966_v32  ;;  %v1972_v6 = vpop.eup %1971 }
 0x2f7   : > { %v1158_v61 = vmul.f32 32.0, %v1972_v6  ;;  %vm1162_vm8 = vweird.f32 %v1972_v6 }
 0x2f8   : > { %v1027_v43 = vpack.c.bf16 %v1025_v42, %v1025_v42 }
 0x2f9   : > { %v1159_v62 = vsub.f32 1.0, %v1158_v61 }
 0x2fa   : > { %1754 = vmatmul.msk.bf16.vlgmr.msra.gmra.mxu0 %vm1049_vm6, %v1027_v43 }
 0x2fb   : > { %v1160_v63 = vmul.f32 %v1972_v6, %v1159_v62 }
 0x2fd   : > { %v1161_v0 = vadd.f32 %v1972_v6, %v1160_v63 }
 0x2ff   : > { %v2452_v1 = vsel %vm1162_vm8, %v1972_v6, %v1161_v0 }
 0x30e   : > { %v1068_v44 = vpop.f32.mrf.mxu3 }
 0x316   : > { %v1070_v45 = vpop.f32.mrf.mxu3 }
 0x377   : > { %v1108_v47 = vpop.f32.mrf.mxu0 }
 0x378   : > { %1113 = vrot.lane.b32.xlu0 %v1108_v47, %s2197_s24 }
 0x37f   : > { %v1110_v48 = vpop.f32.mrf.mxu0 }
 0x3ea   : > { %v1114_v50 = vpop.permute.xlu0 %1113 }
 0x3eb   : > { %v1116_v51 = vsel %vm926_vm3, %v1068_v44, %v1114_v50 }
 0x3ec   : > { %v1117_v52 = vpack.c.bf16 %v1116_v51, %v1116_v51 }
 0x3ee   : > { %1763 = vmatmul.msk.bf16.vlgmr.msra.gmra.mxu3 %vm705_vm2, %v1117_v52 }
 0x471   : > { %v1146_v54 = vpop.f32.mrf.mxu3 }
 0x472   : > { %v2442_v55 = vadd.f32 %v1146_v54, %v681_v53 }
 0x474   : > { %v1154_v56 = vsel %vm1153_vm7, %v2442_v55, 0.0 }
 0x475   : > { %1155 = vadd.xlane.f32.xlu2 %v1154_v56 }
 0x479   : > { %v1148_v57 = vpop.f32.mrf.mxu3 }
 0x4e8   : > { %v1156_v2 = vpop.xlane.xlu2 %1155 }
 0x4e9   : > { %v1164_v3 = vmul.f32 %v2452_v1, %v1156_v2 }
 0x4eb   : > { %v1165_v4 = vsub.f32 %v2442_v55, %v1164_v3 }
 0x4ed   : > { %v1166_v5 = vmul.f32 %v1165_v4, %v1165_v4 }
 0x4ef   : > { %v1167_v7 = vsel %vm1153_vm7, %v1166_v5, 0.0 }
 0x4f0   : > { %1168 = vadd.xlane.f32.xlu1 %v1167_v7 }
 0x563   : > { %v1169_v12 = vpop.xlane.xlu1 %1168 }
 0x564   : > { %v1170_v13 = vmul.f32 %v1169_v12, %v2452_v1 }
 0x566   : > { %v1171_v14 = vadd.f32 1e-05, %v1170_v13  ;;  %v1846_v13 = vld [vmem:[%s2538_s11 + $0x8] sm:$0xff] }
 0x568   : > { %1973 = vrsqrt.f32 %v1171_v14  ;;  %vm1178_vm10 = vweird.f32 %v1171_v14 }
 0x56e   : > { %v1974_v15 = vpop.eup %1973 }
 0x56f   : > { %v1173_v16 = vmul.f32 %v1974_v15, %v1171_v14  ;;  %vm1179_vm9 = vweird.f32 %v1974_v15 }
 0x570   : > { %vm1180_vm11 = vmor %vm1178_vm10, %vm1179_vm9 }
 0x571   : > { %v1174_v17 = vmul.f32 %v1974_v15, %v1173_v16  ;;  %v1845_v16 = vld [vmem:[%s2538_s11] sm:$0xff] }
 0x573   : > { %v1175_v18 = vmul.f32 0.5, %v1174_v17 }
 0x575   : > { %v1176_v19 = vsub.f32 1.5, %v1175_v18 }
 0x577   : > { %v1177_v20 = vmul.f32 %v1974_v15, %v1176_v19 }
 0x579   : > { %v1181_v22 = vsel %vm1180_vm11, %v1974_v15, %v1177_v20 }
 0x57a   : > { %v1182_v23 = vmul.f32 %v1181_v22, %v1165_v4 }
 0x57c   : > { %v1186_v25 = vmul.f32 %v1957_v21, %v1182_v23 }
 0x57e   : > { %v1190_v26 = vadd.f32 %v1958_v24, %v1186_v25 }
 0x580   : > { %v1191_v27 = vpack.c.bf16 %v1190_v26, %v1190_v26 }
 0x582   : > { %1772 = vmatmul.msk.bf16.vlgmr.msrb.gmra.mxu1 %vm705_vm2, %v1191_v27  ;;  %1781 = vmatmul.msk.bf16.vlgmr.msrb.gmra.mxu2 %vm705_vm2, %v1191_v27 }
 0x583   : > { %1790 = vmatmul.msk.bf16.vlgmr.msrb.gmra.mxu0 %vm705_vm2, %v1191_v27 }
 0x5ff   : > { %v1220_v28 = vpop.f32.mrf.mxu1 }
 0x600   : > { %v1278_v29 = vpop.f32.mrf.mxu0  ;;  %1283 = vrot.lane.b32.xlu1 %v1220_v28, %s2195_s13  ;;  %v1286_v38 = vpack.c.bf16 %v1220_v28, %v1220_v28 }
 0x601   : > { %v1298_v30 = vpack.c.bf16 %v1278_v29, %v1278_v29 }
 0x603   : > { %v1371_v31 = vsel %vm1369_vm12, %v1298_v30, 0 }
 0x604   : > { %1380 = vmatpush.bf16.msra.mxu2 %v1371_v31 }
 0x605   : > { %v1249_v32 = vpop.f32.mrf.mxu2 }
 0x606   : > { %v1292_v33 = vpack.c.bf16 %v1249_v32, %v1249_v32  ;;  %1289 = vrot.lane.b32.xlu0 %v1249_v32, %s2195_s13 }
 0x607   : > { %v1222_v34 = vpop.f32.mrf.mxu1 }
 0x608   : > { %v1280_v35 = vpop.f32.mrf.mxu0  ;;  %v1304_v36 = vsel %vm926_vm3, %v1292_v33, 0 }
 0x609   : > { %1313 = vmatpush.bf16.xpose.msrb.mxu3 %v1304_v36 }
 0x60d   : > { %v1251_v37 = vpop.f32.mrf.mxu2 }
 0x610   : > { %1791 = vmatmul.msk.bf16.vlgmr.msrb.gmra.mxu3 %vm926_vm3, %v1286_v38 }
 0x611   : > { %1436 = vmatpush.bf16.msra.mxu3 %v1846_v13 }
 0x615   : > { %1437 = vmatpush.bf16.msra.mxu3 %v1845_v16 }
 0x672   : > { %v1284_v42 = vpop.permute.xlu1 %1283 }
 0x673   : > { %v1287_v43 = vpack.c.bf16 %v1284_v42, %v1284_v42  ;;  %v1960_v42 = vld [vmem:[#allocation7] ss:$0 sm:$0xff] }
 0x678   : > { %v1290_v39 = vpop.permute.xlu0 %1289 }
 0x679   : > { %v1293_v40 = vpack.c.bf16 %v1290_v39, %v1290_v39  ;;  %v1959_v39 = vld [vmem:[#allocation6] ss:$0 sm:$0xff] }
 0x67b   : > { %v1323_v41 = vsel %vm926_vm3, %v1293_v40, 0 }
 0x67c   : > { %1332 = vmatpush.bf16.xpose.msra.mxu1 %v1323_v41 }
 0x683   : > { %1792 = vmatmul.msk.bf16.vlgmr.msra.gmra.mxu1 %vm926_vm3, %v1287_v43 }
 0x693   : > { %v1315_v44 = vpop.f32.mrf.mxu3 }
 0x694   : > { %v1338_v45 = vmul.f32 0.25, %v1315_v44 }
 0x696   : > { %v1341_v46 = vsel %vm1340_vm13, %v1338_v45, -inf }
 0x697   : > { %1342 = vmax.xlane.f32.xlu2 %v1341_v46  ;;  %v1851_v46 = vld [vmem:[%s2543_s16 + $0x10] sm:$0xff] }
 0x69b   : > { %v1317_v47 = vpop.f32.mrf.mxu3 }
 0x69c   : > { %v1850_v47 = vld [vmem:[%s2543_s16 + $0x8] sm:$0xff] }
 0x6af   : > { %1295 = vrot.lane.b32.xlu2 %v1278_v29, %s2195_s13  ;;  %v1848_v29 = vld [vmem:[%s2541_s14 + $0x8] sm:$0xff] }
 0x6b0   : > { %1506 = vmatpush.bf16.msrb.mxu1 %v1848_v29 }
 0x700   : > { %v1334_v48 = vpop.f32.mrf.mxu1 }
 0x701   : > { %v1339_v49 = vmul.f32 0.25, %v1334_v48  ;;  %v1849_v48 = vld [vmem:[%s2543_s16] sm:$0xff] }
 0x703   : > { %v1344_v50 = vsel %vm1340_vm13, %v1339_v49, -inf }
 0x704   : > { %1345 = vmax.xlane.f32.xlu0 %v1344_v50 }
 0x708   : > { %v1336_v51 = vpop.f32.mrf.mxu1 }
 0x70a   : > { %v1343_v52 = vpop.xlane.xlu2 %1342 }
 0x70b   : > { %v1347_v53 = vsub.f32 %v1338_v45, %v1343_v52 }
 0x70d   : > { %v1349_v54 = vmul.f32 1.442695, %v1347_v53 }
 0x70f   : > { %1975 = vpow2.f32 %v1349_v54 }
 0x712   : > { %v1296_v56 = vpop.permute.xlu2 %1295 }
 0x713   : > { %v1299_v57 = vpack.c.bf16 %v1296_v56, %v1296_v56 }
 0x715   : > { %v1976_v58 = vpop.eup %1975  ;;  %v1390_v59 = vsel %vm1369_vm12, %v1299_v57, 0 }
 0x716   : > { %1399 = vmatpush.bf16.msra.mxu0 %v1390_v59  ;;  %v1353_v60 = vsel %vm1340_vm13, %v1976_v58, 0.0 }
 0x717   : > { %1354 = vadd.xlane.f32.xlu0 %v1353_v60  ;;  %v1962_v60 = vld [vmem:[#allocation10] ss:$0 sm:$0xff] }
 0x777   : > { %v1346_v6 = vpop.xlane.xlu0 %1345 }
 0x778   : > { %v1348_v61 = vsub.f32 %v1339_v49, %v1346_v6  ;;  %v1961_v49 = vld [vmem:[#allocation9] ss:$0 sm:$0xff] }
 0x77a   : > { %v1351_v62 = vmul.f32 1.442695, %v1348_v61 }
 0x77c   : > { %1977 = vpow2.f32 %v1351_v62 }
 0x782   : > { %v1978_v63 = vpop.eup %1977 }
 0x783   : > { %v1356_v0 = vsel %vm1340_vm13, %v1978_v63, 0.0 }
 0x784   : > { %1357 = vadd.xlane.f32.xlu1 %v1356_v0 }
 0x78a   : > { %v1355_v2 = vpop.xlane.xlu0 %1354 }
 0x78b   : > { %1979 = vrcp.f32 %v1355_v2 }
 0x791   : > { %v1980_v3 = vpop.eup %1979 }
 0x792   : > { %v1361_v4 = vmul.f32 %v1980_v3, %v1976_v58 }
 0x794   : > { %v1363_v5 = vpack.c.bf16 %v1361_v4, %v1361_v4 }
 0x796   : > { %1793 = vmatmul.msk.bf16.vlgmr.msra.gmra.mxu2 %vm1365_vm14, %v1363_v5 }
 0x7f7   : > { %v1358_v7 = vpop.xlane.xlu1 %1357 }
 0x7f8   : > { %1981 = vrcp.f32 %v1358_v7 }
 0x7fe   : > { %v1982_v8 = vpop.eup %1981 }
 0x7ff   : > { %v1362_v9 = vmul.f32 %v1982_v8, %v1978_v63 }
 0x801   : > { %v1364_v10 = vpack.c.bf16 %v1362_v9, %v1362_v9 }
 0x803   : > { %1794 = vmatmul.msk.bf16.vlgmr.msra.gmra.mxu0 %vm1365_vm14, %v1364_v10 }
 0x819   : > { %v1382_v11 = vpop.f32.mrf.mxu2 }
 0x821   : > { %v1384_v12 = vpop.f32.mrf.mxu2 }
 0x880   : > { %v1401_v14 = vpop.f32.mrf.mxu0 }
 0x881   : > { %1406 = vrot.lane.b32.xlu0 %v1401_v14, %s2197_s24  ;;  %s678_s24 = scalar_lea.vmem %s2545_s18, %s1719_s2 }
 0x888   : > { %v1403_v15 = vpop.f32.mrf.mxu0 }
 0x8f3   : > { %v1407_v17 = vpop.permute.xlu0 %1406 }
 0x8f4   : > { %v1409_v18 = vsel %vm926_vm3, %v1382_v11, %v1407_v17  ;;  %vm1575_vm3 = vcmask 254976  }
 0x8f5   : > { %v1410_v19 = vpack.c.bf16 %v1409_v18, %v1409_v18 }
 0x8f7   : > { %1803 = vmatmul.msk.bf16.vlgmr.msra.gmra.mxu3 %vm705_vm2, %v1410_v19 }
 0x97a   : > { %v1439_v20 = vpop.f32.mrf.mxu3 }
 0x97b   : > { %v1443_v21 = vadd.f32 %v1439_v20, %v2442_v55  ;;  %v1847_v55 = vld [vmem:[%s2541_s14] sm:$0xff] }
 0x97c   : > { %1507 = vmatpush.bf16.msrb.mxu1 %v1847_v55 }
 0x97d   : > { %v1446_v22 = vsel %vm1153_vm7, %v1443_v21, 0.0 }
 0x97e   : > { %1447 = vadd.xlane.f32.xlu2 %v1446_v22 }
 0x982   : > { %v1441_v23 = vpop.f32.mrf.mxu3 }
 0x9f1   : > { %v1448_v24 = vpop.xlane.xlu2 %1447 }
 0x9f2   : > { %v1449_v25 = vmul.f32 %v1448_v24, %v2452_v1 }
 0x9f4   : > { %v1450_v26 = vsub.f32 %v1443_v21, %v1449_v25 }
 0x9f6   : > { %v1451_v27 = vmul.f32 %v1450_v26, %v1450_v26 }
 0x9f8   : > { %v1452_v28 = vsel %vm1153_vm7, %v1451_v27, 0.0 }
 0x9f9   : > { %1453 = vadd.xlane.f32.xlu1 %v1452_v28 }
 0xa6c   : > { %v1454_v30 = vpop.xlane.xlu1 %1453 }
 0xa6d   : > { %v1455_v31 = vmul.f32 %v1454_v30, %v2452_v1  ;;  %v1852_v1 = vld [vmem:[%s2543_s16 + $0x18] sm:$0xff] }
 0xa6e   : > { %1559 = vmatpush.bf16.msrb.mxu2 %v1852_v1 }
 0xa6f   : > { %v1456_v32 = vadd.f32 1e-05, %v1455_v31 }
 0xa71   : > { %1983 = vrsqrt.f32 %v1456_v32  ;;  %vm1463_vm0 = vweird.f32 %v1456_v32 }
 0xa72   : > { %1560 = vmatpush.bf16.msrb.mxu2 %v1851_v46 }
 0xa76   : > { %1561 = vmatpush.bf16.msrb.mxu2 %v1850_v47 }
 0xa77   : > { %v1984_v33 = vpop.eup %1983 }
 0xa78   : > { %v1458_v34 = vmul.f32 %v1984_v33, %v1456_v32  ;;  %vm1464_vm15 = vweird.f32 %v1984_v33 }
 0xa79   : > { %vm1465_vm1 = vmor %vm1463_vm0, %vm1464_vm15 }
 0xa7a   : > { %v1459_v35 = vmul.f32 %v1984_v33, %v1458_v34  ;;  %1562 = vmatpush.bf16.msrb.mxu2 %v1849_v48 }
 0xa7c   : > { %v1460_v36 = vmul.f32 0.5, %v1459_v35 }
 0xa7e   : > { %v1461_v37 = vsub.f32 1.5, %v1460_v36 }
 0xa80   : > { %v1462_v38 = vmul.f32 %v1984_v33, %v1461_v37 }
 0xa82   : > { %v1466_v40 = vsel %vm1465_vm1, %v1984_v33, %v1462_v38 }
 0xa83   : > { %v1467_v41 = vmul.f32 %v1466_v40, %v1450_v26 }
 0xa85   : > { %v1471_v43 = vmul.f32 %v1959_v39, %v1467_v41 }
 0xa87   : > { %v1475_v44 = vadd.f32 %v1960_v42, %v1471_v43 }
 0xa89   : > { %v1476_v45 = vpack.c.bf16 %v1475_v44, %v1475_v44 }
 0xa8b   : > { %1812 = vmatmul.msk.bf16.vlgmr.msrb.gmra.mxu1 %vm705_vm2, %v1476_v45  ;;  %vm1551_vm2 = vcmask 523264  }
 0xb08   : > { %v1509_v50 = vpop.f32.mrf.mxu1 }
 0xb09   : > { %v1510_v51 = vadd.f32 %v1961_v49, %v1509_v50 }
 0xb0b   : > { %v1513_v52 = vadd.f32 3.0, %v1510_v51 }
 0xb0d   : > { %v1514_v53 = vmax.f32 %v1513_v52, 0.0 }
 0xb0f   : > { %v1515_v54 = vmin.f32 %v1514_v53, 6.0 }
 0xb10   : > { %v1511_v56 = vpop.f32.mrf.mxu1 }
 0xb11   : > { %v1516_v57 = vmul.f32 %v1515_v54, %v1510_v51 }
 0xb13   : > { %v1517_v58 = vmul.f32 0.16666667, %v1516_v57 }
 0xb15   : > { %v1518_v59 = vpack.c.bf16 %v1517_v58, %v1517_v58 }
 0xb17   : > { %1829 = vmatmul.msk.bf16.vlgmr.msrb.gmra.mxu2 %vm1551_vm2, %v1518_v59 }
 0xb9a   : > { %v1564_v6 = vpop.f32.mrf.mxu2 }
 0xb9b   : > { %v1568_v61 = vadd.f32 %v1564_v6, %v1443_v21 }
 0xb9d   : > { %v1573_v62 = vadd.f32 %v1962_v60, %v1568_v61 }
 0xb9f   : > { %v1574_v63 = vpack.c.bf16 %v1573_v62, %v1573_v62 }
 0xba1   : > { %1576 = vst.msk [vmem:[%s678_s24] sm:$0x3] %vm1575_vm3, %v1574_v63 }
 0xba2   : > { %v1566_v0 = vpop.f32.mrf.mxu2 }
 0xba3 PF: > { %s32_s27 = sadd.s32 1, %s2187_s27  }
 0xba4   : > { %p29_p7 = scmp.ge.s32.totalorder %s32_s27, 4  }
 0xba6   :  { %31 = sbr.rel (!%p29_p7) target bundleno = 11 (0xb), region = 150 }
 0xbab   :  { %1596 = vsyncpa [#allocation3], 1 }
 0xbac   :  { %1598 = vsyncpa [#allocation3 + $0x1], 1 }
 0xbad   :  { %1599 = vsyncpa [#allocation5], 1 }
 0xbae   :  { %1600 = vsyncpa [#allocation8], 1 }
 0xbaf   :  { %1601 = vsyncpa [#allocation11], 1 }

// kernel: _lambda_.8
= control target key start
LH: loop header
LB: loop body
LE: loop exit
PB: predicated region body
PF: predicated region fallthrough
CT: control target
= control target key end

     0   :  { %s3872_s21 = smov 0   ;;  %s5371_s0 = inlined_call_operand.vmem [shape: bf16[2,8,8,3], index: 0, kind: input, shape index: {}]   ;;  %s5372_s1 = inlined_call_operand.vmem [shape: bf16[2,8,8,3], index: 1, kind: input, shape index: {}]   ;;  %s5373_s2 = inlined_call_operand.vmem [shape: bf16[2,8,8,3], index: 2, kind: input, shape index: {}]   ;;  %s5374_s3 = inlined_call_operand.vmem [shape: bf16[2,8,8,3], index: 3, kind: input, shape index: {}]   ;;  %s5375_s4 = inlined_call_operand.vmem [shape: bf16[9,3,8], index: 4, kind: input, shape index: {}]   ;;  %s5376_s5 = inlined_call_operand.vmem [shape: f32[1,8], index: 5, kind: input, shape index: {}]   ;;  %s5377_s6 = inlined_call_operand.vmem [shape: f32[1,8], index: 6, kind: input, shape index: {}]   ;;  %s5378_s7 = inlined_call_operand.vmem [shape: f32[2,9,8], index: 7, kind: input, shape index: {}]   ;;  %s5379_s8 = inlined_call_operand.vmem [shape: f32[2,8], index: 8, kind: input, shape index: {}]   ;;  %s5380_s9 = inlined_call_operand.vmem [shape: bf16[2,8,8], index: 9, kind: input, shape index: {}]   ;;  %s5381_s10 = inlined_call_operand.vmem [shape: f32[1,8], index: 10, kind: input, shape index: {}]   ;;  %s5382_s11 = inlined_call_operand.vmem [shape: f32[1,8], index: 11, kind: input, shape index: {}]   ;;  %s5383_s12 = inlined_call_operand.vmem [shape: bf16[2,49,8], index: 12, kind: output, shape index: {}]  }
   0x1 LB: > { %s3625_s22 = sadd.s32 4294967295, %s3804_s21   ;;  %p3629_p0 = scmp.ge.s32.totalorder %s3804_s21, 1  ;;  %s3804_s21 = sphi %s3872_s21, %s22_s21  }
   0x2   : > { %p392_p1 = scmp.lt.s32.totalorder %s3804_s21, 3 }
   0x4   : > { %p393_p2 = pnand %p3629_p0, %p392_p1 }
   0x6   : > { %396 = sbr.rel (%p393_p2) target bundleno = 1058 (0x422), region = 68 }
   0xb   : > { %v506_v0 = vld [vmem:[%s5375_s4 + $0x2] sm:$0x3]  ;;  %vm528_vm0 = vcmask 1040384   ;;  %vm921_vm1 = vcmask 1041408   ;;  %p449_p3 = scmp.lt.s32.totalorder %s3625_s22, 1  ;;  %v3806_v1 = vmov 65535  }
   0xc   : > { %v922_v2 = vsel %vm528_vm0, 4294967295, %v3806_v1  ;;  %vm533_vm2 = vcmask 1041409   ;;  %vm537_vm3 = vcmask 1042434   ;;  %vm541_vm4 = vcmask 1043459   ;;  %v505_v58 = vld [vmem:[%s5375_s4] sm:$0x3] }
   0xd   : > { %v3884_v3 = vsel %vm921_vm1, %v922_v2, 0  ;;  %s5608_s22 = smov (!%p449_p3, %s3625_s22), 1  ;;  %vm912_vm5 = vcmask 23552   ;;  %vm2567_vm6 = vcmask 1045504   ;;  %vm3417_vm7 = vcmask 1043456  }
   0xe   : > { %v925_v4 = vand.u32 %v3884_v3, %v506_v0  ;;  %s3890_s25 = sshll.u32 %s5608_s22, 5  ;;  %v1050_v61 = vand.u32 %v3884_v3, %v505_v58  ;;  %vm3404_vm8 = vcmask 64512   ;;  %s3782_s30 = smul.u32 28, %s5608_s22  ;;  %vm3521_vm9 = vcmask 60416  }
   0xf   : > { %s3896_s28 = scalar_lea.vmem %s5372_s1, %s3890_s25  ;;  %s4027_s15 = scalar_lea.vmem %s5371_s0, %s3890_s25  ;;  %vm3528_vm10 = vcmask 57344   ;;  %vm3529_vm11 = vsmask.f32 256 }
  0x10   : > { %3779 = vmatpush.bf16.msra.mxu3 %v925_v4  ;;  %934 = vmatpush.bf16.msra.mxu0 %v925_v4  ;;  %v483_v5 = vld [vmem:[%s3896_s28] sm:$0xf]  ;;  %v484_v6 = vld [vmem:[%s3896_s28 + $0x4] sm:$0xf]  ;;  %v485_v7 = vld [vmem:[%s3896_s28 + $0x8] sm:$0xf]  ;;  %s4286_s24 = scalar_lea.vmem %s5373_s2, %s3890_s25  ;;  %s4440_s13 = scalar_lea.vmem %s5374_s3, %s3890_s25 }
  0x11   : > { %v679_v8 = vrot.slane %v483_v5, 3  ;;  %v680_v9 = vrot.slane %v484_v6, 3  ;;  %v681_v10 = vrot.slane %v485_v7, 3  ;;  %v486_v22 = vld [vmem:[%s3896_s28 + $0xc] sm:$0xf]  ;;  %3780 = vmatpush.bf16.msra.mxu1 %v1050_v61  ;;  %s5352_s14 = scalar_lea.vmem %s5383_s12, %s3782_s30  ;;  %vm3530_vm12 = vmand %vm3528_vm10, %vm3529_vm11 }
  0x12   : > { %v682_v27 = vrot.slane %v486_v22, 3  ;;  %v487_v40 = vld [vmem:[%s3896_s28 + $0x10] sm:$0xf]  ;;  %v488_v50 = vld [vmem:[%s3896_s28 + $0x14] sm:$0xf] }
  0x13   : > { %v688_v11 = vsel %vm528_vm0, %v483_v5, %v679_v8  ;;  %v690_v12 = vsel %vm533_vm2, %v483_v5, %v679_v8  ;;  %v693_v13 = vsel %vm537_vm3, %v483_v5, %v679_v8  ;;  %v696_v16 = vsel %vm541_vm4, %v483_v5, %v679_v8 }
  0x14   : > { %v692_v14 = vrot.slane %v690_v12, 1  ;;  %v695_v15 = vrot.slane %v693_v13, 2  ;;  %852 = vst [vmem:[#allocation1] ss:$9 sm:$0xff] %v688_v11  ;;  %v703_v17 = vsel %vm533_vm2, %v484_v6, %v680_v9  ;;  %v706_v18 = vsel %vm537_vm3, %v484_v6, %v680_v9  ;;  %1059 = vmatpush.bf16.msrb.mxu0 %v1050_v61 }
  0x15   : > { %v3908_v19 = vsel %vm528_vm0, %v485_v7, %v681_v10  ;;  %v3910_v20 = vrot.slane %v703_v17, 1  ;;  %v3913_v21 = vsel %vm541_vm4, %v484_v6, %v680_v9  ;;  %v3917_v23 = vsel %vm528_vm0, %v484_v6, %v680_v9 }
  0x16   : > { %5473 = vst [vmem:[#allocation2_spill] sm:$0xff] %v3908_v19  ;;  %v3919_v24 = vrot.slane %v706_v18, 2  ;;  %v698_v25 = vrot.slane %v696_v16, 3  ;;  %v5389_v26 = vrot.slane %v3913_v21, 3  ;;  %v785_v28 = vunpack.i.h.s16 %v3917_v23 }
  0x17   : > { %5474 = vst [vmem:[#allocation3_spill] sm:$0xff] %v3910_v20  ;;  %v787_v29 = vunpack.i.h.s16 %v3910_v20  ;;  %v729_v35 = vsel %vm533_vm2, %v486_v22, %v682_v27  ;;  %v732_v36 = vsel %vm537_vm3, %v486_v22, %v682_v27  ;;  %v3934_v37 = vsel %vm541_vm4, %v485_v7, %v681_v10 }
  0x18   : > { %5475 = vst [vmem:[#allocation4_spill] sm:$0xff] %v3913_v21  ;;  %v789_v30 = vunpack.i.h.s16 %v3919_v24  ;;  %v3639_v31 = vpack.i.b16 %v3917_v23, %v698_v25  ;;  %v3640_v32 = vpack.i.b16 %v3910_v20, %v785_v28  ;;  %v3937_v38 = vsel %vm528_vm0, %v486_v22, %v682_v27 }
  0x19   : > { %855 = vst [vmem:[#allocation1 + $0x1] ss:$9 sm:$0xff] %v692_v14  ;;  %v3641_v33 = vpack.i.b16 %v3919_v24, %v787_v29  ;;  %v3939_v39 = vrot.slane %v729_v35, 1  ;;  %v716_v41 = vsel %vm533_vm2, %v485_v7, %v681_v10  ;;  %v3943_v42 = vrot.slane %v732_v36, 2  ;;  %v476_v35 = vld [vmem:[%s4027_s15 + $0x4] sm:$0xf] }
  0x1a   : > { %5476 = vst [vmem:[#allocation5_spill] sm:$0xff] %v3917_v23  ;;  %v3642_v34 = vpack.i.b16 %v5389_v26, %v789_v30  ;;  %v719_v43 = vsel %vm537_vm3, %v485_v7, %v681_v10  ;;  %v5388_v44 = vrot.slane %v3934_v37, 3  ;;  %v3948_v45 = vsel %vm541_vm4, %v486_v22, %v682_v27  ;;  %v489_v7 = vld [vmem:[%s3896_s28 + $0x18] sm:$0xf]  ;;  %v507_v36 = vld [vmem:[%s5375_s4 + $0x4] sm:$0x3] }
  0x1b   : > { %5477 = vst [vmem:[#allocation6_spill] sm:$0xff] %v3919_v24  ;;  %v799_v46 = vunpack.i.h.s16 %v3937_v38  ;;  %v683_v47 = vrot.slane %v487_v40, 3  ;;  %v3951_v48 = vrot.slane %v716_v41, 1  ;;  %v801_v49 = vunpack.i.h.s16 %v3939_v39 }
  0x1c   : > { %858 = vst [vmem:[#allocation1 + $0x2] ss:$9 sm:$0xff] %v695_v15  ;;  %v3955_v51 = vrot.slane %v719_v43, 2  ;;  %v5387_v52 = vrot.slane %v3948_v45, 3  ;;  %v803_v53 = vunpack.i.h.s16 %v3943_v42  ;;  %v3643_v54 = vpack.i.b16 %v3937_v38, %v5388_v44  ;;  %v475_v43 = vld [vmem:[%s4027_s15] sm:$0xf] }
  0x1d   : > { %873 = vst [vmem:[#allocation1 + $0x7] ss:$9 sm:$0xff] %v3908_v19  ;;  %v3644_v55 = vpack.i.b16 %v3939_v39, %v799_v46  ;;  %v684_v57 = vrot.slane %v488_v50, 3  ;;  %v742_v59 = vsel %vm533_vm2, %v487_v40, %v683_v47  ;;  %v3645_v60 = vpack.i.b16 %v3943_v42, %v801_v49 }
  0x1e   : > { %861 = vst [vmem:[#allocation1 + $0x3] ss:$9 sm:$0xff] %v3639_v31  ;;  %v3646_v62 = vpack.i.b16 %v5387_v52, %v803_v53  ;;  %v3975_v63 = vsel %vm528_vm0, %v487_v40, %v683_v47  ;;  %v3977_v0 = vrot.slane %v742_v59, 1  ;;  %v3982_v4 = vsel %vm541_vm4, %v487_v40, %v683_v47 }
  0x1f   : > { %864 = vst [vmem:[#allocation1 + $0x4] ss:$9 sm:$0xff] %v3640_v32  ;;  %v755_v1 = vsel %vm533_vm2, %v488_v50, %v684_v57  ;;  %v758_v2 = vsel %vm537_vm3, %v488_v50, %v684_v57  ;;  %v3986_v5 = vsel %vm528_vm0, %v488_v50, %v684_v57  ;;  %v745_v9 = vsel %vm537_vm3, %v487_v40, %v683_v47 }
  0x20   : > { %5478 = vst [vmem:[#allocation7_spill] sm:$0xff] %v3934_v37  ;;  %v3988_v6 = vrot.slane %v755_v1, 1  ;;  %v3992_v8 = vrot.slane %v758_v2, 2  ;;  %v5386_v10 = vrot.slane %v3982_v4, 3  ;;  %v3997_v11 = vsel %vm541_vm4, %v488_v50, %v684_v57  ;;  %v477_v2 = vld [vmem:[%s4027_s15 + $0x8] sm:$0xf] }
  0x21   : > { %867 = vst [vmem:[#allocation1 + $0x5] ss:$9 sm:$0xff] %v3641_v33  ;;  %v813_v12 = vunpack.i.h.s16 %v3986_v5  ;;  %v685_v13 = vrot.slane %v489_v7, 3  ;;  %v4001_v15 = vrot.slane %v745_v9, 2  ;;  %v5385_v16 = vrot.slane %v3997_v11, 3 }
  0x22   : > { %5479 = vst [vmem:[#allocation8_spill] sm:$0xff] %v3937_v38  ;;  %v815_v14 = vunpack.i.h.s16 %v3988_v6  ;;  %v817_v17 = vunpack.i.h.s16 %v3992_v8  ;;  %v3647_v18 = vpack.i.b16 %v3986_v5, %v5386_v10  ;;  %v1182_v41 = vand.u32 %v3884_v3, %v507_v36 }
  0x23   : > { %5480 = vst [vmem:[#allocation9_spill] sm:$0xff] %v3939_v39  ;;  %v3648_v22 = vpack.i.b16 %v3988_v6, %v813_v12  ;;  %v768_v27 = vsel %vm533_vm2, %v489_v7, %v685_v13  ;;  %v771_v29 = vsel %vm537_vm3, %v489_v7, %v685_v13  ;;  %v4017_v31 = vsel %vm528_vm0, %v489_v7, %v685_v13  ;;  %v496_v39 = vld [vmem:[%s4286_s24 + $0x14] sm:$0xf] }
  0x24   : > { %870 = vst [vmem:[#allocation1 + $0x6] ss:$9 sm:$0xff] %v3642_v34  ;;  %v3649_v28 = vpack.i.b16 %v3992_v8, %v815_v14  ;;  %v3650_v30 = vpack.i.b16 %v5385_v16, %v817_v17  ;;  %v4019_v32 = vrot.slane %v768_v27, 1  ;;  %v4021_v33 = vrot.slane %v771_v29, 2  ;;  %3781 = vmatpush.bf16.msra.mxu2 %v1182_v41 }
  0x25   : > { %5481 = vst [vmem:[#allocation10_spill] sm:$0xff] %v3943_v42  ;;  %v4030_v34 = vsel %vm541_vm4, %v489_v7, %v685_v13  ;;  %v522_v46 = vrot.slane %v476_v35, 3  ;;  %v521_v47 = vrot.slane %v475_v43, 3  ;;  %v478_v13 = vld [vmem:[%s4027_s15 + $0xc] sm:$0xf]  ;;  %v523_v27 = vrot.slane %v477_v2, 3 }
  0x26   : > { %5482 = vst [vmem:[#allocation11_spill] sm:$0xff] %v3948_v45  ;;  %v5384_v40 = vrot.slane %v4030_v34, 3  ;;  %v524_v29 = vrot.slane %v478_v13, 3 }
  0x27   : > { %5483 = vst [vmem:[#allocation12_spill] sm:$0xff] %v3951_v48  ;;  %v549_v50 = vsel %vm533_vm2, %v476_v35, %v522_v46  ;;  %v534_v58 = vsel %vm533_vm2, %v475_v43, %v521_v47  ;;  %v4063_v7 = vsel %vm528_vm0, %v475_v43, %v521_v47  ;;  %v4091_v36 = vsel %vm528_vm0, %v477_v2, %v523_v27 }
  0x28   : > { %5484 = vst [vmem:[#allocation13_spill] sm:$0xff] %v3955_v51  ;;  %v825_v49 = vunpack.i.l.s16 %v5384_v40  ;;  %v4051_v57 = vrot.slane %v549_v50, 1  ;;  %v4065_v9 = vrot.slane %v534_v58, 1  ;;  %v479_v50 = vld [vmem:[%s4027_s15 + $0x10] sm:$0xf] }
  0x29   : > { %5485 = vst [vmem:[#allocation14_spill] sm:$0xff] %v3975_v63 }
  0x2a   : > { %5486 = vst [vmem:[#allocation15_spill] sm:$0xff] %v3977_v0  ;;  %v633_v12 = vunpack.i.h.s16 %v4051_v57 }
  0x2b   : > { %v874_v56 = vld [vmem:[#allocation1] sm:$0xff]  ;;  %5487 = vst [vmem:[#allocation16_spill] sm:$0xff] %v3982_v4 }
  0x2c   : > { %876 = vst [vmem:[#allocation1] ss:$9 sm:$0xff] %v3951_v48  ;;  %3651 = vmatmul.msk.bf16.vlgmr.msra.gmra.mxu0 %vm912_vm5, %v874_v56  ;;  %v4049_v56 = vsel %vm528_vm0, %v476_v35, %v522_v46 }
  0x2d   : > { %878 = vst [vmem:[#allocation1 + $0x1] ss:$9 sm:$0xff] %v3955_v51  ;;  %1191 = vmatpush.bf16.msra.mxu0 %v1182_v41  ;;  %v5391_v1 = vunpack.i.h.s16 %v4049_v56  ;;  %v575_v41 = vsel %vm533_vm2, %v478_v13, %v524_v29 }
  0x2e   : > { %880 = vst [vmem:[#allocation1 + $0x2] ss:$9 sm:$0xff] %v3643_v54  ;;  %v552_v54 = vsel %vm537_vm3, %v476_v35, %v522_v46 }
  0x2f   : > { %882 = vst [vmem:[#allocation1 + $0x3] ss:$9 sm:$0xff] %v3644_v55  ;;  %v542_v55 = vsel %vm541_vm4, %v475_v43, %v521_v47  ;;  %v4054_v59 = vrot.slane %v552_v54, 2 }
  0x30   : > { %884 = vst [vmem:[#allocation1 + $0x4] ss:$9 sm:$0xff] %v3645_v60  ;;  %v538_v60 = vsel %vm537_vm3, %v475_v43, %v521_v47  ;;  %v4057_v61 = vrot.slane %v542_v55, 3  ;;  %v578_v43 = vsel %vm537_vm3, %v478_v13, %v524_v29  ;;  %v4101_v47 = vsel %vm528_vm0, %v478_v13, %v524_v29 }
  0x31   : > { %886 = vst [vmem:[#allocation1 + $0x5] ss:$9 sm:$0xff] %v3646_v62  ;;  %v555_v62 = vsel %vm541_vm4, %v476_v35, %v522_v46  ;;  %v4069_v14 = vrot.slane %v538_v60, 2  ;;  %v568_v46 = vsel %vm541_vm4, %v477_v2, %v523_v27  ;;  %v4107_v54 = vrot.slane %v578_v43, 2 }
  0x32   : > { %888 = vst [vmem:[#allocation1 + $0x6] ss:$9 sm:$0xff] %v3975_v63  ;;  %v4071_v17 = vrot.slane %v555_v62, 3  ;;  %v565_v55 = vsel %vm537_vm3, %v477_v2, %v523_v27  ;;  %v4111_v58 = vrot.slane %v568_v46, 3  ;;  %v581_v60 = vsel %vm541_vm4, %v478_v13, %v524_v29 }
  0x33   : > { %5488 = vst [vmem:[#allocation17_spill] sm:$0xff] %v3986_v5  ;;  %v5390_v62 = vunpack.i.h.s16 %v4101_v47  ;;  %v4119_v40 = vrot.slane %v565_v55, 2  ;;  %v4121_v43 = vrot.slane %v581_v60, 3 }
  0x34   : > { %5489 = vst [vmem:[#allocation18_spill] sm:$0xff] %v3988_v6 }
  0x35   : > { %890 = vst [vmem:[#allocation1 + $0x7] ss:$9 sm:$0xff] %v3977_v0 }
  0x36   : > { %5490 = vst [vmem:[#allocation19_spill] sm:$0xff] %v3992_v8  ;;  %v493_v8 = vld [vmem:[%s4286_s24 + $0x8] sm:$0xf] }
  0x37   : > { %5491 = vst [vmem:[#allocation20_spill] sm:$0xff] %v3997_v11 }
  0x38   : > { %5492 = vst [vmem:[#allocation21_spill] sm:$0xff] %v4001_v15 }
  0x39   : > { %5493 = vst [vmem:[#allocation22_spill] sm:$0xff] %v4017_v31 }
  0x3a   : > { %5494 = vst [vmem:[#allocation23_spill] sm:$0xff] %v4019_v32 }
  0x3b   : > { %5495 = vst [vmem:[#allocation24_spill] sm:$0xff] %v4021_v33 }
  0x3c   : > { %v891_v25 = vld [vmem:[#allocation1] sm:$0xff]  ;;  %5496 = vst [vmem:[#allocation25_spill] sm:$0xff] %v4030_v34 }
  0x3d   : > { %3652 = vmatmul.msk.bf16.vlgmr.msra.gmra.mxu3 %vm912_vm5, %v891_v25  ;;  %893 = vst [vmem:[#allocation1] ss:$9 sm:$0xff] %v4001_v15  ;;  %v3655_v25 = vpack.i.b16 %v4049_v56, %v4057_v61 }
  0x3e   : > { %895 = vst [vmem:[#allocation1 + $0x1] ss:$9 sm:$0xff] %v3647_v18  ;;  %v635_v18 = vunpack.i.h.s16 %v4054_v59 }
  0x3f   : > { %897 = vst [vmem:[#allocation1 + $0x2] ss:$9 sm:$0xff] %v3648_v22 }
  0x40   : > { %899 = vst [vmem:[#allocation1 + $0x3] ss:$9 sm:$0xff] %v3649_v28  ;;  %v4079_v28 = vpack.i.b16 %v4051_v57, %v5391_v1  ;;  %v4087_v35 = vpack.i.b16 %v4071_v17, %v635_v18 }
  0x41   : > { %901 = vst [vmem:[#allocation1 + $0x4] ss:$9 sm:$0xff] %v3650_v30  ;;  %v4083_v30 = vpack.i.b16 %v4054_v59, %v633_v12  ;;  %v525_v12 = vrot.slane %v479_v50, 3 }
  0x42   : > { %903 = vst [vmem:[#allocation1 + $0x5] ss:$9 sm:$0xff] %v4017_v31 }
  0x43   : > { %905 = vst [vmem:[#allocation1 + $0x6] ss:$9 sm:$0xff] %v4019_v32  ;;  %v588_v46 = vsel %vm533_vm2, %v479_v50, %v525_v12  ;;  %v4142_v60 = vsel %vm528_vm0, %v479_v50, %v525_v12  ;;  %v591_v44 = vsel %vm537_vm3, %v479_v50, %v525_v12 }
  0x44   : > { %907 = vst [vmem:[#allocation1 + $0x7] ss:$9 sm:$0xff] %v4021_v33  ;;  %v4144_v16 = vrot.slane %v588_v46, 1  ;;  %v481_v46 = vld [vmem:[%s4027_s15 + $0x18] sm:$0xf] }
  0x45   : > { %5497 = vst [vmem:[#allocation26_spill] sm:$0xff] %v4079_v28  ;;  %v494_v33 = vld [vmem:[%s4286_s24 + $0xc] sm:$0xf] }
  0x46   : > { %5498 = vst [vmem:[#allocation27_spill] sm:$0xff] %v4083_v30 }
  0x47   : > { %5499 = vst [vmem:[#allocation28_spill] sm:$0xff] %v4087_v35 }
  0x48   : > { %5500 = vst [vmem:[#allocation29_spill] sm:$0xff] %v4101_v47 }
  0x49   : > { %5502 = vst [vmem:[#allocation31_spill] sm:$0xff] %v4107_v54 }
  0x4a   : > { %5503 = vst [vmem:[#allocation32_spill] sm:$0xff] %v4111_v58 }
  0x4b   : > { %v908_v53 = vld [vmem:[#allocation1] sm:$0xff]  ;;  %5505 = vst [vmem:[#allocation34_spill] sm:$0xff] %v4119_v40 }
  0x4c   : > { %910 = vst [vmem:[#allocation1] ss:$9 sm:$0xff] %v825_v49  ;;  %v4103_v49 = vrot.slane %v575_v41, 1  ;;  %v480_v41 = vld [vmem:[%s4027_s15 + $0x14] sm:$0xf] }
  0x4d   : > { %3653 = vmatmul.msk.bf16.gmra.mxu3 %vm912_vm5, %v908_v53  ;;  %v562_v53 = vsel %vm533_vm2, %v477_v2, %v523_v27  ;;  %5506 = vst [vmem:[#allocation35_spill] sm:$0xff] %v4121_v43  ;;  %v3659_v2 = vpack.i.b16 %v4101_v47, %v4111_v58  ;;  %v526_v29 = vrot.slane %v480_v41, 3 }
  0x4e   : > { %5501 = vst [vmem:[#allocation30_spill] sm:$0xff] %v4103_v49  ;;  %v4115_v18 = vrot.slane %v562_v53, 1  ;;  %v4129_v13 = vpack.i.b16 %v4103_v49, %v5390_v62 }
  0x4f   : > { %5510 = vst [vmem:[#allocation39_spill] sm:$0xff] %v4142_v60  ;;  %v607_v62 = vsel %vm541_vm4, %v480_v41, %v526_v29 }
  0x50   : > { %5504 = vst [vmem:[#allocation33_spill] sm:$0xff] %v4115_v18 }
  0x51   : > { %5507 = vst [vmem:[#allocation36_spill] sm:$0xff] %v4129_v13 }
  0x52   : > { %5511 = vst [vmem:[#allocation40_spill] sm:$0xff] %v4144_v16 }
  0x53   : > { %v911_v22 = vld [vmem:[#allocation1] sm:$0xff] }
  0x54   : > { %981 = vst [vmem:[#allocation1] ss:$9 sm:$0xff] %v4063_v7 }
  0x55   : > { %984 = vst [vmem:[#allocation1 + $0x1] ss:$9 sm:$0xff] %v4065_v9 }
  0x56   : > { %987 = vst [vmem:[#allocation1 + $0x2] ss:$9 sm:$0xff] %v4069_v14 }
  0x57   : > { %990 = vst [vmem:[#allocation1 + $0x3] ss:$9 sm:$0xff] %v3655_v25  ;;  %v647_v25 = vunpack.i.h.s16 %v4103_v49 }
  0x58   : > { %993 = vst [vmem:[#allocation1 + $0x4] ss:$9 sm:$0xff] %v4079_v28 }
  0x59   : > { %996 = vst [vmem:[#allocation1 + $0x5] ss:$9 sm:$0xff] %v4083_v30  ;;  %v4134_v53 = vpack.i.b16 %v4107_v54, %v647_v25  ;;  %v604_v25 = vsel %vm537_vm3, %v480_v41, %v526_v29 }
  0x5a   : > { %999 = vst [vmem:[#allocation1 + $0x6] ss:$9 sm:$0xff] %v4087_v35  ;;  %v4160_v52 = vrot.slane %v604_v25, 2 }
  0x5b   : > { %1002 = vst [vmem:[#allocation1 + $0x7] ss:$9 sm:$0xff] %v4091_v36 }
  0x5c   : > { %5508 = vst [vmem:[#allocation37_spill] sm:$0xff] %v4134_v53  ;;  %v663_v35 = vunpack.i.h.s16 %v4160_v52 }
  0x5d   : > { %3654 = vmatmul.msk.bf16.gmra.mxu3 %vm912_vm5, %v911_v22  ;;  %v649_v22 = vunpack.i.h.s16 %v4107_v54  ;;  %5514 = vst [vmem:[#allocation43_spill] sm:$0xff] %v4160_v52 }
  0x5f   : > { %v4138_v55 = vpack.i.b16 %v4121_v43, %v649_v22  ;;  %v594_v22 = vsel %vm541_vm4, %v479_v50, %v525_v12 }
  0x60   : > { %v4163_v26 = vrot.slane %v594_v22, 3 }
  0x61   : > { %5509 = vst [vmem:[#allocation38_spill] sm:$0xff] %v4138_v55 }
  0x62   : > { %v1003_v27 = vld [vmem:[#allocation1] sm:$0xff]  ;;  %5515 = vst [vmem:[#allocation44_spill] sm:$0xff] %v4163_v26 }
  0x63   : > { %3667 = vmatmul.msk.bf16.vlgmr.msrb.gmra.mxu0 %vm912_vm5, %v1003_v27  ;;  %1005 = vst [vmem:[#allocation1] ss:$9 sm:$0xff] %v4115_v18  ;;  %v601_v27 = vsel %vm533_vm2, %v480_v41, %v526_v29 }
  0x64   : > { %1007 = vst [vmem:[#allocation1 + $0x1] ss:$9 sm:$0xff] %v4119_v40  ;;  %v4156_v10 = vrot.slane %v601_v27, 1  ;;  %v4170_v27 = vrot.slane %v607_v62, 3 }
  0x65   : > { %1009 = vst [vmem:[#allocation1 + $0x2] ss:$9 sm:$0xff] %v3659_v2  ;;  %v4154_v2 = vsel %vm528_vm0, %v480_v41, %v526_v29 }
  0x66   : > { %1011 = vst [vmem:[#allocation1 + $0x3] ss:$9 sm:$0xff] %v4129_v13  ;;  %v5396_v1 = vunpack.i.h.s16 %v4154_v2  ;;  %v4168_v13 = vrot.slane %v591_v44, 2  ;;  %v3663_v25 = vpack.i.b16 %v4154_v2, %v4163_v26  ;;  %v4187_v62 = vpack.i.b16 %v4170_v27, %v663_v35 }
  0x67   : > { %1013 = vst [vmem:[#allocation1 + $0x4] ss:$9 sm:$0xff] %v4134_v53  ;;  %v661_v53 = vunpack.i.h.s16 %v4156_v10 }
  0x68   : > { %1015 = vst [vmem:[#allocation1 + $0x5] ss:$9 sm:$0xff] %v4138_v55  ;;  %v527_v55 = vrot.slane %v481_v46, 3  ;;  %v4178_v50 = vpack.i.b16 %v4156_v10, %v5396_v1 }
  0x69   : > { %1017 = vst [vmem:[#allocation1 + $0x6] ss:$9 sm:$0xff] %v4142_v60  ;;  %v4182_v29 = vpack.i.b16 %v4160_v52, %v661_v53 }
  0x6a   : > { %5512 = vst [vmem:[#allocation41_spill] sm:$0xff] %v4154_v2  ;;  %v614_v41 = vsel %vm533_vm2, %v481_v46, %v527_v55  ;;  %v617_v44 = vsel %vm537_vm3, %v481_v46, %v527_v55  ;;  %v4191_v22 = vsel %vm528_vm0, %v481_v46, %v527_v55  ;;  %v620_v53 = vsel %vm541_vm4, %v481_v46, %v527_v55 }
  0x6b   : > { %5513 = vst [vmem:[#allocation42_spill] sm:$0xff] %v4156_v10  ;;  %v4193_v1 = vrot.slane %v614_v41, 1  ;;  %v4196_v30 = vrot.slane %v617_v44, 2  ;;  %v4203_v35 = vrot.slane %v620_v53, 3  ;;  %v624_v46 = vunpack.i.h.s16 %v4063_v7 }
  0x6c   : > { %1019 = vst [vmem:[#allocation1 + $0x7] ss:$9 sm:$0xff] %v4144_v16  ;;  %v626_v44 = vunpack.i.h.s16 %v4065_v9  ;;  %v628_v53 = vunpack.i.h.s16 %v4069_v14  ;;  %v5525_v7 = vunpack.i.h.s16 %v4049_v56 }
  0x6d   : > { %5516 = vst [vmem:[#allocation45_spill] sm:$0xff] %v4168_v13  ;;  %v671_v41 = vunpack.i.l.s16 %v4203_v35 }
  0x6e   : > { %5517 = vst [vmem:[#allocation46_spill] sm:$0xff] %v4170_v27 }
  0x6f   : > { %5518 = vst [vmem:[#allocation47_spill] sm:$0xff] %v4178_v50 }
  0x70   : > { %5519 = vst [vmem:[#allocation48_spill] sm:$0xff] %v4182_v29 }
  0x71   : > { %5520 = vst [vmem:[#allocation49_spill] sm:$0xff] %v4187_v62 }
  0x72   : > { %5521 = vst [vmem:[#allocation50_spill] sm:$0xff] %v4191_v22 }
  0x73   : > { %v1020_v12 = vld [vmem:[#allocation1] sm:$0xff]  ;;  %5522 = vst [vmem:[#allocation51_spill] sm:$0xff] %v4193_v1 }
  0x74   : > { %3668 = vmatmul.msk.bf16.vlgmr.msra.gmra.mxu1 %vm912_vm5, %v1020_v12  ;;  %1022 = vst [vmem:[#allocation1] ss:$9 sm:$0xff] %v4168_v13 }
  0x75   : > { %1024 = vst [vmem:[#allocation1 + $0x1] ss:$9 sm:$0xff] %v3663_v25  ;;  %v508_v25 = vld [vmem:[%s5375_s4 + $0x6] sm:$0x3] }
  0x76   : > { %1026 = vst [vmem:[#allocation1 + $0x2] ss:$9 sm:$0xff] %v4178_v50  ;;  %v1468_v12 = vand.u32 %v3884_v3, %v508_v25  ;;  %v3672_v50 = vpack.i.b16 %v4069_v14, %v626_v44  ;;  %v3673_v25 = vpack.i.b16 %v4057_v61, %v628_v53  ;;  %v1082_v14 = vunpack.i.h.s16 %v4111_v58 }
  0x77   : > { %5523 = vst [vmem:[#allocation52_spill] sm:$0xff] %v4196_v30  ;;  %v5526_v44 = vunpack.i.h.s16 %v4101_v47 }
  0x78   : > { %1028 = vst [vmem:[#allocation1 + $0x3] ss:$9 sm:$0xff] %v4182_v29  ;;  %1477 = vmatpush.bf16.msrb.mxu3 %v1468_v12  ;;  %v3671_v29 = vpack.i.b16 %v4065_v9, %v624_v46  ;;  %v5403_v12 = vunpack.i.h.s16 %v4091_v36  ;;  %v642_v9 = vunpack.i.h.s16 %v4119_v40 }
  0x79   : > { %1030 = vst [vmem:[#allocation1 + $0x4] ss:$9 sm:$0xff] %v4187_v62  ;;  %v1080_v62 = vunpack.i.h.s16 %v4057_v61  ;;  %v640_v61 = vunpack.i.h.s16 %v4115_v18  ;;  %v1097_v53 = vpack.i.b16 %v5526_v44, %v1082_v14  ;;  %v5404_v14 = vunpack.i.h.s16 %v4191_v22 }
  0x7a   : > { %1032 = vst [vmem:[#allocation1 + $0x5] ss:$9 sm:$0xff] %v4191_v22  ;;  %v668_v44 = vunpack.i.h.s16 %v4193_v1 }
  0x7b   : > { %1034 = vst [vmem:[#allocation1 + $0x6] ss:$9 sm:$0xff] %v4193_v1  ;;  %v4238_v46 = vpack.i.b16 %v4119_v40, %v640_v61  ;;  %v1084_v61 = vunpack.i.h.s16 %v4163_v26 }
  0x7c   : > { %5524 = vst [vmem:[#allocation53_spill] sm:$0xff] %v4203_v35 }
  0x7d   : > { %1036 = vst [vmem:[#allocation1 + $0x7] ss:$9 sm:$0xff] %v4196_v30 }
  0x84   : > { %v1037_v55 = vld [vmem:[#allocation1] sm:$0xff] }
  0x85   : > { %1039 = vst [vmem:[#allocation1] ss:$9 sm:$0xff] %v671_v41  ;;  %3669 = vmatmul.msk.bf16.gmra.mxu1 %vm912_vm5, %v1037_v55  ;;  %v1090_v41 = vpack.i.b16 %v5525_v7, %v1080_v62  ;;  %v4225_v55 = vpack.i.b16 %v4115_v18, %v5403_v12  ;;  %v654_v62 = vunpack.i.h.s16 %v4144_v16  ;;  %v4276_v12 = vpack.i.b16 %v4193_v1, %v5404_v14 }
  0x86   : > { %v1086_v14 = vunpack.i.h.s16 %v4203_v35 }
  0x87   : > { %v4255_v7 = vpack.i.b16 %v4168_v13, %v654_v62  ;;  %5531 = vst [vmem:[#allocation57_spill] sm:$0xff] %v4276_v12 }
  0x89   : > { %5528 = vst [vmem:[#allocation55_spill] sm:$0xff] %v4255_v7 }
  0x8c   : > { %v1040_v28 = vld [vmem:[#allocation1] sm:$0xff] }
  0x8d   : > { %1113 = vst [vmem:[#allocation1] ss:$9 sm:$0xff] %v3671_v29 }
  0x8e   : > { %1116 = vst [vmem:[#allocation1 + $0x1] ss:$9 sm:$0xff] %v3672_v50  ;;  %v5402_v50 = vunpack.i.h.s16 %v4142_v60  ;;  %v501_v60 = vld [vmem:[%s4440_s13 + $0xc] sm:$0xf] }
  0x8f   : > { %1119 = vst [vmem:[#allocation1 + $0x2] ss:$9 sm:$0xff] %v3673_v25 }
  0x90   : > { %1122 = vst [vmem:[#allocation1 + $0x3] ss:$9 sm:$0xff] %v1090_v41  ;;  %v4252_v25 = vpack.i.b16 %v4144_v16, %v5402_v50  ;;  %v656_v41 = vunpack.i.h.s16 %v4168_v13 }
  0x91   : > { %1125 = vst [vmem:[#allocation1 + $0x4] ss:$9 sm:$0xff] %v4051_v57 }
  0x92   : > { %1128 = vst [vmem:[#allocation1 + $0x5] ss:$9 sm:$0xff] %v4054_v59 }
  0x93   : > { %1131 = vst [vmem:[#allocation1 + $0x6] ss:$9 sm:$0xff] %v4071_v17 }
  0x94   : > { %1134 = vst [vmem:[#allocation1 + $0x7] ss:$9 sm:$0xff] %v4225_v55 }
  0x95   : > { %3670 = vmatmul.msk.bf16.gmra.mxu1 %vm912_vm5, %v1040_v28  ;;  %v4243_v28 = vpack.i.b16 %v4111_v58, %v642_v9  ;;  %5527 = vst [vmem:[#allocation54_spill] sm:$0xff] %v4252_v25  ;;  %v4264_v9 = vpack.i.b16 %v4163_v26, %v656_v41  ;;  %v4279_v41 = vpack.i.b16 %v4196_v30, %v668_v44  ;;  %v491_v44 = vld [vmem:[%s4286_s24] sm:$0xf] }
  0x97   : > { %5529 = vst [vmem:[#allocation56_spill] sm:$0xff] %v4264_v9 }
  0x98   : > { %5532 = vst [vmem:[#allocation58_spill] sm:$0xff] %v4279_v41 }
  0x9b   : > { %v1135_v29 = vld [vmem:[#allocation1] sm:$0xff] }
  0x9c   : > { %3683 = vmatmul.msk.bf16.vlgmr.msra.gmra.mxu0 %vm912_vm5, %v1135_v29  ;;  %1143 = vst [vmem:[#allocation1 + $0x3] ss:$9 sm:$0xff] %v4103_v49  ;;  %v5530_v29 = vunpack.i.h.s16 %v4154_v2 }
  0x9d   : > { %1145 = vst [vmem:[#allocation1 + $0x4] ss:$9 sm:$0xff] %v4107_v54 }
  0x9e   : > { %1147 = vst [vmem:[#allocation1 + $0x5] ss:$9 sm:$0xff] %v4121_v43  ;;  %v1104_v62 = vpack.i.b16 %v5530_v29, %v1084_v61  ;;  %v492_v61 = vld [vmem:[%s4286_s24 + $0x4] sm:$0xf]  ;;  %v509_v29 = vld [vmem:[%s5375_s4 + $0x8] sm:$0x3] }
  0x9f   : > { %1137 = vst [vmem:[#allocation1] ss:$9 sm:$0xff] %v4238_v46 }
  0xa0   : > { %1139 = vst [vmem:[#allocation1 + $0x1] ss:$9 sm:$0xff] %v4243_v28 }
  0xa1   : > { %1141 = vst [vmem:[#allocation1 + $0x2] ss:$9 sm:$0xff] %v1097_v53  ;;  %v670_v53 = vunpack.i.h.s16 %v4196_v30  ;;  %v1226_v30 = vrot.slane %v491_v44, 3 }
  0xa2   : > { %1149 = vst [vmem:[#allocation1 + $0x6] ss:$9 sm:$0xff] %v4252_v25 }
  0xa3   : > { %1151 = vst [vmem:[#allocation1 + $0x7] ss:$9 sm:$0xff] %v4255_v7  ;;  %v1243_v16 = vsel %vm541_vm4, %v491_v44, %v1226_v30  ;;  %v1240_v40 = vsel %vm537_vm3, %v491_v44, %v1226_v30  ;;  %v4324_v11 = vsel %vm528_vm0, %v491_v44, %v1226_v30 }
  0xa4   : > { %v4316_v18 = vrot.slane %v1243_v16, 3 }
  0xaa   : > { %v1152_v50 = vld [vmem:[#allocation1] sm:$0xff] }
  0xab   : > { %1154 = vst [vmem:[#allocation1] ss:$9 sm:$0xff] %v4264_v9  ;;  %3684 = vmatmul.msk.bf16.vlgmr.msra.gmra.mxu2 %vm912_vm5, %v1152_v50  ;;  %v4289_v50 = vpack.i.b16 %v4203_v35, %v670_v53  ;;  %v1227_v53 = vrot.slane %v492_v61, 3 }
  0xac   : > { %1156 = vst [vmem:[#allocation1 + $0x1] ss:$9 sm:$0xff] %v1104_v62  ;;  %v1754_v62 = vand.u32 %v3884_v3, %v509_v29 }
  0xad   : > { %1158 = vst [vmem:[#allocation1 + $0x2] ss:$9 sm:$0xff] %v4156_v10  ;;  %v1250_v1 = vsel %vm533_vm2, %v492_v61, %v1227_v53  ;;  %v1253_v13 = vsel %vm537_vm3, %v492_v61, %v1227_v53  ;;  %v4307_v58 = vsel %vm528_vm0, %v492_v61, %v1227_v53  ;;  %v4319_v34 = vsel %vm541_vm4, %v492_v61, %v1227_v53  ;;  %v500_v10 = vld [vmem:[%s4440_s13 + $0x8] sm:$0xf] }
  0xae   : > { %5533 = vst [vmem:[#allocation59_spill] sm:$0xff] %v4289_v50  ;;  %1763 = vmatpush.bf16.msrb.mxu0 %v1754_v62  ;;  %v4309_v29 = vrot.slane %v1250_v1, 1  ;;  %v1237_v62 = vsel %vm533_vm2, %v491_v44, %v1226_v30  ;;  %v4313_v35 = vrot.slane %v1253_v13, 2  ;;  %v4330_v13 = vrot.slane %v1240_v40, 2 }
  0xaf   : > { %1160 = vst [vmem:[#allocation1 + $0x3] ss:$9 sm:$0xff] %v4160_v52  ;;  %v4326_v1 = vrot.slane %v1237_v62, 1  ;;  %v5426_v32 = vrot.slane %v4319_v34, 3  ;;  %v3687_v61 = vpack.i.b16 %v4307_v58, %v4316_v18  ;;  %v1228_v53 = vrot.slane %v493_v8, 3 }
  0xb0   : > { %1162 = vst [vmem:[#allocation1 + $0x4] ss:$9 sm:$0xff] %v4170_v27  ;;  %v1336_v16 = vunpack.i.h.s16 %v4313_v35  ;;  %v1229_v44 = vrot.slane %v494_v33, 3 }
  0xb1   : > { %1164 = vst [vmem:[#allocation1 + $0x5] ss:$9 sm:$0xff] %v4276_v12  ;;  %v4346_v4 = vsel %vm528_vm0, %v493_v8, %v1228_v53  ;;  %v1263_v5 = vsel %vm533_vm2, %v493_v8, %v1228_v53  ;;  %v1266_v42 = vsel %vm537_vm3, %v493_v8, %v1228_v53 }
  0xb2   : > { %1166 = vst [vmem:[#allocation1 + $0x6] ss:$9 sm:$0xff] %v4279_v41  ;;  %v3690_v62 = vpack.i.b16 %v5426_v32, %v1336_v16  ;;  %v1279_v6 = vsel %vm537_vm3, %v494_v33, %v1229_v44  ;;  %v4353_v16 = vsel %vm528_vm0, %v494_v33, %v1229_v44  ;;  %v4373_v63 = vrot.slane %v1266_v42, 2 }
  0xb3   : > { %1168 = vst [vmem:[#allocation1 + $0x7] ss:$9 sm:$0xff] %v4289_v50  ;;  %v5439_v45 = vunpack.i.h.s16 %v4353_v16 }
  0xba   : > { %v1169_v26 = vld [vmem:[#allocation1] sm:$0xff] }
  0xbb   : > { %1171 = vst [vmem:[#allocation1] ss:$9 sm:$0xff] %v1086_v14  ;;  %3685 = vmatmul.msk.bf16.gmra.mxu2 %vm912_vm5, %v1169_v26  ;;  %v5424_v14 = vunpack.i.h.s16 %v4307_v58  ;;  %v1334_v26 = vunpack.i.h.s16 %v4309_v29 }
  0xbd   : > { %v3688_v30 = vpack.i.b16 %v4309_v29, %v5424_v14  ;;  %v3689_v40 = vpack.i.b16 %v4313_v35, %v1334_v26  ;;  %v1276_v14 = vsel %vm533_vm2, %v494_v33, %v1229_v44  ;;  %v1269_v26 = vsel %vm541_vm4, %v493_v8, %v1228_v53 }
  0xbe   : > { %v4355_v32 = vrot.slane %v1276_v14, 1  ;;  %v4370_v14 = vrot.slane %v1263_v5, 1 }
  0xc0   : > { %v1348_v0 = vunpack.i.h.s16 %v4355_v32 }
  0xc2   : > { %v1172_v31 = vld [vmem:[#allocation1] sm:$0xff] }
  0xc3   : > { %1399 = vst [vmem:[#allocation1] ss:$9 sm:$0xff] %v4324_v11 }
  0xc4   : > { %1402 = vst [vmem:[#allocation1 + $0x1] ss:$9 sm:$0xff] %v4326_v1 }
  0xc5   : > { %1405 = vst [vmem:[#allocation1 + $0x2] ss:$9 sm:$0xff] %v4330_v13 }
  0xc6   : > { %1408 = vst [vmem:[#allocation1 + $0x3] ss:$9 sm:$0xff] %v3687_v61  ;;  %v495_v61 = vld [vmem:[%s4286_s24 + $0x10] sm:$0xf] }
  0xc7   : > { %1411 = vst [vmem:[#allocation1 + $0x4] ss:$9 sm:$0xff] %v3688_v30  ;;  %v4359_v30 = vrot.slane %v1279_v6, 2  ;;  %v1230_v15 = vrot.slane %v495_v61, 3 }
  0xc8   : > { %1414 = vst [vmem:[#allocation1 + $0x5] ss:$9 sm:$0xff] %v3689_v40  ;;  %v4362_v40 = vrot.slane %v1269_v26, 3 }
  0xc9   : > { %1417 = vst [vmem:[#allocation1 + $0x6] ss:$9 sm:$0xff] %v3690_v62  ;;  %v4365_v62 = vsel %vm541_vm4, %v494_v33, %v1229_v44  ;;  %v1350_v8 = vunpack.i.h.s16 %v4359_v30  ;;  %v1231_v44 = vrot.slane %v496_v39, 3  ;;  %v1289_v5 = vsel %vm533_vm2, %v495_v61, %v1230_v15 }
  0xca   : > { %1420 = vst [vmem:[#allocation1 + $0x7] ss:$9 sm:$0xff] %v4346_v4  ;;  %v5441_v6 = vrot.slane %v4365_v62, 3  ;;  %v3691_v33 = vpack.i.b16 %v4353_v16, %v4362_v40  ;;  %v3693_v42 = vpack.i.b16 %v4359_v30, %v1348_v0  ;;  %v4390_v38 = vsel %vm528_vm0, %v495_v61, %v1230_v15 }
  0xcb   : > { %3686 = vmatmul.msk.bf16.gmra.mxu2 %vm912_vm5, %v1172_v31  ;;  %v3692_v31 = vpack.i.b16 %v4355_v32, %v5439_v45  ;;  %v4392_v24 = vrot.slane %v1289_v5, 1  ;;  %v1305_v45 = vsel %vm537_vm3, %v496_v39, %v1231_v44  ;;  %v1295_v0 = vsel %vm541_vm4, %v495_v61, %v1230_v15 }
  0xcc   : > { %v3694_v26 = vpack.i.b16 %v5441_v6, %v1350_v8  ;;  %v4398_v37 = vsel %vm528_vm0, %v496_v39, %v1231_v44  ;;  %v4404_v6 = vrot.slane %v1305_v45, 2  ;;  %v4408_v5 = vrot.slane %v1295_v0, 3 }
  0xce   : > { %v1364_v21 = vunpack.i.h.s16 %v4404_v6 }
  0xd1   : > { %v1421_v53 = vld [vmem:[#allocation1] sm:$0xff] }
  0xd2   : > { %3699 = vmatmul.msk.bf16.vlgmr.msrb.gmra.mxu3 %vm912_vm5, %v1421_v53  ;;  %1423 = vst [vmem:[#allocation1] ss:$9 sm:$0xff] %v4370_v14  ;;  %v1302_v53 = vsel %vm533_vm2, %v496_v39, %v1231_v44 }
  0xd3   : > { %1425 = vst [vmem:[#allocation1 + $0x1] ss:$9 sm:$0xff] %v4373_v63  ;;  %v4400_v8 = vrot.slane %v1302_v53, 1 }
  0xd4   : > { %1427 = vst [vmem:[#allocation1 + $0x2] ss:$9 sm:$0xff] %v3691_v33  ;;  %v497_v33 = vld [vmem:[%s4286_s24 + $0x18] sm:$0xf] }
  0xd5   : > { %1429 = vst [vmem:[#allocation1 + $0x3] ss:$9 sm:$0xff] %v3692_v31  ;;  %v1292_v31 = vsel %vm537_vm3, %v495_v61, %v1230_v15  ;;  %v1232_v20 = vrot.slane %v497_v33, 3  ;;  %v1362_v53 = vunpack.i.h.s16 %v4400_v8  ;;  %v3695_v15 = vpack.i.b16 %v4398_v37, %v4408_v5 }
  0xd6   : > { %1431 = vst [vmem:[#allocation1 + $0x4] ss:$9 sm:$0xff] %v3693_v42  ;;  %v4411_v42 = vsel %vm541_vm4, %v496_v39, %v1231_v44  ;;  %v4415_v23 = vrot.slane %v1292_v31, 2 }
  0xd7   : > { %1433 = vst [vmem:[#allocation1 + $0x5] ss:$9 sm:$0xff] %v3694_v26  ;;  %v5452_v26 = vunpack.i.h.s16 %v4398_v37  ;;  %v5451_v45 = vrot.slane %v4411_v42, 3  ;;  %v1315_v61 = vsel %vm533_vm2, %v497_v33, %v1232_v20  ;;  %v3697_v44 = vpack.i.b16 %v4404_v6, %v1362_v53 }
  0xd8   : > { %1435 = vst [vmem:[#allocation1 + $0x6] ss:$9 sm:$0xff] %v4390_v38  ;;  %v1318_v31 = vsel %vm537_vm3, %v497_v33, %v1232_v20  ;;  %v4432_v48 = vsel %vm528_vm0, %v497_v33, %v1232_v20  ;;  %v4434_v19 = vrot.slane %v1315_v61, 1 }
  0xd9   : > { %1437 = vst [vmem:[#allocation1 + $0x7] ss:$9 sm:$0xff] %v4392_v24  ;;  %v3696_v39 = vpack.i.b16 %v4400_v8, %v5452_v26  ;;  %v3698_v51 = vpack.i.b16 %v5451_v45, %v1364_v21  ;;  %v4442_v53 = vrot.slane %v1318_v31, 2  ;;  %v1321_v21 = vsel %vm541_vm4, %v497_v33, %v1232_v20 }
  0xda   : > { %v4448_v61 = vrot.slane %v1321_v21, 3 }
  0xdc   : > { %v1372_v45 = vunpack.i.l.s16 %v4448_v61 }
  0xe0   : > { %v1438_v0 = vld [vmem:[#allocation1] sm:$0xff] }
  0xe1   : > { %1440 = vst [vmem:[#allocation1] ss:$9 sm:$0xff] %v4415_v23 }
  0xe2   : > { %1442 = vst [vmem:[#allocation1 + $0x1] ss:$9 sm:$0xff] %v3695_v15  ;;  %3700 = vmatmul.msk.bf16.gmra.mxu3 %vm912_vm5, %v1438_v0  ;;  %v499_v15 = vld [vmem:[%s4440_s13 + $0x4] sm:$0xf] }
  0xe3   : > { %1444 = vst [vmem:[#allocation1 + $0x2] ss:$9 sm:$0xff] %v3696_v39  ;;  %v498_v39 = vld [vmem:[%s4440_s13] sm:$0xf]  ;;  %v1513_v0 = vrot.slane %v499_v15, 3 }
  0xe4   : > { %1446 = vst [vmem:[#allocation1 + $0x3] ss:$9 sm:$0xff] %v3697_v44  ;;  %v1512_v31 = vrot.slane %v498_v39, 3 }
  0xe5   : > { %1448 = vst [vmem:[#allocation1 + $0x4] ss:$9 sm:$0xff] %v3698_v51  ;;  %v1536_v44 = vsel %vm533_vm2, %v499_v15, %v1513_v0  ;;  %v1539_v20 = vsel %vm537_vm3, %v499_v15, %v1513_v0  ;;  %v1534_v33 = vsel %vm528_vm0, %v499_v15, %v1513_v0  ;;  %v1542_v27 = vsel %vm541_vm4, %v499_v15, %v1513_v0 }
  0xe6   : > { %1450 = vst [vmem:[#allocation1 + $0x5] ss:$9 sm:$0xff] %v4432_v48  ;;  %v1529_v51 = vsel %vm541_vm4, %v498_v39, %v1512_v31  ;;  %v1538_v21 = vrot.slane %v1536_v44, 1  ;;  %v1523_v50 = vsel %vm533_vm2, %v498_v39, %v1512_v31  ;;  %v1541_v41 = vrot.slane %v1539_v20, 2 }
  0xe7   : > { %1452 = vst [vmem:[#allocation1 + $0x6] ss:$9 sm:$0xff] %v4434_v19  ;;  %v1526_v12 = vsel %vm537_vm3, %v498_v39, %v1512_v31  ;;  %v1531_v22 = vrot.slane %v1529_v51, 3  ;;  %v1618_v52 = vunpack.i.h.s16 %v1534_v33  ;;  %v1521_v2 = vsel %vm528_vm0, %v498_v39, %v1512_v31 }
  0xe8   : > { %1454 = vst [vmem:[#allocation1 + $0x7] ss:$9 sm:$0xff] %v4442_v53  ;;  %v1620_v9 = vunpack.i.h.s16 %v1538_v21  ;;  %v1528_v43 = vrot.slane %v1526_v12, 2  ;;  %v1544_v7 = vrot.slane %v1542_v27, 3  ;;  %v1622_v44 = vunpack.i.h.s16 %v1541_v41 }
  0xe9   : > { %v3703_v54 = vpack.i.b16 %v1534_v33, %v1531_v22  ;;  %v1514_v20 = vrot.slane %v500_v10, 3  ;;  %v3704_v51 = vpack.i.b16 %v1538_v21, %v1618_v52  ;;  %v1515_v15 = vrot.slane %v501_v60, 3 }
  0xea   : > { %v3705_v49 = vpack.i.b16 %v1541_v41, %v1620_v9 }
  0xeb   : > { %v1547_v27 = vsel %vm528_vm0, %v500_v10, %v1514_v20  ;;  %v1562_v22 = vsel %vm533_vm2, %v501_v60, %v1515_v15  ;;  %v1565_v12 = vsel %vm537_vm3, %v501_v60, %v1515_v15  ;;  %v1555_v52 = vsel %vm541_vm4, %v500_v10, %v1514_v20 }
  0xec   : > { %v1564_v9 = vrot.slane %v1562_v22, 1  ;;  %v1552_v41 = vsel %vm537_vm3, %v500_v10, %v1514_v20  ;;  %v1557_v39 = vrot.slane %v1555_v52, 3  ;;  %v1568_v31 = vsel %vm541_vm4, %v501_v60, %v1515_v15 }
  0xef   : > { %v1455_v26 = vld [vmem:[#allocation1] sm:$0xff] }
  0xf0   : > { %1457 = vst [vmem:[#allocation1] ss:$9 sm:$0xff] %v1372_v45  ;;  %v1525_v45 = vrot.slane %v1523_v50, 1  ;;  %v3706_v50 = vpack.i.b16 %v1544_v7, %v1622_v44  ;;  %v502_v7 = vld [vmem:[%s4440_s13 + $0x10] sm:$0xf] }
  0xf1   : > { %v1516_v33 = vrot.slane %v502_v7, 3  ;;  %v503_v44 = vld [vmem:[%s4440_s13 + $0x14] sm:$0xf] }
  0xf2   : > { %3701 = vmatmul.msk.bf16.gmra.mxu3 %vm912_vm5, %v1455_v26  ;;  %v510_v26 = vld [vmem:[%s5375_s4 + $0xa] sm:$0x3]  ;;  %v1517_v47 = vrot.slane %v503_v44, 3 }
  0xf3   : > { %v1893_v0 = vand.u32 %v3884_v3, %v510_v26  ;;  %v1554_v26 = vrot.slane %v1552_v41, 2 }
  0xf4   : > { %v1591_v52 = vsel %vm537_vm3, %v503_v44, %v1517_v47 }
  0xf5   : > { %1902 = vmatpush.bf16.msrb.mxu1 %v1893_v0  ;;  %v1593_v41 = vrot.slane %v1591_v52, 2 }
  0xf7   : > { %v1458_v25 = vld [vmem:[#allocation1] sm:$0xff] }
  0xf8   : > { %1685 = vst [vmem:[#allocation1] ss:$9 sm:$0xff] %v1521_v2  ;;  %v1560_v2 = vsel %vm528_vm0, %v501_v60, %v1515_v15 }
  0xf9   : > { %1688 = vst [vmem:[#allocation1 + $0x1] ss:$9 sm:$0xff] %v1525_v45  ;;  %v1634_v45 = vunpack.i.h.s16 %v1564_v9 }
  0xfa   : > { %1691 = vst [vmem:[#allocation1 + $0x2] ss:$9 sm:$0xff] %v1528_v43  ;;  %v1549_v43 = vsel %vm533_vm2, %v500_v10, %v1514_v20  ;;  %v1575_v10 = vsel %vm533_vm2, %v502_v7, %v1516_v33 }
  0xfb   : > { %1694 = vst [vmem:[#allocation1 + $0x3] ss:$9 sm:$0xff] %v3703_v54  ;;  %v1567_v54 = vrot.slane %v1565_v12, 2  ;;  %v1551_v21 = vrot.slane %v1549_v43, 1  ;;  %v1577_v15 = vrot.slane %v1575_v10, 1  ;;  %v1588_v12 = vsel %vm533_vm2, %v503_v44, %v1517_v47 }
  0xfc   : > { %1697 = vst [vmem:[#allocation1 + $0x4] ss:$9 sm:$0xff] %v3704_v51  ;;  %v1570_v51 = vrot.slane %v1568_v31, 3  ;;  %v1590_v43 = vrot.slane %v1588_v12, 1 }
  0xfd   : > { %1700 = vst [vmem:[#allocation1 + $0x5] ss:$9 sm:$0xff] %v3705_v49  ;;  %v1632_v49 = vunpack.i.h.s16 %v1560_v2  ;;  %v1636_v0 = vunpack.i.h.s16 %v1567_v54  ;;  %v3709_v20 = vpack.i.b16 %v1567_v54, %v1634_v45  ;;  %v504_v54 = vld [vmem:[%s4440_s13 + $0x18] sm:$0xf] }
  0xfe   : > { %1703 = vst [vmem:[#allocation1 + $0x6] ss:$9 sm:$0xff] %v3706_v50  ;;  %v3707_v50 = vpack.i.b16 %v1560_v2, %v1557_v39  ;;  %v1581_v2 = vsel %vm541_vm4, %v502_v7, %v1516_v33  ;;  %v1578_v39 = vsel %vm537_vm3, %v502_v7, %v1516_v33  ;;  %v1518_v45 = vrot.slane %v504_v54, 3 }
  0xff   : > { %1706 = vst [vmem:[#allocation1 + $0x7] ss:$9 sm:$0xff] %v1547_v27  ;;  %v3708_v22 = vpack.i.b16 %v1564_v9, %v1632_v49  ;;  %v3710_v60 = vpack.i.b16 %v1570_v51, %v1636_v0  ;;  %v1586_v9 = vsel %vm528_vm0, %v503_v44, %v1517_v47  ;;  %v1583_v31 = vrot.slane %v1581_v2, 3 }
 0x100   : > { %v1594_v49 = vsel %vm541_vm4, %v503_v44, %v1517_v47  ;;  %v1580_v51 = vrot.slane %v1578_v39, 2  ;;  %v1599_v47 = vsel %vm528_vm0, %v504_v54, %v1518_v45  ;;  %v1607_v44 = vsel %vm541_vm4, %v504_v54, %v1518_v45 }
 0x101   : > { %v1596_v0 = vrot.slane %v1594_v49, 3  ;;  %v1609_v12 = vrot.slane %v1607_v44, 3  ;;  %v1791_v39 = vunpack.i.h.s16 %v4316_v18  ;;  %v941_v44 = vpop.f32.mrf.mxu3 }
 0x102   : > { %3702 = vmatmul.msk.bf16.gmra.mxu3 %vm912_vm5, %v1458_v25  ;;  %v1573_v25 = vsel %vm528_vm0, %v502_v7, %v1516_v33 }
 0x103   : > { %v1658_v52 = vunpack.i.l.s16 %v1609_v12 }
 0x106   : > { %v1707_v27 = vld [vmem:[#allocation1] sm:$0xff] }
 0x107   : > { %3715 = vmatmul.msk.bf16.vlgmr.msrb.gmra.mxu0 %vm912_vm5, %v1707_v27  ;;  %1709 = vst [vmem:[#allocation1] ss:$9 sm:$0xff] %v1551_v21  ;;  %v1646_v21 = vunpack.i.h.s16 %v1586_v9  ;;  %v3711_v27 = vpack.i.b16 %v1586_v9, %v1583_v31  ;;  %v1325_v9 = vunpack.i.h.s16 %v4324_v11  ;;  %v5534_v11 = vunpack.i.h.s16 %v4307_v58 }
 0x108   : > { %1711 = vst [vmem:[#allocation1 + $0x1] ss:$9 sm:$0xff] %v1554_v26  ;;  %v1648_v26 = vunpack.i.h.s16 %v1590_v43  ;;  %v5535_v58 = vrot.slane %v4319_v34, 3 }
 0x109   : > { %1713 = vst [vmem:[#allocation1 + $0x2] ss:$9 sm:$0xff] %v3707_v50  ;;  %v1650_v50 = vunpack.i.h.s16 %v1593_v41  ;;  %v3719_v31 = vpack.i.b16 %v4326_v1, %v1325_v9  ;;  %v943_v12 = vpop.f32.mrf.mxu3  ;;  %v5546_v9 = vld [vmem:[#allocation39_spill] sm:$0xff] }
 0x10a   : > { %1715 = vst [vmem:[#allocation1 + $0x3] ss:$9 sm:$0xff] %v3708_v22  ;;  %v3712_v22 = vpack.i.b16 %v1590_v43, %v1646_v21  ;;  %v1327_v43 = vunpack.i.h.s16 %v4326_v1  ;;  %v1339_v21 = vunpack.i.h.s16 %v4346_v4 }
 0x10b   : > { %1717 = vst [vmem:[#allocation1 + $0x4] ss:$9 sm:$0xff] %v3709_v20  ;;  %v1601_v20 = vsel %vm533_vm2, %v504_v54, %v1518_v45 }
 0x10c   : > { %1719 = vst [vmem:[#allocation1 + $0x5] ss:$9 sm:$0xff] %v3710_v60  ;;  %v3713_v60 = vpack.i.b16 %v1593_v41, %v1648_v26  ;;  %v1603_v7 = vrot.slane %v1601_v20, 1  ;;  %v1329_v41 = vunpack.i.h.s16 %v4330_v13  ;;  %v1801_v26 = vpack.i.b16 %v5534_v11, %v1791_v39 }
 0x10d   : > { %1721 = vst [vmem:[#allocation1 + $0x6] ss:$9 sm:$0xff] %v1573_v25  ;;  %v1604_v25 = vsel %vm537_vm3, %v504_v54, %v1518_v45  ;;  %v3720_v54 = vpack.i.b16 %v4330_v13, %v1327_v43  ;;  %v3722_v4 = vpack.i.b16 %v4370_v14, %v1339_v21  ;;  %v1341_v13 = vunpack.i.h.s16 %v4370_v14 }
 0x10e   : > { %1723 = vst [vmem:[#allocation1 + $0x7] ss:$9 sm:$0xff] %v1577_v15  ;;  %v3714_v15 = vpack.i.b16 %v1596_v0, %v1650_v50  ;;  %v1606_v33 = vrot.slane %v1604_v25, 2  ;;  %v3721_v49 = vpack.i.b16 %v4316_v18, %v1329_v41  ;;  %v511_v0 = vld [vmem:[%s5375_s4 + $0xc] sm:$0x3]  ;;  %v1343_v50 = vunpack.i.h.s16 %v4373_v63  ;;  %v5547_v41 = vld [vmem:[#allocation56_spill] sm:$0xff] }
 0x10f   : > { %v2017_v18 = vand.u32 %v3884_v3, %v511_v0  ;;  %v1355_v20 = vunpack.i.h.s16 %v4392_v24 }
 0x110   : > { %v3724_v34 = vpack.i.b16 %v4362_v40, %v1343_v50 }
 0x111   : > { %2026 = vmatpush.bf16.msrb.mxu2 %v2017_v18  ;;  %v3726_v25 = vpack.i.b16 %v4415_v23, %v1355_v20  ;;  %v946_v39 = vpop.f32.mrf.mxu3  ;;  %v5552_v18 = vld [vmem:[#allocation50_spill] sm:$0xff] }
 0x115   : > { %v1724_v10 = vld [vmem:[#allocation1] sm:$0xff] }
 0x116   : > { %1726 = vst [vmem:[#allocation1] ss:$9 sm:$0xff] %v1580_v51  ;;  %v512_v51 = vld [vmem:[%s5375_s4 + $0xe] sm:$0x3] }
 0x117   : > { %3716 = vmatmul.msk.bf16.gmra.mxu0 %vm912_vm5, %v1724_v10  ;;  %1728 = vst [vmem:[#allocation1 + $0x1] ss:$9 sm:$0xff] %v3711_v27  ;;  %v2171_v1 = vand.u32 %v3884_v3, %v512_v51  ;;  %v1793_v27 = vunpack.i.h.s16 %v4362_v40  ;;  %v5550_v51 = vld [vmem:[#allocation43_spill] sm:$0xff] }
 0x118   : > { %1730 = vst [vmem:[#allocation1 + $0x2] ss:$9 sm:$0xff] %v3712_v22  ;;  %v1353_v22 = vunpack.i.h.s16 %v4390_v38 }
 0x119   : > { %1732 = vst [vmem:[#allocation1 + $0x3] ss:$9 sm:$0xff] %v3713_v60  ;;  %2180 = vmatpush.bf16.msra.mxu3 %v2171_v1  ;;  %v5537_v60 = vrot.slane %v4365_v62, 3  ;;  %v1371_v62 = vunpack.i.h.s16 %v4442_v53  ;;  %v4578_v11 = vpop.f32.mrf.mxu3  ;;  %v5551_v1 = vld [vmem:[#allocation46_spill] sm:$0xff] }
 0x11a   : > { %1734 = vst [vmem:[#allocation1 + $0x4] ss:$9 sm:$0xff] %v3714_v15  ;;  %v3725_v38 = vpack.i.b16 %v4392_v24, %v1353_v22  ;;  %v5538_v15 = vunpack.i.h.s16 %v4398_v37  ;;  %v1797_v37 = vunpack.i.h.s16 %v4448_v61  ;;  %v5555_v22 = vld [vmem:[#allocation59_spill] sm:$0xff] }
 0x11b   : > { %1736 = vst [vmem:[#allocation1 + $0x5] ss:$9 sm:$0xff] %v1599_v47 }
 0x11c   : > { %1738 = vst [vmem:[#allocation1 + $0x6] ss:$9 sm:$0xff] %v1603_v7 }
 0x11d   : > { %1740 = vst [vmem:[#allocation1 + $0x7] ss:$9 sm:$0xff] %v1606_v33  ;;  %v3730_v33 = vpack.i.b16 %v4448_v61, %v1371_v62 }
 0x124   : > { %v1741_v2 = vld [vmem:[#allocation1] sm:$0xff] }
 0x125   : > { %1743 = vst [vmem:[#allocation1] ss:$9 sm:$0xff] %v1658_v52 }
 0x127   : > { %3717 = vmatmul.msk.bf16.gmra.mxu0 %vm912_vm5, %v1741_v2 }
 0x12c   : > { %v1744_v45 = vld [vmem:[#allocation1] sm:$0xff] }
 0x12d   : > { %1824 = vst [vmem:[#allocation1] ss:$9 sm:$0xff] %v3719_v31  ;;  %v5548_v31 = vld [vmem:[#allocation41_spill] sm:$0xff] }
 0x12e   : > { %1827 = vst [vmem:[#allocation1 + $0x1] ss:$9 sm:$0xff] %v3720_v54  ;;  %v5549_v54 = vld [vmem:[#allocation42_spill] sm:$0xff] }
 0x12f   : > { %1830 = vst [vmem:[#allocation1 + $0x2] ss:$9 sm:$0xff] %v3721_v49  ;;  %v482_v49 = vld [vmem:[%s4027_s15 + $0x1c] sm:$0xf] }
 0x130   : > { %1833 = vst [vmem:[#allocation1 + $0x3] ss:$9 sm:$0xff] %v1801_v26  ;;  %v1931_v21 = vrot.slane %v482_v49, 3 }
 0x131   : > { %1836 = vst [vmem:[#allocation1 + $0x4] ss:$9 sm:$0xff] %v4309_v29  ;;  %v3723_v29 = vpack.i.b16 %v4373_v63, %v1341_v13  ;;  %v1357_v63 = vunpack.i.h.s16 %v4415_v23  ;;  %v5554_v13 = vld [vmem:[#allocation58_spill] sm:$0xff] }
 0x132   : > { %1839 = vst [vmem:[#allocation1 + $0x5] ss:$9 sm:$0xff] %v4313_v35  ;;  %v5536_v35 = vunpack.i.h.s16 %v4353_v16  ;;  %v1369_v16 = vunpack.i.h.s16 %v4434_v19  ;;  %v1936_v26 = vsel %vm533_vm2, %v482_v49, %v1931_v21  ;;  %v1939_v0 = vsel %vm537_vm3, %v482_v49, %v1931_v21 }
 0x133   : > { %1842 = vst [vmem:[#allocation1 + $0x6] ss:$9 sm:$0xff] %v5535_v58  ;;  %v3727_v24 = vpack.i.b16 %v4408_v5, %v1357_v63  ;;  %v5553_v58 = vld [vmem:[#allocation57_spill] sm:$0xff]  ;;  %v4589_v50 = vsel %vm528_vm0, %v482_v49, %v1931_v21  ;;  %v1942_v20 = vsel %vm541_vm4, %v482_v49, %v1931_v21  ;;  %v5567_v49 = vld [vmem:[#allocation14_spill] sm:$0xff] }
 0x134   : > { %1845 = vst [vmem:[#allocation1 + $0x7] ss:$9 sm:$0xff] %v3722_v4  ;;  %v1808_v14 = vpack.i.b16 %v5536_v35, %v1793_v27  ;;  %v3729_v7 = vpack.i.b16 %v4442_v53, %v1369_v16  ;;  %v3735_v53 = vpack.i.b16 %v4091_v36, %v4071_v17  ;;  %v3737_v4 = vpack.i.b16 %v5552_v18, %v5551_v1  ;;  %v4602_v35 = vpop.f32.mrf.mxu3 }
 0x135   : > { %v4591_v27 = vrot.slane %v1936_v26, 1  ;;  %v806_v21 = vunpack.i.h.s16 %v5567_v49 }
 0x137   : > { %3718 = vmatmul.msk.bf16.gmra.mxu0 %vm912_vm5, %v1744_v45 }
 0x13b   : > { %v1846_v10 = vld [vmem:[#allocation1] sm:$0xff] }
 0x13c   : > { %3731 = vmatmul.msk.bf16.vlgmr.msrb.gmra.mxu1 %vm912_vm5, %v1846_v10  ;;  %1854 = vst [vmem:[#allocation1 + $0x3] ss:$9 sm:$0xff] %v4355_v32  ;;  %v1795_v32 = vunpack.i.h.s16 %v4408_v5  ;;  %v936_v5 = vpop.f32.mrf.mxu0  ;;  %v4594_v10 = vrot.slane %v1939_v0, 2  ;;  %v5569_v0 = vld [vmem:[#allocation21_spill] sm:$0xff] }
 0x13d   : > { %1856 = vst [vmem:[#allocation1 + $0x4] ss:$9 sm:$0xff] %v4359_v30  ;;  %v1367_v30 = vunpack.i.h.s16 %v4432_v48  ;;  %v5539_v48 = vrot.slane %v4411_v42, 3 }
 0x13e   : > { %1858 = vst [vmem:[#allocation1 + $0x5] ss:$9 sm:$0xff] %v5537_v60  ;;  %v1815_v47 = vpack.i.b16 %v5538_v15, %v1795_v32  ;;  %v1066_v60 = vpop.f32.mrf.mxu1 }
 0x13f   : > { %1848 = vst [vmem:[#allocation1] ss:$9 sm:$0xff] %v3723_v29  ;;  %v3728_v23 = vpack.i.b16 %v4434_v19, %v1367_v30  ;;  %v4600_v29 = vrot.slane %v1942_v20, 3  ;;  %v953_v30 = vpop.f32.mrf.mxu3  ;;  %v5573_v20 = vld [vmem:[#allocation10_spill] sm:$0xff] }
 0x140   : > { %1850 = vst [vmem:[#allocation1 + $0x1] ss:$9 sm:$0xff] %v3724_v34 }
 0x141   : > { %1852 = vst [vmem:[#allocation1 + $0x2] ss:$9 sm:$0xff] %v1808_v14 }
 0x142   : > { %1860 = vst [vmem:[#allocation1 + $0x6] ss:$9 sm:$0xff] %v3725_v38  ;;  %v1951_v38 = vunpack.i.l.s16 %v4600_v29 }
 0x143   : > { %1862 = vst [vmem:[#allocation1 + $0x7] ss:$9 sm:$0xff] %v3726_v25  ;;  %v4605_v25 = vadd.f32 %v1066_v60, %v941_v44  ;;  %v5563_v44 = vld [vmem:[#allocation7_spill] sm:$0xff] }
 0x144   : > { %v938_v61 = vpop.f32.mrf.mxu0 }
 0x14a   : > { %v1863_v40 = vld [vmem:[#allocation1] sm:$0xff] }
 0x14b   : > { %1869 = vst [vmem:[#allocation1 + $0x2] ss:$9 sm:$0xff] %v4400_v8 }
 0x14c   : > { %3732 = vmatmul.msk.bf16.gmra.mxu1 %vm912_vm5, %v1863_v40  ;;  %1871 = vst [vmem:[#allocation1 + $0x3] ss:$9 sm:$0xff] %v4404_v6  ;;  %v513_v6 = vld [vmem:[%s5375_s4 + $0x10] sm:$0x3]  ;;  %v1061_v52 = vpop.f32.mrf.mxu0  ;;  %v5556_v40 = vld [vmem:[#allocation2_spill] sm:$0xff] }
 0x14d   : > { %1873 = vst [vmem:[#allocation1 + $0x4] ss:$9 sm:$0xff] %v5539_v48  ;;  %v2274_v19 = vand.u32 %v3884_v3, %v513_v6  ;;  %v5540_v3 = vld [vmem:[#allocation29_spill] sm:$0xff]  ;;  %v792_v62 = vunpack.i.h.s16 %v5556_v40  ;;  %v1068_v6 = vpop.f32.mrf.mxu1 }
 0x14e   : > { %1865 = vst [vmem:[#allocation1] ss:$9 sm:$0xff] %v3727_v24  ;;  %v5557_v24 = vld [vmem:[#allocation12_spill] sm:$0xff] }
 0x14f   : > { %1867 = vst [vmem:[#allocation1 + $0x1] ss:$9 sm:$0xff] %v1815_v47  ;;  %2283 = vmatpush.bf16.msra.mxu0 %v2274_v19  ;;  %v794_v15 = vunpack.i.h.s16 %v5557_v24  ;;  %v5558_v47 = vld [vmem:[#allocation13_spill] sm:$0xff]  ;;  %v3743_v19 = vpack.i.b16 %v5557_v24, %v792_v62  ;;  %v5579_v24 = vld [vmem:[#allocation23_spill] sm:$0xff] }
 0x150   : > { %1875 = vst [vmem:[#allocation1 + $0x5] ss:$9 sm:$0xff] %v3728_v23  ;;  %v796_v23 = vunpack.i.h.s16 %v5558_v47 }
 0x151   : > { %1877 = vst [vmem:[#allocation1 + $0x6] ss:$9 sm:$0xff] %v3729_v7  ;;  %v5559_v7 = vld [vmem:[#allocation4_spill] sm:$0xff] }
 0x152   : > { %1879 = vst [vmem:[#allocation1 + $0x7] ss:$9 sm:$0xff] %v3730_v33  ;;  %v5560_v33 = vrot.slane %v5559_v7, 3  ;;  %v5581_v7 = vld [vmem:[#allocation20_spill] sm:$0xff] }
 0x154   : > { %v1063_v34 = vpop.f32.mrf.mxu0 }
 0x155   : > { %v1064_v14 = vadd.f32 %v1063_v34, %v938_v61  ;;  %v5564_v61 = vrot.slane %v5563_v44, 3 }
 0x159   : > { %v1880_v8 = vld [vmem:[#allocation1] sm:$0xff] }
 0x15a   : > { %1882 = vst [vmem:[#allocation1] ss:$9 sm:$0xff] %v1797_v37  ;;  %v3742_v37 = vpack.i.b16 %v5556_v40, %v5560_v33  ;;  %v5578_v40 = vld [vmem:[#allocation22_spill] sm:$0xff]  ;;  %v5582_v33 = vrot.slane %v5581_v7, 3 }
 0x15b   : > { %v820_v62 = vunpack.i.h.s16 %v5578_v40 }
 0x15c   : > { %3733 = vmatmul.msk.bf16.gmra.mxu1 %vm912_vm5, %v1880_v8  ;;  %v1193_v32 = vpop.f32.mrf.mxu0  ;;  %v5561_v8 = vld [vmem:[#allocation5_spill] sm:$0xff] }
 0x161   : > { %v1883_v42 = vld [vmem:[#allocation1] sm:$0xff] }
 0x162   : > { %1963 = vst [vmem:[#allocation1] ss:$9 sm:$0xff] %v4049_v56  ;;  %v1062_v56 = vadd.f32 %v1061_v52, %v936_v5  ;;  %v4616_v5 = vadd.f32 %v1068_v6, %v943_v12  ;;  %v5565_v52 = vld [vmem:[#allocation6_spill] sm:$0xff]  ;;  %v1071_v12 = vpop.f32.mrf.mxu1  ;;  %v3751_v6 = vpack.i.b16 %v5579_v24, %v820_v62 }
 0x163   : > { %1965 = vst [vmem:[#allocation1 + $0x1] ss:$9 sm:$0xff] %v4051_v57  ;;  %v5541_v57 = vld [vmem:[#allocation30_spill] sm:$0xff] }
 0x164   : > { %1967 = vst [vmem:[#allocation1 + $0x2] ss:$9 sm:$0xff] %v4054_v59  ;;  %v5542_v59 = vld [vmem:[#allocation31_spill] sm:$0xff]  ;;  %v1212_v16 = vadd.f32 %v1193_v32, %v1062_v56  ;;  %v1195_v56 = vpop.f32.mrf.mxu0 }
 0x165   : > { %1970 = vst [vmem:[#allocation1 + $0x3] ss:$9 sm:$0xff] %v3735_v53  ;;  %v5562_v53 = vld [vmem:[#allocation3_spill] sm:$0xff] }
 0x166   : > { %1972 = vst [vmem:[#allocation1 + $0x4] ss:$9 sm:$0xff] %v4225_v55  ;;  %v5543_v55 = vld [vmem:[#allocation54_spill] sm:$0xff] }
 0x167   : > { %1974 = vst [vmem:[#allocation1 + $0x5] ss:$9 sm:$0xff] %v4238_v46  ;;  %v5544_v46 = vld [vmem:[#allocation55_spill] sm:$0xff] }
 0x168   : > { %1976 = vst [vmem:[#allocation1 + $0x6] ss:$9 sm:$0xff] %v4243_v28  ;;  %v5545_v28 = vld [vmem:[#allocation35_spill] sm:$0xff] }
 0x169   : > { %1979 = vst [vmem:[#allocation1 + $0x7] ss:$9 sm:$0xff] %v5540_v3  ;;  %v3736_v43 = vpack.i.b16 %v5546_v9, %v5545_v28  ;;  %v3745_v3 = vpack.i.b16 %v5564_v61, %v796_v23  ;;  %v5580_v23 = vld [vmem:[#allocation24_spill] sm:$0xff]  ;;  %v5584_v61 = vld [vmem:[#allocation25_spill] sm:$0xff] }
 0x16c   : > { %3734 = vmatmul.msk.bf16.gmra.mxu1 %vm912_vm5, %v1883_v42  ;;  %v3744_v42 = vpack.i.b16 %v5558_v47, %v794_v15  ;;  %v822_v15 = vunpack.i.h.s16 %v5579_v24 }
 0x170   : > { %v1980_v2 = vld [vmem:[#allocation1] sm:$0xff] }
 0x171   : > { %3738 = vmatmul.msk.bf16.vlgmr.msrb.gmra.mxu2 %vm912_vm5, %v1980_v2  ;;  %1981 = vst [vmem:[#allocation1] ss:$9 sm:$0xff] %v5541_v57  ;;  %v1479_v2 = vpop.f32.mrf.mxu3  ;;  %v1213_v57 = vadd.f32 %v1195_v56, %v1064_v14  ;;  %v5574_v14 = vld [vmem:[#allocation17_spill] sm:$0xff] }
 0x172   : > { %1982 = vst [vmem:[#allocation1 + $0x1] ss:$9 sm:$0xff] %v5542_v59  ;;  %v1498_v59 = vadd.f32 %v1479_v2, %v1212_v16  ;;  %v490_v16 = vld [vmem:[%s3896_s28 + $0x1c] sm:$0xf] }
 0x173   : > { %1985 = vst [vmem:[#allocation1 + $0x3] ss:$9 sm:$0xff] %v5543_v55  ;;  %v5566_v55 = vld [vmem:[#allocation8_spill] sm:$0xff]  ;;  %v2055_v47 = vrot.slane %v490_v16, 3 }
 0x174   : > { %1986 = vst [vmem:[#allocation1 + $0x4] ss:$9 sm:$0xff] %v5544_v46  ;;  %v4624_v46 = vadd.f32 %v1071_v12, %v946_v39  ;;  %v5571_v39 = vld [vmem:[#allocation11_spill] sm:$0xff] }
 0x175   : > { %1987 = vst [vmem:[#allocation1 + $0x5] ss:$9 sm:$0xff] %v5547_v41  ;;  %v2063_v44 = vsel %vm537_vm3, %v490_v16, %v2055_v47  ;;  %v2058_v56 = vsel %vm528_vm0, %v490_v16, %v2055_v47 }
 0x176   : > { %1989 = vst [vmem:[#allocation1 + $0x6] ss:$9 sm:$0xff] %v5548_v31 }
 0x177   : > { %1990 = vst [vmem:[#allocation1 + $0x7] ss:$9 sm:$0xff] %v5549_v54 }
 0x178   : > { %1984 = vst [vmem:[#allocation1 + $0x2] ss:$9 sm:$0xff] %v3736_v43 }
 0x179   : > { %v1481_v41 = vpop.f32.mrf.mxu3 }
 0x17a   : > { %v1499_v54 = vadd.f32 %v1481_v41, %v1213_v57  ;;  %v2065_v57 = vrot.slane %v2063_v44, 2  ;;  %v1198_v41 = vpop.f32.mrf.mxu2 }
 0x17f   : > { %v1991_v45 = vld [vmem:[#allocation1] sm:$0xff] }
 0x180   : > { %1992 = vst [vmem:[#allocation1] ss:$9 sm:$0xff] %v5550_v51 }
 0x181   : > { %3739 = vmatmul.msk.bf16.gmra.mxu2 %vm912_vm5, %v1991_v45  ;;  %1995 = vst [vmem:[#allocation1 + $0x2] ss:$9 sm:$0xff] %v5553_v58  ;;  %v5568_v45 = vld [vmem:[#allocation15_spill] sm:$0xff]  ;;  %v5570_v58 = vld [vmem:[#allocation9_spill] sm:$0xff] }
 0x182   : > { %1996 = vst [vmem:[#allocation1 + $0x3] ss:$9 sm:$0xff] %v5554_v13  ;;  %v808_v26 = vunpack.i.h.s16 %v5568_v45  ;;  %v5572_v13 = vrot.slane %v5571_v39, 3  ;;  %v3747_v34 = vpack.i.b16 %v5568_v45, %v806_v21  ;;  %v1214_v21 = vadd.f32 %v1198_v41, %v4605_v25 }
 0x183   : > { %1997 = vst [vmem:[#allocation1 + $0x4] ss:$9 sm:$0xff] %v5555_v22 }
 0x184   : > { %1994 = vst [vmem:[#allocation1 + $0x1] ss:$9 sm:$0xff] %v3737_v4  ;;  %v1765_v43 = vpop.f32.mrf.mxu0  ;;  %v810_v4 = vunpack.i.h.s16 %v5569_v0  ;;  %v3746_v22 = vpack.i.b16 %v5567_v49, %v5572_v13  ;;  %v3748_v60 = vpack.i.b16 %v5569_v0, %v808_v26  ;;  %v1484_v26 = vpop.f32.mrf.mxu3 }
 0x185   : > { %1999 = vst [vmem:[#allocation1 + $0x5] ss:$9 sm:$0xff] %v4589_v50  ;;  %v4627_v31 = vadd.f32 %v1765_v43, %v1498_v59  ;;  %v2066_v59 = vsel %vm541_vm4, %v490_v16, %v2055_v47  ;;  %v1073_v43 = vpop.f32.mrf.mxu1  ;;  %v1200_v13 = vpop.f32.mrf.mxu2 }
 0x186   : > { %2001 = vst [vmem:[#allocation1 + $0x6] ss:$9 sm:$0xff] %v4591_v27  ;;  %v1074_v49 = vadd.f32 %v1073_v43, %v4578_v11 }
 0x187   : > { %2003 = vst [vmem:[#allocation1 + $0x7] ss:$9 sm:$0xff] %v4594_v10 }
 0x18c   : > { %v1767_v45 = vpop.f32.mrf.mxu0  ;;  %v1486_v11 = vpop.f32.mrf.mxu3 }
 0x18d   : > { %v1076_v39 = vpop.f32.mrf.mxu1 }
 0x18e   : > { %v2004_v63 = vld [vmem:[#allocation1] sm:$0xff] }
 0x18f   : > { %2006 = vst [vmem:[#allocation1] ss:$9 sm:$0xff] %v1951_v38  ;;  %v5575_v38 = vld [vmem:[#allocation18_spill] sm:$0xff] }
 0x191   : > { %3740 = vmatmul.msk.bf16.gmra.mxu2 %vm912_vm5, %v2004_v63  ;;  %v5576_v63 = vld [vmem:[#allocation16_spill] sm:$0xff] }
 0x192   : > { %v5577_v32 = vrot.slane %v5576_v63, 3  ;;  %v5587_v63 = vld [vmem:[#allocation26_spill] sm:$0xff] }
 0x194   : > { %v3749_v30 = vpack.i.b16 %v5577_v32, %v810_v4  ;;  %v1500_v4 = vadd.f32 %v1484_v26, %v1214_v21  ;;  %v5588_v32 = vld [vmem:[#allocation27_spill] sm:$0xff]  ;;  %v1489_v24 = vpop.f32.mrf.mxu3  ;;  %v1085_v26 = vunpack.i.h.s16 %v5551_v1 }
 0x196   : > { %v2007_v48 = vld [vmem:[#allocation1] sm:$0xff] }
 0x197   : > { %2102 = vst [vmem:[#allocation1] ss:$9 sm:$0xff] %v5561_v8  ;;  %v2060_v8 = vsel %vm533_vm2, %v490_v16, %v2055_v47  ;;  %v1203_v16 = vpop.f32.mrf.mxu2  ;;  %v5593_v47 = vld [vmem:[#allocation36_spill] sm:$0xff] }
 0x198   : > { %2105 = vst [vmem:[#allocation1 + $0x1] ss:$9 sm:$0xff] %v5562_v53  ;;  %v5583_v53 = vld [vmem:[#allocation19_spill] sm:$0xff]  ;;  %v2062_v2 = vrot.slane %v2060_v8, 1 }
 0x199   : > { %2108 = vst [vmem:[#allocation1 + $0x2] ss:$9 sm:$0xff] %v5565_v52 }
 0x19a   : > { %2111 = vst [vmem:[#allocation1 + $0x3] ss:$9 sm:$0xff] %v3742_v37  ;;  %v3750_v37 = vpack.i.b16 %v5578_v40, %v5582_v33  ;;  %v1216_v40 = vadd.f32 %v1203_v16, %v4624_v46  ;;  %v1083_v46 = vunpack.i.h.s16 %v5545_v28 }
 0x19b   : > { %2114 = vst [vmem:[#allocation1 + $0x4] ss:$9 sm:$0xff] %v3743_v19 }
 0x19c   : > { %2117 = vst [vmem:[#allocation1 + $0x5] ss:$9 sm:$0xff] %v3744_v42  ;;  %v3752_v42 = vpack.i.b16 %v5580_v23, %v822_v15 }
 0x19d   : > { %2120 = vst [vmem:[#allocation1 + $0x6] ss:$9 sm:$0xff] %v3745_v3  ;;  %v5585_v3 = vrot.slane %v5584_v61, 3  ;;  %v5595_v61 = vld [vmem:[#allocation38_spill] sm:$0xff] }
 0x19e   : > { %2123 = vst [vmem:[#allocation1 + $0x7] ss:$9 sm:$0xff] %v5566_v55  ;;  %v2068_v55 = vrot.slane %v2066_v59, 3 }
 0x1a0   : > { %v2075_v12 = vunpack.i.l.s16 %v2068_v55  ;;  %v5601_v55 = vld [vmem:[#allocation48_spill] sm:$0xff] }
 0x1a1   : > { %3741 = vmatmul.msk.bf16.gmra.mxu2 %vm912_vm5, %v2007_v48  ;;  %v824_v48 = vunpack.i.h.s16 %v5580_v23  ;;  %v1502_v23 = vadd.f32 %v1489_v24, %v1216_v40 }
 0x1a3   : > { %v3753_v52 = vpack.i.b16 %v5585_v3, %v824_v48  ;;  %v1205_v48 = vpop.f32.mrf.mxu2  ;;  %v5596_v3 = vld [vmem:[#allocation40_spill] sm:$0xff] }
 0x1a4   : > { %v1217_v33 = vadd.f32 %v1205_v48, %v1074_v49 }
 0x1a5   : > { %v2124_v51 = vld [vmem:[#allocation1] sm:$0xff] }
 0x1a6   : > { %3754 = vmatmul.msk.bf16.vlgmr.msra.gmra.mxu3 %vm912_vm5, %v2124_v51  ;;  %2126 = vst [vmem:[#allocation1] ss:$9 sm:$0xff] %v5570_v58  ;;  %v1785_v51 = vadd.f32 %v1767_v45, %v1499_v54  ;;  %v1081_v58 = vunpack.i.h.s16 %v4071_v17  ;;  %v5590_v17 = vld [vmem:[#allocation33_spill] sm:$0xff] }
 0x1a7   : > { %2128 = vst [vmem:[#allocation1 + $0x1] ss:$9 sm:$0xff] %v5573_v20  ;;  %v1215_v20 = vadd.f32 %v1200_v13, %v4616_v5  ;;  %v5591_v5 = vld [vmem:[#allocation34_spill] sm:$0xff]  ;;  %v1950_v13 = vunpack.i.h.s16 %v4594_v10 }
 0x1a8   : > { %2138 = vst [vmem:[#allocation1 + $0x6] ss:$9 sm:$0xff] %v5574_v14 }
 0x1a9   : > { %2140 = vst [vmem:[#allocation1 + $0x7] ss:$9 sm:$0xff] %v5575_v38  ;;  %v1501_v38 = vadd.f32 %v1486_v11, %v1215_v20  ;;  %v5602_v11 = vld [vmem:[#allocation49_spill] sm:$0xff] }
 0x1aa   : > { %2130 = vst [vmem:[#allocation1 + $0x2] ss:$9 sm:$0xff] %v3746_v22  ;;  %v1077_v22 = vadd.f32 %v1076_v39, %v4602_v35  ;;  %v1078_v35 = vpop.f32.mrf.mxu1 }
 0x1ab   : > { %2132 = vst [vmem:[#allocation1 + $0x3] ss:$9 sm:$0xff] %v3747_v34  ;;  %v1770_v34 = vpop.f32.mrf.mxu0  ;;  %v1208_v59 = vpop.f32.mrf.mxu2 }
 0x1ac   : > { %2134 = vst [vmem:[#allocation1 + $0x4] ss:$9 sm:$0xff] %v3748_v60  ;;  %v1786_v14 = vadd.f32 %v1770_v34, %v1500_v4  ;;  %v5586_v60 = vunpack.i.h.s16 %v4091_v36  ;;  %v5592_v36 = vld [vmem:[#allocation32_spill] sm:$0xff]  ;;  %v1218_v41 = vadd.f32 %v1208_v59, %v1077_v22 }
 0x1ad   : > { %2136 = vst [vmem:[#allocation1 + $0x5] ss:$9 sm:$0xff] %v3749_v30  ;;  %v5589_v30 = vld [vmem:[#allocation28_spill] sm:$0xff] }
 0x1ae   : > { %v2209_v54 = vpack.i.b16 %v5586_v60, %v1081_v58  ;;  %v5605_v60 = vld [vmem:[#allocation52_spill] sm:$0xff] }
 0x1b3   : > { %v1772_v62 = vpop.f32.mrf.mxu0  ;;  %v1210_v58 = vpop.f32.mrf.mxu2 }
 0x1b4   : > { %v2141_v19 = vld [vmem:[#allocation1] sm:$0xff]  ;;  %v1787_v15 = vadd.f32 %v1772_v62, %v1501_v38 }
 0x1b5   : > { %2143 = vst [vmem:[#allocation1] ss:$9 sm:$0xff] %v5583_v53  ;;  %v5594_v53 = vld [vmem:[#allocation37_spill] sm:$0xff] }
 0x1b6   : > { %3755 = vmatmul.msk.bf16.gmra.mxu3 %vm912_vm5, %v2141_v19  ;;  %2145 = vst [vmem:[#allocation1 + $0x1] ss:$9 sm:$0xff] %v3750_v37  ;;  %v1491_v19 = vpop.f32.mrf.mxu3 }
 0x1b7   : > { %2147 = vst [vmem:[#allocation1 + $0x2] ss:$9 sm:$0xff] %v3751_v6  ;;  %v1503_v44 = vadd.f32 %v1491_v19, %v1217_v33 }
 0x1b8   : > { %2149 = vst [vmem:[#allocation1 + $0x3] ss:$9 sm:$0xff] %v3752_v42 }
 0x1b9   : > { %2151 = vst [vmem:[#allocation1 + $0x4] ss:$9 sm:$0xff] %v3753_v52  ;;  %v1904_v7 = vpop.f32.mrf.mxu1  ;;  %v5597_v52 = vld [vmem:[#allocation45_spill] sm:$0xff] }
 0x1ba   : > { %2153 = vst [vmem:[#allocation1 + $0x5] ss:$9 sm:$0xff] %v2058_v56  ;;  %v1923_v6 = vadd.f32 %v1904_v7, %v4627_v31  ;;  %v5598_v56 = vunpack.i.h.s16 %v5546_v9  ;;  %v5599_v31 = vld [vmem:[#allocation44_spill] sm:$0xff]  ;;  %v1946_v9 = vunpack.i.h.s16 %v4589_v50 }
 0x1bb   : > { %2155 = vst [vmem:[#allocation1 + $0x6] ss:$9 sm:$0xff] %v2062_v2  ;;  %v1775_v37 = vpop.f32.mrf.mxu0 }
 0x1bc   : > { %2157 = vst [vmem:[#allocation1 + $0x7] ss:$9 sm:$0xff] %v2065_v57  ;;  %v1788_v42 = vadd.f32 %v1775_v37, %v1502_v23  ;;  %v2211_v2 = vpack.i.b16 %v5598_v56, %v1083_v46  ;;  %v5600_v57 = vld [vmem:[#allocation47_spill] sm:$0xff]  ;;  %v3758_v1 = vpack.i.b16 %v4591_v27, %v1946_v9 }
 0x1be   : > { %v1494_v49 = vpop.f32.mrf.mxu3 }
 0x1bf   : > { %v1504_v45 = vadd.f32 %v1494_v49, %v1218_v41  ;;  %v4719_v41 = vld [vmem:[%s5377_s6] ss:$0 sm:$0xff] }
 0x1c1   : > { %v1906_v28 = vpop.f32.mrf.mxu1 }
 0x1c2   : > { %v1924_v43 = vadd.f32 %v1906_v28, %v1785_v51  ;;  %v5603_v51 = vunpack.i.h.s16 %v5552_v18 }
 0x1c3   : > { %v2158_v0 = vld [vmem:[#allocation1] sm:$0xff] }
 0x1c4   : > { %2160 = vst [vmem:[#allocation1] ss:$9 sm:$0xff] %v2075_v12  ;;  %v1777_v12 = vpop.f32.mrf.mxu0  ;;  %v2213_v22 = vpack.i.b16 %v5603_v51, %v1085_v26 }
 0x1c5   : > { %v1789_v21 = vadd.f32 %v1777_v12, %v1503_v44 }
 0x1c6   : > { %3756 = vmatmul.msk.bf16.gmra.mxu3 %vm912_vm5, %v2158_v0  ;;  %v1948_v0 = vunpack.i.h.s16 %v4591_v27  ;;  %v1496_v34 = vpop.f32.mrf.mxu3  ;;  %v2208_v27 = vunpack.i.h.s16 %v4600_v29 }
 0x1c9   : > { %v1909_v4 = vpop.f32.mrf.mxu1 }
 0x1ca   : > { %v1925_v20 = vadd.f32 %v1909_v4, %v1786_v14  ;;  %v3760_v14 = vpack.i.b16 %v4600_v29, %v1950_v13 }
 0x1cb   : > { %v2161_v25 = vld [vmem:[#allocation1] sm:$0xff] }
 0x1cc   : > { %2219 = vst [vmem:[#allocation1] ss:$9 sm:$0xff] %v5587_v63  ;;  %v1780_v50 = vpop.f32.mrf.mxu0  ;;  %v5606_v63 = vld [vmem:[#allocation53_spill] sm:$0xff] }
 0x1cd   : > { %2221 = vst [vmem:[#allocation1 + $0x1] ss:$9 sm:$0xff] %v5588_v32  ;;  %v1790_v38 = vadd.f32 %v1780_v50, %v1504_v45 }
 0x1ce   : > { %2223 = vst [vmem:[#allocation1 + $0x2] ss:$9 sm:$0xff] %v5589_v30 }
 0x1cf   : > { %2226 = vst [vmem:[#allocation1 + $0x3] ss:$9 sm:$0xff] %v2209_v54  ;;  %v3759_v54 = vpack.i.b16 %v4594_v10, %v1948_v0 }
 0x1d0   : > { %2228 = vst [vmem:[#allocation1 + $0x4] ss:$9 sm:$0xff] %v5590_v17 }
 0x1d1   : > { %2230 = vst [vmem:[#allocation1 + $0x5] ss:$9 sm:$0xff] %v5591_v5  ;;  %v1911_v18 = vpop.f32.mrf.mxu1 }
 0x1d2   : > { %2233 = vst [vmem:[#allocation1 + $0x6] ss:$9 sm:$0xff] %v5592_v36  ;;  %v1926_v32 = vadd.f32 %v1911_v18, %v1787_v15 }
 0x1d3   : > { %2235 = vst [vmem:[#allocation1 + $0x7] ss:$9 sm:$0xff] %v5593_v47 }
 0x1d4   : > { %v1782_v30 = vpop.f32.mrf.mxu0 }
 0x1d6   : > { %3757 = vmatmul.msk.bf16.gmra.mxu3 %vm912_vm5, %v2161_v25  ;;  %v5604_v25 = vld [vmem:[#allocation51_spill] sm:$0xff] }
 0x1d9   : > { %v1914_v5 = vpop.f32.mrf.mxu1 }
 0x1da   : > { %v2236_v8 = vld [vmem:[#allocation1] sm:$0xff]  ;;  %v1927_v10 = vadd.f32 %v1914_v5, %v1788_v42 }
 0x1db   : > { %3761 = vmatmul.msk.bf16.vlgmr.msra.gmra.mxu0 %vm912_vm5, %v2236_v8  ;;  %2237 = vst [vmem:[#allocation1] ss:$9 sm:$0xff] %v5594_v53 }
 0x1dc   : > { %2238 = vst [vmem:[#allocation1 + $0x1] ss:$9 sm:$0xff] %v5595_v61 }
 0x1dd   : > { %2241 = vst [vmem:[#allocation1 + $0x3] ss:$9 sm:$0xff] %v5596_v3 }
 0x1de   : > { %2242 = vst [vmem:[#allocation1 + $0x4] ss:$9 sm:$0xff] %v5597_v52 }
 0x1df   : > { %2244 = vst [vmem:[#allocation1 + $0x5] ss:$9 sm:$0xff] %v5599_v31 }
 0x1e0   : > { %2245 = vst [vmem:[#allocation1 + $0x6] ss:$9 sm:$0xff] %v5600_v57 }
 0x1e1   : > { %2246 = vst [vmem:[#allocation1 + $0x7] ss:$9 sm:$0xff] %v5601_v55  ;;  %v1916_v24 = vpop.f32.mrf.mxu1  ;;  %v4714_v55 = vld [vmem:[%s5376_s5] ss:$0 sm:$0xff] }
 0x1e2   : > { %2240 = vst [vmem:[#allocation1 + $0x2] ss:$9 sm:$0xff] %v2211_v2  ;;  %v1928_v36 = vadd.f32 %v1916_v24, %v1789_v21 }
 0x1e9   : > { %v2247_v39 = vld [vmem:[#allocation1] sm:$0xff]  ;;  %v1919_v7 = vpop.f32.mrf.mxu1 }
 0x1ea   : > { %2248 = vst [vmem:[#allocation1] ss:$9 sm:$0xff] %v5602_v11  ;;  %v1929_v15 = vadd.f32 %v1919_v7, %v1790_v38 }
 0x1eb   : > { %3762 = vmatmul.msk.bf16.gmra.mxu0 %vm912_vm5, %v2247_v39  ;;  %2251 = vst [vmem:[#allocation1 + $0x2] ss:$9 sm:$0xff] %v5604_v25 }
 0x1ec   : > { %2252 = vst [vmem:[#allocation1 + $0x3] ss:$9 sm:$0xff] %v5605_v60 }
 0x1ed   : > { %2254 = vst [vmem:[#allocation1 + $0x4] ss:$9 sm:$0xff] %v5606_v63 }
 0x1ee   : > { %2250 = vst [vmem:[#allocation1 + $0x1] ss:$9 sm:$0xff] %v2213_v22 }
 0x1ef   : > { %2256 = vst [vmem:[#allocation1 + $0x5] ss:$9 sm:$0xff] %v3758_v1 }
 0x1f0   : > { %2258 = vst [vmem:[#allocation1 + $0x6] ss:$9 sm:$0xff] %v3759_v54 }
 0x1f1   : > { %2260 = vst [vmem:[#allocation1 + $0x7] ss:$9 sm:$0xff] %v3760_v14  ;;  %v1921_v37 = vpop.f32.mrf.mxu1 }
 0x1f4   : > { %v2028_v17 = vpop.f32.mrf.mxu2 }
 0x1f5   : > { %v2047_v35 = vadd.f32 %v2028_v17, %v1923_v6 }
 0x1f8   : > { %v2261_v16 = vld [vmem:[#allocation1] sm:$0xff] }
 0x1f9   : > { %2263 = vst [vmem:[#allocation1] ss:$9 sm:$0xff] %v2208_v27 }
 0x1fb   : > { %3763 = vmatmul.msk.bf16.gmra.mxu0 %vm912_vm5, %v2261_v16 }
 0x1fc   : > { %v2030_v40 = vpop.f32.mrf.mxu2 }
 0x1fd   : > { %v2048_v62 = vadd.f32 %v2030_v40, %v1924_v43 }
 0x200   : > { %v2264_v48 = vld [vmem:[#allocation1] sm:$0xff] }
 0x204   : > { %v2033_v47 = vpop.f32.mrf.mxu2 }
 0x205   : > { %v2049_v23 = vadd.f32 %v2033_v47, %v1925_v20 }
 0x20b   : > { %3764 = vmatmul.msk.bf16.gmra.mxu0 %vm912_vm5, %v2264_v48 }
 0x20c   : > { %v2035_v33 = vpop.f32.mrf.mxu2 }
 0x20d   : > { %v2050_v29 = vadd.f32 %v2035_v33, %v1926_v32 }
 0x214   : > { %v2038_v6 = vpop.f32.mrf.mxu2 }
 0x215   : > { %v2051_v19 = vadd.f32 %v2038_v6, %v1927_v10 }
 0x21c   : > { %v2040_v8 = vpop.f32.mrf.mxu2 }
 0x21d   : > { %v2052_v46 = vadd.f32 %v2040_v8, %v1928_v36 }
 0x224   : > { %v2043_v42 = vpop.f32.mrf.mxu2 }
 0x225   : > { %v2053_v53 = vadd.f32 %v2043_v42, %v1929_v15 }
 0x229   : > { %v2182_v44 = vpop.f32.mrf.mxu3 }
 0x22a   : > { %v2201_v59 = vadd.f32 %v2182_v44, %v2047_v35 }
 0x22c   : > { %v2045_v61 = vpop.f32.mrf.mxu2 }
 0x231   : > { %v2184_v3 = vpop.f32.mrf.mxu3 }
 0x232   : > { %v2202_v45 = vadd.f32 %v2184_v3, %v2048_v62 }
 0x239   : > { %v2187_v52 = vpop.f32.mrf.mxu3 }
 0x23a   : > { %v2203_v1 = vadd.f32 %v2187_v52, %v2049_v23 }
 0x241   : > { %v2189_v56 = vpop.f32.mrf.mxu3 }
 0x242   : > { %v2204_v40 = vadd.f32 %v2189_v56, %v2050_v29 }
 0x249   : > { %v2192_v2 = vpop.f32.mrf.mxu3 }
 0x24a   : > { %v4707_v31 = vadd.f32 %v2192_v2, %v2051_v19  ;;  %v4738_v2 = vld [vmem:[%s5378_s7] sm:$0xff] }
 0x251   : > { %v2194_v57 = vpop.f32.mrf.mxu3 }
 0x252   : > { %v4709_v28 = vadd.f32 %v2194_v57, %v2052_v46 }
 0x258   : > { %v2285_v12 = vpop.f32.mrf.mxu0 }
 0x259   : > { %v2304_v43 = vadd.f32 %v2285_v12, %v2201_v59  ;;  %v2197_v58 = vpop.f32.mrf.mxu3 }
 0x25a   : > { %v4723_v39 = vadd.f32 %v2197_v58, %v2053_v53 }
 0x25b   : > { %v2315_v49 = vmul.f32 %v4714_v55, %v2304_v43 }
 0x25d   : > { %v2326_v21 = vadd.f32 %v4719_v41, %v2315_v49 }
 0x25f   : > { %v2333_v26 = vadd.f32 3.0, %v2326_v21 }
 0x260   : > { %v2287_v9 = vpop.f32.mrf.mxu0 }
 0x261   : > { %v2340_v0 = vmax.f32 %v2333_v26, 0.0  ;;  %v2305_v4 = vadd.f32 %v2287_v9, %v2202_v45  ;;  %v2199_v38 = vpop.f32.mrf.mxu3  ;;  %v4745_v45 = vperm.slane %v4738_v2, 1 }
 0x263   : > { %v2347_v13 = vmin.f32 %v2340_v0, 6.0  ;;  %v2316_v20 = vmul.f32 %v4714_v55, %v2305_v4  ;;  %v4752_v4 = vperm.slane %v4738_v2, 0  ;;  %v2517_v58 = vmul.f32 0.0, %v4745_v45 }
 0x265   : > { %v2354_v34 = vmul.f32 %v2347_v13, %v2326_v21  ;;  %v2327_v11 = vadd.f32 %v4719_v41, %v2316_v20  ;;  %v4756_v20 = vperm.slane %v4738_v2, 2 }
 0x267   : > { %v2361_v51 = vmul.f32 0.16666667, %v2354_v34  ;;  %v2334_v22 = vadd.f32 3.0, %v2327_v11 }
 0x268   : > { %v2290_v25 = vpop.f32.mrf.mxu0 }
 0x269   : > { %v2375_v50 = vrot.slane %v2361_v51, 1  ;;  %v2376_v60 = vrot.slane %v2361_v51, 2  ;;  %v2377_v54 = vrot.slane %v2361_v51, 3  ;;  %2418 = vst [vmem:[#allocation1 + $0x1] ss:$9 sm:$0xff] %v2361_v51  ;;  %v2378_v63 = vrot.slane %v2361_v51, 4 }
 0x26a   : > { %v2341_v14 = vmax.f32 %v2334_v22, 0.0  ;;  %v2379_v18 = vrot.slane %v2361_v51, 5  ;;  %v2306_v32 = vadd.f32 %v2290_v25, %v2203_v1  ;;  %v2380_v30 = vrot.slane %v2361_v51, 6 }
 0x26b   : > { %2420 = vst [vmem:[#allocation1 + $0x2] ss:$9 sm:$0xff] %v2375_v50  ;;  %v2381_v47 = vrot.slane %v2361_v51, 7  ;;  %v2531_v51 = vrot.slane %v2517_v58, 1  ;;  %v2553_v25 = vmul.f32 0.0, %v4756_v20 }
 0x26c   : > { %2422 = vst [vmem:[#allocation1 + $0x3] ss:$9 sm:$0xff] %v2376_v60  ;;  %v2348_v17 = vmin.f32 %v2341_v14, 6.0  ;;  %v2317_v27 = vmul.f32 %v4714_v55, %v2306_v32 }
 0x26d   : > { %2424 = vst [vmem:[#allocation1 + $0x4] ss:$9 sm:$0xff] %v2377_v54 }
 0x26e   : > { %2426 = vst [vmem:[#allocation1 + $0x5] ss:$9 sm:$0xff] %v2378_v63  ;;  %v2355_v35 = vmul.f32 %v2348_v17, %v2327_v11  ;;  %v2328_v16 = vadd.f32 %v4719_v41, %v2317_v27  ;;  %v2502_v11 = vmul.f32 0.0, %v4752_v4  ;;  %v4767_v17 = vrot.slane %v2553_v25, 2 }
 0x26f   : > { %2428 = vst [vmem:[#allocation1 + $0x6] ss:$9 sm:$0xff] %v2379_v18  ;;  %v4770_v27 = vperm.slane %v4738_v2, 3 }
 0x270   : > { %2430 = vst [vmem:[#allocation1 + $0x7] ss:$9 sm:$0xff] %v2380_v30  ;;  %v2292_v5 = vpop.f32.mrf.mxu0  ;;  %v2335_v10 = vadd.f32 3.0, %v2328_v16  ;;  %v2362_v62 = vmul.f32 0.16666667, %v2355_v35  ;;  %v2545_v14 = vadd.f32 %v2531_v51, %v2502_v11 }
 0x271   : > { %v2307_v24 = vadd.f32 %v2292_v5, %v2204_v40 }
 0x272   : > { %v2342_v36 = vmax.f32 %v2335_v10, 0.0  ;;  %v2382_v23 = vrot.slane %v2362_v62, 1  ;;  %v2383_v7 = vrot.slane %v2362_v62, 2  ;;  %v2384_v15 = vrot.slane %v2362_v62, 3 }
 0x273   : > { %v2318_v33 = vmul.f32 %v4714_v55, %v2307_v24  ;;  %v2385_v6 = vrot.slane %v2362_v62, 4  ;;  %v2386_v8 = vrot.slane %v2362_v62, 5  ;;  %v2387_v3 = vrot.slane %v2362_v62, 6 }
 0x274   : > { %v2349_v19 = vmin.f32 %v2342_v36, 6.0  ;;  %v2388_v57 = vrot.slane %v2362_v62, 7 }
 0x275   : > { %v2329_v29 = vadd.f32 %v4719_v41, %v2318_v33 }
 0x276   : > { %v2356_v46 = vmul.f32 %v2349_v19, %v2328_v16  ;;  %v4778_v16 = vperm.slane %v4738_v2, 4 }
 0x277   : > { %v4729_v48 = vld [vmem:[#allocation1] sm:$0xff]  ;;  %v2336_v42 = vadd.f32 3.0, %v2329_v29 }
 0x278   : > { %2432 = vst [vmem:[#allocation1 + $0x1] ss:$9 sm:$0xff] %v2381_v47  ;;  %v2295_v37 = vpop.f32.mrf.mxu0  ;;  %v2363_v53 = vmul.f32 0.16666667, %v2356_v46  ;;  %v4775_v35 = vsel %vm528_vm0, 0.0, %v4729_v48 }
 0x279   : > { %2433 = vst [vmem:[#allocation1 + $0x2] ss:$9 sm:$0xff] %v2362_v62  ;;  %v2308_v61 = vadd.f32 %v2295_v37, %v4707_v31  ;;  %v2343_v52 = vmax.f32 %v2336_v42, 0.0  ;;  %v2589_v62 = vadd.f32 %v4767_v17, %v2545_v14  ;;  %v2597_v24 = vmul.f32 %v4770_v27, %v4775_v35 }
 0x27a   : > { %2434 = vst [vmem:[#allocation1 + $0x3] ss:$9 sm:$0xff] %v2382_v23  ;;  %v2389_v12 = vrot.slane %v2363_v53, 1  ;;  %v2390_v43 = vrot.slane %v2363_v53, 2  ;;  %v2391_v21 = vrot.slane %v2363_v53, 3  ;;  %v2393_v60 = vrot.slane %v2363_v53, 5 }
 0x27b   : > { %2435 = vst [vmem:[#allocation1 + $0x4] ss:$9 sm:$0xff] %v2383_v7  ;;  %v2319_v31 = vmul.f32 %v4714_v55, %v2308_v61  ;;  %v2350_v26 = vmin.f32 %v2343_v52, 6.0  ;;  %v2394_v54 = vrot.slane %v2363_v53, 6  ;;  %v2395_v32 = vrot.slane %v2363_v53, 7 }
 0x27c   : > { %2436 = vst [vmem:[#allocation1 + $0x5] ss:$9 sm:$0xff] %v2384_v15  ;;  %v2612_v47 = vmul.f32 %v4778_v16, %v4775_v35  ;;  %v2518_v48 = vmul.f32 %v4745_v45, %v4775_v35  ;;  %v2554_v7 = vmul.f32 %v4756_v20, %v4775_v35  ;;  %v2604_v33 = vadd.f32 %v2597_v24, %v2589_v62 }
 0x27d   : > { %2437 = vst [vmem:[#allocation1 + $0x6] ss:$9 sm:$0xff] %v2385_v6  ;;  %v2330_v0 = vadd.f32 %v4719_v41, %v2319_v31  ;;  %v2357_v13 = vmul.f32 %v2350_v26, %v2329_v29  ;;  %v4808_v42 = vperm.slane %v4738_v2, 6  ;;  %v4813_v61 = vperm.slane %v4738_v2, 7 }
 0x27e   : > { %2438 = vst [vmem:[#allocation1 + $0x7] ss:$9 sm:$0xff] %v2386_v8  ;;  %v2626_v37 = vrot.slane %v2612_v47, 1  ;;  %v2532_v8 = vrot.slane %v2518_v48, 1 }
 0x27f   : > { %v2337_v34 = vadd.f32 3.0, %v2330_v0  ;;  %v4759_v22 = vmul.f32 0.16666667, %v2357_v13 }
 0x280   : > { %v2297_v44 = vpop.f32.mrf.mxu0 }
 0x281   : > { %v2309_v56 = vadd.f32 %v2297_v44, %v4709_v28  ;;  %v2392_v28 = vrot.slane %v2363_v53, 4  ;;  %v2344_v63 = vmax.f32 %v2337_v34, 0.0  ;;  %v2396_v30 = vrot.slane %v4759_v22, 1 }
 0x282   : > { %v2398_v5 = vrot.slane %v4759_v22, 3  ;;  %v2399_v52 = vrot.slane %v4759_v22, 4 }
 0x283   : > { %v2320_v49 = vmul.f32 %v4714_v55, %v2309_v56  ;;  %v2351_v40 = vmin.f32 %v2344_v63, 6.0  ;;  %v2400_v56 = vrot.slane %v4759_v22, 5 }
 0x285   : > { %v4740_v59 = vld [vmem:[#allocation1] sm:$0xff]  ;;  %v4748_v9 = vadd.f32 %v4719_v41, %v2320_v49  ;;  %v2358_v15 = vmul.f32 %v2351_v40, %v2330_v0  ;;  %v2640_v49 = vadd.f32 %v2626_v37, %v2604_v33 }
 0x286   : > { %2440 = vst [vmem:[#allocation1 + $0x1] ss:$9 sm:$0xff] %v2387_v3  ;;  %v4805_v46 = vsel %vm528_vm0, 0.0, %v4740_v59  ;;  %v2503_v3 = vmul.f32 %v4752_v4, %v4775_v35  ;;  %v2402_v59 = vrot.slane %v4759_v22, 7  ;;  %v4867_v37 = vld [vmem:[%s5379_s8] sm:$0x3] }
 0x287   : > { %2441 = vst [vmem:[#allocation1 + $0x2] ss:$9 sm:$0xff] %v2388_v57  ;;  %v2338_v29 = vadd.f32 3.0, %v4748_v9  ;;  %v4810_v44 = vmul.f32 0.16666667, %v2358_v15  ;;  %v2401_v57 = vrot.slane %v4759_v22, 6  ;;  %v2555_v26 = vmul.f32 %v4756_v20, %v4805_v46 }
 0x288   : > { %2442 = vst [vmem:[#allocation1 + $0x3] ss:$9 sm:$0xff] %v2363_v53  ;;  %v2300_v1 = vpop.f32.mrf.mxu0  ;;  %v2570_v53 = vrot.slane %v2554_v7, 2  ;;  %v2546_v31 = vadd.f32 %v2532_v8, %v2503_v3  ;;  %v2694_v0 = vmul.f32 %v4808_v42, %v4805_v46  ;;  %v2709_v34 = vmul.f32 %v4813_v61, %v4805_v46 }
 0x289   : > { %2443 = vst [vmem:[#allocation1 + $0x4] ss:$9 sm:$0xff] %v2389_v12  ;;  %v2310_v50 = vadd.f32 %v2300_v1, %v4723_v39  ;;  %v2397_v39 = vrot.slane %v4759_v22, 2  ;;  %v4824_v12 = vld [vmem:[%s5378_s7 + $0x8] ss:$0 sm:$0xff]  ;;  %v2403_v13 = vrot.slane %v4810_v44, 1  ;;  %v2598_v11 = vmul.f32 %v4770_v27, %v4805_v46 }
 0x28a   : > { %2444 = vst [vmem:[#allocation1 + $0x5] ss:$9 sm:$0xff] %v2390_v43  ;;  %v2571_v58 = vsel %vm2567_vm6, %v2570_v53, %v4767_v17  ;;  %v2613_v51 = vmul.f32 %v4778_v16, %v4805_v46  ;;  %v2745_v25 = vmul.f32 %v4824_v12, %v4805_v46  ;;  %v2746_v1 = vmul.f32 0.0, %v4824_v12 }
 0x28b   : > { %2445 = vst [vmem:[#allocation1 + $0x6] ss:$9 sm:$0xff] %v2391_v21  ;;  %v2321_v18 = vmul.f32 %v4714_v55, %v2310_v50  ;;  %v4781_v55 = vperm.slane %v4738_v2, 5  ;;  %v2519_v2 = vmul.f32 %v4745_v45, %v4805_v46  ;;  %v2504_v40 = vmul.f32 %v4752_v4, %v4805_v46 }
 0x28c   : > { %2446 = vst [vmem:[#allocation1 + $0x7] ss:$9 sm:$0xff] %v2392_v28  ;;  %v2345_v28 = vmax.f32 %v2338_v29, 0.0  ;;  %v2759_v62 = vrot.slane %v2745_v25, 2  ;;  %v4854_v24 = vrot.slane %v2746_v1, 2  ;;  %v2405_v48 = vrot.slane %v4810_v44, 3 }
 0x28d   : > { %v4785_v10 = vadd.f32 %v4719_v41, %v2321_v18  ;;  %v2648_v23 = vmul.f32 %v4781_v55, %v4775_v35  ;;  %v2649_v41 = vmul.f32 0.0, %v4781_v55  ;;  %v2650_v50 = vmul.f32 %v4781_v55, %v4805_v46 }
 0x28e   : > { %v2352_v63 = vmin.f32 %v2345_v28, 6.0  ;;  %v2533_v14 = vrot.slane %v2519_v2, 1  ;;  %v2572_v18 = vrot.slane %v2555_v26, 2  ;;  %v2406_v29 = vrot.slane %v4810_v44, 4 }
 0x28f   : > { %v2664_v6 = vrot.slane %v2648_v23, 2  ;;  %v4800_v19 = vrot.slane %v2649_v41, 2  ;;  %v4893_v28 = vperm.slane %v4867_v37, 0  ;;  %v2409_v1 = vrot.slane %v4810_v44, 7 }
 0x290   : > { %v2302_v36 = vpop.f32.mrf.mxu0  ;;  %v2359_v23 = vmul.f32 %v2352_v63, %v4748_v9  ;;  %v2547_v41 = vadd.f32 %v2533_v14, %v2504_v40  ;;  %v2573_v7 = vsel %vm2567_vm6, %v2572_v18, %v4767_v17 }
 0x291   : > { %v2666_v21 = vsel %vm2567_vm6, %v2664_v6, %v4800_v19  ;;  %v2667_v36 = vrot.slane %v2650_v50, 2  ;;  %v2761_v6 = vsel %vm2567_vm6, %v2759_v62, %v4854_v24 }
 0x293   : > { %v4763_v38 = vld [vmem:[#allocation1] sm:$0xff]  ;;  %v2668_v8 = vsel %vm2567_vm6, %v2667_v36, %v4800_v19 }
 0x294   : > { %2448 = vst [vmem:[#allocation1 + $0x1] ss:$9 sm:$0xff] %v2393_v60  ;;  %v2686_v60 = vadd.f32 %v2666_v21, %v2640_v49  ;;  %v4858_v47 = vsel %vm528_vm0, 0.0, %v4763_v38  ;;  %v2408_v49 = vrot.slane %v4810_v44, 6 }
 0x295   : > { %2449 = vst [vmem:[#allocation1 + $0x2] ss:$9 sm:$0xff] %v2394_v54  ;;  %v2590_v54 = vadd.f32 %v2571_v58, %v2546_v31  ;;  %v2599_v38 = vmul.f32 %v4770_v27, %v4858_v47  ;;  %v2614_v9 = vmul.f32 %v4778_v16, %v4858_v47  ;;  %v2651_v53 = vmul.f32 %v4781_v55, %v4858_v47 }
 0x296   : > { %2450 = vst [vmem:[#allocation1 + $0x3] ss:$9 sm:$0xff] %v2395_v32  ;;  %v2701_v32 = vadd.f32 %v2694_v0, %v2686_v60  ;;  %v2695_v3 = vmul.f32 %v4808_v42, %v4858_v47  ;;  %v2747_v2 = vmul.f32 %v4824_v12, %v4858_v47  ;;  %v2339_v0 = vadd.f32 3.0, %v4785_v10 }
 0x297   : > { %2451 = vst [vmem:[#allocation1 + $0x4] ss:$9 sm:$0xff] %v4759_v22  ;;  %v2404_v22 = vrot.slane %v4810_v44, 2  ;;  %v2556_v25 = vmul.f32 %v4756_v20, %v4858_v47  ;;  %v2505_v62 = vmul.f32 %v4752_v4, %v4858_v47 }
 0x298   : > { %2452 = vst [vmem:[#allocation1 + $0x5] ss:$9 sm:$0xff] %v2396_v30  ;;  %v2723_v30 = vrot.slane %v2709_v34, 1  ;;  %v2520_v34 = vmul.f32 %v4745_v45, %v4858_v47  ;;  %v2762_v60 = vrot.slane %v2747_v2, 2 }
 0x299   : > { %2453 = vst [vmem:[#allocation1 + $0x6] ss:$9 sm:$0xff] %v2397_v39  ;;  %v2605_v39 = vadd.f32 %v2598_v11, %v2590_v54  ;;  %v2669_v11 = vrot.slane %v2651_v53, 2 }
 0x29a   : > { %2454 = vst [vmem:[#allocation1 + $0x7] ss:$9 sm:$0xff] %v2398_v5  ;;  %v2627_v5 = vrot.slane %v2613_v51, 1  ;;  %v2737_v15 = vadd.f32 %v2723_v30, %v2701_v32  ;;  %v2534_v18 = vrot.slane %v2520_v34, 1  ;;  %v2346_v32 = vmax.f32 %v2339_v0, 0.0 }
 0x29b   : > { %v2763_v40 = vsel %vm2567_vm6, %v2762_v60, %v4854_v24 }
 0x29c   : > { %v2641_v33 = vadd.f32 %v2627_v5, %v2605_v39  ;;  %v2780_v31 = vadd.f32 %v2761_v6, %v2737_v15  ;;  %v2574_v39 = vrot.slane %v2556_v25, 2 }
 0x29e   : > { %v2687_v26 = vadd.f32 %v2668_v8, %v2641_v33  ;;  %v2788_v63 = vadd.f32 %v4893_v28, %v2780_v31  ;;  %v2575_v33 = vsel %vm2567_vm6, %v2574_v39, %v4767_v17 }
 0x2a0   : > { %v2702_v51 = vadd.f32 %v2695_v3, %v2687_v26 }
 0x2a1   : > { %v4826_v43 = vld [vmem:[#allocation1] sm:$0xff] }
 0x2a2   : > { %2456 = vst [vmem:[#allocation1 + $0x1] ss:$9 sm:$0xff] %v2399_v52  ;;  %v2710_v52 = vmul.f32 %v4813_v61, %v4858_v47  ;;  %v4904_v54 = vsel %vm528_vm0, 0.0, %v4826_v43 }
 0x2a3   : > { %2457 = vst [vmem:[#allocation1 + $0x2] ss:$9 sm:$0xff] %v2400_v56  ;;  %v2407_v56 = vrot.slane %v4810_v44, 5  ;;  %v2696_v5 = vmul.f32 %v4808_v42, %v4904_v54  ;;  %v2711_v43 = vmul.f32 %v4813_v61, %v4904_v54  ;;  %v2748_v36 = vmul.f32 %v4824_v12, %v4904_v54 }
 0x2a4   : > { %2458 = vst [vmem:[#allocation1 + $0x3] ss:$9 sm:$0xff] %v2401_v57  ;;  %v4885_v57 = vmul.f32 0.16666667, %v2359_v23  ;;  %v2795_v23 = vadd.f32 3.0, %v2788_v63  ;;  %v2615_v8 = vmul.f32 %v4778_v16, %v4904_v54  ;;  %v2652_v3 = vmul.f32 %v4781_v55, %v4904_v54 }
 0x2a5   : > { %2459 = vst [vmem:[#allocation1 + $0x4] ss:$9 sm:$0xff] %v2402_v59  ;;  %v2591_v59 = vadd.f32 %v2573_v7, %v2547_v41  ;;  %v2353_v7 = vmin.f32 %v2346_v32, 6.0  ;;  %v2725_v6 = vrot.slane %v2711_v43, 1  ;;  %v2557_v25 = vmul.f32 %v4756_v20, %v4904_v54  ;;  %v2500_v43 = vld [vmem:[%s5380_s9 + $0x4] sm:$0xf] }
 0x2a6   : > { %2460 = vst [vmem:[#allocation1 + $0x5] ss:$9 sm:$0xff] %v4810_v44  ;;  %v2410_v50 = vrot.slane %v4885_v57, 1  ;;  %v2670_v44 = vsel %vm2567_vm6, %v2669_v11, %v4800_v19  ;;  %v2802_v53 = vmax.f32 %v2795_v23, 0.0  ;;  %v2413_v2 = vrot.slane %v4885_v57, 4 }
 0x2a7   : > { %2461 = vst [vmem:[#allocation1 + $0x6] ss:$9 sm:$0xff] %v2403_v13  ;;  %v2606_v58 = vadd.f32 %v2599_v38, %v2591_v59  ;;  %v2628_v13 = vrot.slane %v2614_v9, 1  ;;  %v2600_v9 = vmul.f32 %v4770_v27, %v4904_v54  ;;  %v2360_v26 = vmul.f32 %v2353_v7, %v4785_v10 }
 0x2a8   : > { %2462 = vst [vmem:[#allocation1 + $0x7] ss:$9 sm:$0xff] %v2404_v22  ;;  %v2724_v22 = vrot.slane %v2710_v52, 1  ;;  %v2411_v52 = vrot.slane %v4885_v57, 2  ;;  %v2629_v11 = vrot.slane %v2615_v8, 1  ;;  %v2415_v10 = vrot.slane %v4885_v57, 6 }
 0x2a9   : > { %v2642_v14 = vadd.f32 %v2628_v13, %v2606_v58  ;;  %v2521_v13 = vmul.f32 %v4745_v45, %v4904_v54  ;;  %v2367_v60 = vmul.f32 0.16666667, %v2360_v26 }
 0x2aa   : > { %v2738_v30 = vadd.f32 %v2724_v22, %v2702_v51  ;;  %v2809_v22 = vmin.f32 %v2802_v53, 6.0 }
 0x2ab   : > { %v2688_v41 = vadd.f32 %v2670_v44, %v2642_v14  ;;  %v2499_v44 = vld [vmem:[%s5380_s9] sm:$0xf] }
 0x2ac   : > { %v2781_v15 = vadd.f32 %v2763_v40, %v2738_v30  ;;  %v2535_v30 = vrot.slane %v2521_v13, 1  ;;  %v2576_v40 = vrot.slane %v2557_v25, 2 }
 0x2ad   : > { %v2703_v38 = vadd.f32 %v2696_v5, %v2688_v41  ;;  %v2816_v5 = vmul.f32 %v2809_v22, %v2788_v63 }
 0x2ae   : > { %v2789_v0 = vadd.f32 %v4893_v28, %v2781_v15 }
 0x2af   : > { %v4890_v21 = vld [vmem:[#allocation1] sm:$0xff]  ;;  %v2739_v58 = vadd.f32 %v2725_v6, %v2703_v38  ;;  %v2823_v6 = vmul.f32 0.16666667, %v2816_v5  ;;  %v2577_v38 = vsel %vm2567_vm6, %v2576_v40, %v4767_v17 }
 0x2b0   : > { %2464 = vst [vmem:[#allocation1 + $0x1] ss:$9 sm:$0xff] %v2405_v48  ;;  %v2548_v48 = vadd.f32 %v2534_v18, %v2505_v62  ;;  %v2796_v14 = vadd.f32 3.0, %v2789_v0  ;;  %v4946_v18 = vsel %vm528_vm0, 0.0, %v4890_v21  ;;  %v3419_v62 = vsel %vm3417_vm7, %v2500_v43, 0 }
 0x2b1   : > { %2465 = vst [vmem:[#allocation1 + $0x2] ss:$9 sm:$0xff] %v2406_v29  ;;  %v2764_v29 = vrot.slane %v2748_v36, 2  ;;  %v2506_v36 = vmul.f32 %v4752_v4, %v4904_v54  ;;  %v2697_v23 = vmul.f32 %v4808_v42, %v4946_v18  ;;  %v2712_v63 = vmul.f32 %v4813_v61, %v4946_v18  ;;  %3428 = vmatpush.bf16.msra.mxu1 %v3419_v62 }
 0x2b2   : > { %2466 = vst [vmem:[#allocation1 + $0x3] ss:$9 sm:$0xff] %v2407_v56  ;;  %v2412_v56 = vrot.slane %v4885_v57, 3  ;;  %v2592_v59 = vadd.f32 %v2575_v33, %v2548_v48  ;;  %v2803_v41 = vmax.f32 %v2796_v14, 0.0  ;;  %v2749_v48 = vmul.f32 %v4824_v12, %v4946_v18 }
 0x2b3   : > { %2467 = vst [vmem:[#allocation1 + $0x4] ss:$9 sm:$0xff] %v2408_v49  ;;  %v2414_v49 = vrot.slane %v4885_v57, 5  ;;  %v2765_v51 = vsel %vm2567_vm6, %v2764_v29, %v4854_v24  ;;  %v2549_v15 = vadd.f32 %v2535_v30, %v2506_v36  ;;  %v2616_v8 = vmul.f32 %v4778_v16, %v4946_v18 }
 0x2b4   : > { %2468 = vst [vmem:[#allocation1 + $0x5] ss:$9 sm:$0xff] %v2409_v1  ;;  %v2607_v34 = vadd.f32 %v2600_v9, %v2592_v59  ;;  %v2671_v1 = vrot.slane %v2652_v3, 2  ;;  %v2782_v32 = vadd.f32 %v2765_v51, %v2739_v58  ;;  %v2601_v9 = vmul.f32 %v4770_v27, %v4946_v18 }
 0x2b5   : > { %2469 = vst [vmem:[#allocation1 + $0x6] ss:$9 sm:$0xff] %v4885_v57  ;;  %v2726_v53 = vrot.slane %v2712_v63, 1  ;;  %v2810_v3 = vmin.f32 %v2803_v41, 6.0  ;;  %v2838_v26 = vrot.slane %v2823_v6, 2  ;;  %v2839_v13 = vrot.slane %v2823_v6, 3 }
 0x2b6   : > { %2470 = vst [vmem:[#allocation1 + $0x7] ss:$9 sm:$0xff] %v2410_v50  ;;  %v2416_v50 = vrot.slane %v4885_v57, 7  ;;  %v2643_v39 = vadd.f32 %v2629_v11, %v2607_v34  ;;  %v3462_v57 = vsel %vm3417_vm7, %v2499_v44, 0  ;;  %v2672_v21 = vsel %vm2567_vm6, %v2671_v1, %v4800_v19 }
 0x2b7   : > { %3471 = vmatpush.bf16.msra.mxu2 %v3462_v57  ;;  %v2790_v7 = vadd.f32 %v4893_v28, %v2782_v32  ;;  %v2630_v11 = vrot.slane %v2616_v8, 1  ;;  %v2817_v22 = vmul.f32 %v2810_v3, %v2789_v0  ;;  %v2558_v14 = vmul.f32 %v4756_v20, %v4946_v18 }
 0x2b8   : > { %v2689_v33 = vadd.f32 %v2672_v21, %v2643_v39  ;;  %v2841_v32 = vrot.slane %v2823_v6, 5  ;;  %v2842_v0 = vrot.slane %v2823_v6, 6 }
 0x2b9   : > { %v2797_v59 = vadd.f32 3.0, %v2790_v7  ;;  %v2824_v5 = vmul.f32 0.16666667, %v2817_v22 }
 0x2ba   : > { %v2704_v29 = vadd.f32 %v2697_v23, %v2689_v33  ;;  %v2507_v23 = vmul.f32 %v4752_v4, %v4946_v18 }
 0x2bc   : > { %v2740_v51 = vadd.f32 %v2726_v53, %v2704_v29 }
 0x2bd   : > { %v4932_v31 = vld [vmem:[#allocation1] sm:$0xff] }
 0x2be   : > { %2472 = vst [vmem:[#allocation1 + $0x1] ss:$9 sm:$0xff] %v2411_v52  ;;  %v2653_v52 = vmul.f32 %v4781_v55, %v4946_v18  ;;  %v4983_v44 = vsel %vm528_vm0, 0.0, %v4932_v31  ;;  %v2578_v31 = vrot.slane %v2558_v14, 2 }
 0x2bf   : > { %2473 = vst [vmem:[#allocation1 + $0x2] ss:$9 sm:$0xff] %v2412_v56  ;;  %v2766_v56 = vrot.slane %v2749_v48, 2  ;;  %v2698_v21 = vmul.f32 %v4808_v42, %v4983_v44  ;;  %v2713_v62 = vmul.f32 %v4813_v61, %v4983_v44  ;;  %v2750_v36 = vmul.f32 %v4824_v12, %v4983_v44 }
 0x2c0   : > { %2474 = vst [vmem:[#allocation1 + $0x3] ss:$9 sm:$0xff] %v2413_v2  ;;  %v2593_v2 = vadd.f32 %v2577_v38, %v2549_v15  ;;  %v2673_v25 = vrot.slane %v2653_v52, 2  ;;  %v2579_v38 = vsel %vm2567_vm6, %v2578_v31, %v4767_v17  ;;  %v2523_v8 = vmul.f32 %v4745_v45, %v4983_v44 }
 0x2c1   : > { %2475 = vst [vmem:[#allocation1 + $0x4] ss:$9 sm:$0xff] %v2414_v49  ;;  %v2837_v49 = vrot.slane %v2823_v6, 1  ;;  %v2767_v1 = vsel %vm2567_vm6, %v2766_v56, %v4854_v24  ;;  %v2602_v29 = vmul.f32 %v4770_v27, %v4983_v44  ;;  %v2617_v53 = vmul.f32 %v4778_v16, %v4983_v44 }
 0x2c2   : > { %2476 = vst [vmem:[#allocation1 + $0x5] ss:$9 sm:$0xff] %v2415_v10  ;;  %v2608_v34 = vadd.f32 %v2601_v9, %v2593_v2  ;;  %v2522_v10 = vmul.f32 %v4745_v45, %v4946_v18  ;;  %v2783_v39 = vadd.f32 %v2767_v1, %v2740_v51  ;;  %v2674_v57 = vsel %vm2567_vm6, %v2673_v25, %v4800_v19 }
 0x2c3   : > { %2477 = vst [vmem:[#allocation1 + $0x6] ss:$9 sm:$0xff] %v2416_v50  ;;  %v2840_v50 = vrot.slane %v2823_v6, 4  ;;  %v2768_v9 = vrot.slane %v2750_v36, 2  ;;  %v2559_v52 = vmul.f32 %v4756_v20, %v4983_v44  ;;  %v2843_v56 = vrot.slane %v2824_v5, 1  ;;  %v5017_v20 = vld [vmem:[%s5378_s7 + $0x10] sm:$0xff] }
 0x2c4   : > { %2478 = vst [vmem:[#allocation1 + $0x7] ss:$9 sm:$0xff] %v2367_v60  ;;  %v2804_v60 = vmax.f32 %v2797_v59, 0.0  ;;  %v2644_v30 = vadd.f32 %v2630_v11, %v2608_v34  ;;  %v2536_v43 = vrot.slane %v2522_v10, 1  ;;  %v2791_v41 = vadd.f32 %v4893_v28, %v2783_v39 }
 0x2c5   : > { %v2769_v34 = vsel %vm2567_vm6, %v2768_v9, %v4854_v24  ;;  %v2537_v11 = vrot.slane %v2523_v8, 1  ;;  %v2631_v22 = vrot.slane %v2617_v53, 1  ;;  %v2846_v25 = vrot.slane %v2824_v5, 4 }
 0x2c6   : > { %v2811_v40 = vmin.f32 %v2804_v60, 6.0  ;;  %v2690_v63 = vadd.f32 %v2674_v57, %v2644_v30  ;;  %v2550_v48 = vadd.f32 %v2536_v43, %v2507_v23  ;;  %v2798_v3 = vadd.f32 3.0, %v2791_v41 }
 0x2c7   : > { %v2580_v10 = vrot.slane %v2559_v52, 2  ;;  %v2847_v60 = vrot.slane %v2824_v5, 5  ;;  %v2508_v14 = vmul.f32 %v4752_v4, %v4983_v44  ;;  %v5026_v43 = vperm.slane %v5017_v20, 1 }
 0x2c8   : > { %v2818_v15 = vmul.f32 %v2811_v40, %v2790_v7  ;;  %v2705_v33 = vadd.f32 %v2698_v21, %v2690_v63  ;;  %v2654_v7 = vmul.f32 %v4781_v55, %v4983_v44  ;;  %v2594_v59 = vadd.f32 %v2579_v38, %v2550_v48 }
 0x2c9   : > { %v2805_v1 = vmax.f32 %v2798_v3, 0.0  ;;  %v2551_v39 = vadd.f32 %v2537_v11, %v2508_v14  ;;  %v2581_v4 = vsel %vm2567_vm6, %v2580_v10, %v4767_v17  ;;  %v2970_v38 = vmul.f32 %v5026_v43, %v4775_v35 }
 0x2ca   : > { %v5008_v2 = vmul.f32 0.16666667, %v2818_v15  ;;  %v2609_v51 = vadd.f32 %v2602_v29, %v2594_v59  ;;  %v2969_v15 = vmul.f32 0.0, %v5026_v43 }
 0x2cb   : > { %v4973_v58 = vld [vmem:[#allocation1] sm:$0xff]  ;;  %v2812_v21 = vmin.f32 %v2805_v1, 6.0 }
 0x2cc   : > { %2879 = vst [vmem:[#allocation1] ss:$9 sm:$0xff] %v2823_v6  ;;  %v2727_v6 = vrot.slane %v2713_v62, 1  ;;  %v5023_v30 = vsel %vm528_vm0, 0.0, %v4973_v58  ;;  %v2645_v57 = vadd.f32 %v2631_v22, %v2609_v51  ;;  %v2849_v40 = vrot.slane %v5008_v2, 1 }
 0x2cd   : > { %2881 = vst [vmem:[#allocation1 + $0x1] ss:$9 sm:$0xff] %v2837_v49  ;;  %v2844_v49 = vrot.slane %v2824_v5, 2  ;;  %v2603_v58 = vmul.f32 %v4770_v27, %v5023_v30  ;;  %v2618_v62 = vmul.f32 %v4778_v16, %v5023_v30  ;;  %v2699_v31 = vmul.f32 %v4808_v42, %v5023_v30 }
 0x2ce   : > { %2883 = vst [vmem:[#allocation1 + $0x2] ss:$9 sm:$0xff] %v2838_v26  ;;  %v2845_v26 = vrot.slane %v2824_v5, 3  ;;  %v2714_v36 = vmul.f32 %v4813_v61, %v5023_v30  ;;  %v2655_v23 = vmul.f32 %v4781_v55, %v5023_v30  ;;  %v2751_v63 = vmul.f32 %v4824_v12, %v5023_v30 }
 0x2cf   : > { %2885 = vst [vmem:[#allocation1 + $0x3] ss:$9 sm:$0xff] %v2839_v13  ;;  %v2741_v13 = vadd.f32 %v2727_v6, %v2705_v33  ;;  %v5050_v27 = vperm.slane %v5017_v20, 0  ;;  %v2595_v16 = vadd.f32 %v2581_v4, %v2551_v39  ;;  %v5054_v33 = vperm.slane %v5017_v20, 2 }
 0x2d0   : > { %2887 = vst [vmem:[#allocation1 + $0x4] ss:$9 sm:$0xff] %v2840_v50  ;;  %v2675_v50 = vrot.slane %v2654_v7, 2  ;;  %v2819_v6 = vmul.f32 %v2812_v21, %v2791_v41  ;;  %v2632_v8 = vrot.slane %v2618_v62, 1  ;;  %v2728_v29 = vrot.slane %v2714_v36, 1 }
 0x2d1   : > { %2889 = vst [vmem:[#allocation1 + $0x5] ss:$9 sm:$0xff] %v2841_v32  ;;  %v2848_v32 = vrot.slane %v2824_v5, 6  ;;  %v2610_v9 = vadd.f32 %v2603_v58, %v2595_v16  ;;  %v2677_v53 = vrot.slane %v2655_v23, 2  ;;  %v2770_v3 = vrot.slane %v2751_v63, 2 }
 0x2d2   : > { %2891 = vst [vmem:[#allocation1 + $0x6] ss:$9 sm:$0xff] %v2842_v0  ;;  %v2784_v0 = vadd.f32 %v2769_v34, %v2741_v13  ;;  %v2954_v52 = vmul.f32 0.0, %v5050_v27  ;;  %v2955_v7 = vmul.f32 %v5050_v27, %v4775_v35  ;;  %v3005_v59 = vmul.f32 0.0, %v5054_v33 }
 0x2d3   : > { %2893 = vst [vmem:[#allocation1 + $0x7] ss:$9 sm:$0xff] %v2824_v5  ;;  %v2676_v5 = vsel %vm2567_vm6, %v2675_v50, %v4800_v19  ;;  %v3006_v41 = vmul.f32 %v5054_v33, %v4775_v35  ;;  %v2852_v13 = vrot.slane %v5008_v2, 4  ;;  %v2984_v34 = vrot.slane %v2970_v38, 1 }
 0x2d4   : > { %v5043_v17 = vadd.f32 %v4893_v28, %v2784_v0  ;;  %v2691_v48 = vadd.f32 %v2676_v5, %v2645_v57  ;;  %v5068_v51 = vmul.f32 0.16666667, %v2819_v6  ;;  %v2646_v22 = vadd.f32 %v2632_v8, %v2610_v9 }
 0x2d5   : > { %v2678_v50 = vsel %vm2567_vm6, %v2677_v53, %v4800_v19  ;;  %v2853_v14 = vrot.slane %v5008_v2, 5  ;;  %v3021_v0 = vrot.slane %v3006_v41, 2  ;;  %v5077_v39 = vperm.slane %v5017_v20, 3 }
 0x2d6   : > { %v2706_v55 = vadd.f32 %v2699_v31, %v2691_v48  ;;  %v2799_v12 = vadd.f32 3.0, %v5043_v17  ;;  %v5081_v57 = vrot.slane %v3005_v59, 2  ;;  %v5084_v19 = vperm.slane %v5017_v20, 4 }
 0x2d7   : > { %v2692_v21 = vadd.f32 %v2678_v50, %v2646_v22  ;;  %v2700_v4 = vmul.f32 0.0, %v4808_v42  ;;  %v2715_v5 = vmul.f32 0.0, %v4813_v61  ;;  %v2855_v31 = vrot.slane %v5068_v51, 1 }
 0x2d8   : > { %v2806_v10 = vmax.f32 %v2799_v12, 0.0  ;;  %v2856_v36 = vrot.slane %v5068_v51, 2  ;;  %v2998_v23 = vadd.f32 %v2984_v34, %v2955_v7  ;;  %v3007_v63 = vmul.f32 %v5054_v33, %v4805_v46 }
 0x2d9   : > { %v3022_v42 = vsel %vm2567_vm6, %v3021_v0, %v5081_v57  ;;  %v3048_v16 = vmul.f32 %v5077_v39, %v4775_v35  ;;  %v3063_v48 = vmul.f32 %v5084_v19, %v4775_v35  ;;  %v2707_v6 = vadd.f32 %v2700_v4, %v2692_v21 }
 0x2da   : > { %v5010_v45 = vld [vmem:[#allocation1] sm:$0xff]  ;;  %v2813_v62 = vmin.f32 %v2806_v10, 6.0  ;;  %v2729_v38 = vrot.slane %v2715_v5, 1  ;;  %v3023_v53 = vrot.slane %v3007_v63, 2  ;;  %v5118_v7 = vmul.f32 %v5084_v19, %v4805_v46 }
 0x2db   : > { %2895 = vst [vmem:[#allocation1] ss:$9 sm:$0xff] %v2843_v56  ;;  %v2983_v56 = vrot.slane %v2969_v15, 1  ;;  %v2860_v10 = vrot.slane %v5068_v51, 6  ;;  %v5152_v5 = vperm.slane %v5017_v20, 7 }
 0x2dc   : > { %2896 = vst [vmem:[#allocation1 + $0x1] ss:$9 sm:$0xff] %v2844_v49  ;;  %v2850_v49 = vrot.slane %v5008_v2, 2  ;;  %v2743_v59 = vadd.f32 %v2729_v38, %v2707_v6  ;;  %v3078_v0 = vrot.slane %v5118_v7, 1 }
 0x2dd   : > { %2897 = vst [vmem:[#allocation1 + $0x2] ss:$9 sm:$0xff] %v2845_v26  ;;  %v2851_v26 = vrot.slane %v5008_v2, 3  ;;  %v3161_v7 = vmul.f32 %v5152_v5, %v4858_v47 }
 0x2de   : > { %2898 = vst [vmem:[#allocation1 + $0x3] ss:$9 sm:$0xff] %v2846_v25  ;;  %v2742_v25 = vadd.f32 %v2728_v29, %v2706_v55  ;;  %v2820_v55 = vmul.f32 %v2813_v62, %v5043_v17  ;;  %v2956_v29 = vmul.f32 %v5050_v27, %v4805_v46 }
 0x2df   : > { %2899 = vst [vmem:[#allocation1 + $0x4] ss:$9 sm:$0xff] %v2847_v60  ;;  %v2771_v60 = vsel %vm2567_vm6, %v2770_v3, %v4854_v24  ;;  %v3049_v3 = vmul.f32 %v5077_v39, %v4805_v46 }
 0x2e0   : > { %2900 = vst [vmem:[#allocation1 + $0x5] ss:$9 sm:$0xff] %v2848_v32  ;;  %v2997_v32 = vadd.f32 %v2983_v56, %v2954_v52  ;;  %v2785_v58 = vadd.f32 %v2771_v60, %v2742_v25  ;;  %v3041_v52 = vadd.f32 %v3022_v42, %v2998_v23  ;;  %v3077_v56 = vrot.slane %v3063_v48, 1 }
 0x2e1   : > { %2901 = vst [vmem:[#allocation1 + $0x6] ss:$9 sm:$0xff] %v5008_v2  ;;  %v2858_v25 = vrot.slane %v5068_v51, 4  ;;  %v2974_v23 = vmul.f32 %v5026_v43, %v4946_v18  ;;  %v2959_v48 = vmul.f32 %v5050_v27, %v4946_v18 }
 0x2e2   : > { %2902 = vst [vmem:[#allocation1 + $0x7] ss:$9 sm:$0xff] %v2849_v40  ;;  %v5087_v40 = vperm.slane %v5017_v20, 5  ;;  %v3040_v61 = vadd.f32 %v5081_v57, %v2997_v32  ;;  %v5108_v9 = vadd.f32 %v4893_v28, %v2785_v58  ;;  %v5132_v22 = vadd.f32 %v3049_v3, %v3041_v52 }
 0x2e3   : > { %v2988_v6 = vrot.slane %v2974_v23, 1  ;;  %v3054_v52 = vmul.f32 %v5077_v39, %v5023_v30 }
 0x2e4   : > { %v3099_v15 = vmul.f32 %v5087_v40, %v4775_v35  ;;  %v3100_v8 = vmul.f32 0.0, %v5087_v40  ;;  %v3055_v35 = vadd.f32 %v3048_v16, %v3040_v61  ;;  %v2800_v41 = vadd.f32 3.0, %v5108_v9 }
 0x2e5   : > { %v5146_v4 = vmul.f32 %v5087_v40, %v4805_v46  ;;  %v3010_v61 = vmul.f32 %v5054_v33, %v4946_v18  ;;  %v3011_v16 = vmul.f32 %v5054_v33, %v4983_v44 }
 0x2e6   : > { %v5121_v17 = vrot.slane %v3100_v8, 2  ;;  %v3091_v60 = vadd.f32 %v3077_v56, %v3055_v35  ;;  %v2807_v32 = vmax.f32 %v2800_v41, 0.0  ;;  %v3069_v35 = vmul.f32 %v5084_v19, %v5023_v30 }
 0x2e7   : > { %v3029_v8 = vrot.slane %v3010_v61, 2  ;;  %v3165_v61 = vmul.f32 %v5152_v5, %v5023_v30 }
 0x2e8   : > { %v2814_v42 = vmin.f32 %v2807_v32, 6.0 }
 0x2e9   : > { %v2903_v11 = vld [vmem:[#allocation1] sm:$0xff]  ;;  %v3030_v41 = vsel %vm2567_vm6, %v3029_v8, %v5081_v57  ;;  %v3118_v8 = vrot.slane %v5146_v4, 2 }
 0x2ea   : > { %v2949_v1 = vpack.c.bf16 %v2903_v11, %v5010_v45  ;;  %2904 = vst [vmem:[#allocation1] ss:$9 sm:$0xff] %v2850_v49  ;;  %v2854_v45 = vrot.slane %v5008_v2, 6  ;;  %v2971_v2 = vmul.f32 %v5026_v43, %v4805_v46  ;;  %v3115_v49 = vrot.slane %v3099_v15, 2 }
 0x2eb   : > { %2905 = vst [vmem:[#allocation1 + $0x1] ss:$9 sm:$0xff] %v2851_v26  ;;  %v5123_v26 = vmul.f32 0.16666667, %v2820_v55  ;;  %v5130_v11 = vsel %vm2567_vm6, %v3023_v53, %v5081_v57  ;;  %v2960_v15 = vmul.f32 %v5050_v27, %v4983_v44  ;;  %v3053_v55 = vmul.f32 %v5077_v39, %v4983_v44 }
 0x2ec   : > { %3769 = vmatmul.msk.bf16.vlgmr.msra.gmra.mxu2 %vm3404_vm8, %v2949_v1  ;;  %2906 = vst [vmem:[#allocation1 + $0x2] ss:$9 sm:$0xff] %v2852_v13  ;;  %v2985_v12 = vrot.slane %v2971_v2, 1  ;;  %v2857_v13 = vrot.slane %v5068_v51, 3  ;;  %v2859_v1 = vrot.slane %v5068_v51, 5  ;;  %v3002_v53 = vadd.f32 %v2988_v6, %v2959_v48 }
 0x2ed   : > { %2907 = vst [vmem:[#allocation1 + $0x3] ss:$9 sm:$0xff] %v2853_v14  ;;  %v2786_v14 = vadd.f32 %v4854_v24, %v2743_v59  ;;  %v2861_v21 = vrot.slane %v5123_v26, 1  ;;  %v2862_v24 = vrot.slane %v5123_v26, 2  ;;  %v2863_v58 = vrot.slane %v5123_v26, 3 }
 0x2ee   : > { %2908 = vst [vmem:[#allocation1 + $0x4] ss:$9 sm:$0xff] %v2854_v45  ;;  %v5126_v34 = vadd.f32 %v2985_v12, %v2956_v29  ;;  %v3117_v45 = vsel %vm2567_vm6, %v3115_v49, %v5121_v17  ;;  %v2864_v62 = vrot.slane %v5123_v26, 4  ;;  %v2866_v2 = vrot.slane %v5123_v26, 6  ;;  %v5182_v12 = vld [vmem:[%s5378_s7 + $0x18] ss:$0 sm:$0xff] }
 0x2ef   : > { %2909 = vst [vmem:[#allocation1 + $0x5] ss:$9 sm:$0xff] %v5068_v51  ;;  %v5149_v51 = vperm.slane %v5017_v20, 6  ;;  %v2975_v20 = vmul.f32 %v5026_v43, %v4983_v44  ;;  %v5165_v63 = vadd.f32 %v4893_v28, %v2786_v14  ;;  %v3031_v28 = vrot.slane %v3011_v16, 2 }
 0x2f0   : > { %2910 = vst [vmem:[#allocation1 + $0x6] ss:$9 sm:$0xff] %v2855_v31  ;;  %v2865_v31 = vrot.slane %v5123_v26, 5  ;;  %v3068_v29 = vmul.f32 %v5084_v19, %v4983_v44  ;;  %v2821_v56 = vmul.f32 %v2814_v42, %v5108_v9  ;;  %v3105_v14 = vmul.f32 %v5087_v40, %v4983_v44 }
 0x2f1   : > { %2911 = vst [vmem:[#allocation1 + $0x7] ss:$9 sm:$0xff] %v2856_v36  ;;  %v3137_v36 = vadd.f32 %v3117_v45, %v3091_v60  ;;  %v2989_v38 = vrot.slane %v2975_v20, 1  ;;  %v3145_v59 = vmul.f32 %v5149_v51, %v4805_v46  ;;  %v3032_v49 = vsel %vm2567_vm6, %v3031_v28, %v5081_v57 }
 0x2f2   : > { %v3160_v60 = vmul.f32 %v5152_v5, %v4805_v46  ;;  %v3106_v9 = vmul.f32 %v5087_v40, %v5023_v30  ;;  %v3150_v32 = vmul.f32 %v5149_v51, %v5023_v30  ;;  %v2801_v45 = vadd.f32 3.0, %v5165_v63 }
 0x2f3   : > { %v3003_v3 = vadd.f32 %v2989_v38, %v2960_v15  ;;  %v3197_v23 = vmul.f32 0.0, %v5182_v12  ;;  %v3126_v20 = vrot.slane %v3105_v14, 2  ;;  %v5209_v16 = vmul.f32 0.16666667, %v2821_v56 }
 0x2f4   : > { %v3128_v42 = vrot.slane %v3106_v9, 2  ;;  %v3166_v6 = vmul.f32 0.0, %v5152_v5  ;;  %v3152_v28 = vadd.f32 %v3145_v59, %v3137_v36  ;;  %v3202_v4 = vmul.f32 %v5182_v12, %v5023_v30 }
 0x2f5   : > { %v2867_v36 = vrot.slane %v5209_v16, 1  ;;  %v5225_v59 = vrot.slane %v3197_v23, 2  ;;  %v3050_v30 = vmul.f32 %v5077_v39, %v4858_v47  ;;  %v3198_v23 = vmul.f32 %v5182_v12, %v4858_v47 }
 0x2f8   : > { %v5137_v50 = vld [vmem:[#allocation1] sm:$0xff] }
 0x2f9   : > { %2913 = vst [vmem:[#allocation1] ss:$9 sm:$0xff] %v2857_v13  ;;  %v3045_v13 = vadd.f32 %v3030_v41, %v3002_v53  ;;  %v2808_v53 = vmax.f32 %v2801_v45, 0.0  ;;  %v3179_v41 = vrot.slane %v3165_v61, 1 }
 0x2fa   : > { %2914 = vst [vmem:[#allocation1 + $0x1] ss:$9 sm:$0xff] %v2858_v25  ;;  %v3046_v25 = vadd.f32 %v3032_v49, %v3003_v3  ;;  %v2868_v49 = vrot.slane %v5209_v16, 2 }
 0x2fb   : > { %2915 = vst [vmem:[#allocation1 + $0x2] ss:$9 sm:$0xff] %v2859_v1  ;;  %v3082_v1 = vrot.slane %v3068_v29, 1 }
 0x2fc   : > { %2916 = vst [vmem:[#allocation1 + $0x3] ss:$9 sm:$0xff] %v2860_v10  ;;  %v3083_v10 = vrot.slane %v3069_v35, 1  ;;  %v3174_v35 = vrot.slane %v3160_v60, 1  ;;  %v3092_v60 = vadd.f32 %v3078_v0, %v5132_v22  ;;  %v5249_v22 = vperm.slane %v4867_v37, 1 }
 0x2fd   : > { %2917 = vst [vmem:[#allocation1 + $0x4] ss:$9 sm:$0xff] %v5123_v26 }
 0x2fe   : > { %2918 = vst [vmem:[#allocation1 + $0x5] ss:$9 sm:$0xff] %v2861_v21  ;;  %v3196_v21 = vmul.f32 %v5182_v12, %v4805_v46  ;;  %v3127_v46 = vsel %vm2567_vm6, %v3126_v20, %v5121_v17  ;;  %v3188_v14 = vadd.f32 %v3174_v35, %v3152_v28  ;;  %v2872_v35 = vrot.slane %v5209_v16, 6 }
 0x2ff   : > { %2919 = vst [vmem:[#allocation1 + $0x6] ss:$9 sm:$0xff] %v2862_v24  ;;  %v3060_v24 = vadd.f32 %v3053_v55, %v3045_v13  ;;  %v3129_v55 = vsel %vm2567_vm6, %v3128_v42, %v5121_v17  ;;  %v3102_v42 = vmul.f32 %v5087_v40, %v4858_v47 }
 0x300   : > { %2920 = vst [vmem:[#allocation1 + $0x7] ss:$9 sm:$0xff] %v2863_v58  ;;  %v3061_v58 = vadd.f32 %v3054_v52, %v3046_v25  ;;  %v3151_v52 = vmul.f32 0.0, %v5149_v51  ;;  %v2815_v25 = vmin.f32 %v2808_v53, 6.0 }
 0x301   : > { %v3096_v48 = vadd.f32 %v3082_v1, %v3060_v24  ;;  %v2869_v1 = vrot.slane %v5209_v16, 3  ;;  %v3120_v53 = vrot.slane %v3102_v42, 2 }
 0x302   : > { %v3097_v15 = vadd.f32 %v3083_v10, %v3061_v58  ;;  %v2870_v10 = vrot.slane %v5209_v16, 4  ;;  %v2822_v24 = vmul.f32 %v2815_v25, %v5165_v63  ;;  %v3065_v58 = vmul.f32 %v5084_v19, %v4858_v47 }
 0x303   : > { %v3142_v56 = vadd.f32 %v3127_v46, %v3096_v48  ;;  %v3213_v46 = vrot.slane %v3198_v23, 2 }
 0x304   : > { %v3143_v3 = vadd.f32 %v3129_v55, %v3097_v15  ;;  %v3079_v28 = vrot.slane %v3065_v58, 1  ;;  %v2972_v55 = vmul.f32 %v5026_v43, %v4858_v47  ;;  %v3103_v58 = vmul.f32 %v5087_v40, %v4904_v54 }
 0x305   : > { %v3157_v13 = vadd.f32 %v3150_v32, %v3142_v56 }
 0x306   : > { %v3158_v26 = vadd.f32 %v3151_v52, %v3143_v3  ;;  %v3008_v52 = vmul.f32 %v5054_v33, %v4858_v47 }
 0x307   : > { %v2921_v38 = vld [vmem:[#allocation1] sm:$0xff]  ;;  %v3193_v9 = vadd.f32 %v3179_v41, %v3157_v13 }
 0x308   : > { %v2950_v29 = vpack.c.bf16 %v2921_v38, %v5137_v50  ;;  %2922 = vst [vmem:[#allocation1] ss:$9 sm:$0xff] %v2864_v62  ;;  %v3210_v50 = vrot.slane %v3196_v21, 2  ;;  %v3180_v62 = vrot.slane %v3166_v6, 1  ;;  %v3146_v21 = vmul.f32 %v5149_v51, %v4858_v47 }
 0x309   : > { %2923 = vst [vmem:[#allocation1 + $0x1] ss:$9 sm:$0xff] %v2865_v31  ;;  %v3042_v31 = vadd.f32 %v5130_v11, %v5126_v34  ;;  %v3119_v34 = vsel %vm2567_vm6, %v3118_v8, %v5121_v17  ;;  %v3175_v38 = vrot.slane %v3161_v7, 1  ;;  %v2829_v8 = vmul.f32 0.16666667, %v2822_v24 }
 0x30a   : > { %3770 = vmatmul.msk.bf16.gmra.mxu2 %vm3404_vm8, %v2950_v29  ;;  %2924 = vst [vmem:[#allocation1 + $0x2] ss:$9 sm:$0xff] %v2866_v2  ;;  %v3221_v2 = vrot.slane %v3202_v4, 2  ;;  %v3212_v11 = vsel %vm2567_vm6, %v3210_v50, %v5225_v59  ;;  %v3194_v32 = vadd.f32 %v3180_v62, %v3158_v26  ;;  %v3138_v61 = vadd.f32 %v3119_v34, %v3092_v60 }
 0x30b   : > { %2925 = vst [vmem:[#allocation1 + $0x3] ss:$9 sm:$0xff] %v5209_v16  ;;  %v3231_v48 = vadd.f32 %v3212_v11, %v3188_v14  ;;  %v3057_v63 = vadd.f32 %v3050_v30, %v3042_v31  ;;  %v2871_v29 = vrot.slane %v5209_v16, 5  ;;  %v2873_v4 = vrot.slane %v2829_v8, 1 }
 0x30c   : > { %2926 = vst [vmem:[#allocation1 + $0x4] ss:$9 sm:$0xff] %v2867_v36  ;;  %v3222_v45 = vsel %vm2567_vm6, %v3221_v2, %v5225_v59  ;;  %v3237_v20 = vadd.f32 %v5225_v59, %v3194_v32  ;;  %v3153_v6 = vadd.f32 %v3146_v21, %v3138_v61  ;;  %v3214_v50 = vsel %vm2567_vm6, %v3213_v46, %v5225_v59 }
 0x30d   : > { %2927 = vst [vmem:[#allocation1 + $0x5] ss:$9 sm:$0xff] %v2868_v49  ;;  %v3236_v0 = vadd.f32 %v3222_v45, %v3193_v9  ;;  %v3239_v3 = vadd.f32 %v5249_v22, %v3231_v48  ;;  %v3093_v36 = vadd.f32 %v3079_v28, %v3057_v63  ;;  %v2986_v62 = vrot.slane %v2972_v55, 1 }
 0x30e   : > { %2928 = vst [vmem:[#allocation1 + $0x6] ss:$9 sm:$0xff] %v2869_v1  ;;  %v5263_v37 = vadd.f32 %v5249_v22, %v3237_v20  ;;  %v3189_v41 = vadd.f32 %v3175_v38, %v3153_v6  ;;  %v2874_v49 = vrot.slane %v2829_v8, 2  ;;  %v3121_v31 = vsel %vm2567_vm6, %v3120_v53, %v5121_v17 }
 0x30f   : > { %2929 = vst [vmem:[#allocation1 + $0x7] ss:$9 sm:$0xff] %v2870_v10  ;;  %v5260_v15 = vadd.f32 %v5249_v22, %v3236_v0  ;;  %v3246_v30 = vadd.f32 3.0, %v3239_v3  ;;  %v3025_v13 = vrot.slane %v3008_v52, 2  ;;  %v2875_v25 = vrot.slane %v2829_v8, 3 }
 0x310   : > { %v3147_v16 = vmul.f32 %v5149_v51, %v4904_v54  ;;  %v3162_v1 = vmul.f32 %v5152_v5, %v4904_v54  ;;  %v2957_v26 = vmul.f32 %v5050_v27, %v4858_v47  ;;  %v2876_v2 = vrot.slane %v2829_v8, 4 }
 0x311   : > { %v3199_v10 = vmul.f32 %v5182_v12, %v4904_v54  ;;  %v3232_v60 = vadd.f32 %v3214_v50, %v3189_v41  ;;  %v2877_v14 = vrot.slane %v2829_v8, 5  ;;  %v3139_v9 = vadd.f32 %v3121_v31, %v3093_v36 }
 0x312   : > { %v3000_v34 = vadd.f32 %v2986_v62, %v2957_v26  ;;  %v3253_v11 = vmax.f32 %v3246_v30, 0.0  ;;  %v3026_v32 = vsel %vm2567_vm6, %v3025_v13, %v5081_v57  ;;  %v3176_v21 = vrot.slane %v3162_v1, 1 }
 0x313   : > { %v3154_v45 = vadd.f32 %v3147_v16, %v3139_v9  ;;  %v3051_v47 = vmul.f32 %v5077_v39, %v4904_v54  ;;  %v3066_v7 = vmul.f32 %v5084_v19, %v4904_v54  ;;  %v3215_v0 = vrot.slane %v3199_v10, 2 }
 0x314   : > { %v3240_v24 = vadd.f32 %v5249_v22, %v3232_v60  ;;  %v3043_v23 = vadd.f32 %v3026_v32, %v3000_v34  ;;  %v3260_v20 = vmin.f32 %v3253_v11, 6.0  ;;  %v2973_v61 = vmul.f32 %v5026_v43, %v4904_v54 }
 0x315   : > { %v3190_v42 = vadd.f32 %v3176_v21, %v3154_v45  ;;  %v3080_v63 = vrot.slane %v3066_v7, 1  ;;  %v3216_v6 = vsel %vm2567_vm6, %v3215_v0, %v5225_v59  ;;  %v3009_v28 = vmul.f32 %v5054_v33, %v4904_v54 }
 0x316   : > { %v2930_v56 = vld [vmem:[#allocation1] sm:$0xff]  ;;  %v3058_v48 = vadd.f32 %v3051_v47, %v3043_v23  ;;  %v3247_v38 = vadd.f32 3.0, %v3240_v24  ;;  %v3122_v46 = vrot.slane %v3103_v58, 2  ;;  %v2878_v55 = vrot.slane %v2829_v8, 6 }
 0x317   : > { %2931 = vst [vmem:[#allocation1] ss:$9 sm:$0xff] %v2871_v29  ;;  %v3267_v53 = vmul.f32 %v3260_v20, %v3239_v3  ;;  %v2987_v41 = vrot.slane %v2973_v61, 1  ;;  %v3027_v43 = vrot.slane %v3009_v28, 2  ;;  %v2958_v62 = vmul.f32 %v5050_v27, %v4904_v54 }
 0x318   : > { %2932 = vst [vmem:[#allocation1 + $0x1] ss:$9 sm:$0xff] %v2872_v35  ;;  %v3233_v35 = vadd.f32 %v3216_v6, %v3190_v42  ;;  %v3254_v36 = vmax.f32 %v3247_v38, 0.0  ;;  %v3123_v50 = vsel %vm2567_vm6, %v3122_v46, %v5121_v17  ;;  %v3148_v33 = vmul.f32 %v5149_v51, %v4946_v18 }
 0x319   : > { %2933 = vst [vmem:[#allocation1 + $0x2] ss:$9 sm:$0xff] %v2829_v8  ;;  %v3163_v8 = vmul.f32 %v5152_v5, %v4946_v18  ;;  %v3274_v3 = vmul.f32 0.16666667, %v3267_v53  ;;  %v3001_v31 = vadd.f32 %v2987_v41, %v2958_v62  ;;  %v3052_v54 = vmul.f32 %v5077_v39, %v4946_v18 }
 0x31a   : > { %2934 = vst [vmem:[#allocation1 + $0x3] ss:$9 sm:$0xff] %v2873_v4  ;;  %v3094_v4 = vadd.f32 %v3080_v63, %v3058_v48  ;;  %v3261_v13 = vmin.f32 %v3254_v36, 6.0  ;;  %v3067_v27 = vmul.f32 %v5084_v19, %v4946_v18  ;;  %v3104_v10 = vmul.f32 %v5087_v40, %v4946_v18 }
 0x31b   : > { %2935 = vst [vmem:[#allocation1 + $0x4] ss:$9 sm:$0xff] %v2874_v49  ;;  %v3241_v49 = vadd.f32 %v5249_v22, %v3233_v35  ;;  %v3177_v1 = vrot.slane %v3163_v8, 1  ;;  %v3289_v9 = vrot.slane %v3274_v3, 2  ;;  %v3291_v32 = vrot.slane %v3274_v3, 4 }
 0x31c   : > { %2936 = vst [vmem:[#allocation1 + $0x5] ss:$9 sm:$0xff] %v2875_v25  ;;  %v3140_v30 = vadd.f32 %v3123_v50, %v3094_v4  ;;  %v3028_v25 = vsel %vm2567_vm6, %v3027_v43, %v5081_v57  ;;  %v3268_v11 = vmul.f32 %v3261_v13, %v3240_v24  ;;  %v3290_v57 = vrot.slane %v3274_v3, 3 }
 0x31d   : > { %2937 = vst [vmem:[#allocation1 + $0x6] ss:$9 sm:$0xff] %v2876_v2  ;;  %v3288_v2 = vrot.slane %v3274_v3, 1  ;;  %v3044_v34 = vadd.f32 %v3028_v25, %v3001_v31  ;;  %v3081_v45 = vrot.slane %v3067_v27, 1  ;;  %v3292_v21 = vrot.slane %v3274_v3, 5 }
 0x31e   : > { %2938 = vst [vmem:[#allocation1 + $0x7] ss:$9 sm:$0xff] %v2877_v14  ;;  %v3155_v16 = vadd.f32 %v3148_v33, %v3140_v30  ;;  %v3248_v14 = vadd.f32 3.0, %v3241_v49  ;;  %v3124_v47 = vrot.slane %v3104_v10, 2  ;;  %v3293_v40 = vrot.slane %v3274_v3, 6 }
 0x31f   : > { %v3059_v39 = vadd.f32 %v3052_v54, %v3044_v34  ;;  %v3275_v0 = vmul.f32 0.16666667, %v3268_v11  ;;  %v3149_v61 = vmul.f32 %v5149_v51, %v4983_v44  ;;  %v3164_v48 = vmul.f32 %v5152_v5, %v4983_v44 }
 0x320   : > { %v3191_v19 = vadd.f32 %v3177_v1, %v3155_v16  ;;  %v3125_v23 = vsel %vm2567_vm6, %v3124_v47, %v5121_v17  ;;  %v3201_v63 = vmul.f32 %v5182_v12, %v4983_v44  ;;  %v3251_v10 = vadd.f32 3.0, %v5260_v15 }
 0x321   : > { %v3095_v24 = vadd.f32 %v3081_v45, %v3059_v39  ;;  %v3294_v17 = vrot.slane %v3275_v0, 1  ;;  %v3295_v53 = vrot.slane %v3275_v0, 2  ;;  %v3296_v51 = vrot.slane %v3275_v0, 3 }
 0x322   : > { %v3297_v5 = vrot.slane %v3275_v0, 4  ;;  %v3298_v44 = vrot.slane %v3275_v0, 5  ;;  %v3299_v36 = vrot.slane %v3275_v0, 6 }
 0x323   : > { %v3141_v6 = vadd.f32 %v3125_v23, %v3095_v24 }
 0x325   : > { %v2939_v29 = vld [vmem:[#allocation1] sm:$0xff]  ;;  %v3156_v46 = vadd.f32 %v3149_v61, %v3141_v6 }
 0x326   : > { %v2951_v52 = vpack.c.bf16 %v2939_v29, %v2930_v56  ;;  %2940 = vst [vmem:[#allocation1] ss:$9 sm:$0xff] %v2878_v55  ;;  %v3200_v56 = vmul.f32 %v5182_v12, %v4946_v18  ;;  %v3255_v18 = vmax.f32 %v3248_v14, 0.0  ;;  %v3178_v55 = vrot.slane %v3164_v48, 1 }
 0x327   : > { %v3219_v29 = vrot.slane %v3201_v63, 2 }
 0x328   : > { %3771 = vmatmul.msk.bf16.gmra.mxu2 %vm3404_vm8, %v2951_v52  ;;  %v3217_v60 = vrot.slane %v3200_v56, 2  ;;  %v3262_v42 = vmin.f32 %v3255_v18, 6.0  ;;  %v3192_v4 = vadd.f32 %v3178_v55, %v3156_v46 }
 0x329   : > { %v3220_v12 = vsel %vm2567_vm6, %v3219_v29, %v5225_v59 }
 0x32a   : > { %v3218_v7 = vsel %vm2567_vm6, %v3217_v60, %v5225_v59  ;;  %v3269_v28 = vmul.f32 %v3262_v42, %v3241_v49  ;;  %v3235_v62 = vadd.f32 %v3220_v12, %v3192_v4 }
 0x32b   : > { %v3234_v58 = vadd.f32 %v3218_v7, %v3191_v19  ;;  %v3252_v7 = vadd.f32 3.0, %v5263_v37 }
 0x32c   : > { %v3276_v41 = vmul.f32 0.16666667, %v3269_v28  ;;  %v3243_v8 = vadd.f32 %v5249_v22, %v3235_v62 }
 0x32d   : > { %v2941_v26 = vld [vmem:[#allocation1] sm:$0xff]  ;;  %v3242_v38 = vadd.f32 %v5249_v22, %v3234_v58  ;;  %v3259_v23 = vmax.f32 %v3252_v7, 0.0 }
 0x32e   : > { %3330 = vst [vmem:[#allocation1] ss:$9 sm:$0xff] %v3274_v3  ;;  %v2952_v20 = vpack.c.bf16 %v2941_v26, %v2941_v26  ;;  %v3300_v50 = vrot.slane %v3276_v41, 1  ;;  %v3250_v56 = vadd.f32 3.0, %v3243_v8  ;;  %v3301_v49 = vrot.slane %v3276_v41, 2 }
 0x32f   : > { %3332 = vst [vmem:[#allocation1 + $0x1] ss:$9 sm:$0xff] %v3288_v2  ;;  %v3249_v35 = vadd.f32 3.0, %v3242_v38  ;;  %v3302_v30 = vrot.slane %v3276_v41, 3  ;;  %v3303_v59 = vrot.slane %v3276_v41, 4  ;;  %v3304_v54 = vrot.slane %v3276_v41, 5 }
 0x330   : > { %3334 = vst [vmem:[#allocation1 + $0x2] ss:$9 sm:$0xff] %v3289_v9  ;;  %v3257_v27 = vmax.f32 %v3250_v56, 0.0  ;;  %v3305_v16 = vrot.slane %v3276_v41, 6  ;;  %v3266_v48 = vmin.f32 %v3259_v23, 6.0 }
 0x331   : > { %3336 = vst [vmem:[#allocation1 + $0x3] ss:$9 sm:$0xff] %v3290_v57  ;;  %v3256_v43 = vmax.f32 %v3249_v35, 0.0 }
 0x332   : > { %3338 = vst [vmem:[#allocation1 + $0x4] ss:$9 sm:$0xff] %v3291_v32  ;;  %v3264_v26 = vmin.f32 %v3257_v27, 6.0  ;;  %v3258_v32 = vmax.f32 %v3251_v10, 0.0  ;;  %v3273_v6 = vmul.f32 %v3266_v48, %v5263_v37 }
 0x333   : > { %3340 = vst [vmem:[#allocation1 + $0x5] ss:$9 sm:$0xff] %v3292_v21  ;;  %v3263_v33 = vmin.f32 %v3256_v43, 6.0 }
 0x334   : > { %3342 = vst [vmem:[#allocation1 + $0x6] ss:$9 sm:$0xff] %v3293_v40  ;;  %v3271_v2 = vmul.f32 %v3264_v26, %v3243_v8  ;;  %v3265_v21 = vmin.f32 %v3258_v32, 6.0 }
 0x335   : > { %3344 = vst [vmem:[#allocation1 + $0x7] ss:$9 sm:$0xff] %v3275_v0  ;;  %v3270_v3 = vmul.f32 %v3263_v33, %v3242_v38  ;;  %v3280_v38 = vmul.f32 0.16666667, %v3273_v6 }
 0x336   : > { %v3278_v14 = vmul.f32 0.16666667, %v3271_v2  ;;  %v3272_v47 = vmul.f32 %v3265_v21, %v5260_v15 }
 0x337   : > { %v3277_v25 = vmul.f32 0.16666667, %v3270_v3  ;;  %v3325_v29 = vrot.slane %v3280_v38, 2  ;;  %v3328_v35 = vrot.slane %v3280_v38, 5  ;;  %v3796_v3 = vld [vmem:[%s5381_s10] ss:$0 sm:$0xff] }
 0x338   : > { %3772 = vmatmul.msk.bf16.gmra.mxu2 %vm3404_vm8, %v2952_v20  ;;  %v3312_v39 = vrot.slane %v3278_v14, 1  ;;  %v3313_v45 = vrot.slane %v3278_v14, 2  ;;  %v3314_v19 = vrot.slane %v3278_v14, 3  ;;  %v3279_v18 = vmul.f32 0.16666667, %v3272_v47 }
 0x339   : > { %v3306_v1 = vrot.slane %v3277_v25, 1  ;;  %v3307_v22 = vrot.slane %v3277_v25, 2  ;;  %v3308_v60 = vrot.slane %v3277_v25, 3  ;;  %v3309_v9 = vrot.slane %v3277_v25, 4 }
 0x33a   : > { %v3310_v11 = vrot.slane %v3277_v25, 5  ;;  %v3311_v57 = vrot.slane %v3277_v25, 6  ;;  %v3315_v40 = vrot.slane %v3278_v14, 4  ;;  %v3316_v24 = vrot.slane %v3278_v14, 5 }
 0x33b   : > { %v3317_v20 = vrot.slane %v3278_v14, 6  ;;  %v3318_v42 = vrot.slane %v3279_v18, 1  ;;  %v3319_v61 = vrot.slane %v3279_v18, 2  ;;  %v3320_v63 = vrot.slane %v3279_v18, 3 }
 0x33c   : > { %v3345_v52 = vld [vmem:[#allocation1] sm:$0xff]  ;;  %v3321_v15 = vrot.slane %v3279_v18, 4  ;;  %v3322_v28 = vrot.slane %v3279_v18, 5  ;;  %v3323_v46 = vrot.slane %v3279_v18, 6 }
 0x33d   : > { %3346 = vst [vmem:[#allocation1] ss:$9 sm:$0xff] %v3294_v17  ;;  %v3324_v17 = vrot.slane %v3280_v38, 1 }
 0x33e   : > { %3347 = vst [vmem:[#allocation1 + $0x1] ss:$9 sm:$0xff] %v3295_v53  ;;  %v3326_v53 = vrot.slane %v3280_v38, 3 }
 0x33f   : > { %3348 = vst [vmem:[#allocation1 + $0x2] ss:$9 sm:$0xff] %v3296_v51 }
 0x340   : > { %3349 = vst [vmem:[#allocation1 + $0x3] ss:$9 sm:$0xff] %v3297_v5 }
 0x341   : > { %3350 = vst [vmem:[#allocation1 + $0x4] ss:$9 sm:$0xff] %v3298_v44 }
 0x342   : > { %3351 = vst [vmem:[#allocation1 + $0x5] ss:$9 sm:$0xff] %v3299_v36 }
 0x343   : > { %3352 = vst [vmem:[#allocation1 + $0x6] ss:$9 sm:$0xff] %v3276_v41  ;;  %v3329_v41 = vrot.slane %v3280_v38, 6 }
 0x344   : > { %3353 = vst [vmem:[#allocation1 + $0x7] ss:$9 sm:$0xff] %v3300_v50 }
 0x34b   : > { %v3354_v31 = vld [vmem:[#allocation1] sm:$0xff] }
 0x34c   : > { %v3400_v13 = vpack.c.bf16 %v3354_v31, %v3345_v52  ;;  %3355 = vst [vmem:[#allocation1] ss:$9 sm:$0xff] %v3301_v49  ;;  %v3327_v52 = vrot.slane %v3280_v38, 4  ;;  %v3797_v31 = vld [vmem:[%s5382_s11] ss:$0 sm:$0xff] }
 0x34d   : > { %3356 = vst [vmem:[#allocation1 + $0x1] ss:$9 sm:$0xff] %v3302_v30 }
 0x34e   : > { %3765 = vmatmul.msk.bf16.vlgmr.msra.gmra.mxu1 %vm3404_vm8, %v3400_v13  ;;  %3357 = vst [vmem:[#allocation1 + $0x2] ss:$9 sm:$0xff] %v3303_v59 }
 0x34f   : > { %3358 = vst [vmem:[#allocation1 + $0x3] ss:$9 sm:$0xff] %v3304_v54 }
 0x350   : > { %3359 = vst [vmem:[#allocation1 + $0x4] ss:$9 sm:$0xff] %v3305_v16 }
 0x351   : > { %3360 = vst [vmem:[#allocation1 + $0x5] ss:$9 sm:$0xff] %v3277_v25 }
 0x352   : > { %3361 = vst [vmem:[#allocation1 + $0x6] ss:$9 sm:$0xff] %v3306_v1 }
 0x353   : > { %3362 = vst [vmem:[#allocation1 + $0x7] ss:$9 sm:$0xff] %v3307_v22 }
 0x35a   : > { %v3363_v34 = vld [vmem:[#allocation1] sm:$0xff] }
 0x35b   : > { %3364 = vst [vmem:[#allocation1] ss:$9 sm:$0xff] %v3308_v60 }
 0x35c   : > { %3365 = vst [vmem:[#allocation1 + $0x1] ss:$9 sm:$0xff] %v3309_v9 }
 0x35d   : > { %3366 = vst [vmem:[#allocation1 + $0x2] ss:$9 sm:$0xff] %v3310_v11 }
 0x35e   : > { %3367 = vst [vmem:[#allocation1 + $0x3] ss:$9 sm:$0xff] %v3311_v57 }
 0x35f   : > { %3368 = vst [vmem:[#allocation1 + $0x4] ss:$9 sm:$0xff] %v3278_v14 }
 0x360   : > { %3369 = vst [vmem:[#allocation1 + $0x5] ss:$9 sm:$0xff] %v3312_v39 }
 0x361   : > { %3370 = vst [vmem:[#allocation1 + $0x6] ss:$9 sm:$0xff] %v3313_v45 }
 0x362   : > { %3371 = vst [vmem:[#allocation1 + $0x7] ss:$9 sm:$0xff] %v3314_v19 }
 0x369   : > { %v3372_v0 = vld [vmem:[#allocation1] sm:$0xff] }
 0x36a   : > { %v3401_v58 = vpack.c.bf16 %v3372_v0, %v3363_v34  ;;  %3373 = vst [vmem:[#allocation1] ss:$9 sm:$0xff] %v3315_v40 }
 0x36b   : > { %3374 = vst [vmem:[#allocation1 + $0x1] ss:$9 sm:$0xff] %v3316_v24 }
 0x36c   : > { %3766 = vmatmul.msk.bf16.gmra.mxu1 %vm3404_vm8, %v3401_v58  ;;  %3375 = vst [vmem:[#allocation1 + $0x2] ss:$9 sm:$0xff] %v3317_v20 }
 0x36d   : > { %3376 = vst [vmem:[#allocation1 + $0x3] ss:$9 sm:$0xff] %v3279_v18 }
 0x36e   : > { %3377 = vst [vmem:[#allocation1 + $0x4] ss:$9 sm:$0xff] %v3318_v42  ;;  %v3531_v42 = vld [vmem:[%s5352_s14 + $0x18] sm:$0x1] }
 0x36f   : > { %3378 = vst [vmem:[#allocation1 + $0x5] ss:$9 sm:$0xff] %v3319_v61  ;;  %v3473_v51 = vpop.f32.mrf.mxu2 }
 0x370   : > { %3379 = vst [vmem:[#allocation1 + $0x6] ss:$9 sm:$0xff] %v3320_v63 }
 0x371   : > { %3380 = vst [vmem:[#allocation1 + $0x7] ss:$9 sm:$0xff] %v3321_v15 }
 0x377   : > { %v3475_v4 = vpop.f32.mrf.mxu2 }
 0x378   : > { %v3381_v55 = vld [vmem:[#allocation1] sm:$0xff] }
 0x379   : > { %3382 = vst [vmem:[#allocation1] ss:$9 sm:$0xff] %v3322_v28 }
 0x37a   : > { %3383 = vst [vmem:[#allocation1 + $0x1] ss:$9 sm:$0xff] %v3323_v46 }
 0x37b   : > { %3384 = vst [vmem:[#allocation1 + $0x2] ss:$9 sm:$0xff] %v3280_v38 }
 0x37c   : > { %3385 = vst [vmem:[#allocation1 + $0x3] ss:$9 sm:$0xff] %v3324_v17 }
 0x37d   : > { %3386 = vst [vmem:[#allocation1 + $0x4] ss:$9 sm:$0xff] %v3325_v29 }
 0x37e   : > { %3387 = vst [vmem:[#allocation1 + $0x5] ss:$9 sm:$0xff] %v3326_v53 }
 0x37f   : > { %3388 = vst [vmem:[#allocation1 + $0x6] ss:$9 sm:$0xff] %v3327_v52 }
 0x380   : > { %3389 = vst [vmem:[#allocation1 + $0x7] ss:$9 sm:$0xff] %v3328_v35 }
 0x387   : > { %v3390_v37 = vld [vmem:[#allocation1] sm:$0xff] }
 0x388   : > { %v3402_v5 = vpack.c.bf16 %v3390_v37, %v3381_v55  ;;  %3391 = vst [vmem:[#allocation1] ss:$9 sm:$0xff] %v3329_v41 }
 0x38a   : > { %3767 = vmatmul.msk.bf16.gmra.mxu1 %vm3404_vm8, %v3402_v5 }
 0x38d   : > { %v3478_v12 = vpop.f32.mrf.mxu2 }
 0x38f   : > { %v3392_v44 = vld [vmem:[#allocation1] sm:$0xff] }
 0x390   : > { %v3403_v36 = vpack.c.bf16 %v3392_v44, %v3392_v44 }
 0x395   : > { %v3480_v43 = vpop.f32.mrf.mxu2 }
 0x39a   : > { %3768 = vmatmul.msk.bf16.gmra.mxu1 %vm3404_vm8, %v3403_v36 }
 0x3ab   : > { %v3483_v50 = vpop.f32.mrf.mxu2 }
 0x3b3   : > { %v3485_v62 = vpop.f32.mrf.mxu2 }
 0x3bb   : > { %v3488_v33 = vpop.f32.mrf.mxu2 }
 0x3c3   : > { %v3490_v8 = vpop.f32.mrf.mxu2 }
 0x3cb   : > { %v3430_v56 = vpop.f32.mrf.mxu1 }
 0x3cc   : > { %v3474_v49 = vadd.f32 %v3473_v51, %v3430_v56 }
 0x3ce   : > { %v3496_v30 = vmul.f32 %v3796_v3, %v3474_v49 }
 0x3d0   : > { %v3507_v13 = vadd.f32 %v3797_v31, %v3496_v30 }
 0x3d2   : > { %v3514_v25 = vpack.c.bf16 %v3507_v13, %v3507_v13 }
 0x3d3   : > { %v3432_v59 = vpop.f32.mrf.mxu1 }
 0x3d4   : > { %3522 = vst.msk [vmem:[%s5352_s14] sm:$0xf] %vm3521_vm9, %v3514_v25  ;;  %v3476_v54 = vadd.f32 %v3475_v4, %v3432_v59 }
 0x3d6   : > { %v3497_v27 = vmul.f32 %v3796_v3, %v3476_v54 }
 0x3d8   : > { %v3508_v16 = vadd.f32 %v3797_v31, %v3497_v27 }
 0x3da   : > { %v3515_v1 = vpack.c.bf16 %v3508_v16, %v3508_v16 }
 0x3dc   : > { %3523 = vst.msk [vmem:[%s5352_s14 + $0x4] sm:$0xf] %vm3521_vm9, %v3515_v1 }
 0x3e9   : > { %v3435_v22 = vpop.f32.mrf.mxu1 }
 0x3ea   : > { %v3479_v26 = vadd.f32 %v3478_v12, %v3435_v22 }
 0x3ec   : > { %v3498_v2 = vmul.f32 %v3796_v3, %v3479_v26 }
 0x3ee   : > { %v3509_v10 = vadd.f32 %v3797_v31, %v3498_v2 }
 0x3f0   : > { %v3516_v60 = vpack.c.bf16 %v3509_v10, %v3509_v10 }
 0x3f1   : > { %v3437_v14 = vpop.f32.mrf.mxu1 }
 0x3f2   : > { %3524 = vst.msk [vmem:[%s5352_s14 + $0x8] sm:$0xf] %vm3521_vm9, %v3516_v60  ;;  %v3481_v9 = vadd.f32 %v3480_v43, %v3437_v14 }
 0x3f4   : > { %v3499_v34 = vmul.f32 %v3796_v3, %v3481_v9 }
 0x3f6   : > { %v3510_v11 = vadd.f32 %v3797_v31, %v3499_v34 }
 0x3f8   : > { %v3517_v57 = vpack.c.bf16 %v3510_v11, %v3510_v11 }
 0x3fa   : > { %3525 = vst.msk [vmem:[%s5352_s14 + $0xc] sm:$0xf] %vm3521_vm9, %v3517_v57 }
 0x407   : > { %v3440_v32 = vpop.f32.mrf.mxu1 }
 0x408   : > { %v3484_v39 = vadd.f32 %v3483_v50, %v3440_v32 }
 0x40a   : > { %v3500_v45 = vmul.f32 %v3796_v3, %v3484_v39 }
 0x40c   : > { %v3511_v19 = vadd.f32 %v3797_v31, %v3500_v45 }
 0x40e   : > { %v3518_v21 = vpack.c.bf16 %v3511_v19, %v3511_v19 }
 0x40f   : > { %v3442_v47 = vpop.f32.mrf.mxu1 }
 0x410   : > { %3526 = vst.msk [vmem:[%s5352_s14 + $0x10] sm:$0xf] %vm3521_vm9, %v3518_v21  ;;  %v3486_v7 = vadd.f32 %v3485_v62, %v3442_v47 }
 0x412   : > { %v3501_v18 = vmul.f32 %v3796_v3, %v3486_v7 }
 0x414   : > { %v3512_v40 = vadd.f32 %v3797_v31, %v3501_v18 }
 0x416   : > { %v3519_v0 = vpack.c.bf16 %v3512_v40, %v3512_v40 }
 0x417   : > { %v3445_v24 = vpop.f32.mrf.mxu1 }
 0x418   : > { %3527 = vst.msk [vmem:[%s5352_s14 + $0x14] sm:$0xf] %vm3521_vm9, %v3519_v0  ;;  %v3489_v58 = vadd.f32 %v3488_v33, %v3445_v24 }
 0x41a   : > { %v3502_v23 = vmul.f32 %v3796_v3, %v3489_v58 }
 0x41c   : > { %v3513_v20 = vadd.f32 %v3797_v31, %v3502_v23 }
 0x41e   : > { %v3520_v61 = vpack.c.bf16 %v3513_v20, %v3513_v20 }
 0x41f   : > { %v3447_v48 = vpop.f32.mrf.mxu1 }
 0x420   : > { %v3532_v63 = vsel %vm3530_vm12, %v3520_v61, %v3531_v42 }
 0x421   : > { %3533 = vst [vmem:[%s5352_s14 + $0x18] sm:$0x1] %v3532_v63 }
 0x422 PF: > { %s22_s21 = sadd.s32 1, %s3804_s21  }
 0x423   : > { %p19_p4 = scmp.ge.s32.totalorder %s22_s21, 4  }
 0x425   :  { %21 = sbr.rel (!%p19_p4) target bundleno = 1 (0x1), region = 191 }

</bundles_post_ra>
